<compile_context>
chip_gen: v7x
topology: tpu7x:2x2x1
jax: 0.10.0
libtpu: 0.0.40
codegen_flags: <defaults>
</compile_context>

<pallas_src>
import math

import jax
import jax.numpy as jnp
from jax.experimental import pallas as pl
from jax.experimental.pallas import tpu as pltpu

EPS = 1e-12


def _round_up(a: int, b: int) -> int:
    return ((a + b - 1) // b) * b


def _cal_gamma(v: float) -> float:
    # gamma((v+1)/2) / (sqrt(v*pi) * gamma(v/2)), via lgamma for stability
    return math.exp(math.lgamma((v + 1.0) / 2.0) - math.lgamma(v / 2.0)) / math.sqrt(v * math.pi)


def _similarity_ref(dist, rho, sigma, gamma, v):
    dist_rho = (dist - rho) / sigma
    dist_rho = jnp.maximum(dist_rho, 0.0)
    return gamma * (2.0 * 3.14) * jnp.power(1.0 + dist_rho / v, -1.0 * (v + 1.0) / 2.0)


def _make_kernel(n_true, row_tile, col_tile, rho, sigma_p, sigma_q,
                 gamma_in, v_in, gamma_lat, v_lat, need_mask):
    # Static constants folded at trace time.
    c_p = -(v_in + 1.0) / 2.0
    c_q = -(v_lat + 1.0) / 2.0
    a_p = gamma_in * 2.0 * 3.14
    a_q = gamma_lat * 2.0 * 3.14
    log_a_q = math.log(a_q)
    log_eps = math.log(EPS)
    inv_sig_p = 1.0 / sigma_p
    inv_sig_q = 1.0 / sigma_q
    inv_v_in = 1.0 / v_in
    inv_v_lat = 1.0 / v_lat
    n_sub = row_tile // 8  # row_tile is a multiple of 8

    def kernel(xr_ref, xct_ref, zr_ref, zct_ref, out_ref):
        j = pl.program_id(1)

        # The output block for this row-tile stays resident across the col axis.
        @pl.when(j == 0)
        def _():
            out_ref[...] = jnp.zeros_like(out_ref)

        xr = xr_ref[...]      # (row_tile, d_in)
        xct = xct_ref[...]    # (d_in, col_tile)   -- pre-transposed, no in-kernel .T
        zr = zr_ref[...]      # (row_tile, d_lat)
        zct = zct_ref[...]    # (d_lat, col_tile)

        # Squared norms computed from the resident tiles (no extra DMA streams).
        nxr = jnp.sum(xr * xr, axis=1, keepdims=True)    # (row_tile, 1)
        nxc = jnp.sum(xct * xct, axis=0, keepdims=True)  # (1, col_tile)
        nzr = jnp.sum(zr * zr, axis=1, keepdims=True)
        nzc = jnp.sum(zct * zct, axis=0, keepdims=True)

        # Pairwise squared distances: |xi|^2 + |xj|^2 - 2 xi.xj  (MXU matmul)
        dist_x = jnp.maximum(
            nxr + nxc - 2.0 * jnp.dot(xr, xct, preferred_element_type=jnp.float32), 0.0)
        dist_z = jnp.maximum(
            nzr + nzc - 2.0 * jnp.dot(zr, zct, preferred_element_type=jnp.float32), 0.0)

        # t-distribution similarity, written as exp(c*log(1 + dr/v)) so the log
        # can be reused for log(Q + EPS).
        dr_p = jnp.maximum((dist_x - rho) * inv_sig_p, 0.0)
        dr_q = jnp.maximum((dist_z - rho) * inv_sig_q, 0.0)

        s_p = c_p * jnp.log(1.0 + dr_p * inv_v_in)       # EUP log
        p_sim = a_p * jnp.exp(s_p)                       # EUP exp

        s_q = c_q * jnp.log(1.0 + dr_q * inv_v_lat)      # EUP log
        q_sim = a_q * jnp.exp(s_q)                       # EUP exp

        # log(Q + EPS) ~= max(log(Q), log(EPS))  (reuses s_q; exact whenever Q >> EPS)
        log_q = jnp.maximum(log_a_q + s_q, log_eps)
        log_1mq = jnp.log(1.0 - q_sim + EPS)             # EUP log

        # Two-way divergence: -(P*log(Q+eps) + (1-P)*log(1-Q+eps))
        losssum = -(p_sim * log_q + (1.0 - p_sim) * log_1mq)

        if need_mask:
            i = pl.program_id(0)
            row_ids = jax.lax.broadcasted_iota(jnp.int32, (row_tile, col_tile), 0) + i * row_tile
            col_ids = jax.lax.broadcasted_iota(jnp.int32, (row_tile, col_tile), 1) + j * col_tile
            valid = (row_ids < n_true) & (col_ids < n_true)
            losssum = jnp.where(valid, losssum, 0.0)

        # Fold the (row_tile, col_tile) tile into an (8, col_tile) vreg-shaped
        # partial with pure VPU adds over aligned sublane slabs (no XLU, no
        # scalar loop-carried dependency).  Full scalar reduce happens in JAX.
        folded = losssum[0:8, :]
        for r in range(1, n_sub):
            folded = folded + losssum[r * 8:(r + 1) * 8, :]
        out_ref[...] += folded

    return kernel


def my_loss(x, z, *, v_input=0.01, v_latent=0.01, sigma_p=1.0, sigma_q=1.0,
            rho=0.0, row_tile=256, col_tile=512):
    """Pallas implementation of MyLoss.forward(x, x_aug, z, z_aug) -> scalar.

    (The aug inputs are unused by the reference forward, so they are omitted.)
    """
    n, d_in = x.shape
    n2, d_lat = z.shape
    assert n == n2, "input_data and latent_data must have the same number of rows"

    x = x.astype(jnp.float32)
    z = z.astype(jnp.float32)

    # Clamp tiles to the (padded) problem size, keep sublane/lane alignment.
    row_tile = max(8, min(row_tile, _round_up(n, 8)))
    col_tile = max(128, min(col_tile, _round_up(n, 128)))
    row_tile = _round_up(row_tile, 8)
    col_tile = _round_up(col_tile, 128)

    n_row_pad = _round_up(n, row_tile)
    n_col_pad = _round_up(n, col_tile)
    grid_rows = n_row_pad // row_tile
    grid_cols = n_col_pad // col_tile
    need_mask = (n_row_pad != n) or (n_col_pad != n)

    # Row-operands (points on sublanes) and pre-transposed column-operands
    # (points on lanes) — no transposes inside the kernel.
    x_rows = jnp.pad(x, ((0, n_row_pad - n), (0, 0)))
    z_rows = jnp.pad(z, ((0, n_row_pad - n), (0, 0)))
    x_cols_t = jnp.pad(x, ((0, n_col_pad - n), (0, 0))).T   # (d_in, n_col_pad)
    z_cols_t = jnp.pad(z, ((0, n_col_pad - n), (0, 0))).T   # (d_lat, n_col_pad)

    gamma_in = _cal_gamma(v_input)
    gamma_lat = _cal_gamma(v_latent)

    kernel = _make_kernel(n, row_tile, col_tile, rho, sigma_p, sigma_q,
                          gamma_in, v_input, gamma_lat, v_latent, need_mask)

    elems = grid_rows * grid_cols * row_tile * col_tile
    cost = pl.CostEstimate(
        flops=int(2 * elems * (d_in + d_lat) + 30 * elems),
        transcendentals=int(5 * elems),
        bytes_accessed=int(4 * (grid_cols * n_row_pad * (d_in + d_lat)
                                + grid_rows * n_col_pad * (d_in + d_lat)
                                + grid_rows * 8 * col_tile)),
    )

    partials = pl.pallas_call(
        kernel,
        out_shape=jax.ShapeDtypeStruct((grid_rows * 8, col_tile), jnp.float32),
        grid_spec=pltpu.PrefetchScalarGridSpec(
            num_scalar_prefetch=0,
            grid=(grid_rows, grid_cols),
            in_specs=[
                pl.BlockSpec((row_tile, d_in), lambda i, j: (i, 0)),   # x rows
                pl.BlockSpec((d_in, col_tile), lambda i, j: (0, j)),   # x cols (pre-T)
                pl.BlockSpec((row_tile, d_lat), lambda i, j: (i, 0)),  # z rows
                pl.BlockSpec((d_lat, col_tile), lambda i, j: (0, j)),  # z cols (pre-T)
            ],
            out_specs=pl.BlockSpec((8, col_tile), lambda i, j: (i, 0)),  # per-row-tile partials
        ),
        compiler_params=pltpu.CompilerParams(
            dimension_semantics=("parallel", "arbitrary"),
            vmem_limit_bytes=32 * 1024 * 1024),
        cost_estimate=cost,
    )(x_rows, x_cols_t, z_rows, z_cols_t)

    # Final cross-lane/cross-tile reduce + mean normalization outside the kernel.
    return jnp.sum(partials) / float(n * n)


def my_loss_ref(x, z, *, v_input=0.01, v_latent=0.01, sigma_p=1.0, sigma_q=1.0, rho=0.0):
    x = x.astype(jnp.float32)
    z = z.astype(jnp.float32)

    def dist2(a):
        nn_ = jnp.sum(a * a, axis=1, keepdims=True)
        d = nn_ + nn_.T - 2.0 * a @ a.T
        return jnp.maximum(d, 0.0)

    P = _similarity_ref(dist2(x), rho, sigma_p, _cal_gamma(v_input), v_input)
    Q = _similarity_ref(dist2(z), rho, sigma_q, _cal_gamma(v_latent), v_latent)
    L = -1.0 * (P * jnp.log(Q + EPS) + (1.0 - P) * jnp.log(1.0 - Q + EPS))
    return jnp.mean(L)


if __name__ == "__main__":
    key = jax.random.PRNGKey(0)
    k1, k2 = jax.random.split(key)

    # Small but non-trivial: exercises row tiling (2 row tiles) and padding/masking.
    N, D_IN, D_LAT = 300, 32, 8
    x = jax.random.normal(k1, (N, D_IN), dtype=jnp.float32)    # input_data
    z = jax.random.normal(k2, (N, D_LAT), dtype=jnp.float32)   # latent_data
    # input_data_aug / latent_data_aug are unused by the reference forward.

    loss = my_loss(x, z)
    jax.block_until_ready(loss)

    ref = my_loss_ref(x, z)
    assert jnp.allclose(loss, ref, rtol=1e-3, atol=1e-5), (loss, ref)

    print("KERNEL_OK")
</pallas_src>

<mosaic_0001>
module attributes {stable_mosaic.version = 11 : i64} {
  func.func @kernel(%arg0: i32, %arg1: i32, %arg2: memref<256x32xf32, #tpu.memory_space<vmem>>, %arg3: memref<32x384xf32, #tpu.memory_space<vmem>>, %arg4: memref<256x8xf32, #tpu.memory_space<vmem>>, %arg5: memref<8x384xf32, #tpu.memory_space<vmem>>, %arg6: memref<8x384xf32, #tpu.memory_space<vmem>>) attributes {dimension_semantics = [#tpu.dimension_semantics<parallel>, #tpu.dimension_semantics<arbitrary>], iteration_bounds = array<i64: 2, 1>, scalar_prefetch = 0 : i64, scratch_operands = 0 : i64, tpu.core_type = #tpu.core_type<tc>, window_params = [{transform_indices = @transform_0, window_bounds = array<i64: 256, 32>}, {transform_indices = @transform_1, window_bounds = array<i64: 32, 384>}, {transform_indices = @transform_2, window_bounds = array<i64: 256, 8>}, {transform_indices = @transform_3, window_bounds = array<i64: 8, 384>}, {transform_indices = @transform_4, window_bounds = array<i64: 8, 384>}]} {
    %c0_i32 = arith.constant 0 : i32
    %0 = arith.cmpi eq, %arg1, %c0_i32 : i32
    %1 = arith.extui %0 : i1 to i32
    %c0_i32_0 = arith.constant 0 : i32
    %2 = arith.cmpi ne, %1, %c0_i32_0 : i32
    scf.if %2 {
      %cst_43 = arith.constant 0.000000e+00 : f32
      %166 = vector.broadcast %cst_43 : f32 to vector<8x384xf32>
      %c0_44 = arith.constant 0 : index
      %c0_45 = arith.constant 0 : index
      %167 = vector.load %arg6[%c0_44, %c0_45] : memref<8x384xf32, #tpu.memory_space<vmem>>, vector<8x384xf32>
      tpu.vector_store %arg6[%c0_44, %c0_45], %166 {strides = array<i32>} : memref<8x384xf32, #tpu.memory_space<vmem>>, vector<8x384xf32>,
    } else {
    }
    %c0 = arith.constant 0 : index
    %c0_1 = arith.constant 0 : index
    %3 = vector.load %arg2[%c0, %c0_1] : memref<256x32xf32, #tpu.memory_space<vmem>>, vector<256x32xf32>
    %c0_2 = arith.constant 0 : index
    %c0_3 = arith.constant 0 : index
    %4 = vector.load %arg3[%c0_2, %c0_3] : memref<32x384xf32, #tpu.memory_space<vmem>>, vector<32x384xf32>
    %c0_4 = arith.constant 0 : index
    %c0_5 = arith.constant 0 : index
    %5 = vector.load %arg4[%c0_4, %c0_5] : memref<256x8xf32, #tpu.memory_space<vmem>>, vector<256x8xf32>
    %c0_6 = arith.constant 0 : index
    %c0_7 = arith.constant 0 : index
    %6 = vector.load %arg5[%c0_6, %c0_7] : memref<8x384xf32, #tpu.memory_space<vmem>>, vector<8x384xf32>
    %7 = arith.mulf %3, %3 : vector<256x32xf32>
    %cst = arith.constant dense<0.000000e+00> : vector<256xf32>
    %8 = vector.multi_reduction <add>, %7, %cst [1] : vector<256x32xf32> to vector<256xf32>
    %9 = vector.shape_cast %8 : vector<256xf32> to vector<256x1xf32>
    %10 = arith.mulf %4, %4 : vector<32x384xf32>
    %cst_8 = arith.constant dense<0.000000e+00> : vector<384xf32>
    %11 = vector.multi_reduction <add>, %10, %cst_8 [0] : vector<32x384xf32> to vector<384xf32>
    %12 = vector.shape_cast %11 : vector<384xf32> to vector<1x384xf32>
    %13 = arith.mulf %5, %5 : vector<256x8xf32>
    %cst_9 = arith.constant dense<0.000000e+00> : vector<256xf32>
    %14 = vector.multi_reduction <add>, %13, %cst_9 [1] : vector<256x8xf32> to vector<256xf32>
    %15 = vector.shape_cast %14 : vector<256xf32> to vector<256x1xf32>
    %16 = arith.mulf %6, %6 : vector<8x384xf32>
    %cst_10 = arith.constant dense<0.000000e+00> : vector<384xf32>
    %17 = vector.multi_reduction <add>, %16, %cst_10 [0] : vector<8x384xf32> to vector<384xf32>
    %18 = vector.shape_cast %17 : vector<384xf32> to vector<1x384xf32>
    %19 = vector.broadcast %9 : vector<256x1xf32> to vector<256x384xf32>
    %20 = vector.broadcast %12 : vector<1x384xf32> to vector<256x384xf32>
    %21 = arith.addf %19, %20 : vector<256x384xf32>
    %cst_11 = arith.constant dense<0.000000e+00> : vector<256x384xf32>
    %22 = tpu.matmul %3, %4, %cst_11 {dimension_numbers = #tpu.dot_dimension_numbers<[1], [0], [0], [1], [0, 0, 1, 1], [], []>} : vector<256x32xf32>, vector<32x384xf32>, vector<256x384xf32> -> vector<256x384xf32>
    %cst_12 = arith.constant 2.000000e+00 : f32
    %23 = vector.broadcast %cst_12 : f32 to vector<256x384xf32>
    %24 = arith.mulf %23, %22 : vector<256x384xf32>
    %25 = arith.subf %21, %24 : vector<256x384xf32>
    %cst_13 = arith.constant 0.000000e+00 : f32
    %26 = vector.broadcast %cst_13 : f32 to vector<256x384xf32>
    %27 = arith.maximumf %25, %26 : vector<256x384xf32>
    %28 = vector.broadcast %15 : vector<256x1xf32> to vector<256x384xf32>
    %29 = vector.broadcast %18 : vector<1x384xf32> to vector<256x384xf32>
    %30 = arith.addf %28, %29 : vector<256x384xf32>
    %cst_14 = arith.constant dense<0.000000e+00> : vector<256x384xf32>
    %31 = tpu.matmul %5, %6, %cst_14 {dimension_numbers = #tpu.dot_dimension_numbers<[1], [0], [0], [1], [0, 0, 1, 1], [], []>} : vector<256x8xf32>, vector<8x384xf32>, vector<256x384xf32> -> vector<256x384xf32>
    %cst_15 = arith.constant 2.000000e+00 : f32
    %32 = vector.broadcast %cst_15 : f32 to vector<256x384xf32>
    %33 = arith.mulf %32, %31 : vector<256x384xf32>
    %34 = arith.subf %30, %33 : vector<256x384xf32>
    %cst_16 = arith.constant 0.000000e+00 : f32
    %35 = vector.broadcast %cst_16 : f32 to vector<256x384xf32>
    %36 = arith.maximumf %34, %35 : vector<256x384xf32>
    %cst_17 = arith.constant 0.000000e+00 : f32
    %37 = vector.broadcast %cst_17 : f32 to vector<256x384xf32>
    %38 = arith.subf %27, %37 : vector<256x384xf32>
    %cst_18 = arith.constant 1.000000e+00 : f32
    %39 = vector.broadcast %cst_18 : f32 to vector<256x384xf32>
    %40 = arith.mulf %38, %39 : vector<256x384xf32>
    %cst_19 = arith.constant 0.000000e+00 : f32
    %41 = vector.broadcast %cst_19 : f32 to vector<256x384xf32>
    %42 = arith.maximumf %40, %41 : vector<256x384xf32>
    %cst_20 = arith.constant 0.000000e+00 : f32
    %43 = vector.broadcast %cst_20 : f32 to vector<256x384xf32>
    %44 = arith.subf %36, %43 : vector<256x384xf32>
    %cst_21 = arith.constant 1.000000e+00 : f32
    %45 = vector.broadcast %cst_21 : f32 to vector<256x384xf32>
    %46 = arith.mulf %44, %45 : vector<256x384xf32>
    %cst_22 = arith.constant 0.000000e+00 : f32
    %47 = vector.broadcast %cst_22 : f32 to vector<256x384xf32>
    %48 = arith.maximumf %46, %47 : vector<256x384xf32>
    %cst_23 = arith.constant 1.000000e+02 : f32
    %49 = vector.broadcast %cst_23 : f32 to vector<256x384xf32>
    %50 = arith.mulf %42, %49 : vector<256x384xf32>
    %cst_24 = arith.constant 1.000000e+00 : f32
    %51 = vector.broadcast %cst_24 : f32 to vector<256x384xf32>
    %52 = arith.addf %51, %50 : vector<256x384xf32>
    %53 = math.log %52 : vector<256x384xf32>
    %cst_25 = arith.constant -5.050000e-01 : f32
    %54 = vector.broadcast %cst_25 : f32 to vector<256x384xf32>
    %55 = arith.mulf %54, %53 : vector<256x384xf32>
    %56 = math.exp %55 : vector<256x384xf32>
    %cst_26 = arith.constant 0.311843783 : f32
    %57 = vector.broadcast %cst_26 : f32 to vector<256x384xf32>
    %58 = arith.mulf %57, %56 : vector<256x384xf32>
    %cst_27 = arith.constant 1.000000e+02 : f32
    %59 = vector.broadcast %cst_27 : f32 to vector<256x384xf32>
    %60 = arith.mulf %48, %59 : vector<256x384xf32>
    %cst_28 = arith.constant 1.000000e+00 : f32
    %61 = vector.broadcast %cst_28 : f32 to vector<256x384xf32>
    %62 = arith.addf %61, %60 : vector<256x384xf32>
    %63 = math.log %62 : vector<256x384xf32>
    %cst_29 = arith.constant -5.050000e-01 : f32
    %64 = vector.broadcast %cst_29 : f32 to vector<256x384xf32>
    %65 = arith.mulf %64, %63 : vector<256x384xf32>
    %66 = math.exp %65 : vector<256x384xf32>
    %cst_30 = arith.constant 0.311843783 : f32
    %67 = vector.broadcast %cst_30 : f32 to vector<256x384xf32>
    %68 = arith.mulf %67, %66 : vector<256x384xf32>
    %cst_31 = arith.constant -1.16525292 : f32
    %69 = vector.broadcast %cst_31 : f32 to vector<256x384xf32>
    %70 = arith.addf %69, %65 : vector<256x384xf32>
    %cst_32 = arith.constant -27.6310215 : f32
    %71 = vector.broadcast %cst_32 : f32 to vector<256x384xf32>
    %72 = arith.maximumf %70, %71 : vector<256x384xf32>
    %cst_33 = arith.constant 1.000000e+00 : f32
    %73 = vector.broadcast %cst_33 : f32 to vector<256x384xf32>
    %74 = arith.subf %73, %68 : vector<256x384xf32>
    %cst_34 = arith.constant 9.99999996E-13 : f32
    %75 = vector.broadcast %cst_34 : f32 to vector<256x384xf32>
    %76 = arith.addf %74, %75 : vector<256x384xf32>
    %77 = math.log %76 : vector<256x384xf32>
    %78 = arith.mulf %58, %72 : vector<256x384xf32>
    %cst_35 = arith.constant 1.000000e+00 : f32
    %79 = vector.broadcast %cst_35 : f32 to vector<256x384xf32>
    %80 = arith.subf %79, %58 : vector<256x384xf32>
    %81 = arith.mulf %80, %77 : vector<256x384xf32>
    %82 = arith.addf %78, %81 : vector<256x384xf32>
    %cst_36 = arith.constant 0.000000e+00 : f32
    %83 = vector.broadcast %cst_36 : f32 to vector<256x384xf32>
    %84 = arith.subf %83, %82 : vector<256x384xf32>
    %85 = tpu.iota {dimensions = array<i32: 0>} : vector<256x384xi32>
    %c256_i32 = arith.constant 256 : i32
    %86 = arith.muli %arg0, %c256_i32 : i32
    %87 = vector.broadcast %86 : i32 to vector<256x384xi32>
    %88 = arith.addi %85, %87 : vector<256x384xi32>
    %89 = tpu.iota {dimensions = array<i32: 1>} : vector<256x384xi32>
    %c384_i32 = arith.constant 384 : i32
    %90 = arith.muli %arg1, %c384_i32 : i32
    %91 = vector.broadcast %90 : i32 to vector<256x384xi32>
    %92 = arith.addi %89, %91 : vector<256x384xi32>
    %c300_i32 = arith.constant 300 : i32
    %93 = vector.broadcast %c300_i32 : i32 to vector<256x384xi32>
    %94 = arith.cmpi slt, %88, %93 : vector<256x384xi32>
    %c300_i32_37 = arith.constant 300 : i32
    %95 = vector.broadcast %c300_i32_37 : i32 to vector<256x384xi32>
    %96 = arith.cmpi slt, %92, %95 : vector<256x384xi32>
    %97 = arith.andi %94, %96 : vector<256x384xi1>
    %cst_38 = arith.constant 0.000000e+00 : f32
    %98 = vector.broadcast %cst_38 : f32 to vector<256x384xf32>
    %99 = arith.select %97, %84, %98 : vector<256x384xi1>, vector<256x384xf32>
    %100 = vector.extract_strided_slice %99 {offsets = [0, 0], sizes = [8, 384], strides = [1, 1]} : vector<256x384xf32> to vector<8x384xf32>
    %101 = vector.extract_strided_slice %99 {offsets = [8, 0], sizes = [8, 384], strides = [1, 1]} : vector<256x384xf32> to vector<8x384xf32>
    %102 = arith.addf %100, %101 : vector<8x384xf32>
    %103 = vector.extract_strided_slice %99 {offsets = [16, 0], sizes = [8, 384], strides = [1, 1]} : vector<256x384xf32> to vector<8x384xf32>
    %104 = arith.addf %102, %103 : vector<8x384xf32>
    %105 = vector.extract_strided_slice %99 {offsets = [24, 0], sizes = [8, 384], strides = [1, 1]} : vector<256x384xf32> to vector<8x384xf32>
    %106 = arith.addf %104, %105 : vector<8x384xf32>
    %107 = vector.extract_strided_slice %99 {offsets = [32, 0], sizes = [8, 384], strides = [1, 1]} : vector<256x384xf32> to vector<8x384xf32>
    %108 = arith.addf %106, %107 : vector<8x384xf32>
    %109 = vector.extract_strided_slice %99 {offsets = [40, 0], sizes = [8, 384], strides = [1, 1]} : vector<256x384xf32> to vector<8x384xf32>
    %110 = arith.addf %108, %109 : vector<8x384xf32>
    %111 = vector.extract_strided_slice %99 {offsets = [48, 0], sizes = [8, 384], strides = [1, 1]} : vector<256x384xf32> to vector<8x384xf32>
    %112 = arith.addf %110, %111 : vector<8x384xf32>
    %113 = vector.extract_strided_slice %99 {offsets = [56, 0], sizes = [8, 384], strides = [1, 1]} : vector<256x384xf32> to vector<8x384xf32>
    %114 = arith.addf %112, %113 : vector<8x384xf32>
    %115 = vector.extract_strided_slice %99 {offsets = [64, 0], sizes = [8, 384], strides = [1, 1]} : vector<256x384xf32> to vector<8x384xf32>
    %116 = arith.addf %114, %115 : vector<8x384xf32>
    %117 = vector.extract_strided_slice %99 {offsets = [72, 0], sizes = [8, 384], strides = [1, 1]} : vector<256x384xf32> to vector<8x384xf32>
    %118 = arith.addf %116, %117 : vector<8x384xf32>
    %119 = vector.extract_strided_slice %99 {offsets = [80, 0], sizes = [8, 384], strides = [1, 1]} : vector<256x384xf32> to vector<8x384xf32>
    %120 = arith.addf %118, %119 : vector<8x384xf32>
    %121 = vector.extract_strided_slice %99 {offsets = [88, 0], sizes = [8, 384], strides = [1, 1]} : vector<256x384xf32> to vector<8x384xf32>
    %122 = arith.addf %120, %121 : vector<8x384xf32>
    %123 = vector.extract_strided_slice %99 {offsets = [96, 0], sizes = [8, 384], strides = [1, 1]} : vector<256x384xf32> to vector<8x384xf32>
    %124 = arith.addf %122, %123 : vector<8x384xf32>
    %125 = vector.extract_strided_slice %99 {offsets = [104, 0], sizes = [8, 384], strides = [1, 1]} : vector<256x384xf32> to vector<8x384xf32>
    %126 = arith.addf %124, %125 : vector<8x384xf32>
    %127 = vector.extract_strided_slice %99 {offsets = [112, 0], sizes = [8, 384], strides = [1, 1]} : vector<256x384xf32> to vector<8x384xf32>
    %128 = arith.addf %126, %127 : vector<8x384xf32>
    %129 = vector.extract_strided_slice %99 {offsets = [120, 0], sizes = [8, 384], strides = [1, 1]} : vector<256x384xf32> to vector<8x384xf32>
    %130 = arith.addf %128, %129 : vector<8x384xf32>
    %131 = vector.extract_strided_slice %99 {offsets = [128, 0], sizes = [8, 384], strides = [1, 1]} : vector<256x384xf32> to vector<8x384xf32>
    %132 = arith.addf %130, %131 : vector<8x384xf32>
    %133 = vector.extract_strided_slice %99 {offsets = [136, 0], sizes = [8, 384], strides = [1, 1]} : vector<256x384xf32> to vector<8x384xf32>
    %134 = arith.addf %132, %133 : vector<8x384xf32>
    %135 = vector.extract_strided_slice %99 {offsets = [144, 0], sizes = [8, 384], strides = [1, 1]} : vector<256x384xf32> to vector<8x384xf32>
    %136 = arith.addf %134, %135 : vector<8x384xf32>
    %137 = vector.extract_strided_slice %99 {offsets = [152, 0], sizes = [8, 384], strides = [1, 1]} : vector<256x384xf32> to vector<8x384xf32>
    %138 = arith.addf %136, %137 : vector<8x384xf32>
    %139 = vector.extract_strided_slice %99 {offsets = [160, 0], sizes = [8, 384], strides = [1, 1]} : vector<256x384xf32> to vector<8x384xf32>
    %140 = arith.addf %138, %139 : vector<8x384xf32>
    %141 = vector.extract_strided_slice %99 {offsets = [168, 0], sizes = [8, 384], strides = [1, 1]} : vector<256x384xf32> to vector<8x384xf32>
    %142 = arith.addf %140, %141 : vector<8x384xf32>
    %143 = vector.extract_strided_slice %99 {offsets = [176, 0], sizes = [8, 384], strides = [1, 1]} : vector<256x384xf32> to vector<8x384xf32>
    %144 = arith.addf %142, %143 : vector<8x384xf32>
    %145 = vector.extract_strided_slice %99 {offsets = [184, 0], sizes = [8, 384], strides = [1, 1]} : vector<256x384xf32> to vector<8x384xf32>
    %146 = arith.addf %144, %145 : vector<8x384xf32>
    %147 = vector.extract_strided_slice %99 {offsets = [192, 0], sizes = [8, 384], strides = [1, 1]} : vector<256x384xf32> to vector<8x384xf32>
    %148 = arith.addf %146, %147 : vector<8x384xf32>
    %149 = vector.extract_strided_slice %99 {offsets = [200, 0], sizes = [8, 384], strides = [1, 1]} : vector<256x384xf32> to vector<8x384xf32>
    %150 = arith.addf %148, %149 : vector<8x384xf32>
    %151 = vector.extract_strided_slice %99 {offsets = [208, 0], sizes = [8, 384], strides = [1, 1]} : vector<256x384xf32> to vector<8x384xf32>
    %152 = arith.addf %150, %151 : vector<8x384xf32>
    %153 = vector.extract_strided_slice %99 {offsets = [216, 0], sizes = [8, 384], strides = [1, 1]} : vector<256x384xf32> to vector<8x384xf32>
    %154 = arith.addf %152, %153 : vector<8x384xf32>
    %155 = vector.extract_strided_slice %99 {offsets = [224, 0], sizes = [8, 384], strides = [1, 1]} : vector<256x384xf32> to vector<8x384xf32>
    %156 = arith.addf %154, %155 : vector<8x384xf32>
    %157 = vector.extract_strided_slice %99 {offsets = [232, 0], sizes = [8, 384], strides = [1, 1]} : vector<256x384xf32> to vector<8x384xf32>
    %158 = arith.addf %156, %157 : vector<8x384xf32>
    %159 = vector.extract_strided_slice %99 {offsets = [240, 0], sizes = [8, 384], strides = [1, 1]} : vector<256x384xf32> to vector<8x384xf32>
    %160 = arith.addf %158, %159 : vector<8x384xf32>
    %161 = vector.extract_strided_slice %99 {offsets = [248, 0], sizes = [8, 384], strides = [1, 1]} : vector<256x384xf32> to vector<8x384xf32>
    %162 = arith.addf %160, %161 : vector<8x384xf32>
    %c0_39 = arith.constant 0 : index
    %c0_40 = arith.constant 0 : index
    %163 = vector.load %arg6[%c0_39, %c0_40] : memref<8x384xf32, #tpu.memory_space<vmem>>, vector<8x384xf32>
    %164 = arith.addf %163, %162 : vector<8x384xf32>
    %c0_41 = arith.constant 0 : index
    %c0_42 = arith.constant 0 : index
    %165 = vector.load %arg6[%c0_41, %c0_42] : memref<8x384xf32, #tpu.memory_space<vmem>>, vector<8x384xf32>
    tpu.vector_store %arg6[%c0_41, %c0_42], %164 {strides = array<i32>} : memref<8x384xf32, #tpu.memory_space<vmem>>, vector<8x384xf32>,
    return
  }
  func.func @transform_0(%arg0: i32, %arg1: i32) -> (i32, i32) {
    %c0_i32 = arith.constant 0 : i32
    %c0_i32_0 = arith.constant 0 : i32
    return %arg0, %c0_i32 : i32, i32
  }
  func.func @transform_1(%arg0: i32, %arg1: i32) -> (i32, i32) {
    %c0_i32 = arith.constant 0 : i32
    %c0_i32_0 = arith.constant 0 : i32
    return %c0_i32, %arg1 : i32, i32
  }
  func.func @transform_2(%arg0: i32, %arg1: i32) -> (i32, i32) {
    %c0_i32 = arith.constant 0 : i32
    %c0_i32_0 = arith.constant 0 : i32
    return %arg0, %c0_i32 : i32, i32
  }
  func.func @transform_3(%arg0: i32, %arg1: i32) -> (i32, i32) {
    %c0_i32 = arith.constant 0 : i32
    %c0_i32_0 = arith.constant 0 : i32
    return %c0_i32, %arg1 : i32, i32
  }
  func.func @transform_4(%arg0: i32, %arg1: i32) -> (i32, i32) {
    %c0_i32 = arith.constant 0 : i32
    %c0_i32_0 = arith.constant 0 : i32
    return %arg0, %c0_i32 : i32, i32
  }
}

</mosaic_0001>

<bundles_post_ra>
// kernel: tpu_custom_call.1
= control target key start
LH: loop header
LB: loop body
LE: loop exit
PB: predicated region body
PF: predicated region fallthrough
CT: control target
= control target key end

     0   :  { %9 = vsyncpa [#allocation3], 0  ;;  %s11654_s0 = inlined_call_operand.vmem [shape: f32[512,32], index: 0, kind: input, shape index: {}]   ;;  %s11655_s1 = inlined_call_operand.vmem [shape: f32[32,384], index: 1, kind: input, shape index: {}]   ;;  %s11656_s2 = inlined_call_operand.vmem [shape: f32[512,8], index: 2, kind: input, shape index: {}]   ;;  %s11657_s3 = inlined_call_operand.vmem [shape: f32[8,384], index: 3, kind: input, shape index: {}]   ;;  %s11658_s4 = inlined_call_operand.hbm [shape: f32[16,384], index: 4, kind: output, shape index: {}]  }
   0x1   :  { %11 = vsyncpa [#allocation3 + $0x1], 0  ;;  %s7376_s15 = smov 0   ;;  %s7378_s16 = smov 0  }
   0x2   :  { %s7380_s17 = smov 0   ;;  %s7382_s18 = smov 0  }
   0x3   :  { %s7384_s19 = smov 0   ;;  %s7386_s20 = smov 0  }
   0x4 LB: > { %s5917_s21 = sadd.s32 4294967295, %s7347_s20   ;;  %s5918_s22 = sadd.s32 4294967294, %s7347_s20   ;;  %s7347_s20 = sphi %s7386_s20, %s17_s20   ;;  %s7343_s19 = sphi %s7384_s19, %s12614_s19   ;;  %s7339_s18 = sphi %s7382_s18, %s12613_s18   ;;  %s7335_s17 = sphi %s7380_s17, %s12612_s17   ;;  %s7331_s16 = sphi %s7378_s16, %s12611_s16   ;;  %s7327_s15 = sphi %s7376_s15, %s12610_s15  }
   0x5   : > { %s29_s23 = sadd.s32 1, %s7343_s19  ;;  %s140_s24 = sadd.s32 1, %s7335_s17 }
   0x6   : > { %p31_p0 = scmp.ge.s32.totalorder %s29_s23, 2  ;;  %p150_p1 = scmp.ne.s32.totalorder %s7335_s17, %s7331_s16 }
   0x7   : > { %p151_p2 = scmp.eq.s32.totalorder %s5917_s21, 1  ;;  %p156_p3 = scmp.ne.s32.totalorder %s7331_s16, %s7327_s15 }
   0x8   : > { %s12616_s23 = smov (%p31_p0, %s29_s23), 0  ;;  %p157_p5 = scmp.eq.s32.totalorder %s5918_s22, 1 }
   0x9   : > { %p7416_p4 = por %p151_p2, %p150_p1  ;;  %s137_s26 = ssub.s32 %s7343_s19, %s12616_s23 }
   0xa   : > { %p5923_p6 = scmp.ge.s32.totalorder %s7347_s20, 1  ;;  %p138_p7 = scmp.eq.s32.totalorder %s137_s26, 0 }
   0xb   : > { %p7423_p8 = por %p157_p5, %p156_p3  ;;  %p211_p9 = scmp.lt.s32.totalorder %s7347_s20, 3 }
   0xc   : > { %s7429_s28 = scalar_select %p138_p7, %s7335_s17, %s140_s24  }
   0xd   : > { %p212_p10 = pnand %p5923_p6, %p211_p9 }
   0xf   : > { %215 = sbr.rel (%p212_p10) target bundleno = 1243 (0x4db), region = 36 }
  0x16   : > { %v316_v0 = vld [vmem:[%s11655_s1 + $0x8] sm:$0xff]  ;;  %v319_v1 = vld [vmem:[%s11655_s1 + $0x20] sm:$0xff]  ;;  %v317_v2 = vld [vmem:[%s11655_s1 + $0x10] sm:$0xff]  ;;  %s5924_s9 = sshll.u32 %s7339_s18, 5  ;;  %v7349_v10 = vmov 0.0   ;;  %vm394_vm0 = vcmask 261120  }
  0x17   : > { %v492_v3 = vmul.f32 %v316_v0, %v316_v0  ;;  %v495_v4 = vmul.f32 %v319_v1, %v319_v1  ;;  %v6235_v5 = vpack.c.bf16 %v319_v1, %v316_v0  ;;  %v320_v6 = vld [vmem:[%s11655_s1 + $0x28] sm:$0xff]  ;;  %v493_v7 = vmul.f32 %v317_v2, %v317_v2  ;;  %v315_v8 = vld [vmem:[%s11655_s1] sm:$0xff]  ;;  %v318_v9 = vld [vmem:[%s11655_s1 + $0x18] sm:$0xff]  ;;  %936 = vmatprep.mubr.f32.mxu0 %v7349_v10  ;;  %p7451_p11 = scmp.lt.s32.totalorder %s5924_s9, 63  ;;  %s6056_s11 = sshll.u32 %s7339_s18, 8 }
  0x18   : > { %v496_v11 = vmul.f32 %v320_v6, %v320_v6  ;;  %v6243_v12 = vpack.c.bf16 %v320_v6, %v317_v2  ;;  %v491_v13 = vmul.f32 %v315_v8, %v315_v8  ;;  %v494_v14 = vmul.f32 %v318_v9, %v318_v9  ;;  %v322_v15 = vld [vmem:[%s11655_s1 + $0x38] sm:$0xff]  ;;  %v325_v16 = vld [vmem:[%s11655_s1 + $0x50] sm:$0xff]  ;;  %v323_v17 = vld [vmem:[%s11655_s1 + $0x40] sm:$0xff]  ;;  %s249_s12 = sand.u32 1, %s7331_s16   ;;  %s6252_s21 = smul.u32 384, %s7339_s18 }
  0x19   : > { %v512_v18 = vadd.f32 %v495_v4, %v492_v3  ;;  %6236 = vmatprep.subr.bf16.mxu0 %v6235_v5  ;;  %v6237_v19 = vpack.c.bf16 %v318_v9, %v315_v8  ;;  %v498_v20 = vmul.f32 %v322_v15, %v322_v15  ;;  %v501_v21 = vmul.f32 %v325_v16, %v325_v16  ;;  %v326_v22 = vld [vmem:[%s11655_s1 + $0x58] sm:$0xff]  ;;  %v321_v23 = vld [vmem:[%s11655_s1 + $0x30] sm:$0xff]  ;;  %v324_v24 = vld [vmem:[%s11655_s1 + $0x48] sm:$0xff]  ;;  %s12618_s9 = smov (!%p7451_p11, %s5924_s9), 63  ;;  %s6251_s13 = smul.u32 24, %s249_s12 }
  0x1a   : > { %v521_v25 = vadd.f32 %v496_v11, %v493_v7  ;;  %6244 = vmatprep.subr.bf16.mxu1 %v6243_v12  ;;  %v503_v26 = vadd.f32 %v494_v14, %v491_v13  ;;  %v6239_v27 = vpack.c.bf16 %v325_v16, %v322_v15  ;;  %v499_v28 = vmul.f32 %v323_v17, %v323_v17  ;;  %s5925_s14 = sshll.u32 %s12618_s9, 3  ;;  %v7493_v38 = vld [vmem:[%s11657_s3 + $0x10] sm:$0xff]  ;;  %v7498_v39 = vld [vmem:[%s11657_s3 + $0x8] sm:$0xff]  ;;  %v7525_v48 = vld [vmem:[%s11657_s3] sm:$0xff]  ;;  %s11605_s29 = scalar_lea.hbm %s11658_s4, %s6252_s21 }
  0x1b   : > { %6238 = vmatpush1.bf16.msra.mxu0 %v6237_v19  ;;  %6246 = vmatpush3.bf16.msra.mxu1 %v6243_v12  ;;  %v513_v29 = vadd.f32 %v512_v18, %v498_v20  ;;  %v502_v30 = vmul.f32 %v326_v22, %v326_v22  ;;  %v6247_v31 = vpack.c.bf16 %v326_v22, %v323_v17  ;;  %s7478_s24 = scalar_lea.vmem %s11654_s0, %s5925_s14  ;;  %s7483_s30 = scalar_lea.vmem %s11656_s2, %s5925_s14  ;;  %vm562_vm1 = vcmask 64512  }
  0x1c   : > { %6240 = vmatprep.subr.bf16.mxu0 %v6239_v27  ;;  %v522_v32 = vadd.f32 %v521_v25, %v499_v28  ;;  %v497_v33 = vmul.f32 %v321_v23, %v321_v23  ;;  %v500_v34 = vmul.f32 %v324_v24, %v324_v24  ;;  %v6241_v35 = vpack.c.bf16 %v324_v24, %v321_v23  ;;  %v7488_v37 = vld [vmem:[%s7478_s24] sm:$0xff]  ;;  %v7505_v42 = vld [vmem:[%s7478_s24 + $0x8] sm:$0xff]  ;;  %v7508_v43 = vld [vmem:[%s7483_s30 + $0x10] sm:$0xff]  ;;  %s251_s14 = scalar_lea.vmem [#allocation2], %s6251_s13  ;;  %s7350_s18 = smov [#allocation2]  }
  0x1d   : > { %v7485_v36 = vadd.f32 %v513_v29, %v501_v21  ;;  %6248 = vmatprep.subr.bf16.mxu1 %v6247_v31  ;;  %6137 = vmatprep.mubr.msk.f32.mxu1 %vm394_vm0, %v7488_v37  ;;  %v7511_v44 = vld [vmem:[%s7483_s30] sm:$0xff]  ;;  %v532_v46 = vmul.f32 %v7508_v43, %v7508_v43  ;;  %v7520_v47 = vld [vmem:[%s7478_s24 + $0x10] sm:$0xff]  ;;  %v7530_v50 = vld [vmem:[%s7483_s30 + $0x18] sm:$0xff]  ;;  %v362_v13 = vmul.f32 %v7488_v37, %v7488_v37  ;;  %s5808_s22 = sshll.u32 %s251_s14, 4  ;;  %s7273_s5 = sshll.u32 %s7350_s18, 4  ;;  %s11607_s22 = int_to_ptr.vmem [resolvable:$true] %s5808_s22  ;;  %s7274_s5 = int_to_ptr.vmem [resolvable:$false] %s7273_s5 }
  0x1e   : > { %v7500_v40 = vadd.f32 %v522_v32, %v502_v30  ;;  %v504_v41 = vadd.f32 %v503_v26, %v497_v33  ;;  %v530_v49 = vmul.f32 %v7511_v44, %v7511_v44  ;;  %v7538_v52 = vld [vmem:[%s7483_s30 + $0x8] sm:$0xff]  ;;  %v7543_v53 = vld [vmem:[%s7478_s24 + $0x18] sm:$0xff]  ;;  %v7549_v54 = vld [vmem:[%s7478_s24 + $0x20] sm:$0xff]  ;;  %v533_v55 = vmul.f32 %v7530_v50, %v7530_v50  ;;  %s7269_s9 = scalar_lea.vmem %s11607_s22, 384  ;;  %s7275_s6 = scalar_lea.vmem %s7274_s5, 768 }
  0x1f   : > { %6242 = vmatpush1.bf16.msra.mxu0 %v6241_v35  ;;  %6250 = vmatpush3.bf16.msra.mxu1 %v6247_v31  ;;  %v569_v51 = vsel %vm562_vm1, %v532_v46, 0.0  ;;  %v531_v57 = vmul.f32 %v7538_v52, %v7538_v52  ;;  %v7557_v58 = vld [vmem:[%s7483_s30 + $0x28] sm:$0xff]  ;;  %v7565_v60 = vld [vmem:[%s7483_s30 + $0x20] sm:$0xff]  ;;  %v7574_v62 = vld [vmem:[%s7478_s24 + $0x30] sm:$0xff]  ;;  %v395_v19 = vsel %vm394_vm0, %v362_v13, 0.0  ;;  %v363_v25 = vmul.f32 %v7505_v42, %v7505_v42  ;;  %p7270_p12 = scmp.ne.s32.totalorder %s11607_s22, %s7269_s9  ;;  %p7276_p1 = scmp.lt.s32.totalorder %s11607_s22, %s7274_s5 }
  0x20   : > { %v7513_v45 = vadd.f32 %v504_v41, %v500_v34  ;;  %6185 = vmatprep.subr.mxu0 %v7493_v38  ;;  %1834 = vmatprep.subr.mxu1 %v7498_v39  ;;  %v563_v56 = vsel %vm562_vm1, %v530_v49, 0.0  ;;  %v572_v59 = vsel %vm562_vm1, %v533_v55, 0.0  ;;  %v7571_v61 = vld [vmem:[%s7478_s24 + $0x28] sm:$0xff]  ;;  %v535_v63 = vmul.f32 %v7557_v58, %v7557_v58  ;;  %v7579_v0 = vld [vmem:[%s7483_s30 + $0x38] sm:$0xff]  ;;  %v7590_v4 = vld [vmem:[%s7483_s30 + $0x30] sm:$0xff]  ;;  %p7277_p2 = scmp.lt.s32.totalorder %s7275_s6, %s7269_s9 }
  0x21   : > { %570 = vadd.xlane.f32.xlu1 %v569_v51  ;;  %564 = vadd.xlane.f32.xlu0 %v563_v56  ;;  %v566_v1 = vsel %vm562_vm1, %v531_v57, 0.0  ;;  %v534_v2 = vmul.f32 %v7565_v60, %v7565_v60  ;;  %v7596_v5 = vld [vmem:[%s7478_s24 + $0x38] sm:$0xff]  ;;  %v537_v6 = vmul.f32 %v7579_v0, %v7579_v0  ;;  %v7601_v7 = vld [vmem:[%s7478_s24 + $0x40] sm:$0xff]  ;;  %v536_v9 = vmul.f32 %v7590_v4, %v7590_v4  ;;  %v7620_v14 = vld [vmem:[%s7478_s24 + $0x48] sm:$0xff]  ;;  %p7271_p13 = pnand %p7270_p12, %p7416_p4 }
  0x22   : > { %5928 = vmatmul.mubr.msk.f32.vlgmr.msra.gmra.mrb[0].mxu0 %vm394_vm0, %v7488_v37  ;;  %6138 = vmatmul.mubr.msk.f32.vlgmr.msra.gmra.mrb[0].mxu1 %vm394_vm0, %v7505_v42  ;;  %v578_v3 = vsel %vm562_vm1, %v535_v63, 0.0  ;;  %v7612_v12 = vld [vmem:[%s7483_s30 + $0x40] sm:$0xff]  ;;  %v7623_v15 = vld [vmem:[%s7483_s30 + $0x48] sm:$0xff]  ;;  %v7626_v16 = vld [vmem:[%s7478_s24 + $0x50] sm:$0xff]  ;;  %v398_v31 = vsel %vm394_vm0, %v363_v25, 0.0  ;;  %v364_v32 = vmul.f32 %v7520_v47, %v7520_v47  ;;  %v365_v46 = vmul.f32 %v7543_v53, %v7543_v53  ;;  %p7278_p3 = por %p7277_p2, %p7276_p1 }
  0x23   : > { %6186 = vmatpush3.msra.mxu0 %v7493_v38  ;;  %942 = vmatprep.mubr.f32.mxu0 %v7349_v10  ;;  %v575_v8 = vsel %vm562_vm1, %v534_v2, 0.0  ;;  %v584_v11 = vsel %vm562_vm1, %v537_v6, 0.0  ;;  %v581_v17 = vsel %vm562_vm1, %v536_v9, 0.0  ;;  %v538_v18 = vmul.f32 %v7612_v12, %v7612_v12  ;;  %v7642_v21 = vld [vmem:[%s7478_s24 + $0x58] sm:$0xff]  ;;  %v7645_v22 = vld [vmem:[%s7483_s30 + $0x50] sm:$0xff]  ;;  %v7648_v23 = vld [vmem:[%s7478_s24 + $0x60] sm:$0xff]  ;;  %p7272_p0 = pneg %p7271_p13 }
  0x24   : > { %6140 = vmatprep.mubr.msk.f32.mxu1 %vm394_vm0, %v7520_v47  ;;  %1835 = vmatpush1.msra.mxu1 %v7525_v48  ;;  %v539_v20 = vmul.f32 %v7623_v15, %v7623_v15  ;;  %v540_v27 = vmul.f32 %v7645_v22, %v7645_v22  ;;  %v7664_v28 = vld [vmem:[%s7478_s24 + $0x68] sm:$0xff]  ;;  %v7667_v29 = vld [vmem:[%s7483_s30 + $0x58] sm:$0xff]  ;;  %v7670_v30 = vld [vmem:[%s7478_s24 + $0x70] sm:$0xff]  ;;  %v404_v56 = vsel %vm394_vm0, %v365_v46, 0.0  ;;  %v366_v57 = vmul.f32 %v7549_v54, %v7549_v54 }
  0x25   : > { %573 = vadd.xlane.f32.xlu1 %v572_v59  ;;  %567 = vadd.xlane.f32.xlu0 %v566_v1  ;;  %v587_v24 = vsel %vm562_vm1, %v538_v18, 0.0  ;;  %v541_v34 = vmul.f32 %v7667_v29, %v7667_v29  ;;  %v7686_v35 = vld [vmem:[%s7478_s24 + $0x78] sm:$0xff]  ;;  %v7689_v37 = vld [vmem:[%s7483_s30 + $0x60] sm:$0xff]  ;;  %v7708_v51 = vld [vmem:[%s7478_s24 + $0x88] sm:$0xff]  ;;  %v367_v6 = vmul.f32 %v7571_v61, %v7571_v61  ;;  %v368_v18 = vmul.f32 %v7574_v62, %v7574_v62  ;;  %p7279_p5 = pnand %p7278_p3, %p7272_p0 }
  0x26   : > { %5929 = vmatmul.mubr.msk.f32.gmra.mrb[2].mxu0 %vm394_vm0, %v7505_v42  ;;  %6141 = vmatmul.mubr.msk.f32.gmra.mrb[2].mxu1 %vm394_vm0, %v7543_v53  ;;  %v590_v26 = vsel %vm562_vm1, %v539_v20, 0.0  ;;  %v593_v33 = vsel %vm562_vm1, %v540_v27, 0.0  ;;  %v7692_v41 = vld [vmem:[%s7478_s24 + $0x80] sm:$0xff]  ;;  %v401_v42 = vsel %vm394_vm0, %v364_v32, 0.0  ;;  %v542_v49 = vmul.f32 %v7689_v37, %v7689_v37  ;;  %v7714_v55 = vld [vmem:[%s7478_s24 + $0x90] sm:$0xff]  ;;  %v7730_v1 = vld [vmem:[%s7478_s24 + $0x98] sm:$0xff] }
  0x27   : > { %948 = vmatprep.mubr.f32.mxu0 %v7349_v10  ;;  %6143 = vmatprep.mubr.msk.f32.mxu1 %vm394_vm0, %v7549_v54  ;;  %v7736_v2 = vld [vmem:[%s7478_s24 + $0xa0] sm:$0xff]  ;;  %v7758_v13 = vld [vmem:[%s7478_s24 + $0xb0] sm:$0xff]  ;;  %v369_v27 = vmul.f32 %v7596_v5, %v7596_v5  ;;  %v370_v46 = vmul.f32 %v7601_v7, %v7601_v7 }
  0x28   : > { %v599_v59 = vsel %vm562_vm1, %v542_v49, 0.0  ;;  %v7780_v25 = vld [vmem:[%s7478_s24 + $0xc0] sm:$0xff] }
  0x29   : > { %579 = vadd.xlane.f32.xlu1 %v578_v3  ;;  %576 = vadd.xlane.f32.xlu0 %v575_v8  ;;  %v407_v3 = vsel %vm394_vm0, %v366_v57, 0.0  ;;  %v7824_v57 = vld [vmem:[%s7478_s24 + $0xe0] sm:$0xff] }
  0x2a   : > { %5930 = vmatmul.mubr.msk.f32.gmra.mrb[4].mxu0 %vm394_vm0, %v7520_v47  ;;  %6144 = vmatmul.mubr.msk.f32.gmra.mrb[4].mxu1 %vm394_vm0, %v7571_v61  ;;  %v596_v47 = vsel %vm562_vm1, %v541_v34, 0.0  ;;  %v7802_v34 = vld [vmem:[%s7478_s24 + $0xd0] sm:$0xff] }
  0x2b   : > { %954 = vmatprep.mubr.f32.mxu0 %v7349_v10  ;;  %6146 = vmatprep.mubr.msk.f32.mxu1 %vm394_vm0, %v7574_v62 }
  0x2d   : > { %585 = vadd.xlane.f32.xlu1 %v584_v11  ;;  %582 = vadd.xlane.f32.xlu0 %v581_v17  ;;  %v7752_v11 = vld [vmem:[%s7478_s24 + $0xa8] sm:$0xff]  ;;  %v410_v17 = vsel %vm394_vm0, %v367_v6, 0.0 }
  0x2e   : > { %5931 = vmatmul.mubr.msk.f32.gmra.mrb[6].mxu0 %vm394_vm0, %v7543_v53  ;;  %6147 = vmatmul.mubr.msk.f32.gmra.mrb[6].mxu1 %vm394_vm0, %v7596_v5  ;;  %v7711_v53 = vld [vmem:[%s7483_s30 + $0x68] sm:$0xff] }
  0x2f   : > { %960 = vmatprep.mubr.f32.mxu0 %v7349_v10  ;;  %6149 = vmatprep.mubr.msk.f32.mxu1 %vm394_vm0, %v7601_v7  ;;  %v543_v63 = vmul.f32 %v7711_v53, %v7711_v53 }
  0x31   : > { %396 = vadd.xlane.f32.xlu1 %v395_v19  ;;  %588 = vadd.xlane.f32.xlu0 %v587_v24  ;;  %v602_v8 = vsel %vm562_vm1, %v543_v63, 0.0  ;;  %v7774_v24 = vld [vmem:[%s7478_s24 + $0xb8] sm:$0xff]  ;;  %v371_v63 = vmul.f32 %v7620_v14, %v7620_v14 }
  0x32   : > { %5932 = vmatmul.mubr.msk.f32.gmra.mrb[8].mxu0 %vm394_vm0, %v7549_v54  ;;  %6150 = vmatmul.mubr.msk.f32.gmra.mrb[8].mxu1 %vm394_vm0, %v7620_v14  ;;  %v7733_v54 = vld [vmem:[%s7483_s30 + $0x70] sm:$0xff] }
  0x33   : > { %966 = vmatprep.mubr.f32.mxu0 %v7349_v10  ;;  %6152 = vmatprep.mubr.msk.f32.mxu1 %vm394_vm0, %v7626_v16  ;;  %v544_v9 = vmul.f32 %v7733_v54, %v7733_v54 }
  0x35   : > { %591 = vadd.xlane.f32.xlu1 %v590_v26  ;;  %399 = vadd.xlane.f32.xlu0 %v398_v31  ;;  %v605_v19 = vsel %vm562_vm1, %v544_v9, 0.0  ;;  %v413_v26 = vsel %vm394_vm0, %v368_v18, 0.0  ;;  %v7846_v9 = vld [vmem:[%s7478_s24 + $0xf0] sm:$0xff]  ;;  %v372_v18 = vmul.f32 %v7626_v16, %v7626_v16 }
  0x36   : > { %5933 = vmatmul.mubr.msk.f32.gmra.mrb[10].mxu0 %vm394_vm0, %v7571_v61  ;;  %6153 = vmatmul.mubr.msk.f32.gmra.mrb[10].mxu1 %vm394_vm0, %v7642_v21  ;;  %v7755_v61 = vld [vmem:[%s7483_s30 + $0x78] sm:$0xff] }
  0x37   : > { %972 = vmatprep.mubr.f32.mxu0 %v7349_v10  ;;  %6155 = vmatprep.mubr.msk.f32.mxu1 %vm394_vm0, %v7648_v23  ;;  %v545_v20 = vmul.f32 %v7755_v61, %v7755_v61 }
  0x39   : > { %594 = vadd.xlane.f32.xlu1 %v593_v33  ;;  %402 = vadd.xlane.f32.xlu0 %v401_v42  ;;  %v608_v31 = vsel %vm562_vm1, %v545_v20, 0.0  ;;  %v7796_v33 = vld [vmem:[%s7478_s24 + $0xc8] sm:$0xff]  ;;  %v416_v42 = vsel %vm394_vm0, %v369_v27, 0.0  ;;  %v425_v27 = vsel %vm394_vm0, %v372_v18, 0.0  ;;  %v7910_v18 = vld [vmem:[%s7483_s30 + $0xb8] sm:$0xff] }
  0x3a   : > { %5934 = vmatmul.mubr.msk.f32.gmra.mrb[12].mxu0 %vm394_vm0, %v7574_v62  ;;  %6156 = vmatmul.mubr.msk.f32.gmra.mrb[12].mxu1 %vm394_vm0, %v7664_v28  ;;  %v7777_v62 = vld [vmem:[%s7483_s30 + $0x80] sm:$0xff] }
  0x3b   : > { %978 = vmatprep.mubr.f32.mxu0 %v7349_v10  ;;  %6158 = vmatprep.mubr.msk.f32.mxu1 %vm394_vm0, %v7670_v30  ;;  %v546_v32 = vmul.f32 %v7777_v62, %v7777_v62 }
  0x3d   : > { %597 = vadd.xlane.f32.xlu1 %v596_v47  ;;  %405 = vadd.xlane.f32.xlu0 %v404_v56  ;;  %v611_v47 = vsel %vm562_vm1, %v546_v32, 0.0  ;;  %v7818_v56 = vld [vmem:[%s7478_s24 + $0xd8] sm:$0xff] }
  0x3e   : > { %5935 = vmatmul.mubr.msk.f32.gmra.mrb[14].mxu0 %vm394_vm0, %v7596_v5  ;;  %6159 = vmatmul.mubr.msk.f32.gmra.mrb[14].mxu1 %vm394_vm0, %v7686_v35  ;;  %v7799_v5 = vld [vmem:[%s7483_s30 + $0x88] sm:$0xff] }
  0x3f   : > { %984 = vmatprep.mubr.f32.mxu0 %v7349_v10  ;;  %6161 = vmatprep.mubr.msk.f32.mxu1 %vm394_vm0, %v7692_v41  ;;  %v547_v49 = vmul.f32 %v7799_v5, %v7799_v5 }
  0x41   : > { %600 = vadd.xlane.f32.xlu1 %v599_v59  ;;  %408 = vadd.xlane.f32.xlu0 %v407_v3  ;;  %v419_v59 = vsel %vm394_vm0, %v370_v46, 0.0  ;;  %v614_v3 = vsel %vm562_vm1, %v547_v49, 0.0  ;;  %v7880_v46 = vld [vmem:[%s7483_s30 + $0xa8] sm:$0xff] }
  0x42   : > { %5936 = vmatmul.mubr.msk.f32.gmra.mrb[16].mxu0 %vm394_vm0, %v7601_v7  ;;  %6162 = vmatmul.mubr.msk.f32.gmra.mrb[16].mxu1 %vm394_vm0, %v7708_v51  ;;  %v7821_v7 = vld [vmem:[%s7483_s30 + $0x90] sm:$0xff] }
  0x43   : > { %990 = vmatprep.mubr.f32.mxu0 %v7349_v10  ;;  %6164 = vmatprep.mubr.msk.f32.mxu1 %vm394_vm0, %v7714_v55  ;;  %v548_v6 = vmul.f32 %v7821_v7, %v7821_v7 }
  0x45   : > { %603 = vadd.xlane.f32.xlu1 %v602_v8  ;;  %411 = vadd.xlane.f32.xlu0 %v410_v17  ;;  %v7840_v8 = vld [vmem:[%s7478_s24 + $0xe8] sm:$0xff]  ;;  %v422_v17 = vsel %vm394_vm0, %v371_v63, 0.0  ;;  %v7895_v63 = vld [vmem:[%s7483_s30 + $0xb0] sm:$0xff] }
  0x46   : > { %5937 = vmatmul.mubr.msk.f32.gmra.mrb[18].mxu0 %vm394_vm0, %v7620_v14  ;;  %6165 = vmatmul.mubr.msk.f32.gmra.mrb[18].mxu1 %vm394_vm0, %v7730_v1  ;;  %v7843_v14 = vld [vmem:[%s7483_s30 + $0x98] sm:$0xff] }
  0x47   : > { %996 = vmatprep.mubr.f32.mxu0 %v7349_v10  ;;  %6167 = vmatprep.mubr.msk.f32.mxu1 %vm394_vm0, %v7736_v2  ;;  %v549_v20 = vmul.f32 %v7843_v14, %v7843_v14 }
  0x49   : > { %606 = vadd.xlane.f32.xlu1 %v605_v19  ;;  %414 = vadd.xlane.f32.xlu0 %v413_v26  ;;  %v617_v19 = vsel %vm562_vm1, %v548_v6, 0.0  ;;  %v7862_v26 = vld [vmem:[%s7478_s24 + $0xf8] sm:$0xff]  ;;  %v620_v32 = vsel %vm562_vm1, %v549_v20, 0.0 }
  0x4a   : > { %5938 = vmatmul.mubr.msk.f32.gmra.mrb[20].mxu0 %vm394_vm0, %v7626_v16  ;;  %6168 = vmatmul.mubr.msk.f32.gmra.mrb[20].mxu1 %vm394_vm0, %v7752_v11  ;;  %v7865_v16 = vld [vmem:[%s7483_s30 + $0xa0] sm:$0xff] }
  0x4b   : > { %1002 = vmatprep.mubr.f32.mxu0 %v7349_v10  ;;  %6170 = vmatprep.mubr.msk.f32.mxu1 %vm394_vm0, %v7758_v13 }
  0x4d   : > { %609 = vadd.xlane.f32.xlu1 %v608_v31  ;;  %417 = vadd.xlane.f32.xlu0 %v416_v42  ;;  %v373_v31 = vmul.f32 %v7642_v21, %v7642_v21  ;;  %v550_v42 = vmul.f32 %v7865_v16, %v7865_v16 }
  0x4e   : > { %5939 = vmatmul.mubr.msk.f32.gmra.mrb[22].mxu0 %vm394_vm0, %v7642_v21  ;;  %6171 = vmatmul.mubr.msk.f32.gmra.mrb[22].mxu1 %vm394_vm0, %v7774_v24 }
  0x4f   : > { %1008 = vmatprep.mubr.f32.mxu0 %v7349_v10  ;;  %6173 = vmatprep.mubr.msk.f32.mxu1 %vm394_vm0, %v7780_v25  ;;  %v428_v21 = vsel %vm394_vm0, %v373_v31, 0.0  ;;  %v623_v49 = vsel %vm562_vm1, %v550_v42, 0.0  ;;  %v7925_v31 = vld [vmem:[%s7483_s30 + $0xc0] sm:$0xff] }
  0x51   : > { %612 = vadd.xlane.f32.xlu1 %v611_v47  ;;  %420 = vadd.xlane.f32.xlu0 %v419_v59  ;;  %v374_v47 = vmul.f32 %v7648_v23, %v7648_v23  ;;  %v551_v59 = vmul.f32 %v7880_v46, %v7880_v46 }
  0x52   : > { %5940 = vmatmul.mubr.msk.f32.gmra.mrb[24].mxu0 %vm394_vm0, %v7648_v23  ;;  %6174 = vmatmul.mubr.msk.f32.gmra.mrb[24].mxu1 %vm394_vm0, %v7796_v33 }
  0x53   : > { %1014 = vmatprep.mubr.f32.mxu0 %v7349_v10  ;;  %6176 = vmatprep.mubr.msk.f32.mxu1 %vm394_vm0, %v7802_v34  ;;  %v431_v23 = vsel %vm394_vm0, %v374_v47, 0.0  ;;  %v626_v6 = vsel %vm562_vm1, %v551_v59, 0.0  ;;  %v7940_v47 = vld [vmem:[%s7483_s30 + $0xc8] sm:$0xff] }
  0x55   : > { %615 = vadd.xlane.f32.xlu1 %v614_v3  ;;  %423 = vadd.xlane.f32.xlu0 %v422_v17  ;;  %v375_v3 = vmul.f32 %v7664_v28, %v7664_v28  ;;  %v552_v17 = vmul.f32 %v7895_v63, %v7895_v63 }
  0x56   : > { %5941 = vmatmul.mubr.msk.f32.gmra.mrb[26].mxu0 %vm394_vm0, %v7664_v28  ;;  %6177 = vmatmul.mubr.msk.f32.gmra.mrb[26].mxu1 %vm394_vm0, %v7818_v56 }
  0x57   : > { %1020 = vmatprep.mubr.f32.mxu0 %v7349_v10  ;;  %6179 = vmatprep.mubr.msk.f32.mxu1 %vm394_vm0, %v7824_v57  ;;  %v434_v28 = vsel %vm394_vm0, %v375_v3, 0.0  ;;  %v629_v20 = vsel %vm562_vm1, %v552_v17, 0.0  ;;  %v7955_v3 = vld [vmem:[%s7483_s30 + $0xd0] sm:$0xff] }
  0x59   : > { %618 = vadd.xlane.f32.xlu1 %v617_v19  ;;  %426 = vadd.xlane.f32.xlu0 %v425_v27  ;;  %v376_v19 = vmul.f32 %v7670_v30, %v7670_v30  ;;  %v553_v27 = vmul.f32 %v7910_v18, %v7910_v18 }
  0x5a   : > { %5942 = vmatmul.mubr.msk.f32.gmra.mrb[28].mxu0 %vm394_vm0, %v7670_v30  ;;  %6180 = vmatmul.mubr.msk.f32.gmra.mrb[28].mxu1 %vm394_vm0, %v7840_v8 }
  0x5b   : > { %1026 = vmatprep.mubr.f32.mxu0 %v7349_v10  ;;  %6182 = vmatprep.mubr.msk.f32.mxu1 %vm394_vm0, %v7846_v9  ;;  %v437_v30 = vsel %vm394_vm0, %v376_v19, 0.0  ;;  %v632_v42 = vsel %vm562_vm1, %v553_v27, 0.0  ;;  %v7970_v19 = vld [vmem:[%s7483_s30 + $0xd8] sm:$0xff] }
  0x5d   : > { %621 = vadd.xlane.f32.xlu1 %v620_v32  ;;  %429 = vadd.xlane.f32.xlu0 %v428_v21  ;;  %v377_v32 = vmul.f32 %v7686_v35, %v7686_v35  ;;  %v554_v21 = vmul.f32 %v7925_v31, %v7925_v31 }
  0x5e   : > { %5943 = vmatmul.mubr.msk.f32.gmra.mrb[30].mxu0 %vm394_vm0, %v7686_v35  ;;  %6183 = vmatmul.mubr.msk.f32.gmra.mrb[30].mxu1 %vm394_vm0, %v7862_v26 }
  0x5f   : > { %1032 = vmatprep.mubr.f32.mxu0 %v7349_v10  ;;  %1898 = vmatprep.mubr.f32.mxu1 %v7349_v10  ;;  %v440_v35 = vsel %vm394_vm0, %v377_v32, 0.0  ;;  %v635_v59 = vsel %vm562_vm1, %v554_v21, 0.0  ;;  %v7985_v32 = vld [vmem:[%s7483_s30 + $0xe0] sm:$0xff] }
  0x61   : > { %624 = vadd.xlane.f32.xlu1 %v623_v49  ;;  %432 = vadd.xlane.f32.xlu0 %v431_v23  ;;  %v378_v49 = vmul.f32 %v7692_v41, %v7692_v41  ;;  %v555_v23 = vmul.f32 %v7940_v47, %v7940_v47 }
  0x62   : > { %5944 = vmatmul.mubr.msk.f32.gmra.mrb[32].mxu0 %vm394_vm0, %v7692_v41  ;;  %5992 = vmatmul.mubr.msk.f32.vlgmr.msra.gmra.mrb[32].mxu1 %vm562_vm1, %v7511_v44 }
  0x63   : > { %1038 = vmatprep.mubr.f32.mxu0 %v7349_v10  ;;  %1904 = vmatprep.mubr.f32.mxu1 %v7349_v10  ;;  %v443_v41 = vsel %vm394_vm0, %v378_v49, 0.0  ;;  %v638_v17 = vsel %vm562_vm1, %v555_v23, 0.0  ;;  %v8000_v49 = vld [vmem:[%s7483_s30 + $0xe8] sm:$0xff] }
  0x65   : > { %627 = vadd.xlane.f32.xlu1 %v626_v6  ;;  %435 = vadd.xlane.f32.xlu0 %v434_v28  ;;  %v379_v6 = vmul.f32 %v7708_v51, %v7708_v51  ;;  %v556_v28 = vmul.f32 %v7955_v3, %v7955_v3 }
  0x66   : > { %5945 = vmatmul.mubr.msk.f32.gmra.mrb[34].mxu0 %vm394_vm0, %v7708_v51  ;;  %5993 = vmatmul.mubr.msk.f32.gmra.mrb[34].mxu1 %vm562_vm1, %v7538_v52 }
  0x67   : > { %1044 = vmatprep.mubr.f32.mxu0 %v7349_v10  ;;  %1910 = vmatprep.mubr.f32.mxu1 %v7349_v10  ;;  %v446_v51 = vsel %vm394_vm0, %v379_v6, 0.0  ;;  %v641_v27 = vsel %vm562_vm1, %v556_v28, 0.0  ;;  %v8015_v6 = vld [vmem:[%s7483_s30 + $0xf0] sm:$0xff] }
  0x69   : > { %630 = vadd.xlane.f32.xlu1 %v629_v20  ;;  %438 = vadd.xlane.f32.xlu0 %v437_v30  ;;  %v380_v20 = vmul.f32 %v7714_v55, %v7714_v55  ;;  %v557_v30 = vmul.f32 %v7970_v19, %v7970_v19 }
  0x6a   : > { %5946 = vmatmul.mubr.msk.f32.gmra.mrb[36].mxu0 %vm394_vm0, %v7714_v55  ;;  %5994 = vmatmul.mubr.msk.f32.gmra.mrb[36].mxu1 %vm562_vm1, %v7508_v43 }
  0x6b   : > { %1050 = vmatprep.mubr.f32.mxu0 %v7349_v10  ;;  %1916 = vmatprep.mubr.f32.mxu1 %v7349_v10  ;;  %v449_v55 = vsel %vm394_vm0, %v380_v20, 0.0  ;;  %v644_v21 = vsel %vm562_vm1, %v557_v30, 0.0  ;;  %v8030_v20 = vld [vmem:[%s7483_s30 + $0xf8] sm:$0xff]  ;;  %s5794_s30 = scalar_lea.sflag [#allocation3], %s249_s12 }
  0x6d   : > { %633 = vadd.xlane.f32.xlu1 %v632_v42  ;;  %441 = vadd.xlane.f32.xlu0 %v440_v35  ;;  %v381_v42 = vmul.f32 %v7730_v1, %v7730_v1  ;;  %v558_v35 = vmul.f32 %v7985_v32, %v7985_v32 }
  0x6e   : > { %5947 = vmatmul.mubr.msk.f32.gmra.mrb[38].mxu0 %vm394_vm0, %v7730_v1  ;;  %5995 = vmatmul.mubr.msk.f32.gmra.mrb[38].mxu1 %vm562_vm1, %v7530_v50 }
  0x6f   : > { %1056 = vmatprep.mubr.f32.mxu0 %v7349_v10  ;;  %1922 = vmatprep.mubr.f32.mxu1 %v7349_v10  ;;  %v452_v1 = vsel %vm394_vm0, %v381_v42, 0.0  ;;  %v647_v23 = vsel %vm562_vm1, %v558_v35, 0.0  ;;  %v387_v35 = vmul.f32 %v7796_v33, %v7796_v33 }
  0x71   : > { %636 = vadd.xlane.f32.xlu1 %v635_v59  ;;  %444 = vadd.xlane.f32.xlu0 %v443_v41  ;;  %v382_v59 = vmul.f32 %v7736_v2, %v7736_v2  ;;  %v559_v41 = vmul.f32 %v8000_v49, %v8000_v49 }
  0x72   : > { %5948 = vmatmul.mubr.msk.f32.gmra.mrb[40].mxu0 %vm394_vm0, %v7736_v2  ;;  %5996 = vmatmul.mubr.msk.f32.gmra.mrb[40].mxu1 %vm562_vm1, %v7565_v60 }
  0x73   : > { %1062 = vmatprep.mubr.f32.mxu0 %v7349_v10  ;;  %1928 = vmatprep.mubr.f32.mxu1 %v7349_v10  ;;  %v455_v2 = vsel %vm394_vm0, %v382_v59, 0.0  ;;  %v650_v28 = vsel %vm562_vm1, %v559_v41, 0.0  ;;  %v470_v59 = vsel %vm394_vm0, %v387_v35, 0.0 }
  0x75   : > { %639 = vadd.xlane.f32.xlu1 %v638_v17  ;;  %447 = vadd.xlane.f32.xlu0 %v446_v51  ;;  %v383_v17 = vmul.f32 %v7752_v11, %v7752_v11  ;;  %v560_v51 = vmul.f32 %v8015_v6, %v8015_v6 }
  0x76   : > { %5949 = vmatmul.mubr.msk.f32.gmra.mrb[42].mxu0 %vm394_vm0, %v7752_v11  ;;  %5997 = vmatmul.mubr.msk.f32.gmra.mrb[42].mxu1 %vm562_vm1, %v7557_v58 }
  0x77   : > { %1068 = vmatprep.mubr.f32.mxu0 %v7349_v10  ;;  %1934 = vmatprep.mubr.f32.mxu1 %v7349_v10  ;;  %v458_v11 = vsel %vm394_vm0, %v383_v17, 0.0  ;;  %v653_v30 = vsel %vm562_vm1, %v560_v51, 0.0  ;;  %v390_v17 = vmul.f32 %v7824_v57, %v7824_v57 }
  0x79   : > { %642 = vadd.xlane.f32.xlu1 %v641_v27  ;;  %450 = vadd.xlane.f32.xlu0 %v449_v55  ;;  %v384_v27 = vmul.f32 %v7758_v13, %v7758_v13  ;;  %v561_v55 = vmul.f32 %v8030_v20, %v8030_v20  ;;  %v479_v51 = vsel %vm394_vm0, %v390_v17, 0.0 }
  0x7a   : > { %5950 = vmatmul.mubr.msk.f32.gmra.mrb[44].mxu0 %vm394_vm0, %v7758_v13  ;;  %5998 = vmatmul.mubr.msk.f32.gmra.mrb[44].mxu1 %vm562_vm1, %v7590_v4  ;;  %v385_v13 = vmul.f32 %v7774_v24, %v7774_v24 }
  0x7b   : > { %1074 = vmatprep.mubr.f32.mxu0 %v7349_v10  ;;  %1940 = vmatprep.mubr.f32.mxu1 %v7349_v10  ;;  %v461_v42 = vsel %vm394_vm0, %v384_v27, 0.0 }
  0x7d   : > { %645 = vadd.xlane.f32.xlu1 %v644_v21  ;;  %453 = vadd.xlane.f32.xlu0 %v452_v1  ;;  %v656_v21 = vsel %vm562_vm1, %v561_v55, 0.0  ;;  %v464_v1 = vsel %vm394_vm0, %v385_v13, 0.0 }
  0x7e   : > { %5951 = vmatmul.mubr.msk.f32.gmra.mrb[46].mxu0 %vm394_vm0, %v7774_v24  ;;  %5999 = vmatmul.mubr.msk.f32.gmra.mrb[46].mxu1 %vm562_vm1, %v7579_v0  ;;  %v386_v24 = vmul.f32 %v7780_v25, %v7780_v25 }
  0x7f   : > { %1080 = vmatprep.mubr.f32.mxu0 %v7349_v10  ;;  %1946 = vmatprep.mubr.f32.mxu1 %v7349_v10 }
  0x81   : > { %648 = vadd.xlane.f32.xlu1 %v647_v23  ;;  %456 = vadd.xlane.f32.xlu0 %v455_v2  ;;  %v467_v23 = vsel %vm394_vm0, %v386_v24, 0.0  ;;  %v661_v2 = vmul.f32 %v7493_v38, %v7493_v38 }
  0x82   : > { %5952 = vmatmul.mubr.msk.f32.gmra.mrb[48].mxu0 %vm394_vm0, %v7780_v25  ;;  %6000 = vmatmul.mubr.msk.f32.gmra.mrb[48].mxu1 %vm562_vm1, %v7612_v12  ;;  %v388_v25 = vmul.f32 %v7802_v34, %v7802_v34 }
  0x83   : > { %1086 = vmatprep.mubr.f32.mxu0 %v7349_v10  ;;  %1952 = vmatprep.mubr.f32.mxu1 %v7349_v10  ;;  %v674_v38 = vrot.slane %v661_v2, 4 }
  0x85   : > { %651 = vadd.xlane.f32.xlu1 %v650_v28  ;;  %459 = vadd.xlane.f32.xlu0 %v458_v11  ;;  %v393_v28 = vmul.f32 %v7862_v26, %v7862_v26  ;;  %v675_v27 = vadd.f32 %v674_v38, %v661_v2 }
  0x86   : > { %5953 = vmatmul.mubr.msk.f32.gmra.mrb[50].mxu0 %vm394_vm0, %v7796_v33  ;;  %6001 = vmatmul.mubr.msk.f32.gmra.mrb[50].mxu1 %vm562_vm1, %v7623_v15  ;;  %v389_v33 = vmul.f32 %v7818_v56, %v7818_v56 }
  0x87   : > { %1092 = vmatprep.mubr.f32.mxu0 %v7349_v10  ;;  %1958 = vmatprep.mubr.f32.mxu1 %v7349_v10  ;;  %v488_v11 = vsel %vm394_vm0, %v393_v28, 0.0 }
  0x88   : > { %v476_v41 = vsel %vm394_vm0, %v389_v33, 0.0 }
  0x89   : > { %654 = vadd.xlane.f32.xlu1 %v653_v30  ;;  %462 = vadd.xlane.f32.xlu0 %v461_v42 }
  0x8a   : > { %5954 = vmatmul.mubr.msk.f32.gmra.mrb[52].mxu0 %vm394_vm0, %v7802_v34  ;;  %6002 = vmatmul.mubr.msk.f32.gmra.mrb[52].mxu1 %vm562_vm1, %v7645_v22  ;;  %v473_v34 = vsel %vm394_vm0, %v388_v25, 0.0 }
  0x8b   : > { %1098 = vmatprep.mubr.f32.mxu0 %v7349_v10  ;;  %1964 = vmatprep.mubr.f32.mxu1 %v7349_v10 }
  0x8d   : > { %657 = vadd.xlane.f32.xlu1 %v656_v21  ;;  %465 = vadd.xlane.f32.xlu0 %v464_v1 }
  0x8e   : > { %5955 = vmatmul.mubr.msk.f32.gmra.mrb[54].mxu0 %vm394_vm0, %v7818_v56  ;;  %6003 = vmatmul.mubr.msk.f32.gmra.mrb[54].mxu1 %vm562_vm1, %v7667_v29  ;;  %v391_v56 = vmul.f32 %v7840_v8, %v7840_v8 }
  0x8f   : > { %1104 = vmatprep.mubr.f32.mxu0 %v7349_v10  ;;  %1970 = vmatprep.mubr.f32.mxu1 %v7349_v10 }
  0x91   : > { %471 = vadd.xlane.f32.xlu1 %v470_v59  ;;  %468 = vadd.xlane.f32.xlu0 %v467_v23 }
  0x92   : > { %5956 = vmatmul.mubr.msk.f32.gmra.mrb[56].mxu0 %vm394_vm0, %v7824_v57  ;;  %6004 = vmatmul.mubr.msk.f32.gmra.mrb[56].mxu1 %vm562_vm1, %v7689_v37  ;;  %v392_v57 = vmul.f32 %v7846_v9, %v7846_v9 }
  0x93   : > { %1110 = vmatprep.mubr.f32.mxu0 %v7349_v10  ;;  %1976 = vmatprep.mubr.f32.mxu1 %v7349_v10 }
  0x94   : > { %v485_v30 = vsel %vm394_vm0, %v392_v57, 0.0 }
  0x95   : > { %477 = vadd.xlane.f32.xlu1 %v476_v41  ;;  %474 = vadd.xlane.f32.xlu0 %v473_v34 }
  0x96   : > { %5957 = vmatmul.mubr.msk.f32.gmra.mrb[58].mxu0 %vm394_vm0, %v7840_v8  ;;  %6005 = vmatmul.mubr.msk.f32.gmra.mrb[58].mxu1 %vm562_vm1, %v7711_v53  ;;  %v482_v8 = vsel %vm394_vm0, %v391_v56, 0.0 }
  0x97   : > { %1116 = vmatprep.mubr.f32.mxu0 %v7349_v10  ;;  %1982 = vmatprep.mubr.f32.mxu1 %v7349_v10 }
  0x99   : > { %483 = vadd.xlane.f32.xlu1 %v482_v8  ;;  %480 = vadd.xlane.f32.xlu0 %v479_v51 }
  0x9a   : > { %5958 = vmatmul.mubr.msk.f32.gmra.mrb[60].mxu0 %vm394_vm0, %v7846_v9  ;;  %6006 = vmatmul.mubr.msk.f32.gmra.mrb[60].mxu1 %vm562_vm1, %v7733_v54  ;;  %v676_v9 = vrot.slane %v675_v27, 2 }
  0x9b   : > { %1122 = vmatprep.mubr.f32.mxu0 %v7349_v10  ;;  %1988 = vmatprep.mubr.f32.mxu1 %v7349_v10 }
  0x9d   : > { %489 = vadd.xlane.f32.xlu1 %v488_v11  ;;  %486 = vadd.xlane.f32.xlu0 %v485_v30 }
  0x9e   : > { %5959 = vmatmul.mubr.msk.f32.gmra.mrb[62].mxu0 %vm394_vm0, %v7862_v26  ;;  %6007 = vmatmul.mubr.msk.f32.gmra.mrb[62].mxu1 %vm562_vm1, %v7755_v61 }
  0x9f   : > { %1994 = vmatprep.mubr.f32.mxu1 %v7349_v10  ;;  %6187 = vmatprep.mubr.msk.f32.mxu0 %vm562_vm1, %v7511_v44  ;;  %v677_v44 = vadd.f32 %v676_v9, %v675_v27 }
  0xa2   : > { %6008 = vmatmul.mubr.msk.f32.gmra.mrb[64].mxu1 %vm562_vm1, %v7777_v62  ;;  %6188 = vmatmul.mubr.msk.f32.vlgmr.msra.gmra.mrb[64].mxu0 %vm562_vm1, %v7538_v52 }
  0xa3   : > { %2000 = vmatprep.mubr.f32.mxu1 %v7349_v10  ;;  %6190 = vmatprep.mubr.msk.f32.mxu0 %vm562_vm1, %v7508_v43  ;;  %v678_v43 = vrot.slane %v677_v44, 1 }
  0xa6   : > { %6009 = vmatmul.mubr.msk.f32.gmra.mrb[66].mxu1 %vm562_vm1, %v7799_v5  ;;  %6191 = vmatmul.mubr.msk.f32.gmra.mrb[66].mxu0 %vm562_vm1, %v7530_v50  ;;  %v8134_v50 = vadd.f32 %v678_v43, %v677_v44 }
  0xa7   : > { %2006 = vmatprep.mubr.f32.mxu1 %v7349_v10  ;;  %6193 = vmatprep.mubr.msk.f32.mxu0 %vm562_vm1, %v7565_v60 }
  0xaa   : > { %6010 = vmatmul.mubr.msk.f32.gmra.mrb[68].mxu1 %vm562_vm1, %v7821_v7  ;;  %6194 = vmatmul.mubr.msk.f32.gmra.mrb[68].mxu0 %vm562_vm1, %v7557_v58 }
  0xab   : > { %2012 = vmatprep.mubr.f32.mxu1 %v7349_v10  ;;  %6196 = vmatprep.mubr.msk.f32.mxu0 %vm562_vm1, %v7590_v4 }
  0xae   : > { %6011 = vmatmul.mubr.msk.f32.gmra.mrb[70].mxu1 %vm562_vm1, %v7843_v14  ;;  %6197 = vmatmul.mubr.msk.f32.gmra.mrb[70].mxu0 %vm562_vm1, %v7579_v0  ;;  %v8140_v52 = vpop.xlane.xlu1 %570  ;;  %v8149_v60 = vpop.xlane.xlu0 %564 }
  0xaf   : > { %2018 = vmatprep.mubr.f32.mxu1 %v7349_v10  ;;  %6199 = vmatprep.mubr.msk.f32.mxu0 %vm562_vm1, %v7612_v12  ;;  %v8147_v58 = vadd.f32 %v8134_v50, %v8140_v52  ;;  %v8157_v0 = vadd.f32 %v8134_v50, %v8149_v60 }
  0xb1   : > { %11868 = vst [vmem:[#allocation5_spill] sm:$0xff] %v8147_v58  ;;  %11869 = vst [vmem:[#allocation6_spill] sm:$0xff] %v8157_v0 }
  0xb2   : > { %6012 = vmatmul.mubr.msk.f32.gmra.mrb[72].mxu1 %vm562_vm1, %v7865_v16  ;;  %6200 = vmatmul.mubr.msk.f32.gmra.mrb[72].mxu0 %vm562_vm1, %v7623_v15  ;;  %v8159_v4 = vpop.xlane.xlu1 %573  ;;  %v8168_v15 = vpop.xlane.xlu0 %567 }
  0xb3   : > { %2024 = vmatprep.mubr.f32.mxu1 %v7349_v10  ;;  %6202 = vmatprep.mubr.msk.f32.mxu0 %vm562_vm1, %v7645_v22  ;;  %v8166_v12 = vadd.f32 %v8134_v50, %v8159_v4 }
  0xb5   : > { %11870 = vst [vmem:[#allocation7_spill] sm:$0xff] %v8166_v12 }
  0xb6   : > { %6013 = vmatmul.mubr.msk.f32.gmra.mrb[74].mxu1 %vm562_vm1, %v7880_v46  ;;  %6203 = vmatmul.mubr.msk.f32.gmra.mrb[74].mxu0 %vm562_vm1, %v7667_v29  ;;  %v8174_v22 = vpop.xlane.xlu1 %579 }
  0xb7   : > { %2030 = vmatprep.mubr.f32.mxu1 %v7349_v10  ;;  %6205 = vmatprep.mubr.msk.f32.mxu0 %vm562_vm1, %v7689_v37  ;;  %v8181_v29 = vadd.f32 %v8134_v50, %v8174_v22  ;;  %v8183_v37 = vpop.xlane.xlu0 %576 }
  0xb9   : > { %11871 = vst [vmem:[#allocation8_spill] sm:$0xff] %v8181_v29 }
  0xba   : > { %6014 = vmatmul.mubr.msk.f32.gmra.mrb[76].mxu1 %vm562_vm1, %v7895_v63  ;;  %6206 = vmatmul.mubr.msk.f32.gmra.mrb[76].mxu0 %vm562_vm1, %v7711_v53  ;;  %v8191_v53 = vadd.f32 %v8134_v50, %v8183_v37  ;;  %v8193_v26 = vpop.xlane.xlu1 %585 }
  0xbb   : > { %2036 = vmatprep.mubr.f32.mxu1 %v7349_v10  ;;  %6208 = vmatprep.mubr.msk.f32.mxu0 %vm562_vm1, %v7733_v54  ;;  %v8200_v54 = vadd.f32 %v8134_v50, %v8193_v26  ;;  %v8202_v55 = vpop.xlane.xlu0 %582 }
  0xbc   : > { %11872 = vst [vmem:[#allocation9_spill] sm:$0xff] %v8191_v53 }
  0xbd   : > { %11873 = vst [vmem:[#allocation10_spill] sm:$0xff] %v8200_v54 }
  0xbe   : > { %6015 = vmatmul.mubr.msk.f32.gmra.mrb[78].mxu1 %vm562_vm1, %v7910_v18  ;;  %6209 = vmatmul.mubr.msk.f32.gmra.mrb[78].mxu0 %vm562_vm1, %v7755_v61  ;;  %v8210_v61 = vadd.f32 %v8134_v50, %v8202_v55  ;;  %v8228_v42 = vpop.xlane.xlu1 %396 }
  0xbf   : > { %2042 = vmatprep.mubr.f32.mxu1 %v7349_v10  ;;  %6211 = vmatprep.mubr.msk.f32.mxu0 %vm562_vm1, %v7777_v62  ;;  %v8215_v62 = vpop.xlane.xlu0 %588 }
  0xc0   : > { %11874 = vst [vmem:[#allocation11_spill] sm:$0xff] %v8210_v61 }
  0xc2   : > { %6016 = vmatmul.mubr.msk.f32.gmra.mrb[80].mxu1 %vm562_vm1, %v7925_v31  ;;  %6212 = vmatmul.mubr.msk.f32.gmra.mrb[80].mxu0 %vm562_vm1, %v7799_v5  ;;  %v8223_v5 = vadd.f32 %v8134_v50, %v8215_v62 }
  0xc3   : > { %2048 = vmatprep.mubr.f32.mxu1 %v7349_v10  ;;  %6214 = vmatprep.mubr.msk.f32.mxu0 %vm562_vm1, %v7821_v7  ;;  %v8244_v7 = vpop.xlane.xlu1 %591 }
  0xc4   : > { %11875 = vst [vmem:[#allocation12_spill] sm:$0xff] %v8223_v5 }
  0xc6   : > { %6017 = vmatmul.mubr.msk.f32.gmra.mrb[82].mxu1 %vm562_vm1, %v7940_v47  ;;  %6215 = vmatmul.mubr.msk.f32.gmra.mrb[82].mxu0 %vm562_vm1, %v7843_v14  ;;  %v660_v14 = vmul.f32 %v7498_v39, %v7498_v39 }
  0xc7   : > { %2054 = vmatprep.mubr.f32.mxu1 %v7349_v10  ;;  %6217 = vmatprep.mubr.msk.f32.mxu0 %vm562_vm1, %v7865_v16  ;;  %v659_v16 = vmul.f32 %v7525_v48, %v7525_v48  ;;  %v515_v48 = vrot.slane %v7485_v36, 4 }
  0xca   : > { %6018 = vmatmul.mubr.msk.f32.gmra.mrb[84].mxu1 %vm562_vm1, %v7955_v3  ;;  %6218 = vmatmul.mubr.msk.f32.gmra.mrb[84].mxu0 %vm562_vm1, %v7880_v46  ;;  %v8250_v46 = vpop.xlane.xlu0 %399 }
  0xcb   : > { %2060 = vmatprep.mubr.f32.mxu1 %v7349_v10  ;;  %6220 = vmatprep.mubr.msk.f32.mxu0 %vm562_vm1, %v7895_v63  ;;  %v668_v63 = vrot.slane %v660_v14, 4 }
  0xcd   : > { %v669_v13 = vadd.f32 %v668_v63, %v660_v14 }
  0xce   : > { %6019 = vmatmul.mubr.msk.f32.gmra.mrb[86].mxu1 %vm562_vm1, %v7970_v19  ;;  %6221 = vmatmul.mubr.msk.f32.gmra.mrb[86].mxu0 %vm562_vm1, %v7910_v18  ;;  %v662_v18 = vrot.slane %v659_v16, 4  ;;  %v8268_v39 = vpop.xlane.xlu0 %402 }
  0xcf   : > { %2066 = vmatprep.mubr.f32.mxu1 %v7349_v10  ;;  %6223 = vmatprep.mubr.msk.f32.mxu0 %vm562_vm1, %v7925_v31  ;;  %v8259_v31 = vpop.xlane.xlu1 %594  ;;  %v670_v24 = vrot.slane %v669_v13, 2 }
  0xd0   : > { %v663_v21 = vadd.f32 %v662_v18, %v659_v16 }
  0xd1   : > { %v671_v23 = vadd.f32 %v670_v24, %v669_v13 }
  0xd2   : > { %6020 = vmatmul.mubr.msk.f32.gmra.mrb[88].mxu1 %vm562_vm1, %v7985_v32  ;;  %6224 = vmatmul.mubr.msk.f32.gmra.mrb[88].mxu0 %vm562_vm1, %v7940_v47  ;;  %v524_v47 = vrot.slane %v7500_v40, 4  ;;  %v664_v59 = vrot.slane %v663_v21, 2  ;;  %v8285_v33 = vpop.xlane.xlu0 %405 }
  0xd3   : > { %2072 = vmatprep.mubr.f32.mxu1 %v7349_v10  ;;  %6226 = vmatprep.mubr.msk.f32.mxu0 %vm562_vm1, %v7955_v3  ;;  %v506_v3 = vrot.slane %v7513_v45, 4  ;;  %v672_v2 = vrot.slane %v671_v23, 1 }
  0xd4   : > { %v525_v35 = vadd.f32 %v524_v47, %v7500_v40  ;;  %v665_v25 = vadd.f32 %v664_v59, %v663_v21 }
  0xd5   : > { %v507_v1 = vadd.f32 %v506_v3, %v7513_v45 }
  0xd6   : > { %6021 = vmatmul.mubr.msk.f32.gmra.mrb[90].mxu1 %vm562_vm1, %v8000_v49  ;;  %6227 = vmatmul.mubr.msk.f32.gmra.mrb[90].mxu0 %vm562_vm1, %v7970_v19  ;;  %v8280_v19 = vpop.xlane.xlu1 %597  ;;  %v8293_v40 = vpop.xlane.xlu0 %408  ;;  %v666_v34 = vrot.slane %v665_v25, 1 }
  0xd7   : > { %2078 = vmatprep.mubr.f32.mxu1 %v7349_v10  ;;  %6229 = vmatprep.mubr.msk.f32.mxu0 %vm562_vm1, %v7985_v32  ;;  %v516_v32 = vadd.f32 %v515_v48, %v7485_v36 }
  0xd8   : > { %v8299_v51 = vadd.f32 %v666_v34, %v665_v25 }
  0xda   : > { %6022 = vmatmul.mubr.msk.f32.gmra.mrb[92].mxu1 %vm562_vm1, %v8015_v6  ;;  %6230 = vmatmul.mubr.msk.f32.gmra.mrb[92].mxu0 %vm562_vm1, %v8000_v49  ;;  %v526_v49 = vrot.slane %v525_v35, 2  ;;  %v8291_v36 = vpop.xlane.xlu1 %600  ;;  %v8301_v57 = vpop.xlane.xlu0 %411  ;;  %v8311_v9 = vadd.f32 %v8299_v51, %v8140_v52  ;;  %v8319_v43 = vadd.f32 %v8299_v51, %v8149_v60  ;;  %v8329_v63 = vadd.f32 %v8299_v51, %v8159_v4 }
  0xdb   : > { %2084 = vmatprep.mubr.f32.mxu1 %v7349_v10  ;;  %6232 = vmatprep.mubr.msk.f32.mxu0 %vm562_vm1, %v8015_v6  ;;  %v517_v10 = vrot.slane %v516_v32, 2  ;;  %v508_v6 = vrot.slane %v507_v1, 2  ;;  %v8349_v47 = vadd.f32 %v8299_v51, %v8174_v22  ;;  %v8357_v3 = vadd.f32 %v8299_v51, %v8183_v37 }
  0xdc   : > { %v527_v41 = vadd.f32 %v526_v49, %v525_v35  ;;  %11876 = vst [vmem:[#allocation13_spill] sm:$0xff] %v8311_v9  ;;  %11878 = vst [vmem:[#allocation15_spill] sm:$0xff] %v8319_v43 }
  0xdd   : > { %v518_v45 = vadd.f32 %v517_v10, %v516_v32  ;;  %v509_v56 = vadd.f32 %v508_v6, %v507_v1  ;;  %11880 = vst [vmem:[#allocation17_spill] sm:$0xff] %v8329_v63  ;;  %11885 = vst [vmem:[#allocation22_spill] sm:$0xff] %v8349_v47  ;;  %v8415_v6 = vadd.f32 %v8134_v50, %v8244_v7 }
  0xde   : > { %6023 = vmatmul.mubr.msk.f32.gmra.mrb[94].mxu1 %vm562_vm1, %v8030_v20  ;;  %6233 = vmatmul.mubr.msk.f32.gmra.mrb[94].mxu0 %vm562_vm1, %v8030_v20  ;;  %v8295_v17 = vpop.xlane.xlu1 %603  ;;  %v528_v28 = vrot.slane %v527_v41, 1  ;;  %v8297_v20 = vadd.f32 %v672_v2, %v671_v23  ;;  %11887 = vst [vmem:[#allocation24_spill] sm:$0xff] %v8357_v3  ;;  %v8359_v13 = vpop.xlane.xlu0 %414 }
  0xdf   : > { %v519_v8 = vrot.slane %v518_v45, 1  ;;  %v510_v38 = vrot.slane %v509_v56, 1  ;;  %11897 = vst [vmem:[#allocation34_spill] sm:$0xff] %v8415_v6  ;;  %v8447_v6 = vadd.f32 %v8299_v51, %v8280_v19 }
  0xe0   : > { %v8305_v27 = vadd.f32 %v528_v28, %v527_v41  ;;  %v8315_v44 = vadd.f32 %v8297_v20, %v8140_v52  ;;  %v8323_v14 = vadd.f32 %v8297_v20, %v8149_v60  ;;  %v8333_v18 = vadd.f32 %v8297_v20, %v8159_v4 }
  0xe1   : > { %v8303_v11 = vadd.f32 %v519_v8, %v518_v45  ;;  %v8307_v30 = vadd.f32 %v510_v38, %v509_v56  ;;  %v8337_v52 = vadd.f32 %v8299_v51, %v8168_v15  ;;  %v8341_v48 = vadd.f32 %v8297_v20, %v8168_v15  ;;  %11901 = vst [vmem:[#allocation38_spill] sm:$0xff] %v8447_v6 }
  0xe2   : > { %11877 = vst [vmem:[#allocation14_spill] sm:$0xff] %v8315_v44  ;;  %11879 = vst [vmem:[#allocation16_spill] sm:$0xff] %v8323_v14  ;;  %v8325_v16 = vpop.xlane.xlu1 %606  ;;  %v8345_v60 = vadd.f32 %v8134_v50, %v8168_v15  ;;  %v8353_v4 = vadd.f32 %v8297_v20, %v8174_v22  ;;  %v8363_v21 = vadd.f32 %v8297_v20, %v8183_v37  ;;  %v8443_v8 = vpop.xlane.xlu0 %417 }
  0xe3   : > { %11881 = vst [vmem:[#allocation18_spill] sm:$0xff] %v8333_v18  ;;  %11882 = vst [vmem:[#allocation19_spill] sm:$0xff] %v8337_v52  ;;  %v8367_v15 = vadd.f32 %v8299_v51, %v8193_v26  ;;  %v8371_v32 = vadd.f32 %v8297_v20, %v8193_v26  ;;  %v8375_v22 = vadd.f32 %v8299_v51, %v8202_v55 }
  0xe4   : > { %11883 = vst [vmem:[#allocation20_spill] sm:$0xff] %v8341_v48  ;;  %11884 = vst [vmem:[#allocation21_spill] sm:$0xff] %v8345_v60  ;;  %v8379_v35 = vadd.f32 %v8297_v20, %v8202_v55  ;;  %v680_v37 = vadd.f32 %v8307_v30, %v8228_v42  ;;  %v681_v1 = vadd.f32 %v8303_v11, %v8228_v42 }
  0xe5   : > { %11886 = vst [vmem:[#allocation23_spill] sm:$0xff] %v8353_v4  ;;  %11888 = vst [vmem:[#allocation25_spill] sm:$0xff] %v8363_v21  ;;  %v682_v24 = vadd.f32 %v8305_v27, %v8228_v42  ;;  %v8389_v26 = vadd.f32 %v8299_v51, %v8215_v62  ;;  %v8393_v59 = vadd.f32 %v8297_v20, %v8215_v62 }
  0xe6   : > { %11889 = vst [vmem:[#allocation26_spill] sm:$0xff] %v8367_v15  ;;  %11890 = vst [vmem:[#allocation27_spill] sm:$0xff] %v8371_v32  ;;  %v8397_v55 = vadd.f32 %v8299_v51, %v8244_v7  ;;  %v8401_v10 = vadd.f32 %v8297_v20, %v8244_v7  ;;  %v8405_v49 = vadd.f32 %v8307_v30, %v8250_v46  ;;  %v8417_v23 = vpop.xlane.xlu1 %609 }
  0xe7   : > { %11891 = vst [vmem:[#allocation28_spill] sm:$0xff] %v8375_v22  ;;  %11892 = vst [vmem:[#allocation29_spill] sm:$0xff] %v8379_v35  ;;  %v8409_v42 = vadd.f32 %v8303_v11, %v8250_v46  ;;  %v685_v62 = vadd.f32 %v8305_v27, %v8250_v46  ;;  %v8421_v25 = vadd.f32 %v8307_v30, %v8268_v39 }
  0xe8   : > { %11893 = vst [vmem:[#allocation30_spill] sm:$0xff] %v8389_v26  ;;  %11894 = vst [vmem:[#allocation31_spill] sm:$0xff] %v8393_v59  ;;  %v8425_v45 = vadd.f32 %v8299_v51, %v8259_v31  ;;  %v8429_v41 = vadd.f32 %v8297_v20, %v8259_v31  ;;  %v8433_v46 = vadd.f32 %v8134_v50, %v8259_v31 }
  0xe9   : > { %11895 = vst [vmem:[#allocation32_spill] sm:$0xff] %v8397_v55  ;;  %11896 = vst [vmem:[#allocation33_spill] sm:$0xff] %v8401_v10  ;;  %v8437_v2 = vadd.f32 %v8303_v11, %v8268_v39  ;;  %v8441_v34 = vadd.f32 %v8305_v27, %v8268_v39  ;;  %v8451_v31 = vadd.f32 %v8297_v20, %v8280_v19 }
  0xea   : > { %11898 = vst [vmem:[#allocation35_spill] sm:$0xff] %v8425_v45  ;;  %11899 = vst [vmem:[#allocation36_spill] sm:$0xff] %v8429_v41  ;;  %v8459_v54 = vadd.f32 %v8307_v30, %v8285_v33  ;;  %v8463_v29 = vadd.f32 %v8303_v11, %v8285_v33  ;;  %v691_v58 = vadd.f32 %v8305_v27, %v8285_v33  ;;  %v8471_v0 = vpop.xlane.xlu1 %612 }
  0xeb   : > { %11900 = vst [vmem:[#allocation37_spill] sm:$0xff] %v8433_v46  ;;  %11902 = vst [vmem:[#allocation39_spill] sm:$0xff] %v8451_v31  ;;  %v8455_v46 = vadd.f32 %v8134_v50, %v8280_v19  ;;  %v8469_v19 = vadd.f32 %v8299_v51, %v8291_v36  ;;  %v8531_v55 = vadd.f32 %v8297_v20, %v8325_v16 }
  0xec   : > { %v8553_v15 = vadd.f32 %v8305_v27, %v8359_v13 }
  0xed   : > { %11903 = vst [vmem:[#allocation40_spill] sm:$0xff] %v8455_v46  ;;  %11904 = vst [vmem:[#allocation41_spill] sm:$0xff] %v8469_v19 }
  0xee   : > { %11911 = vst [vmem:[#allocation48_spill] sm:$0xff] %v8531_v55  ;;  %v8548_v55 = vadd.f32 %v8303_v11, %v8359_v13 }
  0xf5   : > { %v938_v7 = vpop.f32.mrb[0].mxu0  ;;  %v6139_v56 = vpop.f32.mrb[0].mxu1 }
  0xf6   : > { %v1354_v28 = vmul.f32 2.0, %v938_v7  ;;  %v940_v38 = vpop.f32.mrb[1].mxu0  ;;  %v1359_v5 = vmul.f32 2.0, %v6139_v56  ;;  %v1195_v39 = vpop.f32.mrb[1].mxu1 }
  0xf7   : > { %v1355_v61 = vmul.f32 2.0, %v940_v38  ;;  %v1356_v53 = vmul.f32 2.0, %v1195_v39  ;;  %v8475_v39 = vadd.f32 %v8297_v20, %v8291_v36 }
  0xf8   : > { %v1450_v7 = vsub.f32 %v680_v37, %v1354_v28  ;;  %v1455_v56 = vsub.f32 %v685_v62, %v1359_v5 }
  0xf9   : > { %v1451_v38 = vsub.f32 %v681_v1, %v1355_v61  ;;  %v944_v46 = vpop.f32.mrb[2].mxu0  ;;  %v6142_v12 = vpop.f32.mrb[2].mxu1  ;;  %v1452_v5 = vsub.f32 %v682_v24, %v1356_v53  ;;  %11905 = vst [vmem:[#allocation42_spill] sm:$0xff] %v8475_v39  ;;  %v8479_v61 = vadd.f32 %v8134_v50, %v8291_v36  ;;  %v8491_v36 = vadd.f32 %v8303_v11, %v8293_v40 }
  0xfa   : > { %v1546_v60 = vmax.f32 %v1450_v7, 0.0  ;;  %v1551_v37 = vmax.f32 %v1455_v56, 0.0  ;;  %v1357_v62 = vmul.f32 2.0, %v944_v46  ;;  %v946_v28 = vpop.f32.mrb[3].mxu0  ;;  %v1365_v6 = vmul.f32 2.0, %v6142_v12  ;;  %v1205_v41 = vpop.f32.mrb[3].mxu1 }
  0xfb   : > { %v1547_v31 = vmax.f32 %v1451_v38, 0.0  ;;  %v1358_v33 = vmul.f32 2.0, %v946_v28  ;;  %11906 = vst [vmem:[#allocation43_spill] sm:$0xff] %v8479_v61  ;;  %v8481_v1 = vpop.xlane.xlu0 %420  ;;  %v1548_v7 = vmax.f32 %v1452_v5, 0.0  ;;  %v8487_v12 = vadd.f32 %v8307_v30, %v8293_v40 }
  0xfc   : > { %v2604_v19 = vmax.f32 %v1546_v60, 0.0  ;;  %v1453_v53 = vsub.f32 %v8405_v49, %v1357_v62  ;;  %v2609_v46 = vmax.f32 %v1551_v37, 0.0  ;;  %v1461_v45 = vsub.f32 %v691_v58, %v1365_v6 }
  0xfd   : > { %v2605_v24 = vmax.f32 %v1547_v31, 0.0  ;;  %v1454_v56 = vsub.f32 %v8409_v42, %v1358_v33  ;;  %v950_v39 = vpop.f32.mrb[4].mxu0  ;;  %v6145_v38 = vpop.f32.mrb[4].mxu1  ;;  %v8495_v60 = vadd.f32 %v8305_v27, %v8293_v40  ;;  %v8499_v49 = vadd.f32 %v8299_v51, %v8295_v17 }
  0xfe   : > { %v952_v42 = vpop.f32.mrb[5].mxu0  ;;  %v8503_v58 = vadd.f32 %v8307_v30, %v8301_v57  ;;  %v8507_v6 = vadd.f32 %v8297_v20, %v8295_v17  ;;  %v8511_v31 = vadd.f32 %v8134_v50, %v8295_v17  ;;  %v2796_v37 = vmul.f32 100.0, %v2604_v19  ;;  %v1215_v40 = vpop.f32.mrb[5].mxu1 }
  0xff   : > { %11907 = vst [vmem:[#allocation44_spill] sm:$0xff] %v8499_v49  ;;  %v8515_v5 = vadd.f32 %v8303_v11, %v8301_v57  ;;  %v8519_v62 = vadd.f32 %v8305_v27, %v8301_v57  ;;  %v8523_v28 = vadd.f32 %v8299_v51, %v8325_v16  ;;  %v8525_v33 = vpop.xlane.xlu1 %615  ;;  %v2606_v61 = vmax.f32 %v1548_v7, 0.0  ;;  %v8533_v57 = vpop.xlane.xlu0 %423 }
 0x100   : > { %11908 = vst [vmem:[#allocation45_spill] sm:$0xff] %v8507_v6  ;;  %11909 = vst [vmem:[#allocation46_spill] sm:$0xff] %v8511_v31  ;;  %v2797_v6 = vmul.f32 100.0, %v2605_v24  ;;  %v2801_v17 = vmul.f32 100.0, %v2609_v46  ;;  %v1549_v31 = vmax.f32 %v1453_v53, 0.0  ;;  %v1362_v19 = vmul.f32 2.0, %v1205_v41 }
 0x101   : > { %11910 = vst [vmem:[#allocation47_spill] sm:$0xff] %v8523_v28  ;;  %v956_v49 = vpop.f32.mrb[6].mxu0  ;;  %v8527_v10 = vpop.f32.mrb[6].mxu1  ;;  %v1550_v59 = vmax.f32 %v1454_v56, 0.0  ;;  %v1557_v26 = vmax.f32 %v1461_v45, 0.0  ;;  %v1360_v32 = vmul.f32 2.0, %v950_v39  ;;  %v8537_v7 = vadd.f32 %v8307_v30, %v8359_v13 }
 0x102   : > { %v958_v28 = vpop.f32.mrb[7].mxu0  ;;  %v8541_v41 = vadd.f32 %v8134_v50, %v8325_v16  ;;  %v2892_v53 = vadd.f32 1.0, %v2796_v37  ;;  %v1458_v24 = vsub.f32 %v8441_v34, %v1362_v19  ;;  %v8544_v46 = vpop.f32.mrb[7].mxu1  ;;  %v2798_v45 = vmul.f32 100.0, %v2606_v61 }
 0x103   : > { %v1456_v39 = vsub.f32 %v8421_v25, %v1360_v32  ;;  %v1361_v56 = vmul.f32 2.0, %v952_v42  ;;  %v2893_v35 = vadd.f32 1.0, %v2797_v6  ;;  %v2897_v16 = vadd.f32 1.0, %v2801_v17 }
 0x104   : > { %11912 = vst [vmem:[#allocation49_spill] sm:$0xff] %v8541_v41  ;;  %v2607_v41 = vmax.f32 %v1549_v31, 0.0  ;;  %v2608_v19 = vmax.f32 %v1550_v59, 0.0  ;;  %v2615_v22 = vmax.f32 %v1557_v26, 0.0  ;;  %v1371_v47 = vmul.f32 2.0, %v6145_v38  ;;  %v619_v38 = vpop.xlane.xlu1 %618 }
 0x105   : > { %v8555_v37 = vpop.f32.mrb[8].mxu0  ;;  %v8557_v34 = vpop.f32.mrb[8].mxu1  ;;  %v1457_v4 = vsub.f32 %v8437_v2, %v1361_v56  ;;  %v8564_v32 = vadd.f32 %v8299_v51, %v8417_v23  ;;  %v8568_v13 = vadd.f32 %v8297_v20, %v8417_v23  ;;  %6309 = vlog2.f32 %v2892_v53 }
 0x106   : > { %v8560_v61 = vpop.f32.mrb[9].mxu0  ;;  %v1554_v25 = vmax.f32 %v1458_v24, 0.0  ;;  %v8570_v42 = vpop.f32.mrb[9].mxu1  ;;  %v8574_v26 = vadd.f32 %v8307_v30, %v8443_v8  ;;  %v8578_v59 = vadd.f32 %v8134_v50, %v8417_v23  ;;  %v2894_v6 = vadd.f32 1.0, %v2798_v45 }
 0x107   : > { %11913 = vst [vmem:[#allocation50_spill] sm:$0xff] %v8564_v32  ;;  %11914 = vst [vmem:[#allocation51_spill] sm:$0xff] %v8568_v13  ;;  %v8580_v2 = vpop.xlane.xlu0 %426  ;;  %v1467_v31 = vsub.f32 %v8519_v62, %v1371_v47  ;;  %v8585_v17 = vadd.f32 %v8303_v11, %v8443_v8  ;;  %6311 = vlog2.f32 %v2893_v35  ;;  %v2799_v53 = vmul.f32 100.0, %v2607_v41 }
 0x108   : > { %11915 = vst [vmem:[#allocation52_spill] sm:$0xff] %v8578_v59  ;;  %v8587_v24 = vmul.f32 2.0, %v1215_v40  ;;  %6313 = vlog2.f32 %v2897_v16  ;;  %v2800_v23 = vmul.f32 100.0, %v2608_v19  ;;  %v2807_v59 = vmul.f32 100.0, %v2615_v22 }
 0x109   : > { %v8589_v56 = vpop.f32.mrb[10].mxu0  ;;  %v8591_v13 = vpop.f32.mrb[10].mxu1  ;;  %v1552_v32 = vmax.f32 %v1456_v39, 0.0  ;;  %v2612_v45 = vmax.f32 %v1554_v25, 0.0  ;;  %v1553_v47 = vmax.f32 %v1457_v4, 0.0  ;;  %v8597_v3 = vmul.f32 2.0, %v956_v49 }
 0x10a   : > { %v8593_v21 = vpop.f32.mrb[11].mxu0  ;;  %v1464_v62 = vsub.f32 %v8495_v60, %v8587_v24  ;;  %v8599_v35 = vpop.f32.mrb[11].mxu1  ;;  %v8603_v40 = vadd.f32 %v8305_v27, %v8443_v8  ;;  %v8607_v41 = vadd.f32 %v8299_v51, %v8471_v0  ;;  %v8611_v22 = vadd.f32 %v8297_v20, %v8471_v0 }
 0x10b   : > { %6315 = vlog2.f32 %v2894_v6  ;;  %v2895_v4 = vadd.f32 1.0, %v2799_v53  ;;  %v1563_v39 = vmax.f32 %v1467_v31, 0.0  ;;  %v1459_v60 = vsub.f32 %v8459_v54, %v8597_v3  ;;  %v622_v6 = vpop.xlane.xlu1 %621  ;;  %v430_v3 = vpop.xlane.xlu0 %429 }
 0x10c   : > { %11916 = vst [vmem:[#allocation53_spill] sm:$0xff] %v8607_v41  ;;  %11917 = vst [vmem:[#allocation54_spill] sm:$0xff] %v8611_v22  ;;  %v8615_v49 = vmul.f32 2.0, %v958_v28  ;;  %v8623_v19 = vadd.f32 %v8307_v30, %v8481_v1  ;;  %v8627_v25 = vadd.f32 %v8134_v50, %v8471_v0  ;;  %v2896_v53 = vadd.f32 1.0, %v2800_v23 }
 0x10d   : > { %v8617_v16 = vpop.f32.mrb[12].mxu0  ;;  %v8619_v8 = vpop.f32.mrb[12].mxu1  ;;  %v2610_v31 = vmax.f32 %v1552_v32, 0.0  ;;  %v8633_v54 = vadd.f32 %v8303_v11, %v8481_v1  ;;  %v2903_v28 = vadd.f32 1.0, %v2807_v59  ;;  %v2804_v22 = vmul.f32 100.0, %v2612_v45 }
 0x10e   : > { %11918 = vst [vmem:[#allocation55_spill] sm:$0xff] %v8623_v19  ;;  %11919 = vst [vmem:[#allocation56_spill] sm:$0xff] %v8627_v25  ;;  %v8629_v24 = vpop.f32.mrb[13].mxu0  ;;  %v2611_v41 = vmax.f32 %v1553_v47, 0.0  ;;  %v8637_v18 = vadd.f32 %v8305_v27, %v8481_v1  ;;  %v8641_v0 = vadd.f32 %v8299_v51, %v8525_v33  ;;  %v8645_v32 = vadd.f32 %v8297_v20, %v8525_v33  ;;  %v8651_v25 = vpop.f32.mrb[13].mxu1 }
 0x10f   : > { %11920 = vst [vmem:[#allocation57_spill] sm:$0xff] %v8633_v54  ;;  %v8649_v23 = vadd.f32 %v8134_v50, %v8525_v33  ;;  %v6310_v59 = vpop.eup %6309  ;;  %v8655_v45 = vadd.f32 %v8307_v30, %v8533_v57  ;;  %6317 = vlog2.f32 %v2895_v4  ;;  %v2621_v1 = vmax.f32 %v1563_v39, 0.0 }
 0x110   : > { %11921 = vst [vmem:[#allocation58_spill] sm:$0xff] %v8641_v0  ;;  %11922 = vst [vmem:[#allocation59_spill] sm:$0xff] %v8645_v32  ;;  %v8661_v0 = vadd.f32 %v8303_v11, %v8533_v57  ;;  %v8665_v33 = vadd.f32 %v8305_v27, %v8533_v57  ;;  %6319 = vlog2.f32 %v2896_v53  ;;  %v8668_v63 = vadd.f32 %v8299_v51, %v619_v38 }
 0x111   : > { %11923 = vst [vmem:[#allocation60_spill] sm:$0xff] %v8649_v23  ;;  %11924 = vst [vmem:[#allocation61_spill] sm:$0xff] %v8655_v45  ;;  %v2802_v23 = vmul.f32 100.0, %v2610_v31  ;;  %v6312_v32 = vpop.eup %6311  ;;  %6321 = vlog2.f32 %v2903_v28  ;;  %v2900_v4 = vadd.f32 1.0, %v2804_v22  ;;  %v2803_v39 = vmul.f32 100.0, %v2611_v41  ;;  %v625_v31 = vpop.xlane.xlu1 %624 }
 0x112   : > { %11925 = vst [vmem:[#allocation62_spill] sm:$0xff] %v8661_v0  ;;  %11926 = vst [vmem:[#allocation63_spill] sm:$0xff] %v8668_v63  ;;  %v6314_v44 = vpop.eup %6313  ;;  %v8672_v47 = vadd.f32 %v8307_v30, %v8580_v2  ;;  %v8675_v9 = vadd.f32 %v8297_v20, %v619_v38  ;;  %v8678_v57 = vadd.f32 %v8134_v50, %v619_v38  ;;  %v2989_v53 = vmul.f32 0.6931472, %v6310_v59  ;;  %v8680_v48 = vpop.f32.mrb[14].mxu0 }
 0x113   : > { %v8684_v28 = vadd.f32 %v8303_v11, %v8580_v2  ;;  %v8688_v41 = vadd.f32 %v8305_v27, %v8580_v2  ;;  %v8691_v22 = vadd.f32 %v8299_v51, %v622_v6  ;;  %v433_v63 = vpop.xlane.xlu0 %432  ;;  %v8693_v52 = vpop.f32.mrb[15].mxu0  ;;  %v8696_v59 = vadd.f32 %v8297_v20, %v622_v6 }
 0x114   : > { %11927 = vst [vmem:[#allocation64_spill] sm:$0xff] %v8672_v47  ;;  %11928 = vst [vmem:[#allocation65_spill] sm:$0xff] %v8675_v9  ;;  %v2813_v9 = vmul.f32 100.0, %v2621_v1  ;;  %v2898_v14 = vadd.f32 1.0, %v2802_v23  ;;  %v1560_v43 = vmax.f32 %v1464_v62, 0.0  ;;  %6323 = vlog2.f32 %v2900_v4 }
 0x115   : > { %11929 = vst [vmem:[#allocation66_spill] sm:$0xff] %v8678_v57  ;;  %11930 = vst [vmem:[#allocation67_spill] sm:$0xff] %v8684_v28  ;;  %v6316_v38 = vpop.eup %6315  ;;  %v8699_v57 = vadd.f32 %v8134_v50, %v622_v6  ;;  %v8701_v28 = vpop.f32.mrb[14].mxu1  ;;  %v2991_v47 = vmul.f32 0.6931472, %v6312_v32  ;;  %v8706_v1 = vmul.f32 2.0, %v8527_v10  ;;  %v8718_v54 = vadd.f32 %v8303_v11, %v430_v3 }
 0x116   : > { %11931 = vst [vmem:[#allocation68_spill] sm:$0xff] %v8691_v22  ;;  %11932 = vst [vmem:[#allocation69_spill] sm:$0xff] %v8696_v59  ;;  %v8703_v2 = vpop.f32.mrb[16].mxu0  ;;  %v2899_v22 = vadd.f32 1.0, %v2803_v39  ;;  %v8708_v0 = vpop.f32.mrb[15].mxu1  ;;  %v8713_v59 = vadd.f32 %v8307_v30, %v430_v3  ;;  %v1555_v62 = vmax.f32 %v1459_v60, 0.0  ;;  %6325 = vlog2.f32 %v2898_v14 }
 0x117   : > { %11933 = vst [vmem:[#allocation70_spill] sm:$0xff] %v8699_v57  ;;  %11934 = vst [vmem:[#allocation71_spill] sm:$0xff] %v8703_v2  ;;  %v8710_v45 = vpop.f32.mrb[17].mxu0  ;;  %v3180_v6 = vmul.f32 -0.505, %v2989_v53  ;;  %v8715_v57 = vpop.f32.mrb[16].mxu1  ;;  %v8737_v10 = vadd.f32 %v8307_v30, %v433_v63 }
 0x118   : > { %11935 = vst [vmem:[#allocation72_spill] sm:$0xff] %v8710_v45  ;;  %11936 = vst [vmem:[#allocation73_spill] sm:$0xff] %v8713_v59  ;;  %v2999_v23 = vmul.f32 0.6931472, %v6314_v44  ;;  %v2993_v32 = vmul.f32 0.6931472, %v6316_v38  ;;  %v8727_v45 = vadd.f32 %v8305_v27, %v430_v3  ;;  %v8730_v44 = vadd.f32 %v8299_v51, %v625_v31 }
 0x119   : > { %11937 = vst [vmem:[#allocation74_spill] sm:$0xff] %v8715_v57  ;;  %11938 = vst [vmem:[#allocation75_spill] sm:$0xff] %v8718_v54  ;;  %v2909_v4 = vadd.f32 1.0, %v2813_v9  ;;  %v8722_v39 = vpop.f32.mrb[17].mxu1  ;;  %v8724_v19 = vpop.f32.mrb[18].mxu0  ;;  %v2618_v60 = vmax.f32 %v1560_v43, 0.0  ;;  %v8740_v59 = vadd.f32 %v8297_v20, %v625_v31  ;;  %v8743_v3 = vadd.f32 %v8134_v50, %v625_v31 }
 0x11a   : > { %11939 = vst [vmem:[#allocation76_spill] sm:$0xff] %v8722_v39  ;;  %11940 = vst [vmem:[#allocation77_spill] sm:$0xff] %v8724_v19  ;;  %v8732_v53 = vpop.f32.mrb[19].mxu0  ;;  %v8734_v54 = vpop.f32.mrb[18].mxu1  ;;  %v3181_v38 = vmul.f32 -0.505, %v2991_v47  ;;  %6327 = vlog2.f32 %v2899_v22  ;;  %v8754_v31 = vadd.f32 %v8305_v27, %v433_v63 }
 0x11b   : > { %11941 = vst [vmem:[#allocation78_spill] sm:$0xff] %v8730_v44  ;;  %11942 = vst [vmem:[#allocation79_spill] sm:$0xff] %v8732_v53  ;;  %v6318_v9 = vpop.eup %6317  ;;  %v8745_v19 = vpop.f32.mrb[19].mxu1  ;;  %v3185_v14 = vmul.f32 -0.505, %v2999_v23  ;;  %v2613_v53 = vmax.f32 %v1555_v62, 0.0  ;;  %6329 = vlog2.f32 %v2909_v4 }
 0x11c   : > { %11943 = vst [vmem:[#allocation80_spill] sm:$0xff] %v8734_v54  ;;  %11944 = vst [vmem:[#allocation81_spill] sm:$0xff] %v8737_v10  ;;  %v6320_v44 = vpop.eup %6319  ;;  %v436_v43 = vpop.xlane.xlu0 %435  ;;  %v8748_v54 = vmul.f32 2.0, %v8544_v46  ;;  %v3276_v39 = vmul.f32 1.442695, %v3180_v6  ;;  %v8751_v10 = vadd.f32 %v8303_v11, %v433_v63 }
 0x11d   : > { %11945 = vst [vmem:[#allocation82_spill] sm:$0xff] %v8740_v59  ;;  %11946 = vst [vmem:[#allocation83_spill] sm:$0xff] %v8743_v3  ;;  %v6322_v47 = vpop.eup %6321  ;;  %v3182_v57 = vmul.f32 -0.505, %v2993_v32  ;;  %v628_v59 = vpop.xlane.xlu1 %627  ;;  %v2995_v3 = vmul.f32 0.6931472, %v6318_v9 }
 0x11e   : > { %11947 = vst [vmem:[#allocation84_spill] sm:$0xff] %v8745_v19  ;;  %11948 = vst [vmem:[#allocation85_spill] sm:$0xff] %v8751_v10  ;;  %v2810_v19 = vmul.f32 100.0, %v2618_v60  ;;  %v8758_v23 = vpop.f32.mrb[20].mxu0  ;;  %v8760_v46 = vpop.f32.mrb[20].mxu1  ;;  %v8763_v2 = vadd.f32 %v8299_v51, %v628_v59  ;;  %v8766_v32 = vadd.f32 %v8297_v20, %v628_v59  ;;  %v8769_v9 = vadd.f32 %v8134_v50, %v628_v59 }
 0x11f   : > { %11949 = vst [vmem:[#allocation86_spill] sm:$0xff] %v8758_v23  ;;  %11950 = vst [vmem:[#allocation87_spill] sm:$0xff] %v8760_v46  ;;  %v3278_v62 = vmul.f32 1.442695, %v3181_v38  ;;  %v2997_v6 = vmul.f32 0.6931472, %v6320_v44  ;;  %v6324_v22 = vpop.eup %6323  ;;  %v8774_v46 = vadd.f32 %v8307_v30, %v436_v43  ;;  %v8777_v44 = vadd.f32 %v8303_v11, %v436_v43 }
 0x120   : > { %11951 = vst [vmem:[#allocation88_spill] sm:$0xff] %v8763_v2  ;;  %11952 = vst [vmem:[#allocation89_spill] sm:$0xff] %v8766_v32  ;;  %v3286_v4 = vmul.f32 1.442695, %v3185_v14  ;;  %v3011_v63 = vmul.f32 0.6931472, %v6322_v47  ;;  %v11956_v38 = vsub.f32 %v8463_v29, %v8615_v49  ;;  %6331 = vpow2.f32 %v3276_v39  ;;  %v439_v47 = vpop.xlane.xlu0 %438  ;;  %v6326_v39 = vpop.eup %6325 }
 0x121   : > { %11953 = vst [vmem:[#allocation90_spill] sm:$0xff] %v8769_v9  ;;  %v2805_v60 = vmul.f32 100.0, %v2613_v53  ;;  %v8771_v10 = vpop.f32.mrb[21].mxu0  ;;  %v3280_v23 = vmul.f32 1.442695, %v3182_v57  ;;  %11954 = vst [vmem:[#allocation91_spill] sm:$0xff] %v8774_v46  ;;  %v8785_v53 = vadd.f32 %v8305_v27, %v436_v43  ;;  %6333 = vpow2.f32 %v3278_v62 }
 0x122   : > { %11955 = vst [vmem:[#allocation92_spill] sm:$0xff] %v8777_v44  ;;  %v1556_v32 = vmax.f32 %v11956_v38, 0.0  ;;  %v8782_v14 = vpop.f32.mrb[21].mxu1  ;;  %v3183_v59 = vmul.f32 -0.505, %v2995_v3  ;;  %v2906_v9 = vadd.f32 1.0, %v2810_v19  ;;  %v8790_v46 = vadd.f32 %v8307_v30, %v439_v47 }
 0x123   : > { %11957 = vst [vmem:[#allocation93_spill] sm:$0xff] %v8782_v14  ;;  %v8787_v57 = vpop.f32.mrb[22].mxu0  ;;  %v3184_v2 = vmul.f32 -0.505, %v2997_v6  ;;  %v8793_v44 = vadd.f32 %v8303_v11, %v439_v47  ;;  %v8797_v49 = vpop.f32.mrb[22].mxu1  ;;  %6335 = vpow2.f32 %v3286_v4  ;;  %v2901_v38 = vadd.f32 1.0, %v2805_v60 }
 0x124   : > { %11958 = vst [vmem:[#allocation94_spill] sm:$0xff] %v8787_v57  ;;  %11959 = vst [vmem:[#allocation95_spill] sm:$0xff] %v8790_v46  ;;  %v8795_v29 = vpop.f32.mrb[23].mxu0  ;;  %v3191_v3 = vmul.f32 -0.505, %v3011_v63  ;;  %v8799_v19 = vpop.f32.mrb[23].mxu1  ;;  %6337 = vpow2.f32 %v3280_v23  ;;  %v11963_v6 = vsub.f32 %v8603_v40, %v8706_v1 }
 0x125   : > { %11960 = vst [vmem:[#allocation96_spill] sm:$0xff] %v8793_v44  ;;  %11961 = vst [vmem:[#allocation97_spill] sm:$0xff] %v8795_v29  ;;  %v3005_v43 = vmul.f32 0.6931472, %v6324_v22  ;;  %v2614_v62 = vmax.f32 %v1556_v32, 0.0  ;;  %v1366_v57 = vmul.f32 2.0, %v8555_v37  ;;  %v6328_v29 = vpop.eup %6327  ;;  %6339 = vlog2.f32 %v2906_v9 }
 0x126   : > { %11962 = vst [vmem:[#allocation98_spill] sm:$0xff] %v8797_v49  ;;  %v1569_v46 = vmax.f32 %v11963_v6, 0.0  ;;  %v8805_v44 = vpop.f32.mrb[24].mxu0  ;;  %v3282_v14 = vmul.f32 1.442695, %v3183_v59  ;;  %v8808_v49 = vadd.f32 %v8305_v27, %v439_v47  ;;  %v1367_v22 = vmul.f32 2.0, %v8560_v61  ;;  %v6330_v23 = vpop.eup %6329 }
 0x127   : > { %11964 = vst [vmem:[#allocation99_spill] sm:$0xff] %v8805_v44  ;;  %v8811_v4 = vpop.f32.mrb[25].mxu0  ;;  %v3284_v32 = vmul.f32 1.442695, %v3184_v2  ;;  %v3001_v63 = vmul.f32 0.6931472, %v6326_v39  ;;  %v1462_v40 = vsub.f32 %v8487_v12, %v1366_v57  ;;  %v631_v59 = vpop.xlane.xlu1 %630  ;;  %6341 = vlog2.f32 %v2901_v38 }
 0x128   : > { %11965 = vst [vmem:[#allocation100_spill] sm:$0xff] %v8811_v4  ;;  %v1383_v1 = vmul.f32 2.0, %v8557_v34  ;;  %v8815_v37 = vpop.f32.mrb[24].mxu1  ;;  %v3298_v60 = vmul.f32 1.442695, %v3191_v3  ;;  %v1463_v47 = vsub.f32 %v8491_v36, %v1367_v22  ;;  %v2806_v44 = vmul.f32 100.0, %v2614_v62 }
 0x129   : > { %v3188_v6 = vmul.f32 -0.505, %v3005_v43  ;;  %v8818_v9 = vpop.f32.mrb[25].mxu1  ;;  %v3003_v61 = vmul.f32 0.6931472, %v6328_v29  ;;  %v2627_v4 = vmax.f32 %v1569_v46, 0.0  ;;  %6343 = vpow2.f32 %v3282_v14  ;;  %v442_v46 = vpop.xlane.xlu0 %441 }
 0x12a   : > { %11966 = vst [vmem:[#allocation101_spill] sm:$0xff] %v8818_v9  ;;  %v1479_v2 = vsub.f32 %v8665_v33, %v1383_v1  ;;  %v8821_v39 = vpop.f32.mrb[26].mxu0  ;;  %v3023_v12 = vmul.f32 0.6931472, %v6330_v23  ;;  %v8824_v34 = vadd.f32 %v8299_v51, %v631_v59  ;;  %v11969_v57 = vsub.f32 %v8553_v15, %v8748_v54  ;;  %v8834_v38 = vpop.f32.mrb[26].mxu1 }
 0x12b   : > { %11967 = vst [vmem:[#allocation102_spill] sm:$0xff] %v8821_v39  ;;  %v8829_v43 = vpop.f32.mrb[27].mxu0  ;;  %6345 = vpow2.f32 %v3284_v32  ;;  %v3186_v36 = vmul.f32 -0.505, %v3001_v63  ;;  %v8832_v29 = vadd.f32 %v8297_v20, %v631_v59  ;;  %v1558_v33 = vmax.f32 %v1462_v40, 0.0  ;;  %11972 = vst [vmem:[#allocation106_spill] sm:$0xff] %v8834_v38  ;;  %v6332_v14 = vpop.eup %6331 }
 0x12c   : > { %11968 = vst [vmem:[#allocation103_spill] sm:$0xff] %v8824_v34  ;;  %v1566_v3 = vmax.f32 %v11969_v57, 0.0  ;;  %11970 = vst [vmem:[#allocation104_spill] sm:$0xff] %v8829_v43  ;;  %6347 = vpow2.f32 %v3298_v60  ;;  %v3292_v62 = vmul.f32 1.442695, %v3188_v6  ;;  %v8837_v22 = vadd.f32 %v8134_v50, %v631_v59  ;;  %v6334_v54 = vpop.eup %6333  ;;  %v8845_v57 = vpop.f32.mrb[27].mxu1 }
 0x12d   : > { %11971 = vst [vmem:[#allocation105_spill] sm:$0xff] %v8832_v29  ;;  %v8840_v15 = vadd.f32 %v8307_v30, %v442_v46  ;;  %v3187_v23 = vmul.f32 -0.505, %v3003_v61  ;;  %v2902_v32 = vadd.f32 1.0, %v2806_v44  ;;  %v2819_v63 = vmul.f32 100.0, %v2627_v4  ;;  %11976 = vst [vmem:[#allocation110_spill] sm:$0xff] %v8845_v57  ;;  %v6336_v40 = vpop.eup %6335  ;;  %v8847_v60 = vpop.xlane.xlu1 %633 }
 0x12e   : > { %11973 = vst [vmem:[#allocation107_spill] sm:$0xff] %v8837_v22  ;;  %v8843_v1 = vadd.f32 %v8303_v11, %v442_v46  ;;  %v3197_v29 = vmul.f32 -0.505, %v3023_v12  ;;  %v2624_v34 = vmax.f32 %v1566_v3, 0.0  ;;  %v1559_v6 = vmax.f32 %v1463_v47, 0.0  ;;  %v6338_v22 = vpop.eup %6337 }
 0x12f   : > { %11974 = vst [vmem:[#allocation108_spill] sm:$0xff] %v8840_v15  ;;  %v1380_v59 = vmul.f32 2.0, %v8570_v42  ;;  %v3288_v38 = vmul.f32 1.442695, %v3186_v36  ;;  %v8851_v15 = vadd.f32 %v8305_v27, %v442_v46  ;;  %v8855_v44 = vadd.f32 %v8299_v51, %v8847_v60  ;;  %v6340_v61 = vpop.eup %6339 }
 0x130   : > { %11975 = vst [vmem:[#allocation109_spill] sm:$0xff] %v8843_v1  ;;  %v2616_v4 = vmax.f32 %v1558_v33, 0.0  ;;  %v8857_v1 = vmul.f32 0.31184378, %v6332_v14  ;;  %6349 = vpow2.f32 %v3292_v62  ;;  %v1575_v12 = vmax.f32 %v1479_v2, 0.0 }
 0x131   : > { %11977 = vst [vmem:[#allocation111_spill] sm:$0xff] %v8855_v44  ;;  %v1476_v3 = vsub.f32 %v8637_v18, %v1380_v59  ;;  %v8860_v47 = vmul.f32 0.31184378, %v6334_v54  ;;  %v3290_v42 = vmul.f32 1.442695, %v3187_v23  ;;  %6351 = vlog2.f32 %v2902_v32  ;;  %v6342_v57 = vpop.eup %6341  ;;  %v8863_v44 = vpop.f32.mrb[28].mxu0 }
 0x132   : > { %11978 = vst [vmem:[#allocation112_spill] sm:$0xff] %v8857_v1  ;;  %v2915_v36 = vadd.f32 1.0, %v2819_v63  ;;  %v3310_v46 = vmul.f32 1.442695, %v3197_v29  ;;  %v2816_v43 = vmul.f32 100.0, %v2624_v34  ;;  %v2617_v39 = vmax.f32 %v1559_v6, 0.0 }
 0x133   : > { %11979 = vst [vmem:[#allocation113_spill] sm:$0xff] %v8860_v47  ;;  %v1369_v9 = vmul.f32 2.0, %v8589_v56  ;;  %6353 = vpow2.f32 %v3288_v38  ;;  %v3017_v33 = vmul.f32 0.6931472, %v6340_v61  ;;  %v2808_v14 = vmul.f32 100.0, %v2616_v4  ;;  %v8866_v62 = vpop.f32.mrb[29].mxu0  ;;  %v6344_v54 = vpop.eup %6343 }
 0x134   : > { %v1370_v2 = vmul.f32 2.0, %v8593_v21  ;;  %v8868_v18 = vpop.f32.mrb[28].mxu1  ;;  %v2633_v23 = vmax.f32 %v1575_v12, 0.0  ;;  %v1572_v32 = vmax.f32 %v1476_v3, 0.0  ;;  %v1389_v34 = vmul.f32 2.0, %v8591_v13 }
 0x135   : > { %11980 = vst [vmem:[#allocation114_spill] sm:$0xff] %v8868_v18  ;;  %v1465_v29 = vsub.f32 %v8503_v58, %v1369_v9  ;;  %v6346_v63 = vpop.eup %6345  ;;  %v8872_v56 = vmul.f32 0.31184378, %v6336_v40  ;;  %v3007_v6 = vmul.f32 0.6931472, %v6342_v57  ;;  %6355 = vlog2.f32 %v2915_v36 }
 0x136   : > { %v1466_v38 = vsub.f32 %v8515_v5, %v1370_v2  ;;  %v6348_v59 = vpop.eup %6347  ;;  %v8875_v21 = vmul.f32 0.31184378, %v6338_v22  ;;  %v2912_v4 = vadd.f32 1.0, %v2816_v43  ;;  %v2809_v61 = vmul.f32 100.0, %v2617_v39 }
 0x137   : > { %11981 = vst [vmem:[#allocation115_spill] sm:$0xff] %v8872_v56  ;;  %v1561_v18 = vmax.f32 %v1465_v29, 0.0  ;;  %6357 = vpow2.f32 %v3290_v42  ;;  %v3194_v12 = vmul.f32 -0.505, %v3017_v33  ;;  %v2904_v3 = vadd.f32 1.0, %v2808_v14 }
 0x138   : > { %11982 = vst [vmem:[#allocation116_spill] sm:$0xff] %v8875_v21  ;;  %v1485_v58 = vsub.f32 %v8727_v45, %v1389_v34  ;;  %6359 = vpow2.f32 %v3310_v46  ;;  %v2825_v9 = vmul.f32 100.0, %v2633_v23  ;;  %v2630_v40 = vmax.f32 %v1572_v32, 0.0  ;;  %v8885_v23 = vpop.f32.mrb[29].mxu1 }
 0x139   : > { %v8880_v36 = vmul.f32 0.31184378, %v6344_v54  ;;  %v3189_v5 = vmul.f32 -0.505, %v3007_v6  ;;  %v1562_v22 = vmax.f32 %v1466_v38, 0.0  ;;  %6361 = vlog2.f32 %v2912_v4 }
 0x13a   : > { %v6350_v2 = vpop.eup %6349  ;;  %v2905_v39 = vadd.f32 1.0, %v2809_v61  ;;  %v2619_v43 = vmax.f32 %v1561_v18, 0.0  ;;  %v1386_v42 = vmul.f32 2.0, %v8599_v35  ;;  %v3304_v46 = vmul.f32 1.442695, %v3194_v12 }
 0x13b   : > { %11983 = vst [vmem:[#allocation117_spill] sm:$0xff] %v8880_v36  ;;  %v6352_v33 = vpop.eup %6351  ;;  %6363 = vlog2.f32 %v2904_v3  ;;  %v2921_v32 = vadd.f32 1.0, %v2825_v9  ;;  %v2822_v54 = vmul.f32 100.0, %v2630_v40  ;;  %v1581_v29 = vmax.f32 %v1485_v58, 0.0  ;;  %v8899_v58 = vpop.f32.mrb[30].mxu0 }
 0x13c   : > { %v1482_v34 = vsub.f32 %v8688_v41, %v1386_v42  ;;  %v8888_v38 = vmul.f32 0.31184378, %v6346_v63  ;;  %v3294_v18 = vmul.f32 1.442695, %v3189_v5  ;;  %v2620_v4 = vmax.f32 %v1562_v22, 0.0 }
 0x13d   : > { %v6354_v6 = vpop.eup %6353  ;;  %v1372_v35 = vmul.f32 2.0, %v8617_v16  ;;  %v8894_v12 = vadd.f32 %v8297_v20, %v8847_v60  ;;  %6365 = vlog2.f32 %v2905_v39  ;;  %v2811_v3 = vmul.f32 100.0, %v2619_v43 }
 0x13e   : > { %11984 = vst [vmem:[#allocation118_spill] sm:$0xff] %v8888_v38  ;;  %v8896_v40 = vmul.f32 0.31184378, %v6348_v59  ;;  %6367 = vpow2.f32 %v3304_v46  ;;  %v3009_v41 = vmul.f32 0.6931472, %v6352_v33  ;;  %v2918_v5 = vadd.f32 1.0, %v2822_v54 }
 0x13f   : > { %11985 = vst [vmem:[#allocation119_spill] sm:$0xff] %v8894_v12  ;;  %v6356_v9 = vpop.eup %6355  ;;  %v1468_v63 = vsub.f32 %v8537_v7, %v1372_v35  ;;  %6369 = vlog2.f32 %v2921_v32  ;;  %v2639_v16 = vmax.f32 %v1581_v29, 0.0  ;;  %v1373_v22 = vmul.f32 2.0, %v8629_v24  ;;  %v8905_v59 = vpop.f32.mrb[31].mxu0 }
 0x140   : > { %11986 = vst [vmem:[#allocation120_spill] sm:$0xff] %v8896_v40  ;;  %v8903_v45 = vmul.f32 0.31184378, %v6350_v2  ;;  %6371 = vpow2.f32 %v3294_v18  ;;  %v2812_v39 = vmul.f32 100.0, %v2620_v4  ;;  %v3035_v33 = vmul.f32 0.6931472, %v6356_v9  ;;  %v445_v2 = vpop.xlane.xlu0 %444 }
 0x141   : > { %v6358_v42 = vpop.eup %6357  ;;  %v2907_v46 = vadd.f32 1.0, %v2811_v3  ;;  %v1578_v7 = vmax.f32 %v1482_v34, 0.0  ;;  %v1469_v35 = vsub.f32 %v8548_v55, %v1373_v22  ;;  %v8908_v32 = vpop.f32.mrb[30].mxu1  ;;  %v8910_v54 = vmul.f32 0.31184378, %v6354_v6 }
 0x142   : > { %11987 = vst [vmem:[#allocation121_spill] sm:$0xff] %v8903_v45  ;;  %v6360_v43 = vpop.eup %6359  ;;  %v3190_v24 = vmul.f32 -0.505, %v3009_v41  ;;  %v8914_v29 = vadd.f32 %v8134_v50, %v8847_v60  ;;  %v1395_v18 = vmul.f32 2.0, %v8619_v8  ;;  %v8917_v4 = vpop.f32.mrb[31].mxu1  ;;  %v8921_v34 = vadd.f32 %v8307_v30, %v445_v2 }
 0x143   : > { %11988 = vst [vmem:[#allocation122_spill] sm:$0xff] %v8910_v54  ;;  %v6362_v14 = vpop.eup %6361  ;;  %6373 = vlog2.f32 %v2918_v5  ;;  %v2831_v55 = vmul.f32 100.0, %v2639_v16  ;;  %v8923_v9 = vmul.f32 0.31184378, %v6358_v42  ;;  %v8925_v41 = vmul.f32 0.31184378, %v6360_v43  ;;  %v637_v3 = vpop.xlane.xlu1 %636 }
 0x144   : > { %11989 = vst [vmem:[#allocation123_spill] sm:$0xff] %v8914_v29  ;;  %v2908_v60 = vadd.f32 1.0, %v2812_v39  ;;  %v1491_v22 = vsub.f32 %v8785_v53, %v1395_v18  ;;  %v3203_v61 = vmul.f32 -0.505, %v3035_v33  ;;  %v8929_v8 = vadd.f32 %v8303_v11, %v445_v2 }
 0x145   : > { %v6364_v6 = vpop.eup %6363  ;;  %11990 = vst [vmem:[#allocation124_spill] sm:$0xff] %v8923_v9  ;;  %11991 = vst [vmem:[#allocation125_spill] sm:$0xff] %v8925_v41  ;;  %6375 = vlog2.f32 %v2907_v46  ;;  %v2636_v57 = vmax.f32 %v1578_v7, 0.0  ;;  %v3296_v5 = vmul.f32 1.442695, %v3190_v24  ;;  %v2927_v12 = vadd.f32 1.0, %v2831_v55 }
 0x146   : > { %v3029_v16 = vmul.f32 0.6931472, %v6362_v14  ;;  %v3013_v42 = vmul.f32 0.6931472, %v6364_v6  ;;  %v1564_v43 = vmax.f32 %v1468_v63, 0.0  ;;  %v1392_v39 = vmul.f32 2.0, %v8651_v25 }
 0x147   : > { %v6366_v29 = vpop.eup %6365  ;;  %v8937_v46 = vadd.f32 %v8305_v27, %v445_v2  ;;  %6377 = vlog2.f32 %v2908_v60  ;;  %v3322_v18 = vmul.f32 1.442695, %v3203_v61  ;;  %v2828_v24 = vmul.f32 100.0, %v2636_v57 }
 0x148   : > { %v6368_v40 = vpop.eup %6367  ;;  %v1565_v14 = vmax.f32 %v1469_v35, 0.0  ;;  %v1488_v6 = vsub.f32 %v8754_v31, %v1392_v39  ;;  %6379 = vpow2.f32 %v3296_v5  ;;  %v3200_v63 = vmul.f32 -0.505, %v3029_v16 }
 0x149   : > { %v6370_v7 = vpop.eup %6369  ;;  %v3015_v25 = vmul.f32 0.6931472, %v6366_v29  ;;  %v8941_v13 = vadd.f32 %v8299_v51, %v637_v3  ;;  %v3192_v53 = vmul.f32 -0.505, %v3013_v42  ;;  %v8944_v33 = vadd.f32 %v8297_v20, %v637_v3 }
 0x14a   : > { %v6372_v55 = vpop.eup %6371  ;;  %6381 = vlog2.f32 %v2927_v12  ;;  %v2622_v2 = vmax.f32 %v1564_v43, 0.0  ;;  %v3047_v60 = vmul.f32 0.6931472, %v6370_v7  ;;  %v8947_v61 = vadd.f32 %v8134_v50, %v637_v3 }
 0x14b   : > { %11992 = vst [vmem:[#allocation126_spill] sm:$0xff] %v8941_v13  ;;  %11993 = vst [vmem:[#allocation127_spill] sm:$0xff] %v8944_v33  ;;  %v1587_v57 = vmax.f32 %v1491_v22, 0.0  ;;  %v1375_v31 = vmul.f32 2.0, %v8680_v48  ;;  %v8950_v5 = vmul.f32 0.31184378, %v6368_v40  ;;  %6383 = vpow2.f32 %v3322_v18  ;;  %v448_v33 = vpop.xlane.xlu0 %447 }
 0x14c   : > { %11994 = vst [vmem:[#allocation128_spill] sm:$0xff] %v8947_v61  ;;  %v2924_v29 = vadd.f32 1.0, %v2828_v24  ;;  %v2623_v16 = vmax.f32 %v1565_v14, 0.0  ;;  %v8952_v39 = vmul.f32 0.31184378, %v6372_v55  ;;  %v2814_v3 = vmul.f32 100.0, %v2622_v2 }
 0x14d   : > { %v6374_v35 = vpop.eup %6373  ;;  %11995 = vst [vmem:[#allocation129_spill] sm:$0xff] %v8950_v5  ;;  %v3316_v42 = vmul.f32 1.442695, %v3200_v63  ;;  %v3193_v13 = vmul.f32 -0.505, %v3015_v25  ;;  %v1471_v12 = vsub.f32 %v8574_v26, %v1375_v31  ;;  %v1584_v61 = vmax.f32 %v1488_v6, 0.0 }
 0x14e   : > { %11996 = vst [vmem:[#allocation130_spill] sm:$0xff] %v8952_v39  ;;  %v3300_v7 = vmul.f32 1.442695, %v3192_v53  ;;  %v1376_v22 = vmul.f32 2.0, %v8693_v52  ;;  %v3209_v48 = vmul.f32 -0.505, %v3047_v60  ;;  %v8957_v40 = vadd.f32 %v8307_v30, %v448_v33 }
 0x14f   : > { %v6376_v43 = vpop.eup %6375  ;;  %v3041_v41 = vmul.f32 0.6931472, %v6374_v35  ;;  %v2645_v18 = vmax.f32 %v1587_v57, 0.0  ;;  %v8959_v24 = vpop.f32.mrb[32].mxu0  ;;  %6385 = vlog2.f32 %v2924_v29  ;;  %v2815_v14 = vmul.f32 100.0, %v2623_v16 }
 0x150   : > { %v1567_v55 = vmax.f32 %v1471_v12, 0.0  ;;  %v1472_v26 = vsub.f32 %v8585_v17, %v1376_v22  ;;  %v8962_v63 = vpop.f32.mrb[32].mxu1  ;;  %v3302_v25 = vmul.f32 1.442695, %v3193_v13  ;;  %v3019_v6 = vmul.f32 0.6931472, %v6376_v43  ;;  %v451_v5 = vpop.xlane.xlu0 %450 }
 0x151   : > { %v6378_v53 = vpop.eup %6377  ;;  %v8965_v52 = vadd.f32 %v8303_v11, %v448_v33  ;;  %v1401_v2 = vmul.f32 2.0, %v8701_v28  ;;  %6387 = vpow2.f32 %v3316_v42  ;;  %v2910_v60 = vadd.f32 1.0, %v2814_v3  ;;  %v8968_v35 = vpop.f32.mrb[33].mxu0 }
 0x152   : > { %v2642_v57 = vmax.f32 %v1584_v61, 0.0  ;;  %v1568_v31 = vmax.f32 %v1472_v26, 0.0  ;;  %v6380_v29 = vpop.eup %6379  ;;  %6389 = vpow2.f32 %v3300_v7  ;;  %v3334_v16 = vmul.f32 1.442695, %v3209_v48  ;;  %v8971_v22 = vpop.f32.mrb[33].mxu1 }
 0x153   : > { %v2837_v17 = vmul.f32 100.0, %v2645_v18  ;;  %v1497_v12 = vsub.f32 %v8851_v15, %v1401_v2  ;;  %v3206_v43 = vmul.f32 -0.505, %v3041_v41  ;;  %v3021_v45 = vmul.f32 0.6931472, %v6378_v53  ;;  %v640_v53 = vpop.xlane.xlu1 %639 }
 0x154   : > { %v6382_v13 = vpop.eup %6381  ;;  %v2911_v21 = vadd.f32 1.0, %v2815_v14  ;;  %v2625_v56 = vmax.f32 %v1567_v55, 0.0  ;;  %6391 = vpow2.f32 %v3302_v25  ;;  %v3195_v61 = vmul.f32 -0.505, %v3019_v6 }
 0x155   : > { %v1398_v42 = vmul.f32 2.0, %v8708_v0  ;;  %v6384_v3 = vpop.eup %6383  ;;  %v8976_v7 = vadd.f32 %v8305_v27, %v448_v33  ;;  %6393 = vlog2.f32 %v2910_v60  ;;  %v2834_v48 = vmul.f32 100.0, %v2642_v57 }
 0x156   : > { %v2626_v15 = vmax.f32 %v1568_v31, 0.0  ;;  %6395 = vpow2.f32 %v3334_v16  ;;  %v3059_v18 = vmul.f32 0.6931472, %v6382_v13  ;;  %v2933_v26 = vadd.f32 1.0, %v2837_v17  ;;  %v8988_v17 = vpop.f32.mrb[34].mxu0 }
 0x157   : > { %v1494_v41 = vsub.f32 %v8808_v49, %v1398_v42  ;;  %v3328_v14 = vmul.f32 1.442695, %v3206_v43  ;;  %v3196_v55 = vmul.f32 -0.505, %v3021_v45  ;;  %6397 = vlog2.f32 %v2911_v21  ;;  %v8990_v45 = vpop.f32.mrb[34].mxu1  ;;  %v12001_v42 = vld [vmem:[#allocation71_spill] sm:$0xff] }
 0x158   : > { %v2817_v25 = vmul.f32 100.0, %v2625_v56  ;;  %v8980_v0 = vmul.f32 0.31184378, %v6380_v29  ;;  %v3306_v2 = vmul.f32 1.442695, %v3195_v61  ;;  %v8983_v33 = vadd.f32 %v8299_v51, %v640_v53  ;;  %v8997_v6 = vpop.f32.mrb[35].mxu0 }
 0x159   : > { %v6386_v60 = vpop.eup %6385  ;;  %v8986_v57 = vadd.f32 %v8297_v20, %v640_v53  ;;  %v2930_v31 = vadd.f32 1.0, %v2834_v48  ;;  %v2818_v16 = vmul.f32 100.0, %v2626_v15  ;;  %v1593_v49 = vmax.f32 %v1497_v12, 0.0  ;;  %v12002_v15 = vld [vmem:[#allocation72_spill] sm:$0xff] }
 0x15a   : > { %11997 = vst [vmem:[#allocation131_spill] sm:$0xff] %v8980_v0  ;;  %11998 = vst [vmem:[#allocation132_spill] sm:$0xff] %v8983_v33  ;;  %v8992_v56 = vmul.f32 0.31184378, %v6384_v3  ;;  %v3215_v21 = vmul.f32 -0.505, %v3059_v18  ;;  %6399 = vlog2.f32 %v2933_v26 }
 0x15b   : > { %11999 = vst [vmem:[#allocation133_spill] sm:$0xff] %v8986_v57  ;;  %v1590_v29 = vmax.f32 %v1494_v41, 0.0  ;;  %v6388_v13 = vpop.eup %6387  ;;  %6401 = vpow2.f32 %v3328_v14  ;;  %v3308_v43 = vmul.f32 1.442695, %v3196_v55  ;;  %v2913_v61 = vadd.f32 1.0, %v2817_v25  ;;  %v12003_v3 = vld [vmem:[#allocation74_spill] sm:$0xff] }
 0x15c   : > { %12000 = vst [vmem:[#allocation134_spill] sm:$0xff] %v8992_v56  ;;  %v8995_v28 = vmul.f32 2.0, %v12001_v42  ;;  %v6390_v48 = vpop.eup %6389  ;;  %6403 = vpow2.f32 %v3306_v2  ;;  %v3053_v12 = vmul.f32 0.6931472, %v6386_v60  ;;  %v9000_v57 = vmul.f32 2.0, %v12002_v15  ;;  %v9005_v18 = vpop.f32.mrb[35].mxu1 }
 0x15d   : > { %v9003_v33 = vmul.f32 2.0, %v12003_v3  ;;  %6405 = vlog2.f32 %v2930_v31  ;;  %v2914_v26 = vadd.f32 1.0, %v2818_v16  ;;  %v2651_v41 = vmax.f32 %v1593_v49, 0.0  ;;  %v12004_v14 = vld [vmem:[#allocation55_spill] sm:$0xff]  ;;  %v12005_v2 = vld [vmem:[#allocation57_spill] sm:$0xff]  ;;  %v9028_v15 = vpop.f32.mrb[36].mxu0 }
 0x15e   : > { %v1474_v55 = vsub.f32 %v12004_v14, %v8995_v28  ;;  %v6392_v25 = vpop.eup %6391  ;;  %v3346_v42 = vmul.f32 1.442695, %v3215_v21  ;;  %v2648_v39 = vmax.f32 %v1590_v29, 0.0  ;;  %v1475_v60 = vsub.f32 %v12005_v2, %v9000_v57  ;;  %v12010_v2 = vld [vmem:[#allocation76_spill] sm:$0xff]  ;;  %v9056_v0 = vpop.f32.mrb[37].mxu0 }
 0x15f   : > { %v6394_v3 = vpop.eup %6393  ;;  %v9014_v54 = vmul.f32 0.31184378, %v6388_v13  ;;  %v9017_v31 = vadd.f32 %v8134_v50, %v640_v53  ;;  %6407 = vlog2.f32 %v2913_v61  ;;  %v3212_v49 = vmul.f32 -0.505, %v3053_v12  ;;  %12012 = vst [vmem:[#allocation76_spill] sm:$0xff] %v9028_v15  ;;  %12020 = vst [vmem:[#allocation142_spill] sm:$0xff] %v9056_v0 }
 0x160   : > { %v6396_v28 = vpop.eup %6395  ;;  %6409 = vpow2.f32 %v3308_v43  ;;  %v9021_v21 = vadd.f32 %v8307_v30, %v451_v5  ;;  %v9023_v29 = vmul.f32 0.31184378, %v6390_v48  ;;  %v2843_v14 = vmul.f32 100.0, %v2651_v41  ;;  %v643_v48 = vpop.xlane.xlu1 %642  ;;  %v12027_v0 = vld [vmem:[#allocation62_spill] sm:$0xff] }
 0x161   : > { %12006 = vst [vmem:[#allocation71_spill] sm:$0xff] %v9014_v54  ;;  %12007 = vst [vmem:[#allocation72_spill] sm:$0xff] %v9017_v31  ;;  %v6398_v57 = vpop.eup %6397  ;;  %6411 = vlog2.f32 %v2914_v26  ;;  %v1404_v13 = vmul.f32 2.0, %v12010_v2  ;;  %v9026_v9 = vmul.f32 0.31184378, %v6392_v25  ;;  %v2840_v61 = vmul.f32 100.0, %v2648_v39 }
 0x162   : > { %12008 = vst [vmem:[#allocation74_spill] sm:$0xff] %v9021_v21  ;;  %12009 = vst [vmem:[#allocation55_spill] sm:$0xff] %v9023_v29  ;;  %6413 = vpow2.f32 %v3346_v42  ;;  %v3025_v53 = vmul.f32 0.6931472, %v6394_v3  ;;  %v9031_v12 = vmul.f32 0.31184378, %v6396_v28  ;;  %v9034_v16 = vadd.f32 %v8303_v11, %v451_v5  ;;  %v454_v42 = vpop.xlane.xlu0 %453 }
 0x163   : > { %12011 = vst [vmem:[#allocation57_spill] sm:$0xff] %v9026_v9  ;;  %v1500_v26 = vsub.f32 %v8937_v46, %v1404_v13  ;;  %v3340_v31 = vmul.f32 1.442695, %v3212_v49  ;;  %v3027_v2 = vmul.f32 0.6931472, %v6398_v57  ;;  %v9038_v25 = vadd.f32 %v8305_v27, %v451_v5  ;;  %v9043_v3 = vpop.f32.mrb[36].mxu1 }
 0x164   : > { %12013 = vst [vmem:[#allocation135_spill] sm:$0xff] %v9031_v12  ;;  %12014 = vst [vmem:[#allocation136_spill] sm:$0xff] %v9034_v16  ;;  %v6400_v41 = vpop.eup %6399  ;;  %v9041_v39 = vadd.f32 %v8299_v51, %v643_v48  ;;  %v9046_v43 = vadd.f32 %v8297_v20, %v643_v48  ;;  %v9049_v54 = vadd.f32 %v8134_v50, %v643_v48  ;;  %v2939_v46 = vadd.f32 1.0, %v2843_v14  ;;  %v12024_v29 = vld [vmem:[#allocation79_spill] sm:$0xff]  ;;  %v12026_v16 = vld [vmem:[#allocation61_spill] sm:$0xff] }
 0x165   : > { %12016 = vst [vmem:[#allocation138_spill] sm:$0xff] %v9043_v3  ;;  %v6402_v28 = vpop.eup %6401  ;;  %v9052_v49 = vadd.f32 %v8307_v30, %v454_v42  ;;  %v2936_v56 = vadd.f32 1.0, %v2840_v61  ;;  %v9060_v48 = vadd.f32 %v8303_v11, %v454_v42  ;;  %v1570_v14 = vmax.f32 %v1474_v55, 0.0  ;;  %v12023_v61 = vld [vmem:[#allocation77_spill] sm:$0xff] }
 0x166   : > { %12015 = vst [vmem:[#allocation137_spill] sm:$0xff] %v9041_v39  ;;  %12017 = vst [vmem:[#allocation139_spill] sm:$0xff] %v9046_v43  ;;  %v6404_v57 = vpop.eup %6403  ;;  %v3198_v39 = vmul.f32 -0.505, %v3025_v53  ;;  %v3071_v43 = vmul.f32 0.6931472, %v6400_v41  ;;  %6415 = vpow2.f32 %v3340_v31  ;;  %v9065_v5 = vadd.f32 %v8305_v27, %v454_v42 }
 0x167   : > { %12018 = vst [vmem:[#allocation140_spill] sm:$0xff] %v9049_v54  ;;  %12019 = vst [vmem:[#allocation141_spill] sm:$0xff] %v9052_v49  ;;  %v6406_v38 = vpop.eup %6405  ;;  %v9062_v54 = vmul.f32 0.31184378, %v6402_v28  ;;  %v3199_v47 = vmul.f32 -0.505, %v3027_v2  ;;  %6417 = vlog2.f32 %v2939_v46 }
 0x168   : > { %12021 = vst [vmem:[#allocation143_spill] sm:$0xff] %v9060_v48  ;;  %v1571_v53 = vmax.f32 %v1475_v60, 0.0  ;;  %v1381_v9 = vmul.f32 2.0, %v12023_v61  ;;  %v1382_v49 = vmul.f32 2.0, %v12024_v29  ;;  %v3312_v41 = vmul.f32 1.442695, %v3198_v39  ;;  %v646_v39 = vpop.xlane.xlu1 %645 }
 0x169   : > { %12022 = vst [vmem:[#allocation144_spill] sm:$0xff] %v9062_v54  ;;  %v6408_v13 = vpop.eup %6407  ;;  %v3065_v12 = vmul.f32 0.6931472, %v6406_v38  ;;  %6419 = vlog2.f32 %v2936_v56  ;;  %v12025_v48 = vld [vmem:[#allocation80_spill] sm:$0xff]  ;;  %v3221_v31 = vmul.f32 -0.505, %v3071_v43  ;;  %v12028_v29 = vsub.f32 %v8976_v7, %v9003_v33 }
 0x16a   : > { %v6410_v36 = vpop.eup %6409  ;;  %v9070_v55 = vmul.f32 2.0, %v12025_v48  ;;  %v2628_v2 = vmax.f32 %v1570_v14, 0.0  ;;  %v1477_v42 = vsub.f32 %v12026_v16, %v1381_v9  ;;  %v1478_v1 = vsub.f32 %v12027_v0, %v1382_v49  ;;  %v12033_v14 = vld [vmem:[#allocation84_spill] sm:$0xff] }
 0x16b   : > { %v6412_v28 = vpop.eup %6411  ;;  %v3314_v61 = vmul.f32 1.442695, %v3199_v47  ;;  %v3031_v3 = vmul.f32 0.6931472, %v6408_v13  ;;  %v1599_v38 = vmax.f32 %v12028_v29, 0.0  ;;  %v2629_v48 = vmax.f32 %v1571_v53, 0.0 }
 0x16c   : > { %v6414_v46 = vpop.eup %6413  ;;  %v9078_v56 = vmul.f32 0.31184378, %v6404_v57  ;;  %v1596_v21 = vmax.f32 %v1500_v26, 0.0  ;;  %v1509_v43 = vsub.f32 %v9065_v5, %v9070_v55  ;;  %v9082_v9 = vmul.f32 0.31184378, %v6410_v36  ;;  %v9094_v55 = vpop.f32.mrb[37].mxu1 }
 0x16d   : > { %v3218_v0 = vmul.f32 -0.505, %v3065_v12  ;;  %v3033_v16 = vmul.f32 0.6931472, %v6412_v28  ;;  %v9085_v49 = vadd.f32 %v8299_v51, %v646_v39  ;;  %v9087_v47 = vmul.f32 0.31184378, %v6414_v46 }
 0x16e   : > { %12029 = vst [vmem:[#allocation77_spill] sm:$0xff] %v9078_v56  ;;  %12030 = vst [vmem:[#allocation79_spill] sm:$0xff] %v9082_v9  ;;  %6421 = vpow2.f32 %v3312_v41  ;;  %v3358_v7 = vmul.f32 1.442695, %v3221_v31  ;;  %v2820_v33 = vmul.f32 100.0, %v2628_v2  ;;  %v2657_v13 = vmax.f32 %v1599_v38, 0.0  ;;  %v649_v56 = vpop.xlane.xlu1 %648 }
 0x16f   : > { %12031 = vst [vmem:[#allocation80_spill] sm:$0xff] %v9085_v49  ;;  %12032 = vst [vmem:[#allocation61_spill] sm:$0xff] %v9087_v47  ;;  %6423 = vpow2.f32 %v3314_v61  ;;  %v3201_v57 = vmul.f32 -0.505, %v3031_v3  ;;  %v1410_v26 = vmul.f32 2.0, %v12033_v14  ;;  %v9092_v36 = vadd.f32 %v8297_v20, %v646_v39  ;;  %v457_v14 = vpop.xlane.xlu0 %456  ;;  %v9107_v61 = vpop.f32.mrb[38].mxu0 }
 0x170   : > { %v2821_v12 = vmul.f32 100.0, %v2629_v48  ;;  %v2654_v5 = vmax.f32 %v1596_v21, 0.0  ;;  %12035 = vst [vmem:[#allocation84_spill] sm:$0xff] %v9094_v55  ;;  %v6416_v28 = vpop.eup %6415  ;;  %v3352_v41 = vmul.f32 1.442695, %v3218_v0  ;;  %6425 = vpow2.f32 %v3358_v7  ;;  %12039 = vst [vmem:[#allocation146_spill] sm:$0xff] %v9107_v61 }
 0x171   : > { %12034 = vst [vmem:[#allocation62_spill] sm:$0xff] %v9092_v36  ;;  %v3202_v31 = vmul.f32 -0.505, %v3033_v16  ;;  %v1506_v2 = vsub.f32 %v9038_v25, %v1410_v26  ;;  %v6418_v3 = vpop.eup %6417  ;;  %v9100_v29 = vadd.f32 %v8134_v50, %v646_v39  ;;  %v2916_v38 = vadd.f32 1.0, %v2820_v33  ;;  %v12037_v36 = vld [vmem:[#allocation86_spill] sm:$0xff] }
 0x172   : > { %v3318_v21 = vmul.f32 1.442695, %v3201_v57  ;;  %v2849_v60 = vmul.f32 100.0, %v2657_v13  ;;  %v1573_v53 = vmax.f32 %v1477_v42, 0.0  ;;  %v1384_v49 = vmul.f32 2.0, %v12037_v36 }
 0x173   : > { %12036 = vst [vmem:[#allocation145_spill] sm:$0xff] %v9100_v29  ;;  %v6420_v48 = vpop.eup %6419  ;;  %v2917_v46 = vadd.f32 1.0, %v2821_v12  ;;  %v9104_v0 = vadd.f32 %v8307_v30, %v457_v14  ;;  %v2846_v25 = vmul.f32 100.0, %v2654_v5  ;;  %v1385_v16 = vmul.f32 2.0, %v8771_v10  ;;  %v12042_v12 = vld [vmem:[#allocation64_spill] sm:$0xff]  ;;  %v9115_v29 = vpop.f32.mrb[38].mxu1 }
 0x174   : > { %6427 = vpow2.f32 %v3352_v41  ;;  %v3320_v7 = vmul.f32 1.442695, %v3202_v31  ;;  %v3083_v26 = vmul.f32 0.6931472, %v6418_v3  ;;  %v1574_v39 = vmax.f32 %v1478_v1, 0.0  ;;  %12043 = vst [vmem:[#allocation64_spill] sm:$0xff] %v9115_v29  ;;  %v9117_v31 = vpop.xlane.xlu0 %459 }
 0x175   : > { %12038 = vst [vmem:[#allocation86_spill] sm:$0xff] %v9104_v0  ;;  %v9109_v33 = vmul.f32 0.31184378, %v6416_v28  ;;  %v3077_v57 = vmul.f32 0.6931472, %v6420_v48  ;;  %6429 = vlog2.f32 %v2916_v38  ;;  %v9112_v42 = vadd.f32 %v8303_v11, %v457_v14  ;;  %v12044_v28 = vld [vmem:[#allocation67_spill] sm:$0xff] }
 0x176   : > { %6431 = vpow2.f32 %v3318_v21  ;;  %v2945_v13 = vadd.f32 1.0, %v2849_v60  ;;  %v2631_v36 = vmax.f32 %v1573_v53, 0.0  ;;  %v1480_v5 = vsub.f32 %v12042_v12, %v1384_v49  ;;  %v12045_v12 = vld [vmem:[#allocation87_spill] sm:$0xff]  ;;  %v12083_v29 = vld [vmem:[#allocation104_spill] sm:$0xff] }
 0x177   : > { %12040 = vst [vmem:[#allocation147_spill] sm:$0xff] %v9109_v33  ;;  %12041 = vst [vmem:[#allocation148_spill] sm:$0xff] %v9112_v42  ;;  %6433 = vlog2.f32 %v2917_v46  ;;  %v2942_v41 = vadd.f32 1.0, %v2846_v25  ;;  %v1605_v1 = vmax.f32 %v1509_v43, 0.0  ;;  %v1481_v3 = vsub.f32 %v12044_v28, %v1385_v16  ;;  %v12048_v46 = vld [vmem:[#allocation93_spill] sm:$0xff] }
 0x178   : > { %v6422_v10 = vpop.eup %6421  ;;  %6435 = vpow2.f32 %v3320_v7  ;;  %v3227_v38 = vmul.f32 -0.505, %v3083_v26  ;;  %v2632_v47 = vmax.f32 %v1574_v39, 0.0  ;;  %v745_v60 = vadd.f32 %v8305_v27, %v9117_v31 }
 0x179   : > { %v6424_v48 = vpop.eup %6423  ;;  %v3224_v53 = vmul.f32 -0.505, %v3077_v57  ;;  %v1602_v21 = vmax.f32 %v1506_v2, 0.0  ;;  %v1576_v49 = vmax.f32 %v1480_v5, 0.0  ;;  %v1419_v54 = vmul.f32 2.0, %v12045_v12 }
 0x17a   : > { %6437 = vlog2.f32 %v2945_v13  ;;  %v742_v43 = vadd.f32 %v8305_v27, %v457_v14  ;;  %v2823_v25 = vmul.f32 100.0, %v2631_v36  ;;  %v6426_v9 = vpop.eup %6425  ;;  %v9125_v16 = vmul.f32 0.31184378, %v6422_v10 }
 0x17b   : > { %v9127_v7 = vmul.f32 0.31184378, %v6424_v48  ;;  %6439 = vlog2.f32 %v2942_v41  ;;  %v2663_v26 = vmax.f32 %v1605_v1, 0.0  ;;  %v3370_v39 = vmul.f32 1.442695, %v3227_v38  ;;  %v9135_v41 = vpop.f32.mrb[39].mxu0 }
 0x17c   : > { %12046 = vst [vmem:[#allocation67_spill] sm:$0xff] %v9125_v16  ;;  %v2824_v28 = vmul.f32 100.0, %v2632_v47  ;;  %v1577_v57 = vmax.f32 %v1481_v3, 0.0  ;;  %v1515_v2 = vsub.f32 %v745_v60, %v1419_v54  ;;  %v3364_v5 = vmul.f32 1.442695, %v3224_v53  ;;  %12051 = vst [vmem:[#allocation150_spill] sm:$0xff] %v9135_v41 }
 0x17d   : > { %12047 = vst [vmem:[#allocation87_spill] sm:$0xff] %v9127_v7  ;;  %v2660_v12 = vmax.f32 %v1602_v21, 0.0  ;;  %v2634_v42 = vmax.f32 %v1576_v49, 0.0  ;;  %v1416_v13 = vmul.f32 2.0, %v12048_v46  ;;  %v9130_v14 = vmul.f32 0.31184378, %v6426_v9 }
 0x17e   : > { %v6428_v33 = vpop.eup %6427  ;;  %v9133_v36 = vadd.f32 %v8299_v51, %v649_v56  ;;  %v2919_v10 = vadd.f32 1.0, %v2823_v25  ;;  %v1611_v48 = vmax.f32 %v1515_v2, 0.0  ;;  %v9139_v54 = vadd.f32 %v8297_v20, %v649_v56  ;;  %v12057_v53 = vld [vmem:[#allocation97_spill] sm:$0xff]  ;;  %v9156_v7 = vpop.f32.mrb[39].mxu1 }
 0x17f   : > { %12049 = vst [vmem:[#allocation93_spill] sm:$0xff] %v9130_v14  ;;  %v6430_v1 = vpop.eup %6429  ;;  %v2855_v3 = vmul.f32 100.0, %v2663_v26  ;;  %v1512_v38 = vsub.f32 %v742_v43, %v1416_v13  ;;  %6441 = vpow2.f32 %v3370_v39  ;;  %v2920_v9 = vadd.f32 1.0, %v2824_v28  ;;  %v12061_v16 = vld [vmem:[#allocation73_spill] sm:$0xff] }
 0x180   : > { %12050 = vst [vmem:[#allocation149_spill] sm:$0xff] %v9133_v36  ;;  %12052 = vst [vmem:[#allocation151_spill] sm:$0xff] %v9139_v54  ;;  %v6432_v60 = vpop.eup %6431  ;;  %v2635_v21 = vmax.f32 %v1577_v57, 0.0  ;;  %6443 = vpow2.f32 %v3364_v5  ;;  %v9143_v46 = vadd.f32 %v8134_v50, %v649_v56  ;;  %v2852_v25 = vmul.f32 100.0, %v2660_v12  ;;  %v9145_v36 = vpop.xlane.xlu0 %462  ;;  %v12056_v57 = vld [vmem:[#allocation94_spill] sm:$0xff] }
 0x181   : > { %v6434_v49 = vpop.eup %6433  ;;  %v2826_v2 = vmul.f32 100.0, %v2634_v42  ;;  %v9148_v26 = vmul.f32 0.31184378, %v6428_v33  ;;  %6445 = vlog2.f32 %v2919_v10  ;;  %v2669_v43 = vmax.f32 %v1611_v48, 0.0  ;;  %12058 = vst [vmem:[#allocation94_spill] sm:$0xff] %v9156_v7 }
 0x182   : > { %12053 = vst [vmem:[#allocation152_spill] sm:$0xff] %v9143_v46  ;;  %v6436_v47 = vpop.eup %6435  ;;  %v3037_v13 = vmul.f32 0.6931472, %v6430_v1  ;;  %v2951_v39 = vadd.f32 1.0, %v2855_v3  ;;  %v9152_v28 = vadd.f32 %v8307_v30, %v9117_v31  ;;  %v1387_v56 = vmul.f32 2.0, %v12056_v57  ;;  %v652_v1 = vpop.xlane.xlu1 %651 }
 0x183   : > { %12054 = vst [vmem:[#allocation153_spill] sm:$0xff] %v9148_v26  ;;  %v3039_v12 = vmul.f32 0.6931472, %v6434_v49  ;;  %6447 = vlog2.f32 %v2920_v9  ;;  %v2827_v42 = vmul.f32 100.0, %v2635_v21  ;;  %v1388_v46 = vmul.f32 2.0, %v12057_v53  ;;  %v12062_v9 = vld [vmem:[#allocation75_spill] sm:$0xff] }
 0x184   : > { %12055 = vst [vmem:[#allocation154_spill] sm:$0xff] %v9152_v28  ;;  %v6438_v5 = vpop.eup %6437  ;;  %v9158_v54 = vmul.f32 0.31184378, %v6432_v60  ;;  %v9162_v10 = vadd.f32 %v8303_v11, %v9117_v31  ;;  %v2948_v48 = vadd.f32 1.0, %v2852_v25  ;;  %v2922_v3 = vadd.f32 1.0, %v2826_v2  ;;  %v9168_v60 = vpop.xlane.xlu0 %465 }
 0x185   : > { %v6440_v33 = vpop.eup %6439  ;;  %v2861_v14 = vmul.f32 100.0, %v2669_v43  ;;  %v1608_v57 = vmax.f32 %v1512_v38, 0.0  ;;  %v1483_v49 = vsub.f32 %v12061_v16, %v1387_v56  ;;  %v1484_v21 = vsub.f32 %v12062_v9, %v1388_v46  ;;  %v12064_v16 = vld [vmem:[#allocation98_spill] sm:$0xff] }
 0x186   : > { %12059 = vst [vmem:[#allocation97_spill] sm:$0xff] %v9158_v54  ;;  %12060 = vst [vmem:[#allocation155_spill] sm:$0xff] %v9162_v10  ;;  %v9166_v28 = vmul.f32 0.31184378, %v6436_v47  ;;  %v3204_v53 = vmul.f32 -0.505, %v3037_v13  ;;  %6449 = vlog2.f32 %v2951_v39  ;;  %v748_v38 = vadd.f32 %v8305_v27, %v9145_v36 }
 0x187   : > { %v3095_v0 = vmul.f32 0.6931472, %v6438_v5  ;;  %v3205_v31 = vmul.f32 -0.505, %v3039_v12  ;;  %v3089_v10 = vmul.f32 0.6931472, %v6440_v33  ;;  %6451 = vlog2.f32 %v2948_v48  ;;  %v9181_v33 = vpop.xlane.xlu1 %654 }
 0x188   : > { %12063 = vst [vmem:[#allocation73_spill] sm:$0xff] %v9166_v28  ;;  %v2923_v25 = vadd.f32 1.0, %v2827_v42  ;;  %v1579_v2 = vmax.f32 %v1483_v49, 0.0  ;;  %v9174_v43 = vmul.f32 2.0, %v12064_v16  ;;  %6453 = vlog2.f32 %v2922_v3  ;;  %v9185_v3 = vpop.f32.mrb[40].mxu0  ;;  %v9217_v28 = vpop.xlane.xlu0 %468 }
 0x189   : > { %v6442_v47 = vpop.eup %6441  ;;  %v2957_v46 = vadd.f32 1.0, %v2861_v14  ;;  %v2666_v13 = vmax.f32 %v1608_v57, 0.0  ;;  %v751_v39 = vadd.f32 %v8305_v27, %v9168_v60  ;;  %v3324_v5 = vmul.f32 1.442695, %v3204_v53  ;;  %12066 = vst [vmem:[#allocation98_spill] sm:$0xff] %v9185_v3  ;;  %v9187_v57 = vpop.f32.mrb[40].mxu1 }
 0x18a   : > { %v6444_v56 = vpop.eup %6443  ;;  %v3233_v12 = vmul.f32 -0.505, %v3095_v0  ;;  %v9179_v42 = vadd.f32 %v8299_v51, %v652_v1  ;;  %v1422_v48 = vmul.f32 2.0, %v8799_v19  ;;  %v3230_v9 = vmul.f32 -0.505, %v3089_v10  ;;  %12067 = vst [vmem:[#allocation156_spill] sm:$0xff] %v9187_v57 }
 0x18b   : > { %v6446_v49 = vpop.eup %6445  ;;  %6455 = vlog2.f32 %v2923_v25  ;;  %v1580_v16 = vmax.f32 %v1484_v21, 0.0  ;;  %v1521_v14 = vsub.f32 %v751_v39, %v9174_v43  ;;  %v9189_v7 = vmul.f32 0.31184378, %v6442_v47 }
 0x18c   : > { %12065 = vst [vmem:[#allocation75_spill] sm:$0xff] %v9179_v42  ;;  %v3326_v0 = vmul.f32 1.442695, %v3205_v31  ;;  %v2637_v53 = vmax.f32 %v1579_v2, 0.0  ;;  %v1518_v26 = vsub.f32 %v748_v38, %v1422_v48  ;;  %v9193_v19 = vadd.f32 %v8297_v20, %v652_v1  ;;  %v9201_v2 = vpop.f32.mrb[41].mxu0 }
 0x18d   : > { %12068 = vst [vmem:[#allocation157_spill] sm:$0xff] %v9189_v7  ;;  %v6448_v42 = vpop.eup %6447  ;;  %6457 = vlog2.f32 %v2957_v46  ;;  %v2858_v10 = vmul.f32 100.0, %v2666_v13  ;;  %v9195_v21 = vmul.f32 0.31184378, %v6444_v56  ;;  %v3382_v25 = vmul.f32 1.442695, %v3233_v12  ;;  %v9204_v56 = vpop.xlane.xlu1 %657 }
 0x18e   : > { %12069 = vst [vmem:[#allocation158_spill] sm:$0xff] %v9193_v19  ;;  %v3043_v43 = vmul.f32 0.6931472, %v6446_v49  ;;  %v9198_v39 = vadd.f32 %v8134_v50, %v652_v1  ;;  %6459 = vpow2.f32 %v3324_v5  ;;  %v3376_v31 = vmul.f32 1.442695, %v3230_v9  ;;  %12072 = vst [vmem:[#allocation161_spill] sm:$0xff] %v9201_v2 }
 0x18f   : > { %12070 = vst [vmem:[#allocation159_spill] sm:$0xff] %v9195_v21  ;;  %v2638_v38 = vmax.f32 %v1580_v16, 0.0  ;;  %6461 = vpow2.f32 %v3326_v0  ;;  %v3045_v46 = vmul.f32 0.6931472, %v6448_v42  ;;  %v2829_v13 = vmul.f32 100.0, %v2637_v53  ;;  %v12075_v0 = vld [vmem:[#allocation99_spill] sm:$0xff] }
 0x190   : > { %12071 = vst [vmem:[#allocation160_spill] sm:$0xff] %v9198_v39  ;;  %v6450_v48 = vpop.eup %6449  ;;  %v9208_v12 = vadd.f32 %v8307_v30, %v9145_v36  ;;  %v9212_v1 = vadd.f32 %v8303_v11, %v9145_v36  ;;  %v2954_v5 = vadd.f32 1.0, %v2858_v10  ;;  %v1614_v49 = vmax.f32 %v1518_v26, 0.0  ;;  %v12076_v19 = vld [vmem:[#allocation100_spill] sm:$0xff]  ;;  %v12078_v10 = vld [vmem:[#allocation81_spill] sm:$0xff] }
 0x191   : > { %v6452_v9 = vpop.eup %6451  ;;  %6463 = vpow2.f32 %v3382_v25  ;;  %v3207_v41 = vmul.f32 -0.505, %v3043_v43  ;;  %v1390_v42 = vmul.f32 2.0, %v12075_v0  ;;  %v3107_v47 = vmul.f32 0.6931472, %v6450_v48  ;;  %v9224_v25 = vpop.f32.mrb[41].mxu1 }
 0x192   : > { %12073 = vst [vmem:[#allocation162_spill] sm:$0xff] %v9208_v12  ;;  %12074 = vst [vmem:[#allocation163_spill] sm:$0xff] %v9212_v1  ;;  %v6454_v53 = vpop.eup %6453  ;;  %6465 = vpow2.f32 %v3376_v31  ;;  %v2830_v39 = vmul.f32 100.0, %v2638_v38  ;;  %v1391_v7 = vmul.f32 2.0, %v12076_v19  ;;  %v3208_v54 = vmul.f32 -0.505, %v3045_v46  ;;  %v9229_v12 = vpop.xlane.xlu1 %471 }
 0x193   : > { %v9221_v36 = vadd.f32 %v8299_v51, %v9181_v33  ;;  %v2925_v26 = vadd.f32 1.0, %v2829_v13  ;;  %v1486_v16 = vsub.f32 %v12078_v10, %v1390_v42  ;;  %12079 = vst [vmem:[#allocation100_spill] sm:$0xff] %v9224_v25  ;;  %6467 = vlog2.f32 %v2954_v5  ;;  %v12080_v48 = vld [vmem:[#allocation85_spill] sm:$0xff] }
 0x194   : > { %v1617_v0 = vmax.f32 %v1521_v14, 0.0  ;;  %v2672_v31 = vmax.f32 %v1614_v49, 0.0  ;;  %v1487_v38 = vsub.f32 %v12080_v48, %v1391_v7  ;;  %v3330_v21 = vmul.f32 1.442695, %v3207_v41  ;;  %v12081_v49 = vld [vmem:[#allocation101_spill] sm:$0xff] }
 0x195   : > { %12077 = vst [vmem:[#allocation99_spill] sm:$0xff] %v9221_v36  ;;  %v6456_v43 = vpop.eup %6455  ;;  %v3101_v19 = vmul.f32 0.6931472, %v6452_v9  ;;  %v3049_v1 = vmul.f32 0.6931472, %v6454_v53  ;;  %v754_v46 = vadd.f32 %v8305_v27, %v9217_v28  ;;  %v2926_v2 = vadd.f32 1.0, %v2830_v39 }
 0x196   : > { %v3239_v13 = vmul.f32 -0.505, %v3107_v47  ;;  %v1582_v42 = vmax.f32 %v1486_v16, 0.0  ;;  %v9232_v10 = vmul.f32 2.0, %v8815_v37  ;;  %v3332_v5 = vmul.f32 1.442695, %v3208_v54 }
 0x197   : > { %v6458_v36 = vpop.eup %6457  ;;  %v3051_v14 = vmul.f32 0.6931472, %v6456_v43  ;;  %6469 = vlog2.f32 %v2925_v26  ;;  %v1428_v7 = vmul.f32 2.0, %v12081_v49  ;;  %v2675_v9 = vmax.f32 %v1617_v0, 0.0  ;;  %v12082_v26 = vld [vmem:[#allocation102_spill] sm:$0xff] }
 0x198   : > { %v6460_v41 = vpop.eup %6459  ;;  %v2864_v53 = vmul.f32 100.0, %v2672_v31  ;;  %v1583_v48 = vmax.f32 %v1487_v38, 0.0  ;;  %v9237_v25 = vadd.f32 %v8305_v27, %v9229_v12  ;;  %v3236_v47 = vmul.f32 -0.505, %v3101_v19 }
 0x199   : > { %v6462_v57 = vpop.eup %6461  ;;  %v3210_v39 = vmul.f32 -0.505, %v3049_v1  ;;  %v3119_v16 = vmul.f32 0.6931472, %v6458_v36  ;;  %v1524_v3 = vsub.f32 %v754_v46, %v1428_v7  ;;  %6471 = vlog2.f32 %v2926_v2 }
 0x19a   : > { %v2640_v37 = vmax.f32 %v1582_v42, 0.0  ;;  %v1527_v54 = vsub.f32 %v9237_v25, %v9232_v10  ;;  %v1393_v43 = vmul.f32 2.0, %v12082_v26  ;;  %v3394_v0 = vmul.f32 1.442695, %v3239_v13  ;;  %v9247_v25 = vpop.f32.mrb[42].mxu0 }
 0x19b   : > { %v6464_v49 = vpop.eup %6463  ;;  %v3211_v31 = vmul.f32 -0.505, %v3051_v14  ;;  %v1620_v38 = vmax.f32 %v1524_v3, 0.0  ;;  %v1394_v61 = vmul.f32 2.0, %v12083_v29  ;;  %6473 = vpow2.f32 %v3330_v21  ;;  %v12085_v14 = vld [vmem:[#allocation91_spill] sm:$0xff] }
 0x19c   : > { %v6466_v55 = vpop.eup %6465  ;;  %v2867_v15 = vmul.f32 100.0, %v2675_v9  ;;  %v2960_v19 = vadd.f32 1.0, %v2864_v53  ;;  %v2641_v1 = vmax.f32 %v1583_v48, 0.0  ;;  %6475 = vpow2.f32 %v3332_v5  ;;  %v12087_v9 = vld [vmem:[#allocation92_spill] sm:$0xff]  ;;  %v9253_v53 = vpop.f32.mrb[42].mxu1 }
 0x19d   : > { %v3388_v36 = vmul.f32 1.442695, %v3236_v47  ;;  %v3245_v2 = vmul.f32 -0.505, %v3119_v16  ;;  %v9245_v46 = vadd.f32 %v8297_v20, %v9181_v33  ;;  %v6468_v42 = vpop.eup %6467  ;;  %v3336_v13 = vmul.f32 1.442695, %v3210_v39 }
 0x19e   : > { %v2832_v10 = vmul.f32 100.0, %v2640_v37  ;;  %v2678_v3 = vmax.f32 %v1620_v38, 0.0  ;;  %v1489_v29 = vsub.f32 %v12085_v14, %v1393_v43  ;;  %v9250_v7 = vmul.f32 0.31184378, %v6460_v41 }
 0x19f   : > { %12084 = vst [vmem:[#allocation81_spill] sm:$0xff] %v9245_v46  ;;  %6477 = vpow2.f32 %v3394_v0  ;;  %v3338_v21 = vmul.f32 1.442695, %v3211_v31  ;;  %v1490_v5 = vsub.f32 %v12087_v9, %v1394_v61  ;;  %v2963_v48 = vadd.f32 1.0, %v2867_v15 }
 0x1a0   : > { %12086 = vst [vmem:[#allocation85_spill] sm:$0xff] %v9250_v7  ;;  %6479 = vlog2.f32 %v2960_v19  ;;  %v2833_v47 = vmul.f32 100.0, %v2641_v1  ;;  %v1585_v16 = vmax.f32 %v1489_v29, 0.0  ;;  %v9255_v46 = vmul.f32 0.31184378, %v6462_v57  ;;  %v9266_v57 = vpop.f32.mrb[43].mxu0 }
 0x1a1   : > { %v6470_v26 = vpop.eup %6469  ;;  %6481 = vpow2.f32 %v3388_v36  ;;  %v3406_v39 = vmul.f32 1.442695, %v3245_v2  ;;  %v3113_v37 = vmul.f32 0.6931472, %v6468_v42  ;;  %v9259_v41 = vadd.f32 %v8134_v50, %v9181_v33  ;;  %v9270_v33 = vpop.xlane.xlu0 %474  ;;  %v12096_v7 = vld [vmem:[#allocation95_spill] sm:$0xff] }
 0x1a2   : > { %12088 = vst [vmem:[#allocation101_spill] sm:$0xff] %v9255_v46  ;;  %6483 = vpow2.f32 %v3336_v13  ;;  %v2928_v43 = vadd.f32 1.0, %v2832_v10  ;;  %v2870_v0 = vmul.f32 100.0, %v2678_v3  ;;  %v9264_v15 = vadd.f32 %v8307_v30, %v9168_v60  ;;  %v9273_v10 = vpop.xlane.xlu1 %477 }
 0x1a3   : > { %12089 = vst [vmem:[#allocation102_spill] sm:$0xff] %v9259_v41  ;;  %6485 = vpow2.f32 %v3338_v21  ;;  %v2643_v31 = vmax.f32 %v1585_v16, 0.0  ;;  %v6472_v38 = vpop.eup %6471  ;;  %v9268_v19 = vmul.f32 0.31184378, %v6464_v49  ;;  %v2929_v1 = vadd.f32 1.0, %v2833_v47  ;;  %v12092_v21 = vld [vmem:[#allocation106_spill] sm:$0xff] }
 0x1a4   : > { %12090 = vst [vmem:[#allocation104_spill] sm:$0xff] %v9264_v15  ;;  %6487 = vlog2.f32 %v2963_v48  ;;  %v1586_v36 = vmax.f32 %v1490_v5, 0.0  ;;  %v3242_v42 = vmul.f32 -0.505, %v3113_v37  ;;  %v3055_v13 = vmul.f32 0.6931472, %v6470_v26 }
 0x1a5   : > { %12091 = vst [vmem:[#allocation91_spill] sm:$0xff] %v9268_v19  ;;  %6489 = vpow2.f32 %v3406_v39  ;;  %v6474_v3 = vpop.eup %6473  ;;  %v2966_v14 = vadd.f32 1.0, %v2870_v0  ;;  %v1623_v29 = vmax.f32 %v1527_v54, 0.0  ;;  %v9276_v9 = vmul.f32 2.0, %v12092_v21  ;;  %v12093_v16 = vld [vmem:[#allocation110_spill] sm:$0xff]  ;;  %v9281_v39 = vpop.f32.mrb[43].mxu1 }
 0x1a6   : > { %6491 = vlog2.f32 %v2928_v43  ;;  %v6476_v49 = vpop.eup %6475  ;;  %v3057_v48 = vmul.f32 0.6931472, %v6472_v38  ;;  %v2835_v47 = vmul.f32 100.0, %v2643_v31  ;;  %v760_v5 = vadd.f32 %v8305_v27, %v9270_v33  ;;  %12094 = vst [vmem:[#allocation92_spill] sm:$0xff] %v9281_v39 }
 0x1a7   : > { %v1434_v2 = vmul.f32 2.0, %v12093_v16  ;;  %v9283_v26 = vmul.f32 0.31184378, %v6466_v55  ;;  %6493 = vlog2.f32 %v2929_v1  ;;  %v2644_v37 = vmax.f32 %v1586_v36, 0.0 }
 0x1a8   : > { %v763_v54 = vadd.f32 %v8305_v27, %v9273_v10  ;;  %v3400_v0 = vmul.f32 1.442695, %v3242_v42  ;;  %v9288_v38 = vmul.f32 2.0, %v8863_v44  ;;  %v9291_v31 = vmul.f32 2.0, %v8866_v62 }
 0x1a9   : > { %12095 = vst [vmem:[#allocation106_spill] sm:$0xff] %v9283_v26  ;;  %v6478_v43 = vpop.eup %6477  ;;  %v1530_v21 = vsub.f32 %v760_v5, %v1434_v2  ;;  %v3213_v16 = vmul.f32 -0.505, %v3055_v13  ;;  %6495 = vlog2.f32 %v2966_v14  ;;  %v2681_v41 = vmax.f32 %v1623_v29, 0.0  ;;  %v12097_v2 = vld [vmem:[#allocation96_spill] sm:$0xff] }
 0x1aa   : > { %v6480_v61 = vpop.eup %6479  ;;  %v1533_v55 = vsub.f32 %v763_v54, %v9276_v9  ;;  %v3214_v36 = vmul.f32 -0.505, %v3057_v48  ;;  %v2931_v46 = vadd.f32 1.0, %v2835_v47  ;;  %v1492_v15 = vsub.f32 %v12096_v7, %v9288_v38 }
 0x1ab   : > { %v6482_v1 = vpop.eup %6481  ;;  %v1493_v42 = vsub.f32 %v12097_v2, %v9291_v31  ;;  %v9299_v62 = vmul.f32 0.31184378, %v6474_v3  ;;  %v9301_v39 = vmul.f32 0.31184378, %v6476_v49  ;;  %v2836_v13 = vmul.f32 100.0, %v2644_v37  ;;  %v9310_v3 = vpop.f32.mrb[44].mxu0 }
 0x1ac   : > { %v6484_v44 = vpop.eup %6483  ;;  %v9304_v9 = vmul.f32 0.31184378, %v6478_v43  ;;  %v9308_v48 = vadd.f32 %v8303_v11, %v9168_v60  ;;  %v3125_v7 = vmul.f32 0.6931472, %v6480_v61  ;;  %6497 = vpow2.f32 %v3400_v0  ;;  %v9312_v49 = vpop.f32.mrb[44].mxu1 }
 0x1ad   : > { %12098 = vst [vmem:[#allocation110_spill] sm:$0xff] %v9299_v62  ;;  %12099 = vst [vmem:[#allocation95_spill] sm:$0xff] %v9301_v39  ;;  %v6486_v14 = vpop.eup %6485  ;;  %v3342_v54 = vmul.f32 1.442695, %v3213_v16  ;;  %v2873_v38 = vmul.f32 100.0, %v2681_v41  ;;  %v1626_v31 = vmax.f32 %v1530_v21, 0.0  ;;  %v9316_v43 = vadd.f32 %v8299_v51, %v9204_v56 }
 0x1ae   : > { %12100 = vst [vmem:[#allocation96_spill] sm:$0xff] %v9304_v9  ;;  %v6488_v47 = vpop.eup %6487  ;;  %v3344_v2 = vmul.f32 1.442695, %v3214_v36  ;;  %v9320_v60 = vadd.f32 %v8297_v20, %v9204_v56  ;;  %6499 = vlog2.f32 %v2931_v46  ;;  %v9326_v21 = vadd.f32 %v8134_v50, %v9204_v56  ;;  %v12110_v39 = vld [vmem:[#allocation108_spill] sm:$0xff]  ;;  %v12111_v62 = vld [vmem:[#allocation109_spill] sm:$0xff] }
 0x1af   : > { %v6490_v37 = vpop.eup %6489  ;;  %12101 = vst [vmem:[#allocation164_spill] sm:$0xff] %v9316_v43  ;;  %v2932_v16 = vadd.f32 1.0, %v2836_v13  ;;  %v9329_v29 = vmul.f32 0.31184378, %v6482_v1  ;;  %v3248_v51 = vmul.f32 -0.505, %v3125_v7  ;;  %v9333_v20 = vadd.f32 %v8307_v30, %v9217_v28 }
 0x1b0   : > { %12102 = vst [vmem:[#allocation165_spill] sm:$0xff] %v9320_v60  ;;  %v6492_v61 = vpop.eup %6491  ;;  %12103 = vst [vmem:[#allocation166_spill] sm:$0xff] %v9326_v21  ;;  %v9335_v5 = vmul.f32 0.31184378, %v6484_v44  ;;  %6501 = vpow2.f32 %v3342_v54  ;;  %v2969_v0 = vadd.f32 1.0, %v2873_v38  ;;  %v2684_v41 = vmax.f32 %v1626_v31, 0.0  ;;  %v9337_v60 = vpop.xlane.xlu0 %480 }
 0x1b1   : > { %12104 = vst [vmem:[#allocation167_spill] sm:$0xff] %v9329_v29  ;;  %v6494_v46 = vpop.eup %6493  ;;  %v9339_v50 = vmul.f32 0.31184378, %v6486_v14  ;;  %6503 = vpow2.f32 %v3344_v2  ;;  %v3061_v56 = vmul.f32 0.6931472, %v6492_v61  ;;  %v9343_v1 = vadd.f32 %v8303_v11, %v9217_v28  ;;  %v9345_v13 = vpop.f32.mrb[45].mxu0 }
 0x1b2   : > { %12105 = vst [vmem:[#allocation168_spill] sm:$0xff] %v9335_v5  ;;  %v9347_v36 = vmul.f32 0.31184378, %v6490_v37  ;;  %v3131_v44 = vmul.f32 0.6931472, %v6488_v47  ;;  %6505 = vlog2.f32 %v2932_v16  ;;  %v1629_v54 = vmax.f32 %v1533_v55, 0.0  ;;  %v9349_v38 = vpop.xlane.xlu1 %483 }
 0x1b3   : > { %12106 = vst [vmem:[#allocation169_spill] sm:$0xff] %v9339_v50  ;;  %12107 = vst [vmem:[#allocation170_spill] sm:$0xff] %v9343_v1  ;;  %v6496_v7 = vpop.eup %6495  ;;  %v3412_v31 = vmul.f32 1.442695, %v3248_v51  ;;  %v3063_v21 = vmul.f32 0.6931472, %v6494_v46  ;;  %v9356_v2 = vadd.f32 %v8305_v27, %v9337_v60  ;;  %6507 = vlog2.f32 %v2969_v0 }
 0x1b4   : > { %12108 = vst [vmem:[#allocation171_spill] sm:$0xff] %v9347_v36  ;;  %v12109_v14 = vld [vmem:[#allocation114_spill] sm:$0xff]  ;;  %v2876_v28 = vmul.f32 100.0, %v2684_v41  ;;  %v1588_v61 = vmax.f32 %v1492_v15, 0.0  ;;  %v9359_v37 = vmul.f32 2.0, %v8885_v23  ;;  %v1589_v55 = vmax.f32 %v1493_v42, 0.0 }
 0x1b5   : > { %v9352_v43 = vmul.f32 2.0, %v12109_v14  ;;  %v3216_v47 = vmul.f32 -0.505, %v3061_v56  ;;  %v3137_v16 = vmul.f32 0.6931472, %v6496_v7  ;;  %v9363_v51 = vadd.f32 %v8305_v27, %v9349_v38  ;;  %v9371_v56 = vpop.f32.mrb[45].mxu1 }
 0x1b6   : > { %v6498_v46 = vpop.eup %6497  ;;  %v2687_v14 = vmax.f32 %v1629_v54, 0.0  ;;  %v1536_v9 = vsub.f32 %v9356_v2, %v9359_v37  ;;  %v1399_v26 = vmul.f32 2.0, %v8899_v58  ;;  %v1400_v0 = vmul.f32 2.0, %v8905_v59  ;;  %v9375_v2 = vpop.xlane.xlu0 %486 }
 0x1b7   : > { %v3251_v41 = vmul.f32 -0.505, %v3131_v44  ;;  %6509 = vpow2.f32 %v3412_v31  ;;  %v3217_v23 = vmul.f32 -0.505, %v3063_v21  ;;  %v1539_v42 = vsub.f32 %v9363_v51, %v9352_v43 }
 0x1b8   : > { %v6500_v15 = vpop.eup %6499  ;;  %v2972_v7 = vadd.f32 1.0, %v2876_v28  ;;  %v2646_v19 = vmax.f32 %v1588_v61, 0.0  ;;  %v1495_v54 = vsub.f32 %v12110_v39, %v1399_v26  ;;  %v1496_v1 = vsub.f32 %v12111_v62, %v1400_v0 }
 0x1b9   : > { %v3348_v58 = vmul.f32 1.442695, %v3216_v47  ;;  %v3254_v37 = vmul.f32 -0.505, %v3137_v16  ;;  %v9379_v59 = vadd.f32 %v8307_v30, %v9229_v12  ;;  %v2647_v21 = vmax.f32 %v1589_v55, 0.0 }
 0x1ba   : > { %v6502_v44 = vpop.eup %6501  ;;  %v9381_v31 = vmul.f32 0.31184378, %v6498_v46  ;;  %v9385_v43 = vadd.f32 %v8303_v11, %v9229_v12  ;;  %v3067_v28 = vmul.f32 0.6931472, %v6500_v15  ;;  %v2879_v39 = vmul.f32 100.0, %v2687_v14 }
 0x1bb   : > { %12112 = vst [vmem:[#allocation114_spill] sm:$0xff] %v9379_v59  ;;  %v6504_v26 = vpop.eup %6503  ;;  %v3350_v47 = vmul.f32 1.442695, %v3217_v23  ;;  %v9391_v16 = vadd.f32 %v8305_v27, %v9375_v2  ;;  %v3418_v46 = vmul.f32 1.442695, %v3251_v41  ;;  %6511 = vlog2.f32 %v2972_v7 }
 0x1bc   : > { %12113 = vst [vmem:[#allocation108_spill] sm:$0xff] %v9381_v31  ;;  %12114 = vst [vmem:[#allocation109_spill] sm:$0xff] %v9385_v43  ;;  %v6506_v55 = vpop.eup %6505  ;;  %v2838_v0 = vmul.f32 100.0, %v2646_v19  ;;  %6513 = vpow2.f32 %v3348_v58  ;;  %v3424_v12 = vmul.f32 1.442695, %v3254_v37  ;;  %v2839_v15 = vmul.f32 100.0, %v2647_v21 }
 0x1bd   : > { %v9395_v14 = vmul.f32 2.0, %v8917_v4  ;;  %v6508_v62 = vpop.eup %6507  ;;  %v3219_v29 = vmul.f32 -0.505, %v3067_v28  ;;  %v2975_v5 = vadd.f32 1.0, %v2879_v39  ;;  %6515 = vpow2.f32 %v3350_v47  ;;  %v9409_v58 = vpop.f32.mrb[46].mxu0 }
 0x1be   : > { %v3069_v43 = vmul.f32 0.6931472, %v6506_v55  ;;  %v1591_v59 = vmax.f32 %v1495_v54, 0.0  ;;  %6517 = vpow2.f32 %v3418_v46  ;;  %v9403_v19 = vadd.f32 %v8307_v30, %v9270_v33 }
 0x1bf   : > { %v9407_v4 = vadd.f32 %v8303_v11, %v9270_v33  ;;  %v2934_v7 = vadd.f32 1.0, %v2838_v0  ;;  %6519 = vpow2.f32 %v3424_v12  ;;  %v3143_v21 = vmul.f32 0.6931472, %v6508_v62  ;;  %v9419_v33 = vpop.xlane.xlu1 %489 }
 0x1c0   : > { %12115 = vst [vmem:[#allocation172_spill] sm:$0xff] %v9403_v19  ;;  %v9413_v54 = vadd.f32 %v8307_v30, %v9273_v10  ;;  %v2935_v28 = vadd.f32 1.0, %v2839_v15  ;;  %v3354_v39 = vmul.f32 1.442695, %v3219_v29  ;;  %v9417_v47 = vadd.f32 %v8303_v11, %v9273_v10  ;;  %v9428_v15 = vpop.f32.mrb[46].mxu1 }
 0x1c1   : > { %12116 = vst [vmem:[#allocation173_spill] sm:$0xff] %v9407_v4  ;;  %v6510_v37 = vpop.eup %6509  ;;  %6521 = vlog2.f32 %v2975_v5  ;;  %v1632_v55 = vmax.f32 %v1536_v9, 0.0  ;;  %v3220_v46 = vmul.f32 -0.505, %v3069_v43  ;;  %v2649_v0 = vmax.f32 %v1591_v59, 0.0  ;;  %v9440_v43 = vpop.f32.mrb[47].mxu0 }
 0x1c2   : > { %12117 = vst [vmem:[#allocation174_spill] sm:$0xff] %v9413_v54  ;;  %12118 = vst [vmem:[#allocation175_spill] sm:$0xff] %v9417_v47  ;;  %v1592_v23 = vmax.f32 %v1496_v1, 0.0  ;;  %v9422_v12 = vmul.f32 2.0, %v8908_v32  ;;  %v9424_v62 = vmul.f32 0.31184378, %v6502_v44  ;;  %6523 = vlog2.f32 %v2934_v7 }
 0x1c3   : > { %v9426_v61 = vmul.f32 0.31184378, %v6504_v26  ;;  %v1635_v29 = vmax.f32 %v1539_v42, 0.0  ;;  %v9430_v10 = vmul.f32 0.31184378, %v6510_v37  ;;  %6525 = vlog2.f32 %v2935_v28  ;;  %v9462_v41 = vpop.f32.mrb[47].mxu1 }
 0x1c4   : > { %12119 = vst [vmem:[#allocation176_spill] sm:$0xff] %v9424_v62  ;;  %v3257_v5 = vmul.f32 -0.505, %v3143_v21  ;;  %v9434_v9 = vadd.f32 %v8305_v27, %v9419_v33  ;;  %6527 = vpow2.f32 %v3354_v39  ;;  %v2690_v32 = vmax.f32 %v1632_v55, 0.0  ;;  %v12122_v39 = vld [vmem:[#allocation15_spill] sm:$0xff]  ;;  %v12173_v54 = vld [vmem:[#allocation64_spill] sm:$0xff] }
 0x1c5   : > { %12120 = vst [vmem:[#allocation177_spill] sm:$0xff] %v9426_v61  ;;  %12121 = vst [vmem:[#allocation178_spill] sm:$0xff] %v9430_v10  ;;  %v6512_v1 = vpop.eup %6511  ;;  %v9437_v59 = vmul.f32 2.0, %v8959_v24  ;;  %v2316_v44 = vmul.f32 2.0, %v8962_v63  ;;  %v3356_v26 = vmul.f32 1.442695, %v3220_v46  ;;  %v9473_v27 = vadd.f32 %v8307_v30, %v9349_v38 }
 0x1c6   : > { %v6514_v42 = vpop.eup %6513  ;;  %v2841_v7 = vmul.f32 100.0, %v2649_v0  ;;  %v2650_v37 = vmax.f32 %v1592_v23, 0.0  ;;  %v2693_v28 = vmax.f32 %v1635_v29, 0.0  ;;  %v9448_v24 = vmul.f32 2.0, %v8968_v35  ;;  %v12174_v4 = vld [vmem:[#allocation118_spill] sm:$0xff] }
 0x1c7   : > { %v2412_v55 = vsub.f32 %v12122_v39, %v2316_v44  ;;  %v6516_v51 = vpop.eup %6515  ;;  %v3430_v46 = vmul.f32 1.442695, %v3257_v5  ;;  %v3149_v0 = vmul.f32 0.6931472, %v6512_v1  ;;  %v9454_v31 = vmul.f32 0.31184378, %v6514_v42 }
 0x1c8   : > { %v9452_v23 = vpop.eup %6517  ;;  %v2882_v29 = vmul.f32 100.0, %v2690_v32  ;;  %6529 = vpow2.f32 %v3356_v26  ;;  %v9460_v35 = vadd.f32 %v8307_v30, %v9337_v60  ;;  %v2937_v39 = vadd.f32 1.0, %v2841_v7  ;;  %12128 = vst [vmem:[#allocation183_spill] sm:$0xff] %v9473_v27 }
 0x1c9   : > { %12123 = vst [vmem:[#allocation15_spill] sm:$0xff] %v9452_v23  ;;  %12124 = vst [vmem:[#allocation179_spill] sm:$0xff] %v9454_v31  ;;  %v2508_v21 = vmax.f32 %v2412_v55, 0.0  ;;  %v6520_v44 = vpop.eup %6519  ;;  %v2842_v63 = vmul.f32 100.0, %v2650_v37  ;;  %v9465_v42 = vmul.f32 0.31184378, %v6516_v51  ;;  %6531 = vpow2.f32 %v3430_v46 }
 0x1ca   : > { %12125 = vst [vmem:[#allocation180_spill] sm:$0xff] %v9460_v35  ;;  %v2885_v32 = vmul.f32 100.0, %v2693_v28  ;;  %v3260_v23 = vmul.f32 -0.505, %v3149_v0  ;;  %v9469_v26 = vadd.f32 %v8303_v11, %v9337_v60  ;;  %v2978_v36 = vadd.f32 1.0, %v2882_v29 }
 0x1cb   : > { %v6522_v5 = vpop.eup %6521  ;;  %12126 = vst [vmem:[#allocation181_spill] sm:$0xff] %v9465_v42  ;;  %v2700_v55 = vmax.f32 %v2508_v21, 0.0  ;;  %v9478_v51 = vadd.f32 %v8303_v11, %v9349_v38  ;;  %v2317_v21 = vmul.f32 2.0, %v8971_v22  ;;  %v9481_v46 = vmul.f32 0.31184378, %v6520_v44 }
 0x1cc   : > { %12127 = vst [vmem:[#allocation182_spill] sm:$0xff] %v9469_v26  ;;  %v6524_v7 = vpop.eup %6523  ;;  %6533 = vlog2.f32 %v2937_v39  ;;  %v2938_v60 = vadd.f32 1.0, %v2842_v63  ;;  %v3155_v61 = vmul.f32 0.6931472, %v6522_v5  ;;  %v2981_v27 = vadd.f32 1.0, %v2885_v32  ;;  %v12134_v5 = vld [vmem:[#allocation16_spill] sm:$0xff] }
 0x1cd   : > { %12129 = vst [vmem:[#allocation184_spill] sm:$0xff] %v9478_v51  ;;  %v6526_v28 = vpop.eup %6525  ;;  %12130 = vst [vmem:[#allocation185_spill] sm:$0xff] %v9481_v46  ;;  %v3564_v0 = vmul.f32 100.0, %v2700_v55  ;;  %v9485_v37 = vmul.f32 2.0, %v8988_v17  ;;  %v3436_v29 = vmul.f32 1.442695, %v3260_v23  ;;  %v9489_v38 = vadd.f32 %v8307_v30, %v9375_v2 }
 0x1ce   : > { %v6528_v1 = vpop.eup %6527  ;;  %v3073_v31 = vmul.f32 0.6931472, %v6524_v7  ;;  %v9493_v22 = vadd.f32 %v8303_v11, %v9375_v2  ;;  %v3075_v63 = vmul.f32 0.6931472, %v6526_v28  ;;  %6535 = vlog2.f32 %v2978_v36  ;;  %v9506_v28 = vpop.f32.mrb[48].mxu0 }
 0x1cf   : > { %12131 = vst [vmem:[#allocation186_spill] sm:$0xff] %v9489_v38  ;;  %v12133_v44 = vsub.f32 %v9391_v16, %v9395_v14  ;;  %v2413_v32 = vsub.f32 %v12134_v5, %v2317_v21  ;;  %6537 = vlog2.f32 %v2938_v60  ;;  %v9502_v23 = vadd.f32 %v8307_v30, %v9419_v33  ;;  %v9508_v16 = vpop.f32.mrb[48].mxu1 }
 0x1d0   : > { %12132 = vst [vmem:[#allocation187_spill] sm:$0xff] %v9493_v22  ;;  %v3660_v55 = vadd.f32 1.0, %v3564_v0  ;;  %v3263_v7 = vmul.f32 -0.505, %v3155_v61  ;;  %6539 = vlog2.f32 %v2981_v27  ;;  %v9510_v21 = vmul.f32 0.31184378, %v6528_v1 }
 0x1d1   : > { %v1638_v39 = vmax.f32 %v12133_v44, 0.0  ;;  %12135 = vst [vmem:[#allocation16_spill] sm:$0xff] %v9502_v23  ;;  %v2509_v2 = vmax.f32 %v2413_v32, 0.0  ;;  %6541 = vpow2.f32 %v3436_v29  ;;  %v12137_v60 = vsub.f32 %v8921_v34, %v9437_v59  ;;  %v12140_v1 = vld [vmem:[#allocation19_spill] sm:$0xff] }
 0x1d2   : > { %v6530_v14 = vpop.eup %6529  ;;  %12136 = vst [vmem:[#allocation188_spill] sm:$0xff] %v9510_v21  ;;  %v2319_v0 = vmul.f32 2.0, %v8990_v45  ;;  %v3222_v61 = vmul.f32 -0.505, %v3073_v31  ;;  %v3223_v27 = vmul.f32 -0.505, %v3075_v63  ;;  %v12139_v17 = vsub.f32 %v9434_v9, %v9422_v12 }
 0x1d3   : > { %v1594_v30 = vmax.f32 %v12137_v60, 0.0  ;;  %v2696_v44 = vmax.f32 %v1638_v39, 0.0  ;;  %v2701_v5 = vmax.f32 %v2509_v2, 0.0  ;;  %v9516_v32 = vpop.eup %6531  ;;  %6543 = vlog2.f32 %v3660_v55 }
 0x1d4   : > { %12138 = vst [vmem:[#allocation189_spill] sm:$0xff] %v9516_v32  ;;  %v1641_v10 = vmax.f32 %v12139_v17, 0.0  ;;  %v2415_v36 = vsub.f32 %v12140_v1, %v2319_v0  ;;  %v9523_v29 = vmul.f32 2.0, %v8997_v6  ;;  %v9525_v34 = vmul.f32 0.31184378, %v6530_v14  ;;  %v12143_v14 = vld [vmem:[#allocation76_spill] sm:$0xff] }
 0x1d5   : > { %v9527_v59 = vmul.f32 1.442695, %v3263_v7  ;;  %v9531_v45 = vadd.f32 %v8303_v11, %v9419_v33  ;;  %v3565_v31 = vmul.f32 100.0, %v2701_v5  ;;  %v2652_v39 = vmax.f32 %v1594_v30, 0.0  ;;  %v9539_v7 = vpop.f32.mrb[49].mxu0  ;;  %v12144_v5 = vld [vmem:[#allocation20_spill] sm:$0xff] }
 0x1d6   : > { %12141 = vst [vmem:[#allocation19_spill] sm:$0xff] %v9525_v34  ;;  %v6534_v63 = vpop.eup %6533  ;;  %v2511_v2 = vmax.f32 %v2415_v36, 0.0  ;;  %v2320_v9 = vmul.f32 2.0, %v9005_v18  ;;  %v3360_v17 = vmul.f32 1.442695, %v3222_v61  ;;  %v2888_v6 = vmul.f32 100.0, %v2696_v44 }
 0x1d7   : > { %12142 = vst [vmem:[#allocation190_spill] sm:$0xff] %v9531_v45  ;;  %v3661_v55 = vadd.f32 1.0, %v3565_v31  ;;  %v9537_v60 = vmul.f32 2.0, %v12143_v14  ;;  %v3362_v0 = vmul.f32 1.442695, %v3223_v27  ;;  %v2699_v11 = vmax.f32 %v1641_v10, 0.0 }
 0x1d8   : > { %v2703_v33 = vmax.f32 %v2511_v2, 0.0  ;;  %v2416_v1 = vsub.f32 %v12144_v5, %v2320_v9  ;;  %v6536_v30 = vpop.eup %6535  ;;  %v3079_v36 = vmul.f32 0.6931472, %v6534_v63  ;;  %v12145_v12 = vsub.f32 %v8929_v8, %v9448_v24  ;;  %v12146_v18 = vld [vmem:[#allocation74_spill] sm:$0xff] }
 0x1d9   : > { %v12147_v44 = vld [vmem:[#allocation138_spill] sm:$0xff]  ;;  %v6538_v14 = vpop.eup %6537  ;;  %v2844_v32 = vmul.f32 100.0, %v2652_v39  ;;  %6545 = vlog2.f32 %v3661_v55  ;;  %v2984_v5 = vadd.f32 1.0, %v2888_v6  ;;  %v3161_v24 = vmul.f32 0.6931472, %v6536_v30  ;;  %v12148_v39 = vld [vmem:[#allocation13_spill] sm:$0xff] }
 0x1da   : > { %v1595_v46 = vmax.f32 %v12145_v12, 0.0  ;;  %v2322_v31 = vmul.f32 2.0, %v12147_v44  ;;  %v3567_v27 = vmul.f32 100.0, %v2703_v33  ;;  %v2512_v10 = vmax.f32 %v2416_v1, 0.0  ;;  %v6540_v2 = vpop.eup %6539  ;;  %v9552_v33 = vpop.f32.mrb[49].mxu1 }
 0x1db   : > { %6547 = vpow2.f32 %v3360_v17  ;;  %v6542_v8 = vpop.eup %6541  ;;  %v2891_v12 = vmul.f32 100.0, %v2699_v11  ;;  %v3081_v44 = vmul.f32 0.6931472, %v6538_v14  ;;  %12149 = vst [vmem:[#allocation76_spill] sm:$0xff] %v9552_v33  ;;  %v3225_v22 = vmul.f32 -0.505, %v3079_v36 }
 0x1dc   : > { %v3663_v45 = vadd.f32 1.0, %v3567_v27  ;;  %v2704_v61 = vmax.f32 %v2512_v10, 0.0  ;;  %6549 = vpow2.f32 %v3362_v0  ;;  %v2418_v55 = vsub.f32 %v12148_v39, %v2322_v31 }
 0x1dd   : > { %v6544_v1 = vpop.eup %6543  ;;  %v2940_v9 = vadd.f32 1.0, %v2844_v32  ;;  %v2653_v21 = vmax.f32 %v1595_v46, 0.0  ;;  %v3167_v17 = vmul.f32 0.6931472, %v6540_v2  ;;  %v9554_v63 = vstv %s6056_s11 }
 0x1de   : > { %6551 = vlog2.f32 %v3663_v45  ;;  %v3757_v6 = vmul.f32 0.6931472, %v6544_v1  ;;  %v3568_v11 = vmul.f32 100.0, %v2704_v61  ;;  %v9556_v30 = vmul.f32 0.31184378, %v6542_v8 }
 0x1df   : > { %v3266_v27 = vmul.f32 -0.505, %v3161_v24  ;;  %6553 = vlog2.f32 %v2984_v5  ;;  %v2987_v0 = vadd.f32 1.0, %v2891_v12  ;;  %v3226_v14 = vmul.f32 -0.505, %v3081_v44 }
 0x1e0   : > { %12150 = vst [vmem:[#allocation20_spill] sm:$0xff] %v9556_v30  ;;  %v3948_v10 = vmul.f32 -0.505, %v3757_v6  ;;  %v3664_v31 = vadd.f32 1.0, %v3568_v11  ;;  %v2514_v39 = vmax.f32 %v2418_v55, 0.0  ;;  %6555 = vlog2.f32 %v2940_v9  ;;  %v9569_v11 = vpop.f32.mrb[50].mxu0 }
 0x1e1   : > { %v3366_v23 = vmul.f32 1.442695, %v3225_v22  ;;  %v2845_v36 = vmul.f32 100.0, %v2653_v21  ;;  %v12151_v46 = vsub.f32 %v8957_v40, %v9485_v37  ;;  %v9561_v1 = vmul.f32 1.442695, %v3266_v27  ;;  %12155 = vst [vmem:[#allocation138_spill] sm:$0xff] %v9569_v11 }
 0x1e2   : > { %v4044_v45 = vmul.f32 1.442695, %v3948_v10  ;;  %v4332_v2 = vadd.f32 -1.1652529, %v3948_v10  ;;  %6557 = vlog2.f32 %v3664_v31  ;;  %v2706_v61 = vmax.f32 %v2514_v39, 0.0  ;;  %v9571_v27 = vpop.f32.mrb[50].mxu1 }
 0x1e3   : > { %v1597_v32 = vmax.f32 %v12151_v46, 0.0  ;;  %v6546_v8 = vpop.eup %6545  ;;  %12152 = vst [vmem:[#allocation74_spill] sm:$0xff] %v9561_v1  ;;  %v3269_v5 = vmul.f32 -0.505, %v3167_v17  ;;  %6559 = vlog2.f32 %v2987_v0  ;;  %v12153_v24 = vsub.f32 %v8965_v52, %v9523_v29  ;;  %12156 = vst [vmem:[#allocation13_spill] sm:$0xff] %v9571_v27  ;;  %v12157_v0 = vld [vmem:[#allocation112_spill] sm:$0xff] }
 0x1e4   : > { %6561 = vpow2.f32 %v4044_v45  ;;  %v4428_v21 = vmax.f32 %v4332_v2, -27.631021  ;;  %v3759_v9 = vmul.f32 0.6931472, %v6546_v8  ;;  %v3570_v44 = vmul.f32 100.0, %v2706_v61  ;;  %v12158_v45 = vld [vmem:[#allocation142_spill] sm:$0xff] }
 0x1e5   : > { %v1598_v12 = vmax.f32 %v12153_v24, 0.0  ;;  %v6548_v22 = vpop.eup %6547  ;;  %6563 = vpow2.f32 %v3366_v23  ;;  %v3368_v40 = vmul.f32 1.442695, %v3226_v14  ;;  %v12154_v37 = vlaneseq  ;;  %v12159_v14 = vld [vmem:[#allocation84_spill] sm:$0xff]  ;;  %v12160_v61 = vld [vmem:[#allocation146_spill] sm:$0xff]  ;;  %v9588_v42 = vpop.f32.mrb[51].mxu0 }
 0x1e6   : > { %v2655_v6 = vmax.f32 %v1597_v32, 0.0  ;;  %v6550_v17 = vpop.eup %6549  ;;  %v9574_v10 = vmul.f32 %v4428_v21, %v12157_v0  ;;  %v2941_v52 = vadd.f32 1.0, %v2845_v36  ;;  %v3949_v29 = vmul.f32 -0.505, %v3759_v9  ;;  %v12161_v36 = vld [vmem:[#allocation136_spill] sm:$0xff]  ;;  %12164 = vst [vmem:[#allocation112_spill] sm:$0xff] %v9588_v42 }
 0x1e7   : > { %v9567_v55 = vshrl.u32 %v12154_v37, 7  ;;  %v3666_v31 = vadd.f32 1.0, %v3570_v44  ;;  %v2656_v46 = vmax.f32 %v1598_v12, 0.0  ;;  %v9577_v23 = vmul.f32 2.0, %v12158_v45  ;;  %v12162_v44 = vld [vmem:[#allocation14_spill] sm:$0xff]  ;;  %v12163_v12 = vld [vmem:[#allocation141_spill] sm:$0xff] }
 0x1e8   : > { %v6552_v39 = vpop.eup %6551  ;;  %v2323_v2 = vmul.f32 2.0, %v12159_v14  ;;  %v9581_v32 = vmul.f32 2.0, %v12160_v61  ;;  %v4046_v8 = vmul.f32 1.442695, %v3949_v29  ;;  %v4333_v24 = vadd.f32 -1.1652529, %v3949_v29 }
 0x1e9   : > { %v3763_v30 = vmul.f32 0.6931472, %v6552_v39  ;;  %6565 = vlog2.f32 %v3666_v31  ;;  %v6554_v37 = vpop.eup %6553  ;;  %v2847_v21 = vmul.f32 100.0, %v2655_v6  ;;  %v9590_v14 = vmul.f32 1.442695, %v3269_v5 }
 0x1ea   : > { %v2419_v34 = vsub.f32 %v12162_v44, %v2323_v2  ;;  %6567 = vpow2.f32 %v4046_v8  ;;  %v4429_v61 = vmax.f32 %v4333_v24, -27.631021  ;;  %v6556_v29 = vpop.eup %6555  ;;  %v9592_v39 = vmul.f32 0.31184378, %v6548_v22  ;;  %v12168_v44 = vld [vmem:[#allocation113_spill] sm:$0xff] }
 0x1eb   : > { %12165 = vst [vmem:[#allocation142_spill] sm:$0xff] %v9590_v14  ;;  %v3951_v38 = vmul.f32 -0.505, %v3763_v30  ;;  %6569 = vpow2.f32 %v3368_v40  ;;  %v12167_v6 = vsub.f32 %v12146_v18, %v9537_v60  ;;  %v2848_v5 = vmul.f32 100.0, %v2656_v46  ;;  %v12171_v46 = vld [vmem:[#allocation117_spill] sm:$0xff] }
 0x1ec   : > { %12166 = vst [vmem:[#allocation84_spill] sm:$0xff] %v9592_v39  ;;  %v2515_v9 = vmax.f32 %v2419_v34, 0.0  ;;  %v6558_v2 = vpop.eup %6557  ;;  %v9598_v51 = vmul.f32 %v4429_v61, %v12168_v44  ;;  %6571 = vlog2.f32 %v2941_v52  ;;  %v2943_v8 = vadd.f32 1.0, %v2847_v21 }
 0x1ed   : > { %v1600_v31 = vmax.f32 %v12167_v6, 0.0  ;;  %v4050_v45 = vmul.f32 1.442695, %v3951_v38  ;;  %v4335_v62 = vadd.f32 -1.1652529, %v3951_v38  ;;  %v6560_v14 = vpop.eup %6559  ;;  %v9602_v34 = vadd.s32 %v9554_v63, %v9567_v55 }
 0x1ee   : > { %v3765_v30 = vmul.f32 0.6931472, %v6558_v2  ;;  %v2707_v24 = vmax.f32 %v2515_v9, 0.0  ;;  %v6562_v22 = vpop.eup %6561  ;;  %v3173_v26 = vmul.f32 0.6931472, %v6554_v37  ;;  %v2944_v21 = vadd.f32 1.0, %v2848_v5 }
 0x1ef   : > { %v3085_v40 = vmul.f32 0.6931472, %v6556_v29  ;;  %6573 = vpow2.f32 %v4050_v45  ;;  %v4431_v50 = vmax.f32 %v4335_v62, -27.631021  ;;  %v6564_v60 = vpop.eup %6563  ;;  %v4236_v18 = vmul.f32 0.31184378, %v6562_v22 }
 0x1f0   : > { %12169 = vst [vmem:[#allocation146_spill] sm:$0xff] %v9602_v34  ;;  %v3952_v61 = vmul.f32 -0.505, %v3765_v30  ;;  %v3571_v6 = vmul.f32 100.0, %v2707_v24  ;;  %v9604_v38 = vmul.f32 0.31184378, %v6550_v17  ;;  %6575 = vlog2.f32 %v2943_v8 }
 0x1f1   : > { %v9607_v52 = vmul.f32 %v4431_v50, %v12171_v46  ;;  %v2658_v9 = vmax.f32 %v1600_v31, 0.0  ;;  %v9609_v2 = vpop.f32.mrb[51].mxu1  ;;  %v4524_v37 = vsub.f32 1.0, %v4236_v18  ;;  %v3272_v35 = vmul.f32 -0.505, %v3173_v26 }
 0x1f2   : > { %12170 = vst [vmem:[#allocation136_spill] sm:$0xff] %v9604_v38  ;;  %12172 = vst [vmem:[#allocation14_spill] sm:$0xff] %v9609_v2  ;;  %v4052_v62 = vmul.f32 1.442695, %v3952_v61  ;;  %v4336_v45 = vadd.f32 -1.1652529, %v3952_v61 }
 0x1f3   : > { %v6566_v29 = vpop.eup %6565  ;;  %v3228_v47 = vmul.f32 -0.505, %v3085_v40  ;;  %v3667_v30 = vadd.f32 1.0, %v3571_v6  ;;  %v4620_v24 = vadd.f32 1e-12, %v4524_v37  ;;  %v2850_v31 = vmul.f32 100.0, %v2658_v9 }
 0x1f4   : > { %6577 = vpow2.f32 %v4052_v62  ;;  %v4432_v17 = vmax.f32 %v4336_v45, -27.631021  ;;  %v3769_v1 = vmul.f32 0.6931472, %v6566_v29  ;;  %v6568_v50 = vpop.eup %6567  ;;  %v2325_v18 = vmul.f32 2.0, %v12173_v54  ;;  %v9620_v62 = vpop.f32.mrb[52].mxu0 }
 0x1f5   : > { %6579 = vlog2.f32 %v2944_v21  ;;  %v6570_v8 = vpop.eup %6569  ;;  %v4237_v61 = vmul.f32 0.31184378, %v6568_v50  ;;  %v9617_v40 = vmul.f32 1.442695, %v3272_v35  ;;  %v3372_v6 = vmul.f32 1.442695, %v3228_v47 }
 0x1f6   : > { %6581 = vlog2.f32 %v4620_v24  ;;  %v9615_v19 = vmul.f32 %v4432_v17, %v12174_v4  ;;  %v3954_v26 = vmul.f32 -0.505, %v3769_v1  ;;  %v5390_v37 = vadd.s32 8, %v9567_v55  ;;  %12176 = vst [vmem:[#allocation113_spill] sm:$0xff] %v9620_v62  ;;  %v6572_v45 = vpop.eup %6571  ;;  %v12177_v54 = vld [vmem:[#allocation17_spill] sm:$0xff]  ;;  %v9623_v24 = vpop.f32.mrb[52].mxu1 }
 0x1f7   : > { %12175 = vst [vmem:[#allocation141_spill] sm:$0xff] %v9617_v40  ;;  %6583 = vlog2.f32 %v3667_v30  ;;  %v4525_v21 = vsub.f32 1.0, %v4237_v61  ;;  %v2421_v5 = vsub.f32 %v12177_v54, %v2325_v18  ;;  %12178 = vst [vmem:[#allocation117_spill] sm:$0xff] %v9623_v24  ;;  %v9625_v17 = vmul.f32 0.31184378, %v6564_v60  ;;  %v12182_v18 = vld [vmem:[#allocation150_spill] sm:$0xff] }
 0x1f8   : > { %v4056_v9 = vmul.f32 1.442695, %v3954_v26  ;;  %v4338_v29 = vadd.f32 -1.1652529, %v3954_v26  ;;  %v3179_v1 = vmul.f32 0.6931472, %v6560_v14  ;;  %v12180_v47 = vsub.f32 %v12161_v36, %v9577_v23 }
 0x1f9   : > { %v6574_v50 = vpop.eup %6573  ;;  %12179 = vst [vmem:[#allocation64_spill] sm:$0xff] %v9625_v17  ;;  %v2946_v35 = vadd.f32 1.0, %v2850_v31  ;;  %v4621_v30 = vadd.f32 1e-12, %v4525_v21  ;;  %v9630_v61 = vmul.f32 0.31184378, %v6570_v8 }
 0x1fa   : > { %v1601_v22 = vmax.f32 %v12180_v47, 0.0  ;;  %v4239_v40 = vmul.f32 0.31184378, %v6574_v50  ;;  %6585 = vpow2.f32 %v4056_v9  ;;  %v4434_v38 = vmax.f32 %v4338_v29, -27.631021  ;;  %v6576_v39 = vpop.eup %6575  ;;  %v12183_v31 = vld [vmem:[#allocation122_spill] sm:$0xff] }
 0x1fb   : > { %12181 = vst [vmem:[#allocation118_spill] sm:$0xff] %v9630_v61  ;;  %6587 = vpow2.f32 %v3372_v6  ;;  %v2517_v26 = vmax.f32 %v2421_v5, 0.0  ;;  %v9633_v54 = vmul.f32 2.0, %v12182_v18  ;;  %v3087_v60 = vmul.f32 0.6931472, %v6572_v45  ;;  %v9638_v23 = vpop.f32.mrb[53].mxu0 }
 0x1fc   : > { %6589 = vlog2.f32 %v4621_v30  ;;  %v4527_v14 = vsub.f32 1.0, %v4239_v40  ;;  %v9636_v24 = vmul.f32 %v4434_v38, %v12183_v31  ;;  %12184 = vst [vmem:[#allocation17_spill] sm:$0xff] %v9638_v23  ;;  %v12185_v21 = vld [vmem:[#allocation143_spill] sm:$0xff]  ;;  %v12186_v9 = vld [vmem:[#allocation94_spill] sm:$0xff]  ;;  %v2659_v50 = vmax.f32 %v1601_v22, 0.0  ;;  %v12188_v45 = vld [vmem:[#allocation156_spill] sm:$0xff] }
 0x1fd   : > { %6591 = vlog2.f32 %v2946_v35  ;;  %v2709_v36 = vmax.f32 %v2517_v26, 0.0  ;;  %v2326_v6 = vmul.f32 2.0, %v12186_v9  ;;  %v12187_v47 = vld [vmem:[#allocation98_spill] sm:$0xff]  ;;  %v9647_v40 = vmul.f32 2.0, %v12188_v45  ;;  %v12192_v22 = vld [vmem:[#allocation24_spill] sm:$0xff] }
 0x1fe   : > { %v6578_v5 = vpop.eup %6577  ;;  %v4623_v29 = vadd.f32 1e-12, %v4527_v14  ;;  %v9644_v18 = vmul.f32 2.0, %v12187_v47  ;;  %v3091_v30 = vmul.f32 0.6931472, %v6576_v39  ;;  %v12189_v35 = vld [vmem:[#allocation18_spill] sm:$0xff]  ;;  %v12193_v39 = vsub.f32 %v12163_v12, %v9581_v32 }
 0x1ff   : > { %v6580_v38 = vpop.eup %6579  ;;  %v4240_v62 = vmul.f32 0.31184378, %v6578_v5  ;;  %v3573_v23 = vmul.f32 100.0, %v2709_v36  ;;  %v2422_v26 = vsub.f32 %v12189_v35, %v2326_v6  ;;  %v9650_v42 = vmul.f32 -0.505, %v3179_v1  ;;  %v12191_v9 = vld [vmem:[#allocation86_spill] sm:$0xff] }
 0x200   : > { %v6582_v2 = vpop.eup %6581  ;;  %6593 = vlog2.f32 %v4623_v29  ;;  %v2424_v47 = vsub.f32 %v12192_v22, %v9647_v40  ;;  %v1603_v5 = vmax.f32 %v12193_v39, 0.0  ;;  %v3229_v11 = vmul.f32 -0.505, %v3087_v60 }
 0x201   : > { %12190 = vst [vmem:[#allocation150_spill] sm:$0xff] %v9650_v42  ;;  %v6584_v8 = vpop.eup %6583  ;;  %v4717_v27 = vmul.f32 0.6931472, %v6582_v2  ;;  %v4528_v45 = vsub.f32 1.0, %v4240_v62  ;;  %v3669_v36 = vadd.f32 1.0, %v3573_v23  ;;  %v9660_v6 = vadd.s32 %v9554_v63, %v5390_v37 }
 0x202   : > { %v2851_v1 = vmul.f32 100.0, %v2659_v50  ;;  %v3771_v29 = vmul.f32 0.6931472, %v6584_v8  ;;  %v12195_v35 = vsub.f32 1.0, %v12157_v0  ;;  %v3231_v42 = vmul.f32 -0.505, %v3091_v30 }
 0x203   : > { %12194 = vst [vmem:[#allocation122_spill] sm:$0xff] %v9660_v6  ;;  %v4624_v33 = vadd.f32 1e-12, %v4528_v45  ;;  %6595 = vlog2.f32 %v3669_v36  ;;  %v3093_v2 = vmul.f32 0.6931472, %v6580_v38  ;;  %v5391_v62 = vadd.s32 16, %v9567_v55 }
 0x204   : > { %v5100_v14 = vmul.f32 %v12195_v35, %v4717_v27  ;;  %v6586_v40 = vpop.eup %6585  ;;  %v3955_v22 = vmul.f32 -0.505, %v3771_v29  ;;  %v2518_v32 = vmax.f32 %v2422_v26, 0.0  ;;  %v2661_v23 = vmax.f32 %v1603_v5, 0.0  ;;  %v9669_v30 = vpop.f32.mrb[53].mxu1 }
 0x205   : > { %v6588_v12 = vpop.eup %6587  ;;  %6597 = vlog2.f32 %v4624_v33  ;;  %v4242_v37 = vmul.f32 0.31184378, %v6586_v40  ;;  %v2947_v27 = vadd.f32 1.0, %v2851_v1  ;;  %v3374_v39 = vmul.f32 1.442695, %v3229_v11 }
 0x206   : > { %v9666_v60 = vadd.f32 %v5100_v14, %v9574_v10  ;;  %v6590_v8 = vpop.eup %6589  ;;  %6599 = vpow2.f32 %v9527_v59  ;;  %v4058_v0 = vmul.f32 1.442695, %v3955_v22  ;;  %v4339_v50 = vadd.f32 -1.1652529, %v3955_v22  ;;  %v12198_v22 = vld [vmem:[#allocation124_spill] sm:$0xff] }
 0x207   : > { %v6592_v38 = vpop.eup %6591  ;;  %v4719_v26 = vmul.f32 0.6931472, %v6590_v8  ;;  %v4530_v36 = vsub.f32 1.0, %v4242_v37  ;;  %vm5464_vm2 = vcmp.lt.s32.totalorder %v9602_v34, 300  ;;  %vm5465_vm3 = vcmp.lt.s32.totalorder %v9660_v6, 300 }
 0x208   : > { %v9675_v33 = vadd.s32 %v9554_v63, %v5391_v62  ;;  %6601 = vpow2.f32 %v4058_v0  ;;  %v4435_v59 = vmax.f32 %v4339_v50, -27.631021  ;;  %v2710_v10 = vmax.f32 %v2518_v32, 0.0 }
 0x209   : > { %v12197_v14 = vsub.f32 1.0, %v12168_v44  ;;  %v9679_v1 = vmul.f32 1.442695, %v3231_v42  ;;  %v4626_v29 = vadd.f32 1e-12, %v4530_v36  ;;  %v2853_v35 = vmul.f32 100.0, %v2661_v23 }
 0x20a   : > { %12196 = vst [vmem:[#allocation143_spill] sm:$0xff] %v9675_v33  ;;  %v6594_v11 = vpop.eup %6593  ;;  %v3232_v40 = vmul.f32 -0.505, %v3093_v2  ;;  %6603 = vlog2.f32 %v2947_v27  ;;  %v9682_v37 = vmul.f32 %v4435_v59, %v12198_v22  ;;  %v3574_v8 = vmul.f32 100.0, %v2710_v10  ;;  %v9691_v23 = vpop.f32.mrb[54].mxu1 }
 0x20b   : > { %v5101_v5 = vmul.f32 %v12197_v14, %v4719_v26  ;;  %v4723_v0 = vmul.f32 0.6931472, %v6594_v11  ;;  %v3097_v50 = vmul.f32 0.6931472, %v6592_v38  ;;  %6605 = vlog2.f32 %v4626_v29  ;;  %v9689_v26 = vpop.f32.mrb[54].mxu0  ;;  %v12202_v38 = vld [vmem:[#allocation161_spill] sm:$0xff] }
 0x20c   : > { %v9687_v32 = vmul.f32 0.31184378, %v6588_v12  ;;  %6607 = vpow2.f32 %v3374_v39  ;;  %v3670_v42 = vadd.f32 1.0, %v3574_v8  ;;  %v2520_v44 = vmax.f32 %v2424_v47, 0.0 }
 0x20d   : > { %v9685_v62 = vadd.f32 %v5101_v5, %v9598_v51  ;;  %v6596_v2 = vpop.eup %6595  ;;  %v12200_v27 = vsub.f32 1.0, %v12171_v46  ;;  %v2949_v59 = vadd.f32 1.0, %v2853_v35  ;;  %v12201_v51 = vsub.f32 %v12185_v21, %v9633_v54  ;;  %v12203_v46 = vld [vmem:[#allocation148_spill] sm:$0xff] }
 0x20e   : > { %12199 = vst [vmem:[#allocation94_spill] sm:$0xff] %v9687_v32  ;;  %v9699_v14 = vmul.f32 2.0, %v12202_v38  ;;  %v3380_v12 = vmul.f32 1.442695, %v3232_v40  ;;  %v3775_v39 = vmul.f32 0.6931472, %v6596_v2  ;;  %6609 = vlog2.f32 %v3670_v42 }
 0x20f   : > { %v5103_v36 = vmul.f32 %v12200_v27, %v4723_v0  ;;  %v1604_v10 = vmax.f32 %v12201_v51, 0.0  ;;  %v2712_v47 = vmax.f32 %v2520_v44, 0.0  ;;  %v6598_v5 = vpop.eup %6597  ;;  %v5292_v29 = vsub.f32 0.0, %v9666_v60  ;;  %v12205_v44 = vld [vmem:[#allocation100_spill] sm:$0xff]  ;;  %v9709_v38 = vpop.f32.mrb[55].mxu0 }
 0x210   : > { %v3234_v8 = vmul.f32 -0.505, %v3097_v50  ;;  %v9705_v0 = vpop.eup %6599  ;;  %v4725_v21 = vmul.f32 0.6931472, %v6598_v5  ;;  %v3957_v27 = vmul.f32 -0.505, %v3775_v39  ;;  %6611 = vlog2.f32 %v2949_v59 }
 0x211   : > { %v5199_v11 = vadd.f32 %v5103_v36, %v9607_v52  ;;  %12204 = vst [vmem:[#allocation98_spill] sm:$0xff] %v9705_v0  ;;  %v3576_v51 = vmul.f32 100.0, %v2712_v47  ;;  %v2662_v42 = vmax.f32 %v1604_v10, 0.0  ;;  %v2329_v2 = vmul.f32 2.0, %v12205_v44  ;;  %v12208_v0 = vld [vmem:[#allocation130_spill] sm:$0xff] }
 0x212   : > { %v6602_v60 = vpop.eup %6601  ;;  %v12206_v52 = vsub.f32 1.0, %v12174_v4  ;;  %v4062_v36 = vmul.f32 1.442695, %v3957_v27  ;;  %v4341_v45 = vadd.f32 -1.1652529, %v3957_v27  ;;  %v5595_v54 = vsel %vm5464_vm2, %v5292_v29, 0.0 }
 0x213   : > { %v5295_v40 = vsub.f32 0.0, %v5199_v11  ;;  %v3672_v35 = vadd.f32 1.0, %v3576_v51  ;;  %v5293_v39 = vsub.f32 0.0, %v9685_v62  ;;  %vm5466_vm4 = vcmp.lt.s32.totalorder %v9675_v33, 300 }
 0x214   : > { %v5104_v50 = vmul.f32 %v12206_v52, %v4725_v21  ;;  %v4243_v10 = vmul.f32 0.31184378, %v6602_v60  ;;  %v6604_v47 = vpop.eup %6603  ;;  %6613 = vpow2.f32 %v4062_v36  ;;  %v4437_v4 = vmax.f32 %v4341_v45, -27.631021  ;;  %v12209_v60 = vld [vmem:[#allocation25_spill] sm:$0xff] }
 0x215   : > { %v5598_v59 = vsel %vm5465_vm3, %v5295_v40, 0.0  ;;  %v6606_v21 = vpop.eup %6605  ;;  %v2854_v51 = vmul.f32 100.0, %v2662_v42  ;;  %v12207_v29 = vsub.f32 %v12191_v9, %v9644_v18  ;;  %6615 = vlog2.f32 %v3672_v35 }
 0x216   : > { %v5691_v5 = vadd.f32 %v5598_v59, %v5595_v54  ;;  %v5200_v11 = vadd.f32 %v5104_v50, %v9615_v19  ;;  %v4531_v27 = vsub.f32 1.0, %v4243_v10  ;;  %v6608_v62 = vpop.eup %6607  ;;  %v4729_v40 = vmul.f32 0.6931472, %v6606_v21  ;;  %v9727_v59 = vpop.f32.mrb[55].mxu1 }
 0x217   : > { %v1606_v44 = vmax.f32 %v12207_v29, 0.0  ;;  %v9724_v61 = vmul.f32 %v4437_v4, %v12208_v0  ;;  %v2425_v54 = vsub.f32 %v12209_v60, %v2329_v2  ;;  %6617 = vpow2.f32 %v9679_v1 }
 0x218   : > { %v5296_v52 = vsub.f32 0.0, %v5200_v11  ;;  %v3099_v19 = vmul.f32 0.6931472, %v6604_v47  ;;  %v4627_v45 = vadd.f32 1e-12, %v4531_v27  ;;  %v9731_v42 = vmul.f32 2.0, %v9247_v25  ;;  %v6610_v18 = vpop.eup %6609 }
 0x219   : > { %v5596_v9 = vsel %vm5464_vm2, %v5293_v39, 0.0  ;;  %v12210_v50 = vsub.f32 1.0, %v12183_v31  ;;  %v2521_v2 = vmax.f32 %v2425_v54, 0.0  ;;  %v9739_v10 = vmul.f32 0.31184378, %v6608_v62  ;;  %v12212_v31 = vld [vmem:[#allocation154_spill] sm:$0xff] }
 0x21a   : > { %v5599_v35 = vsel %vm5465_vm3, %v5296_v52, 0.0  ;;  %6619 = vlog2.f32 %v4627_v45  ;;  %v3777_v1 = vmul.f32 0.6931472, %v6610_v18  ;;  %v2950_v4 = vadd.f32 1.0, %v2854_v51  ;;  %v6612_v39 = vpop.eup %6611  ;;  %v12214_v25 = vld [vmem:[#allocation131_spill] sm:$0xff] }
 0x21b   : > { %v5106_v36 = vmul.f32 %v12210_v50, %v4729_v40  ;;  %12211 = vst [vmem:[#allocation156_spill] sm:$0xff] %v9739_v10  ;;  %v9741_v11 = vadd.f32 %v5599_v35, %v5596_v9  ;;  %v2664_v21 = vmax.f32 %v1606_v44, 0.0  ;;  %6621 = vpow2.f32 %v3380_v12  ;;  %v12213_v44 = vld [vmem:[#allocation22_spill] sm:$0xff] }
 0x21c   : > { %v3958_v27 = vmul.f32 -0.505, %v3777_v1  ;;  %v2713_v29 = vmax.f32 %v2521_v2, 0.0  ;;  %v3384_v40 = vmul.f32 1.442695, %v3234_v8  ;;  %v2331_v54 = vmul.f32 2.0, %v9253_v53 }
 0x21d   : > { %v5202_v47 = vadd.f32 %v5106_v36, %v9636_v24  ;;  %v3235_v60 = vmul.f32 -0.505, %v3099_v19  ;;  %6623 = vlog2.f32 %v2950_v4  ;;  %v2856_v12 = vmul.f32 100.0, %v2664_v21  ;;  %v9758_v21 = vpop.f32.mrb[56].mxu0 }
 0x21e   : > { %v4064_v18 = vmul.f32 1.442695, %v3958_v27  ;;  %v4342_v9 = vadd.f32 -1.1652529, %v3958_v27  ;;  %v3577_v35 = vmul.f32 100.0, %v2713_v29  ;;  %v6614_v24 = vpop.eup %6613  ;;  %v2427_v50 = vsub.f32 %v12213_v44, %v2331_v54  ;;  %v9760_v54 = vpop.f32.mrb[56].mxu1 }
 0x21f   : > { %v5298_v62 = vsub.f32 0.0, %v5202_v47  ;;  %v6616_v36 = vpop.eup %6615  ;;  %v4245_v8 = vmul.f32 0.31184378, %v6614_v24  ;;  %v5392_v53 = vadd.s32 24, %v9567_v55  ;;  %v3386_v29 = vmul.f32 1.442695, %v3235_v60 }
 0x220   : > { %6625 = vpow2.f32 %v4064_v18  ;;  %v4438_v19 = vmax.f32 %v4342_v9, -27.631021  ;;  %v3781_v1 = vmul.f32 0.6931472, %v6616_v36  ;;  %v3673_v47 = vadd.f32 1.0, %v3577_v35  ;;  %v12215_v60 = vld [vmem:[#allocation92_spill] sm:$0xff] }
 0x221   : > { %v5601_v51 = vsel %vm5466_vm4, %v5298_v62, 0.0  ;;  %6627 = vpow2.f32 %v3384_v40  ;;  %v6618_v27 = vpop.eup %6617  ;;  %v4533_v45 = vsub.f32 1.0, %v4245_v8  ;;  %v2523_v4 = vmax.f32 %v2427_v50, 0.0  ;;  %v12216_v50 = vld [vmem:[#allocation155_spill] sm:$0xff] }
 0x222   : > { %v9752_v2 = vadd.f32 %v5691_v5, %v5601_v51  ;;  %v9756_v62 = vmul.f32 %v4438_v19, %v12214_v25  ;;  %v3103_v5 = vmul.f32 0.6931472, %v6612_v39  ;;  %v3960_v24 = vmul.f32 -0.505, %v3781_v1  ;;  %v9773_v1 = vpop.f32.mrb[57].mxu0 }
 0x223   : > { %6629 = vlog2.f32 %v3673_v47  ;;  %v9763_v40 = vmul.f32 2.0, %v9266_v57  ;;  %v4629_v9 = vadd.f32 1e-12, %v4533_v45  ;;  %v2952_v35 = vadd.f32 1.0, %v2856_v12 }
 0x224   : > { %v6620_v18 = vpop.eup %6619  ;;  %v2715_v51 = vmax.f32 %v2523_v4, 0.0  ;;  %v2332_v44 = vmul.f32 2.0, %v12215_v60  ;;  %v4068_v8 = vmul.f32 1.442695, %v3960_v24  ;;  %v4344_v19 = vadd.f32 -1.1652529, %v3960_v24 }
 0x225   : > { %v4731_v36 = vmul.f32 0.6931472, %v6620_v18  ;;  %v6622_v34 = vpop.eup %6621  ;;  %v9768_v6 = vmul.f32 0.31184378, %v6618_v27  ;;  %6631 = vlog2.f32 %v4629_v9  ;;  %v9771_v57 = vmul.f32 2.0, %v9310_v3  ;;  %v12221_v60 = vld [vmem:[#allocation55_spill] sm:$0xff] }
 0x226   : > { %v3579_v39 = vmul.f32 100.0, %v2715_v51  ;;  %v12218_v45 = vsub.f32 1.0, %v12198_v22  ;;  %v9778_v47 = vadd.s32 %v9554_v63, %v5392_v53  ;;  %6633 = vpow2.f32 %v4068_v8  ;;  %v12222_v22 = vld [vmem:[#allocation23_spill] sm:$0xff]  ;;  %v9795_v8 = vpop.f32.mrb[57].mxu1 }
 0x227   : > { %12217 = vst [vmem:[#allocation18_spill] sm:$0xff] %v9768_v6  ;;  %v4440_v4 = vmax.f32 %v4344_v19, -27.631021  ;;  %v3237_v24 = vmul.f32 -0.505, %v3103_v5  ;;  %6635 = vlog2.f32 %v2952_v35  ;;  %v12220_v27 = vsub.f32 %v12203_v46, %v9699_v14  ;;  %v6624_v51 = vpop.eup %6623  ;;  %v12225_v14 = vld [vmem:[#allocation162_spill] sm:$0xff] }
 0x228   : > { %v5107_v12 = vmul.f32 %v12218_v45, %v4731_v36  ;;  %12219 = vst [vmem:[#allocation86_spill] sm:$0xff] %v9778_v47  ;;  %v3675_v9 = vadd.f32 1.0, %v3579_v39  ;;  %6637 = vpow2.f32 %v3386_v29  ;;  %v2428_v36 = vsub.f32 %v12222_v22, %v2332_v44  ;;  %v9812_v33 = vpop.f32.mrb[58].mxu1 }
 0x229   : > { %v1607_v18 = vmax.f32 %v12220_v27, 0.0  ;;  %v9785_v52 = vmul.f32 %v4440_v4, %v12221_v60  ;;  %v9788_v45 = vmul.f32 0.31184378, %v6622_v34  ;;  %v12224_v5 = vsub.f32 %v12212_v31, %v9731_v42 }
 0x22a   : > { %v5203_v3 = vadd.f32 %v5107_v12, %v9682_v37  ;;  %v6626_v53 = vpop.eup %6625  ;;  %6639 = vlog2.f32 %v3675_v9  ;;  %v2524_v39 = vmax.f32 %v2428_v36, 0.0  ;;  %v2334_v12 = vmul.f32 2.0, %v9312_v49 }
 0x22b   : > { %12223 = vst [vmem:[#allocation24_spill] sm:$0xff] %v9788_v45  ;;  %v1609_v35 = vmax.f32 %v12224_v5, 0.0  ;;  %v6628_v29 = vpop.eup %6627  ;;  %v4246_v19 = vmul.f32 0.31184378, %v6626_v53  ;;  %v3390_v34 = vmul.f32 1.442695, %v3237_v24 }
 0x22c   : > { %v5299_v37 = vsub.f32 0.0, %v5203_v3  ;;  %v3105_v4 = vmul.f32 0.6931472, %v6624_v51  ;;  %v2665_v27 = vmax.f32 %v1607_v18, 0.0  ;;  %v2716_v9 = vmax.f32 %v2524_v39, 0.0  ;;  %v12226_v5 = vld [vmem:[#allocation28_spill] sm:$0xff] }
 0x22d   : > { %v6630_v22 = vpop.eup %6629  ;;  %v4534_v31 = vsub.f32 1.0, %v4246_v19  ;;  %v2430_v46 = vsub.f32 %v12226_v5, %v2334_v12  ;;  %vm5467_vm5 = vcmp.lt.s32.totalorder %v9778_v47, 300  ;;  %v5393_v49 = vadd.s32 32, %v9567_v55  ;;  %v9810_v5 = vpop.f32.mrb[58].mxu0 }
 0x22e   : > { %v5602_v42 = vsel %vm5466_vm4, %v5299_v37, 0.0  ;;  %v3783_v24 = vmul.f32 0.6931472, %v6630_v22  ;;  %v9808_v51 = vmul.f32 0.31184378, %v6628_v29  ;;  %v2667_v36 = vmax.f32 %v1609_v35, 0.0 }
 0x22f   : > { %v9804_v3 = vadd.f32 %v9741_v11, %v5602_v42  ;;  %v4630_v18 = vadd.f32 1e-12, %v4534_v31  ;;  %v3580_v53 = vmul.f32 100.0, %v2716_v9  ;;  %v6632_v37 = vpop.eup %6631  ;;  %6641 = vpow2.f32 %v3390_v34 }
 0x230   : > { %12227 = vst [vmem:[#allocation124_spill] sm:$0xff] %v9808_v51  ;;  %v2857_v19 = vmul.f32 100.0, %v2665_v27  ;;  %v3961_v39 = vmul.f32 -0.505, %v3783_v24  ;;  %v2526_v12 = vmax.f32 %v2430_v46, 0.0  ;;  %v6634_v10 = vpop.eup %6633  ;;  %v9815_v31 = vadd.s32 %v9554_v63, %v5393_v49 }
 0x231   : > { %v4735_v11 = vmul.f32 0.6931472, %v6632_v37  ;;  %v3238_v42 = vmul.f32 -0.505, %v3105_v4  ;;  %6643 = vlog2.f32 %v4630_v18  ;;  %v3676_v44 = vadd.f32 1.0, %v3580_v53  ;;  %v6636_v22 = vpop.eup %6635 }
 0x232   : > { %v4248_v29 = vmul.f32 0.31184378, %v6634_v10  ;;  %12228 = vst [vmem:[#allocation161_spill] sm:$0xff] %v9815_v31  ;;  %v4070_v35 = vmul.f32 1.442695, %v3961_v39  ;;  %v6638_v34 = vpop.eup %6637  ;;  %v12229_v27 = vsub.f32 1.0, %v12208_v0 }
 0x233   : > { %v4345_v9 = vadd.f32 -1.1652529, %v3961_v39  ;;  %v2859_v24 = vmul.f32 100.0, %v2667_v36  ;;  %6645 = vlog2.f32 %v3676_v44  ;;  %v9820_v37 = vmul.f32 2.0, %v9345_v13  ;;  %v12231_v0 = vld [vmem:[#allocation57_spill] sm:$0xff] }
 0x234   : > { %v5109_v46 = vmul.f32 %v12229_v27, %v4735_v11  ;;  %v6640_v4 = vpop.eup %6639  ;;  %v4536_v18 = vsub.f32 1.0, %v4248_v29  ;;  %6647 = vpow2.f32 %v4070_v35  ;;  %v2718_v45 = vmax.f32 %v2526_v12, 0.0  ;;  %v12233_v12 = vld [vmem:[#allocation163_spill] sm:$0xff] }
 0x235   : > { %v4441_v53 = vmax.f32 %v4345_v9, -27.631021  ;;  %v3109_v49 = vmul.f32 0.6931472, %v6636_v22  ;;  %v2953_v6 = vadd.f32 1.0, %v2857_v19  ;;  %v2955_v13 = vadd.f32 1.0, %v2859_v24 }
 0x236   : > { %v5205_v10 = vadd.f32 %v5109_v46, %v9724_v61  ;;  %v3787_v32 = vmul.f32 0.6931472, %v6640_v4  ;;  %v9823_v39 = vmul.f32 0.31184378, %v6638_v34  ;;  %v4632_v17 = vadd.f32 1e-12, %v4536_v18 }
 0x237   : > { %v9826_v11 = vmul.f32 %v4441_v53, %v12231_v0  ;;  %v3582_v44 = vmul.f32 100.0, %v2718_v45  ;;  %v12232_v29 = vsub.f32 %v12216_v50, %v9763_v40  ;;  %v1517_v9 = vsub.f32 %v12233_v12, %v9820_v37  ;;  %v9833_v61 = vpop.f32.mrb[59].mxu0 }
 0x238   : > { %12230 = vst [vmem:[#allocation148_spill] sm:$0xff] %v9823_v39  ;;  %v5301_v36 = vsub.f32 0.0, %v5205_v10  ;;  %6649 = vlog2.f32 %v4632_v17  ;;  %v3963_v19 = vmul.f32 -0.505, %v3787_v32  ;;  %v2335_v34 = vmul.f32 2.0, %v9371_v56  ;;  %v12234_v32 = vld [vmem:[#allocation29_spill] sm:$0xff] }
 0x239   : > { %v1610_v35 = vmax.f32 %v12232_v29, 0.0  ;;  %v3678_v22 = vadd.f32 1.0, %v3582_v44  ;;  %v3392_v45 = vmul.f32 1.442695, %v3238_v42  ;;  %v3240_v46 = vmul.f32 -0.505, %v3109_v49  ;;  %v6642_v24 = vpop.eup %6641 }
 0x23a   : > { %v5604_v27 = vsel %vm5467_vm5, %v5301_v36, 0.0  ;;  %6651 = vlog2.f32 %v2953_v6  ;;  %v4074_v50 = vmul.f32 1.442695, %v3963_v19  ;;  %v4347_v4 = vadd.f32 -1.1652529, %v3963_v19  ;;  %v12236_v29 = vld [vmem:[#allocation104_spill] sm:$0xff] }
 0x23b   : > { %v9839_v40 = vadd.f32 %v9752_v2, %v5604_v27  ;;  %6653 = vlog2.f32 %v3678_v22  ;;  %v6644_v18 = vpop.eup %6643  ;;  %v2668_v17 = vmax.f32 %v1610_v35, 0.0  ;;  %v2431_v53 = vsub.f32 %v12234_v32, %v2335_v34  ;;  %v12238_v34 = vld [vmem:[#allocation77_spill] sm:$0xff] }
 0x23c   : > { %6655 = vlog2.f32 %v2955_v13  ;;  %v9843_v56 = vmul.f32 2.0, %v9409_v58  ;;  %v4737_v10 = vmul.f32 0.6931472, %v6644_v18  ;;  %v4443_v42 = vmax.f32 %v4347_v4, -27.631021 }
 0x23d   : > { %6657 = vpow2.f32 %v4074_v50  ;;  %v2337_v6 = vmul.f32 2.0, %v9428_v15  ;;  %v6646_v49 = vpop.eup %6645  ;;  %v9846_v44 = vmul.f32 0.31184378, %v6642_v24  ;;  %v3396_v2 = vmul.f32 1.442695, %v3240_v46  ;;  %v12239_v50 = vld [vmem:[#allocation26_spill] sm:$0xff] }
 0x23e   : > { %v2527_v36 = vmax.f32 %v2431_v53, 0.0  ;;  %v1519_v19 = vsub.f32 %v12236_v29, %v9843_v56  ;;  %v6648_v13 = vpop.eup %6647  ;;  %v12237_v35 = vsub.f32 1.0, %v12214_v25  ;;  %v9853_v58 = vmul.f32 %v4443_v42, %v12238_v34  ;;  %v9866_v56 = vpop.f32.mrb[59].mxu1 }
 0x23f   : > { %12235 = vst [vmem:[#allocation100_spill] sm:$0xff] %v9846_v44  ;;  %v3789_v27 = vmul.f32 0.6931472, %v6646_v49  ;;  %v2433_v4 = vsub.f32 %v12239_v50, %v2337_v6  ;;  %v4249_v18 = vmul.f32 0.31184378, %v6648_v13  ;;  %v2860_v24 = vmul.f32 100.0, %v2668_v17 }
 0x240   : > { %v5110_v22 = vmul.f32 %v12237_v35, %v4737_v10  ;;  %v2719_v32 = vmax.f32 %v2527_v36, 0.0  ;;  %6659 = vpow2.f32 %v3392_v45  ;;  %vm5468_vm6 = vcmp.lt.s32.totalorder %v9815_v31, 300  ;;  %v12257_v31 = vld [vmem:[#allocation138_spill] sm:$0xff] }
 0x241   : > { %v3964_v53 = vmul.f32 -0.505, %v3789_v27  ;;  %6661 = vpow2.f32 %v3396_v2  ;;  %v4537_v10 = vsub.f32 1.0, %v4249_v18  ;;  %v2956_v45 = vadd.f32 1.0, %v2860_v24 }
 0x242   : > { %v5206_v46 = vadd.f32 %v5110_v22, %v9756_v62  ;;  %v6650_v42 = vpop.eup %6649  ;;  %v3583_v35 = vmul.f32 100.0, %v2719_v32  ;;  %v12240_v62 = vsub.f32 %v12225_v14, %v9771_v57  ;;  %v2529_v18 = vmax.f32 %v2433_v4, 0.0 }
 0x243   : > { %v4076_v6 = vmul.f32 1.442695, %v3964_v53  ;;  %v4348_v29 = vadd.f32 -1.1652529, %v3964_v53  ;;  %v4741_v17 = vmul.f32 0.6931472, %v6650_v42 }
 0x244   : > { %v5302_v49 = vsub.f32 0.0, %v5206_v46  ;;  %v6652_v13 = vpop.eup %6651  ;;  %v4633_v36 = vadd.f32 1e-12, %v4537_v10  ;;  %v1612_v22 = vmax.f32 %v12240_v62, 0.0  ;;  %v12241_v53 = vsub.f32 1.0, %v12221_v60  ;;  %v12242_v42 = vld [vmem:[#allocation79_spill] sm:$0xff] }
 0x245   : > { %v6654_v27 = vpop.eup %6653  ;;  %6663 = vpow2.f32 %v4076_v6  ;;  %v4444_v2 = vmax.f32 %v4348_v29, -27.631021  ;;  %v5394_v57 = vadd.s32 40, %v9567_v55  ;;  %v3111_v10 = vmul.f32 0.6931472, %v6652_v13 }
 0x246   : > { %v5605_v50 = vsel %vm5467_vm5, %v5302_v49, 0.0  ;;  %v6656_v46 = vpop.eup %6655  ;;  %v5112_v24 = vmul.f32 %v12241_v53, %v4741_v17  ;;  %6665 = vlog2.f32 %v4633_v36  ;;  %v3793_v49 = vmul.f32 0.6931472, %v6654_v27 }
 0x247   : > { %v9869_v32 = vadd.f32 %v9804_v3, %v5605_v50  ;;  %v6658_v14 = vpop.eup %6657  ;;  %v9875_v62 = vmul.f32 %v4444_v2, %v12242_v42  ;;  %v3679_v6 = vadd.f32 1.0, %v3583_v35  ;;  %6667 = vlog2.f32 %v2956_v45  ;;  %v9878_v3 = vpop.f32.mrb[60].mxu0 }
 0x248   : > { %v5208_v4 = vadd.f32 %v5112_v24, %v9785_v52  ;;  %v4251_v29 = vmul.f32 0.31184378, %v6658_v14  ;;  %v2670_v25 = vmax.f32 %v1612_v22, 0.0  ;;  %v3115_v50 = vmul.f32 0.6931472, %v6656_v46  ;;  %v9884_v35 = vpop.f32.mrb[60].mxu1 }
 0x249   : > { %v3966_v60 = vmul.f32 -0.505, %v3793_v49  ;;  %6669 = vlog2.f32 %v3679_v6  ;;  %v2721_v17 = vmax.f32 %v2529_v18, 0.0  ;;  %v1613_v13 = vmax.f32 %v1517_v9, 0.0 }
 0x24a   : > { %v5304_v36 = vsub.f32 0.0, %v5208_v4  ;;  %v4539_v53 = vsub.f32 1.0, %v4251_v29  ;;  %v1424_v27 = vmul.f32 2.0, %v9440_v43  ;;  %v6660_v52 = vpop.eup %6659  ;;  %v1615_v22 = vmax.f32 %v1519_v19, 0.0  ;;  %v9895_v29 = vpop.f32.mrb[61].mxu0 }
 0x24b   : > { %v4080_v2 = vmul.f32 1.442695, %v3966_v60  ;;  %v4350_v45 = vadd.f32 -1.1652529, %v3966_v60  ;;  %v3585_v24 = vmul.f32 100.0, %v2721_v17  ;;  %v6662_v14 = vpop.eup %6661  ;;  %v2862_v12 = vmul.f32 100.0, %v2670_v25 }
 0x24c   : > { %v5607_v46 = vsel %vm5468_vm6, %v5304_v36, 0.0  ;;  %v3241_v18 = vmul.f32 -0.505, %v3111_v10  ;;  %v4635_v49 = vadd.f32 1e-12, %v4539_v53  ;;  %v1520_v6 = vsub.f32 %v9308_v48, %v1424_v27  ;;  %v12245_v10 = vld [vmem:[#allocation67_spill] sm:$0xff] }
 0x24d   : > { %v9890_v37 = vadd.f32 %v9839_v40, %v5607_v46  ;;  %6671 = vpow2.f32 %v4080_v2  ;;  %v4446_v43 = vmax.f32 %v4350_v45, -27.631021  ;;  %v3243_v9 = vmul.f32 -0.505, %v3115_v50 }
 0x24e   : > { %6673 = vlog2.f32 %v4635_v49  ;;  %v9893_v4 = vadd.s32 %v9554_v63, %v5394_v57  ;;  %v3681_v19 = vadd.f32 1.0, %v3585_v24  ;;  %v9897_v17 = vmul.f32 0.31184378, %v6660_v52 }
 0x24f   : > { %v6664_v60 = vpop.eup %6663  ;;  %v9900_v36 = vmul.f32 %v4446_v43, %v12245_v10  ;;  %v2671_v48 = vmax.f32 %v1613_v13, 0.0  ;;  %v2673_v40 = vmax.f32 %v1615_v22, 0.0  ;;  %v3398_v25 = vmul.f32 1.442695, %v3241_v18  ;;  %v12247_v43 = vld [vmem:[#allocation27_spill] sm:$0xff] }
 0x250   : > { %12243 = vst [vmem:[#allocation130_spill] sm:$0xff] %v9893_v4  ;;  %12244 = vst [vmem:[#allocation25_spill] sm:$0xff] %v9897_v17  ;;  %v6666_v53 = vpop.eup %6665  ;;  %v4252_v27 = vmul.f32 0.31184378, %v6664_v60  ;;  %6675 = vlog2.f32 %v3681_v19  ;;  %v2338_v50 = vmul.f32 2.0, %v9462_v41  ;;  %v2958_v45 = vadd.f32 1.0, %v2862_v12 }
 0x251   : > { %v9903_v2 = vmul.f32 0.31184378, %v6662_v14  ;;  %v4743_v57 = vmul.f32 0.6931472, %v6666_v53  ;;  %v9906_v24 = vmul.f32 2.0, %v9506_v28  ;;  %v6668_v52 = vpop.eup %6667  ;;  %v2340_v13 = vmul.f32 2.0, %v9508_v16 }
 0x252   : > { %v3402_v46 = vmul.f32 1.442695, %v3243_v9  ;;  %v4540_v49 = vsub.f32 1.0, %v4252_v27  ;;  %v2434_v15 = vsub.f32 %v12247_v43, %v2338_v50  ;;  %v12248_v18 = vsub.f32 1.0, %v12231_v0 }
 0x253   : > { %12246 = vst [vmem:[#allocation154_spill] sm:$0xff] %v9903_v2  ;;  %v6670_v22 = vpop.eup %6669  ;;  %v2863_v60 = vmul.f32 100.0, %v2671_v48  ;;  %v2865_v41 = vmul.f32 100.0, %v2673_v40  ;;  %v1522_v14 = vsub.f32 %v9333_v20, %v9906_v24  ;;  %6677 = vpow2.f32 %v3398_v25  ;;  %v12249_v48 = vld [vmem:[#allocation30_spill] sm:$0xff] }
 0x254   : > { %v5113_v19 = vmul.f32 %v12248_v18, %v4743_v57  ;;  %v4636_v12 = vadd.f32 1e-12, %v4540_v49  ;;  %v3795_v28 = vmul.f32 0.6931472, %v6670_v22  ;;  %v2530_v53 = vmax.f32 %v2434_v15, 0.0  ;;  %v9918_v49 = vpop.f32.mrb[61].mxu1 }
 0x255   : > { %6679 = vlog2.f32 %v2958_v45  ;;  %v5395_v27 = vadd.s32 48, %v9567_v55  ;;  %v1616_v50 = vmax.f32 %v1520_v6, 0.0  ;;  %vm5469_vm7 = vcmp.lt.s32.totalorder %v9893_v4, 300 }
 0x256   : > { %v5209_v9 = vadd.f32 %v5113_v19, %v9826_v11  ;;  %6681 = vlog2.f32 %v4636_v12  ;;  %v3967_v16 = vmul.f32 -0.505, %v3795_v28  ;;  %v2722_v0 = vmax.f32 %v2530_v53, 0.0 }
 0x257   : > { %v2436_v40 = vsub.f32 %v12249_v48, %v2340_v13  ;;  %v6672_v57 = vpop.eup %6671  ;;  %v3117_v20 = vmul.f32 0.6931472, %v6668_v52  ;;  %v2959_v25 = vadd.f32 1.0, %v2863_v60  ;;  %v2961_v24 = vadd.f32 1.0, %v2865_v41 }
 0x258   : > { %v5305_v43 = vsub.f32 0.0, %v5209_v9  ;;  %v6674_v15 = vpop.eup %6673  ;;  %6683 = vpow2.f32 %v3402_v46  ;;  %v4254_v11 = vmul.f32 0.31184378, %v6672_v57  ;;  %v4082_v45 = vmul.f32 1.442695, %v3967_v16  ;;  %v12251_v57 = vld [vmem:[#allocation87_spill] sm:$0xff] }
 0x259   : > { %v4351_v22 = vadd.f32 -1.1652529, %v3967_v16  ;;  %v4747_v18 = vmul.f32 0.6931472, %v6674_v15  ;;  %v2674_v19 = vmax.f32 %v1616_v50, 0.0  ;;  %v3586_v12 = vmul.f32 100.0, %v2722_v0 }
 0x25a   : > { %v5608_v6 = vsel %vm5468_vm6, %v5305_v43, 0.0  ;;  %v6676_v28 = vpop.eup %6675  ;;  %v4542_v52 = vsub.f32 1.0, %v4254_v11  ;;  %6685 = vpow2.f32 %v4082_v45  ;;  %v12250_v41 = vsub.f32 1.0, %v12238_v34  ;;  %v9927_v16 = vpop.f32.mrb[62].mxu0 }
 0x25b   : > { %v9923_v13 = vadd.f32 %v9869_v32, %v5608_v6  ;;  %v4447_v60 = vmax.f32 %v4351_v22, -27.631021  ;;  %6687 = vlog2.f32 %v2959_v25  ;;  %v3799_v46 = vmul.f32 0.6931472, %v6676_v28  ;;  %v9932_v0 = vpop.f32.mrb[62].mxu1  ;;  %v9938_v28 = vpop.f32.mrb[63].mxu0 }
 0x25c   : > { %v5115_v53 = vmul.f32 %v12250_v41, %v4747_v18  ;;  %v3682_v9 = vadd.f32 1.0, %v3586_v12  ;;  %v4638_v48 = vadd.f32 1e-12, %v4542_v52  ;;  %6689 = vlog2.f32 %v2961_v24  ;;  %v12252_v41 = vld [vmem:[#allocation170_spill] sm:$0xff] }
 0x25d   : > { %v9930_v43 = vmul.f32 %v4447_v60, %v12251_v57  ;;  %v2532_v50 = vmax.f32 %v2436_v40, 0.0  ;;  %v3244_v15 = vmul.f32 -0.505, %v3117_v20  ;;  %v3969_v11 = vmul.f32 -0.505, %v3799_v46  ;;  %v6678_v34 = vpop.eup %6677 }
 0x25e   : > { %v5211_v32 = vadd.f32 %v5115_v53, %v9853_v58  ;;  %6691 = vlog2.f32 %v3682_v9  ;;  %v2866_v25 = vmul.f32 100.0, %v2674_v19  ;;  %v1427_v22 = vmul.f32 2.0, %v9539_v7 }
 0x25f   : > { %6693 = vlog2.f32 %v4638_v48  ;;  %v2724_v45 = vmax.f32 %v2532_v50, 0.0  ;;  %v6680_v6 = vpop.eup %6679  ;;  %v1618_v40 = vmax.f32 %v1522_v14, 0.0  ;;  %v4086_v58 = vmul.f32 1.442695, %v3969_v11 }
 0x260   : > { %v5307_v24 = vsub.f32 0.0, %v5211_v32  ;;  %v6682_v52 = vpop.eup %6681  ;;  %v4353_v20 = vadd.f32 -1.1652529, %v3969_v11  ;;  %v1523_v53 = vsub.f32 %v12252_v41, %v1427_v22  ;;  %v3404_v46 = vmul.f32 1.442695, %v3244_v15  ;;  %v12255_v41 = vld [vmem:[#allocation76_spill] sm:$0xff] }
 0x261   : > { %v3588_v60 = vmul.f32 100.0, %v2724_v45  ;;  %v4749_v7 = vmul.f32 0.6931472, %v6682_v52  ;;  %v9944_v9 = vadd.s32 %v9554_v63, %v5395_v27  ;;  %6695 = vpow2.f32 %v4086_v58  ;;  %v12256_v15 = vld [vmem:[#allocation97_spill] sm:$0xff]  ;;  %v9959_v58 = vpop.f32.mrb[63].mxu1 }
 0x262   : > { %v5610_v19 = vsel %vm5469_vm7, %v5307_v24, 0.0  ;;  %v6684_v48 = vpop.eup %6683  ;;  %v4449_v14 = vmax.f32 %v4353_v20, -27.631021  ;;  %v2962_v32 = vadd.f32 1.0, %v2866_v25  ;;  %v12254_v11 = vsub.f32 1.0, %v12242_v42 }
 0x263   : > { %12253 = vst [vmem:[#allocation22_spill] sm:$0xff] %v9944_v9  ;;  %v9947_v50 = vadd.f32 %v9890_v37, %v5610_v19  ;;  %v3121_v12 = vmul.f32 0.6931472, %v6680_v6  ;;  %v3684_v22 = vadd.f32 1.0, %v3588_v60  ;;  %v2341_v18 = vmul.f32 2.0, %v12255_v41  ;;  %v12258_v37 = vld [vmem:[#allocation13_spill] sm:$0xff] }
 0x264   : > { %v5116_v45 = vmul.f32 %v12254_v11, %v4749_v7  ;;  %v6686_v24 = vpop.eup %6685  ;;  %v9953_v52 = vmul.f32 %v4449_v14, %v12256_v15  ;;  %v2676_v27 = vmax.f32 %v1618_v40, 0.0  ;;  %v9956_v2 = vmul.f32 2.0, %v12257_v31  ;;  %v12259_v7 = vld [vmem:[#allocation31_spill] sm:$0xff]  ;;  %v12260_v40 = vld [vmem:[#allocation114_spill] sm:$0xff]  ;;  %v12261_v11 = vld [vmem:[#allocation32_spill] sm:$0xff] }
 0x265   : > { %v2343_v19 = vmul.f32 2.0, %v12258_v37  ;;  %v6688_v25 = vpop.eup %6687  ;;  %v4255_v20 = vmul.f32 0.31184378, %v6686_v24  ;;  %6697 = vlog2.f32 %v3684_v22  ;;  %v1619_v6 = vmax.f32 %v1523_v53, 0.0 }
 0x266   : > { %v5212_v42 = vadd.f32 %v5116_v45, %v9875_v62  ;;  %v6690_v60 = vpop.eup %6689  ;;  %vm5470_vm8 = vcmp.lt.s32.totalorder %v9944_v9, 300  ;;  %6699 = vlog2.f32 %v2962_v32  ;;  %v2437_v14 = vsub.f32 %v12259_v7, %v2341_v18 }
 0x267   : > { %v1525_v31 = vsub.f32 %v12260_v40, %v9956_v2  ;;  %v2439_v41 = vsub.f32 %v12261_v11, %v2343_v19  ;;  %v9967_v17 = vmul.f32 0.31184378, %v6678_v34  ;;  %6701 = vpow2.f32 %v3404_v46 }
 0x268   : > { %v6692_v37 = vpop.eup %6691  ;;  %v5308_v47 = vsub.f32 0.0, %v5212_v42  ;;  %v4543_v62 = vsub.f32 1.0, %v4255_v20  ;;  %v3246_v22 = vmul.f32 -0.505, %v3121_v12  ;;  %v2868_v24 = vmul.f32 100.0, %v2676_v27 }
 0x269   : > { %12262 = vst [vmem:[#allocation131_spill] sm:$0xff] %v9967_v17  ;;  %v6694_v45 = vpop.eup %6693  ;;  %v3801_v53 = vmul.f32 0.6931472, %v6692_v37  ;;  %v2533_v44 = vmax.f32 %v2437_v14, 0.0  ;;  %v2677_v39 = vmax.f32 %v1619_v6, 0.0  ;;  %v12264_v42 = vsub.f32 1.0, %v12245_v10 }
 0x26a   : > { %v5611_v32 = vsel %vm5469_vm7, %v5308_v47, 0.0  ;;  %v4753_v18 = vmul.f32 0.6931472, %v6694_v45  ;;  %v4639_v7 = vadd.f32 1e-12, %v4543_v62  ;;  %v2964_v47 = vadd.f32 1.0, %v2868_v24 }
 0x26b   : > { %v9971_v2 = vmul.f32 0.31184378, %v6684_v48  ;;  %v9974_v19 = vadd.f32 %v9923_v13, %v5611_v32  ;;  %v3970_v34 = vmul.f32 -0.505, %v3801_v53  ;;  %v2725_v46 = vmax.f32 %v2533_v44, 0.0  ;;  %v6696_v14 = vpop.eup %6695 }
 0x26c   : > { %v5118_v20 = vmul.f32 %v12264_v42, %v4753_v18  ;;  %v3123_v12 = vmul.f32 0.6931472, %v6688_v25  ;;  %6703 = vlog2.f32 %v4639_v7  ;;  %v3127_v27 = vmul.f32 0.6931472, %v6690_v60  ;;  %v9980_v7 = vpop.f32.mrb[64].mxu1 }
 0x26d   : > { %12263 = vst [vmem:[#allocation92_spill] sm:$0xff] %v9971_v2  ;;  %v4088_v40 = vmul.f32 1.442695, %v3970_v34  ;;  %v4354_v11 = vadd.f32 -1.1652529, %v3970_v34  ;;  %v2535_v37 = vmax.f32 %v2439_v41, 0.0 }
 0x26e   : > { %v5214_v6 = vadd.f32 %v5118_v20, %v9900_v36  ;;  %v4257_v48 = vmul.f32 0.31184378, %v6696_v14  ;;  %v2869_v62 = vmul.f32 100.0, %v2677_v39  ;;  %v3589_v45 = vmul.f32 100.0, %v2725_v46  ;;  %v12265_v41 = vld [vmem:[#allocation73_spill] sm:$0xff] }
 0x26f   : > { %v3408_v13 = vmul.f32 1.442695, %v3246_v22  ;;  %v5396_v53 = vadd.s32 56, %v9567_v55  ;;  %6705 = vpow2.f32 %v4088_v40  ;;  %v4450_v44 = vmax.f32 %v4354_v11, -27.631021  ;;  %v6698_v10 = vpop.eup %6697  ;;  %v9987_v40 = vpop.f32.mrb[64].mxu0 }
 0x270   : > { %v5310_v32 = vsub.f32 0.0, %v5214_v6  ;;  %v3247_v25 = vmul.f32 -0.505, %v3123_v12  ;;  %v4545_v18 = vsub.f32 1.0, %v4257_v48  ;;  %v3685_v60 = vadd.f32 1.0, %v3589_v45  ;;  %v6700_v34 = vpop.eup %6699  ;;  %12266 = vst [vmem:[#allocation155_spill] sm:$0xff] %v9987_v40 }
 0x271   : > { %v3249_v24 = vmul.f32 -0.505, %v3127_v27  ;;  %v9983_v42 = vmul.f32 %v4450_v44, %v12265_v41  ;;  %v3805_v36 = vmul.f32 0.6931472, %v6698_v10  ;;  %v2727_v39 = vmax.f32 %v2535_v37, 0.0  ;;  %v6702_v46 = vpop.eup %6701  ;;  %v12267_v45 = vld [vmem:[#allocation112_spill] sm:$0xff] }
 0x272   : > { %v5613_v22 = vsel %vm5470_vm8, %v5310_v32, 0.0  ;;  %v4641_v20 = vadd.f32 1e-12, %v4545_v18  ;;  %6707 = vlog2.f32 %v2964_v47  ;;  %v2965_v14 = vadd.f32 1.0, %v2869_v62  ;;  %v12269_v18 = vld [vmem:[#allocation109_spill] sm:$0xff] }
 0x273   : > { %v9990_v12 = vadd.f32 %v9947_v50, %v5613_v22  ;;  %v3972_v11 = vmul.f32 -0.505, %v3805_v36  ;;  %6709 = vlog2.f32 %v3685_v60  ;;  %v3591_v27 = vmul.f32 100.0, %v2727_v39  ;;  %v12270_v50 = vld [vmem:[#allocation14_spill] sm:$0xff]  ;;  %v12271_v36 = vld [vmem:[#allocation113_spill] sm:$0xff]  ;;  %v10001_v39 = vpop.f32.mrb[65].mxu1 }
 0x274   : > { %6711 = vlog2.f32 %v4641_v20  ;;  %v3129_v6 = vmul.f32 0.6931472, %v6700_v34  ;;  %v1621_v48 = vmax.f32 %v1525_v31, 0.0  ;;  %v1430_v37 = vmul.f32 2.0, %v12267_v45  ;;  %12272 = vst [vmem:[#allocation23_spill] sm:$0xff] %v10001_v39  ;;  %v12273_v20 = vld [vmem:[#allocation117_spill] sm:$0xff] }
 0x275   : > { %v9994_v44 = vadd.s32 %v9554_v63, %v5396_v53  ;;  %v4092_v10 = vmul.f32 1.442695, %v3972_v11  ;;  %v4356_v32 = vadd.f32 -1.1652529, %v3972_v11  ;;  %v3687_v47 = vadd.f32 1.0, %v3591_v27  ;;  %v12274_v11 = vld [vmem:[#allocation33_spill] sm:$0xff] }
 0x276   : > { %v6704_v62 = vpop.eup %6703  ;;  %6713 = vlog2.f32 %v2965_v14  ;;  %v1526_v4 = vsub.f32 %v12269_v18, %v1430_v37  ;;  %v2344_v22 = vmul.f32 2.0, %v12270_v50  ;;  %v9999_v60 = vmul.f32 2.0, %v12271_v36  ;;  %v12276_v50 = vld [vmem:[#allocation85_spill] sm:$0xff]  ;;  %v12277_v36 = vld [vmem:[#allocation172_spill] sm:$0xff] }
 0x277   : > { %12268 = vst [vmem:[#allocation55_spill] sm:$0xff] %v9994_v44  ;;  %v4755_v31 = vmul.f32 0.6931472, %v6704_v62  ;;  %6715 = vpow2.f32 %v4092_v10  ;;  %v4452_v34 = vmax.f32 %v4356_v32, -27.631021  ;;  %v2346_v53 = vmul.f32 2.0, %v12273_v20 }
 0x278   : > { %v3250_v45 = vmul.f32 -0.505, %v3129_v6  ;;  %v2679_v51 = vmax.f32 %v1621_v48, 0.0  ;;  %6717 = vlog2.f32 %v3687_v47  ;;  %v2440_v27 = vsub.f32 %v12274_v11, %v2344_v22  ;;  %v12278_v62 = vld [vmem:[#allocation35_spill] sm:$0xff]  ;;  %v10022_v32 = vpop.f32.mrb[65].mxu0 }
 0x279   : > { %v6706_v14 = vpop.eup %6705  ;;  %v12275_v37 = vsub.f32 1.0, %v12251_v57  ;;  %v10008_v40 = vmul.f32 %v4452_v34, %v12276_v50  ;;  %v2442_v10 = vsub.f32 %v12278_v62, %v2346_v53  ;;  %v3410_v20 = vmul.f32 1.442695, %v3247_v25  ;;  %12280 = vst [vmem:[#allocation28_spill] sm:$0xff] %v10022_v32 }
 0x27a   : > { %v4258_v6 = vmul.f32 0.31184378, %v6706_v14  ;;  %v2536_v48 = vmax.f32 %v2440_v27, 0.0  ;;  %v10015_v22 = vmul.f32 0.31184378, %v6702_v46  ;;  %6719 = vpow2.f32 %v3408_v13 }
 0x27b   : > { %v5119_v18 = vmul.f32 %v12275_v37, %v4755_v31  ;;  %v3414_v34 = vmul.f32 1.442695, %v3249_v24  ;;  %vm5471_vm9 = vcmp.lt.s32.totalorder %v9994_v44, 300  ;;  %v10019_v62 = vmul.f32 1.442695, %v3250_v45 }
 0x27c   : > { %12279 = vst [vmem:[#allocation162_spill] sm:$0xff] %v10015_v22  ;;  %v6708_v31 = vpop.eup %6707  ;;  %v4546_v11 = vsub.f32 1.0, %v4258_v6  ;;  %v2728_v37 = vmax.f32 %v2536_v48, 0.0  ;;  %v2871_v25 = vmul.f32 100.0, %v2679_v51  ;;  %v2538_v14 = vmax.f32 %v2442_v10, 0.0 }
 0x27d   : > { %v5215_v57 = vadd.f32 %v5119_v18, %v9930_v43  ;;  %v6710_v39 = vpop.eup %6709  ;;  %6721 = vpow2.f32 %v3410_v20  ;;  %v5397_v46 = vadd.s32 64, %v9567_v55  ;;  %v1622_v18 = vmax.f32 %v1526_v4, 0.0 }
 0x27e   : > { %v6712_v27 = vpop.eup %6711  ;;  %v4642_v47 = vadd.f32 1e-12, %v4546_v11  ;;  %v3807_v13 = vmul.f32 0.6931472, %v6710_v39  ;;  %v3592_v6 = vmul.f32 100.0, %v2728_v37  ;;  %v2967_v39 = vadd.f32 1.0, %v2871_v25 }
 0x27f   : > { %v5311_v53 = vsub.f32 0.0, %v5215_v57  ;;  %v4759_v24 = vmul.f32 0.6931472, %v6712_v27  ;;  %v3133_v51 = vmul.f32 0.6931472, %v6708_v31  ;;  %v12281_v57 = vsub.f32 1.0, %v12256_v15 }
 0x280   : > { %v6714_v48 = vpop.eup %6713  ;;  %6723 = vlog2.f32 %v4642_v47  ;;  %v3973_v10 = vmul.f32 -0.505, %v3807_v13  ;;  %v3688_v2 = vadd.f32 1.0, %v3592_v6  ;;  %v2730_v17 = vmax.f32 %v2538_v14, 0.0  ;;  %v10035_v13 = vpop.f32.mrb[66].mxu1 }
 0x281   : > { %v5614_v43 = vsel %vm5470_vm8, %v5311_v53, 0.0  ;;  %v6716_v20 = vpop.eup %6715  ;;  %v5121_v11 = vmul.f32 %v12281_v57, %v4759_v24  ;;  %6725 = vpow2.f32 %v3414_v34  ;;  %v10033_v31 = vadd.s32 %v9554_v63, %v5397_v46  ;;  %12283 = vst [vmem:[#allocation163_spill] sm:$0xff] %v10035_v13  ;;  %v10037_v25 = vpop.f32.mrb[66].mxu0 }
 0x282   : > { %v10027_v45 = vadd.f32 %v9974_v19, %v5614_v43  ;;  %v6718_v32 = vpop.eup %6717  ;;  %v4260_v53 = vmul.f32 0.31184378, %v6716_v20  ;;  %v4094_v27 = vmul.f32 1.442695, %v3973_v10  ;;  %v4357_v4 = vadd.f32 -1.1652529, %v3973_v10 }
 0x283   : > { %v5217_v37 = vadd.f32 %v5121_v11, %v9953_v52  ;;  %v3811_v9 = vmul.f32 0.6931472, %v6718_v32  ;;  %v2680_v19 = vmax.f32 %v1622_v18, 0.0  ;;  %6727 = vlog2.f32 %v3688_v2  ;;  %12282 = vst [vmem:[#allocation57_spill] sm:$0xff] %v10033_v31  ;;  %12284 = vst [vmem:[#allocation29_spill] sm:$0xff] %v10037_v25  ;;  %v12285_v32 = vld [vmem:[#allocation101_spill] sm:$0xff] }
 0x284   : > { %v4548_v47 = vsub.f32 1.0, %v4260_v53  ;;  %6729 = vpow2.f32 %v4094_v27  ;;  %v4453_v15 = vmax.f32 %v4357_v4, -27.631021  ;;  %v6720_v14 = vpop.eup %6719  ;;  %v3135_v43 = vmul.f32 0.6931472, %v6714_v48 }
 0x285   : > { %v5313_v34 = vsub.f32 0.0, %v5217_v37  ;;  %v3975_v24 = vmul.f32 -0.505, %v3811_v9  ;;  %v3594_v6 = vmul.f32 100.0, %v2730_v17  ;;  %v3252_v10 = vmul.f32 -0.505, %v3133_v51 }
 0x286   : > { %v4644_v52 = vadd.f32 1e-12, %v4548_v47  ;;  %v10040_v18 = vmul.f32 %v4453_v15, %v12285_v32  ;;  %6731 = vlog2.f32 %v2967_v39  ;;  %v2872_v57 = vmul.f32 100.0, %v2680_v19  ;;  %v12286_v9 = vld [vmem:[#allocation17_spill] sm:$0xff]  ;;  %v10057_v15 = vpop.f32.mrb[67].mxu1 }
 0x287   : > { %v5616_v2 = vsel %vm5471_vm9, %v5313_v34, 0.0  ;;  %v4098_v46 = vmul.f32 1.442695, %v3975_v24  ;;  %v4359_v20 = vadd.f32 -1.1652529, %v3975_v24  ;;  %v6722_v11 = vpop.eup %6721  ;;  %v3690_v48 = vadd.f32 1.0, %v3594_v6 }
 0x288   : > { %v10045_v53 = vadd.f32 %v9990_v12, %v5616_v2  ;;  %6733 = vlog2.f32 %v4644_v52  ;;  %v10048_v17 = vmul.f32 2.0, %v12286_v9  ;;  %v3253_v51 = vmul.f32 -0.505, %v3135_v43  ;;  %v12287_v37 = vld [vmem:[#allocation173_spill] sm:$0xff]  ;;  %12288 = vst [vmem:[#allocation104_spill] sm:$0xff] %v10057_v15  ;;  %v12289_v24 = vld [vmem:[#allocation110_spill] sm:$0xff] }
 0x289   : > { %6735 = vpow2.f32 %v4098_v46  ;;  %v4455_v27 = vmax.f32 %v4359_v20, -27.631021  ;;  %v2347_v39 = vmul.f32 2.0, %v9669_v30  ;;  %v10054_v19 = vmul.f32 2.0, %v9689_v26  ;;  %v12291_v52 = vld [vmem:[#allocation36_spill] sm:$0xff]  ;;  %v12292_v26 = vld [vmem:[#allocation174_spill] sm:$0xff] }
 0x28a   : > { %v6724_v4 = vpop.eup %6723  ;;  %6737 = vlog2.f32 %v3690_v48  ;;  %v2349_v12 = vmul.f32 2.0, %v9691_v23  ;;  %v12290_v43 = vsub.f32 %v12277_v36, %v9999_v60  ;;  %v2968_v20 = vadd.f32 1.0, %v2872_v57  ;;  %v12293_v23 = vld [vmem:[#allocation38_spill] sm:$0xff] }
 0x28b   : > { %v4761_v34 = vmul.f32 0.6931472, %v6724_v4  ;;  %v10060_v6 = vmul.f32 %v4455_v27, %v12289_v24  ;;  %v2443_v2 = vsub.f32 %v12291_v52, %v2347_v39  ;;  %v6726_v46 = vpop.eup %6725  ;;  %6739 = vpow2.f32 %v10019_v62 }
 0x28c   : > { %v1624_v30 = vmax.f32 %v12290_v43, 0.0  ;;  %v1531_v48 = vsub.f32 %v12292_v26, %v10054_v19  ;;  %v2445_v9 = vsub.f32 %v12293_v23, %v2349_v12  ;;  %v12294_v27 = vsub.f32 1.0, %v12265_v41  ;;  %v12295_v43 = vld [vmem:[#allocation74_spill] sm:$0xff] }
 0x28d   : > { %v6728_v47 = vpop.eup %6727  ;;  %v3420_v25 = vmul.f32 1.442695, %v3252_v10  ;;  %v2539_v60 = vmax.f32 %v2443_v2, 0.0  ;;  %6741 = vpow2.f32 %v12295_v43  ;;  %v10074_v39 = vmul.f32 0.31184378, %v6720_v14 }
 0x28e   : > { %v5122_v15 = vmul.f32 %v12294_v27, %v4761_v34  ;;  %v6730_v36 = vpop.eup %6729  ;;  %v3422_v62 = vmul.f32 1.442695, %v3253_v51  ;;  %v3813_v57 = vmul.f32 0.6931472, %v6728_v47  ;;  %v2682_v26 = vmax.f32 %v1624_v30, 0.0 }
 0x28f   : > { %12296 = vst [vmem:[#allocation77_spill] sm:$0xff] %v10074_v39  ;;  %v4261_v19 = vmul.f32 0.31184378, %v6730_v36  ;;  %v2731_v12 = vmax.f32 %v2539_v60, 0.0  ;;  %v10077_v13 = vmul.f32 0.31184378, %v6722_v11  ;;  %6743 = vlog2.f32 %v2968_v20 }
 0x290   : > { %v5218_v52 = vadd.f32 %v5122_v15, %v9983_v42  ;;  %v6732_v23 = vpop.eup %6731  ;;  %vm5472_vm10 = vcmp.lt.s32.totalorder %v10033_v31, 300  ;;  %v5398_v41 = vadd.s32 72, %v9567_v55  ;;  %v3976_v10 = vmul.f32 -0.505, %v3813_v57  ;;  %v10088_v57 = vpop.f32.mrb[67].mxu0 }
 0x291   : > { %12297 = vst [vmem:[#allocation26_spill] sm:$0xff] %v10077_v13  ;;  %v10081_v34 = vmul.f32 0.31184378, %v6726_v46  ;;  %6745 = vpow2.f32 %v3420_v25  ;;  %v4549_v51 = vsub.f32 1.0, %v4261_v19  ;;  %v3595_v30 = vmul.f32 100.0, %v2731_v12 }
 0x292   : > { %v5314_v14 = vsub.f32 0.0, %v5218_v52  ;;  %v6734_v47 = vpop.eup %6733  ;;  %6747 = vpow2.f32 %v3422_v62  ;;  %v4100_v42 = vmul.f32 1.442695, %v3976_v10  ;;  %v4360_v15 = vadd.f32 -1.1652529, %v3976_v10 }
 0x293   : > { %12298 = vst [vmem:[#allocation79_spill] sm:$0xff] %v10081_v34  ;;  %v6736_v2 = vpop.eup %6735  ;;  %v4765_v27 = vmul.f32 0.6931472, %v6734_v47  ;;  %v4645_v60 = vadd.f32 1e-12, %v4549_v51  ;;  %v2874_v36 = vmul.f32 100.0, %v2682_v26  ;;  %v10093_v19 = vadd.s32 %v9554_v63, %v5398_v41 }
 0x294   : > { %v5617_v11 = vsel %vm5471_vm9, %v5314_v14, 0.0  ;;  %v6738_v43 = vpop.eup %6737  ;;  %v4263_v46 = vmul.f32 0.31184378, %v6736_v2  ;;  %6749 = vpow2.f32 %v4100_v42  ;;  %v2541_v25 = vmax.f32 %v2445_v9, 0.0  ;;  %v12301_v2 = vld [vmem:[#allocation95_spill] sm:$0xff] }
 0x295   : > { %v10086_v20 = vadd.f32 %v10027_v45, %v5617_v11  ;;  %v12299_v62 = vsub.f32 1.0, %v12276_v50  ;;  %6751 = vlog2.f32 %v4645_v60  ;;  %12300 = vst [vmem:[#allocation67_spill] sm:$0xff] %v10093_v19  ;;  %v4456_v12 = vmax.f32 %v4360_v15, -27.631021  ;;  %v6740_v10 = vpop.eup %6739 }
 0x296   : > { %v3139_v14 = vmul.f32 0.6931472, %v6732_v23  ;;  %v4551_v26 = vsub.f32 1.0, %v4263_v46  ;;  %v3817_v51 = vmul.f32 0.6931472, %v6738_v43  ;;  %v3691_v47 = vadd.f32 1.0, %v3595_v30 }
 0x297   : > { %v5124_v52 = vmul.f32 %v12299_v62, %v4765_v27  ;;  %v10097_v42 = vmul.f32 %v4456_v12, %v12301_v2  ;;  %v2970_v9 = vadd.f32 1.0, %v2874_v36  ;;  %v1436_v11 = vmul.f32 2.0, %v9709_v38  ;;  %v10100_v50 = vpop.eup %6741 }
 0x298   : > { %12302 = vst [vmem:[#allocation27_spill] sm:$0xff] %v10100_v50  ;;  %v4647_v27 = vadd.f32 1e-12, %v4551_v26  ;;  %v3978_v60 = vmul.f32 -0.505, %v3817_v51  ;;  %6753 = vlog2.f32 %v3691_v47  ;;  %v2733_v41 = vmax.f32 %v2541_v25, 0.0 }
 0x299   : > { %v5220_v45 = vadd.f32 %v5124_v52, %v10008_v40  ;;  %v10102_v15 = vmul.f32 0.31184378, %v6740_v10  ;;  %v12304_v30 = vsub.f32 %v12287_v37, %v10048_v17  ;;  %v1627_v40 = vmax.f32 %v1531_v48, 0.0  ;;  %v6744_v46 = vpop.eup %6743  ;;  %v12305_v25 = vld [vmem:[#allocation175_spill] sm:$0xff]  ;;  %v10113_v48 = vpop.f32.mrb[68].mxu1  ;;  %v12309_v50 = vld [vmem:[#allocation41_spill] sm:$0xff] }
 0x29a   : > { %6755 = vlog2.f32 %v4647_v27  ;;  %v4104_v62 = vmul.f32 1.442695, %v3978_v60  ;;  %v4362_v36 = vadd.f32 -1.1652529, %v3978_v60  ;;  %v3597_v52 = vmul.f32 100.0, %v2733_v41 }
 0x29b   : > { %12303 = vst [vmem:[#allocation30_spill] sm:$0xff] %v10102_v15  ;;  %v5316_v23 = vsub.f32 0.0, %v5220_v45  ;;  %v1625_v43 = vmax.f32 %v12304_v30, 0.0  ;;  %v6746_v38 = vpop.eup %6745  ;;  %v3255_v26 = vmul.f32 -0.505, %v3139_v14  ;;  %6757 = vlog2.f32 %v2970_v9  ;;  %v10115_v45 = vpop.f32.mrb[68].mxu0 }
 0x29c   : > { %v1532_v10 = vsub.f32 %v12305_v25, %v1436_v11  ;;  %v6748_v51 = vpop.eup %6747  ;;  %6759 = vpow2.f32 %v4104_v62  ;;  %v4458_v17 = vmax.f32 %v4362_v36, -27.631021  ;;  %v3693_v37 = vadd.f32 1.0, %v3597_v52  ;;  %v12306_v11 = vld [vmem:[#allocation168_spill] sm:$0xff] }
 0x29d   : > { %v5619_v12 = vsel %vm5472_vm10, %v5316_v23, 0.0  ;;  %v3141_v27 = vmul.f32 0.6931472, %v6744_v46  ;;  %v2683_v60 = vmax.f32 %v1625_v43, 0.0  ;;  %v2350_v41 = vmul.f32 2.0, %v9727_v59  ;;  %v12307_v43 = vld [vmem:[#allocation39_spill] sm:$0xff] }
 0x29e   : > { %v10111_v47 = vadd.f32 %v10045_v53, %v5619_v12  ;;  %v10119_v14 = vmul.f32 2.0, %v9758_v21  ;;  %v6750_v9 = vpop.eup %6749  ;;  %v10122_v23 = vmul.f32 %v4458_v17, %v12306_v11  ;;  %v2685_v53 = vmax.f32 %v1627_v40, 0.0  ;;  %v12308_v21 = vld [vmem:[#allocation180_spill] sm:$0xff] }
 0x29f   : > { %6761 = vlog2.f32 %v3693_v37  ;;  %v2352_v30 = vmul.f32 2.0, %v9760_v54  ;;  %v6752_v62 = vpop.eup %6751  ;;  %v4264_v46 = vmul.f32 0.31184378, %v6750_v9  ;;  %v2446_v12 = vsub.f32 %v12307_v43, %v2350_v41 }
 0x2a0   : > { %v4767_v59 = vmul.f32 0.6931472, %v6752_v62  ;;  %v3426_v25 = vmul.f32 1.442695, %v3255_v26  ;;  %v1534_v4 = vsub.f32 %v12308_v21, %v10119_v14  ;;  %v12310_v36 = vsub.f32 1.0, %v12285_v32 }
 0x2a1   : > { %v2448_v17 = vsub.f32 %v12309_v50, %v2352_v30  ;;  %v4552_v54 = vsub.f32 1.0, %v4264_v46  ;;  %v2542_v22 = vmax.f32 %v2446_v12, 0.0  ;;  %vm5473_vm11 = vcmp.lt.s32.totalorder %v10093_v19, 300 }
 0x2a2   : > { %v6754_v44 = vpop.eup %6753  ;;  %v5125_v52 = vmul.f32 %v12310_v36, %v4767_v59  ;;  %v3256_v41 = vmul.f32 -0.505, %v3141_v27  ;;  %v2875_v9 = vmul.f32 100.0, %v2683_v60  ;;  %v2877_v26 = vmul.f32 100.0, %v2685_v53 }
 0x2a3   : > { %v4648_v62 = vadd.f32 1e-12, %v4552_v54  ;;  %v10137_v14 = vadd.s32 80, %v9567_v55  ;;  %v3819_v50 = vmul.f32 0.6931472, %v6754_v44  ;;  %v1628_v30 = vmax.f32 %v1532_v10, 0.0 }
 0x2a4   : > { %v6756_v43 = vpop.eup %6755  ;;  %v10139_v21 = vmul.f32 0.31184378, %v6746_v38  ;;  %v5221_v46 = vadd.f32 %v5125_v52, %v10040_v18  ;;  %6763 = vpow2.f32 %v3426_v25  ;;  %v2734_v12 = vmax.f32 %v2542_v22, 0.0  ;;  %v10146_v10 = vpop.f32.mrb[69].mxu1 }
 0x2a5   : > { %v6758_v32 = vpop.eup %6757  ;;  %v10142_v36 = vmul.f32 0.31184378, %v6748_v51  ;;  %v4771_v59 = vmul.f32 0.6931472, %v6756_v43  ;;  %6765 = vlog2.f32 %v4648_v62  ;;  %v3979_v27 = vmul.f32 -0.505, %v3819_v50 }
 0x2a6   : > { %12311 = vst [vmem:[#allocation87_spill] sm:$0xff] %v10139_v21  ;;  %v6760_v60 = vpop.eup %6759  ;;  %v5317_v53 = vsub.f32 0.0, %v5221_v46  ;;  %v10144_v54 = vmul.f32 1.442695, %v3256_v41  ;;  %v2971_v37 = vadd.f32 1.0, %v2875_v9  ;;  %v2973_v44 = vadd.f32 1.0, %v2877_v26 }
 0x2a7   : > { %12312 = vst [vmem:[#allocation170_spill] sm:$0xff] %v10142_v36  ;;  %v12313_v38 = vsub.f32 1.0, %v12289_v24  ;;  %v4266_v18 = vmul.f32 0.31184378, %v6760_v60  ;;  %v4106_v52 = vmul.f32 1.442695, %v3979_v27 }
 0x2a8   : > { %v2686_v22 = vmax.f32 %v1628_v30, 0.0  ;;  %v5620_v51 = vsel %vm5472_vm10, %v5317_v53, 0.0  ;;  %v4363_v62 = vadd.f32 -1.1652529, %v3979_v27  ;;  %v3598_v50 = vmul.f32 100.0, %v2734_v12  ;;  %v10156_v46 = vpop.f32.mrb[69].mxu0 }
 0x2a9   : > { %v5127_v40 = vmul.f32 %v12313_v38, %v4771_v59  ;;  %v6762_v25 = vpop.eup %6761  ;;  %v2544_v43 = vmax.f32 %v2448_v17, 0.0  ;;  %v10153_v41 = vadd.f32 %v10086_v20, %v5620_v51  ;;  %v4554_v26 = vsub.f32 1.0, %v4266_v18  ;;  %v12314_v27 = vld [vmem:[#allocation169_spill] sm:$0xff]  ;;  %v12332_v21 = vld [vmem:[#allocation47_spill] sm:$0xff] }
 0x2aa   : > { %6767 = vpow2.f32 %v4106_v52  ;;  %v3145_v24 = vmul.f32 0.6931472, %v6758_v32  ;;  %v4459_v59 = vmax.f32 %v4363_v62, -27.631021  ;;  %v3823_v30 = vmul.f32 0.6931472, %v6762_v25 }
 0x2ab   : > { %v5223_v9 = vadd.f32 %v5127_v40, %v10060_v6  ;;  %6769 = vlog2.f32 %v2971_v37  ;;  %v4650_v38 = vadd.f32 1e-12, %v4554_v26  ;;  %v3694_v15 = vadd.f32 1.0, %v3598_v50 }
 0x2ac   : > { %v1630_v53 = vmax.f32 %v1534_v4, 0.0  ;;  %v10159_v12 = vmul.f32 %v4459_v59, %v12314_v27  ;;  %6771 = vlog2.f32 %v2973_v44  ;;  %v3981_v20 = vmul.f32 -0.505, %v3823_v30  ;;  %v12315_v44 = vld [vmem:[#allocation182_spill] sm:$0xff] }
 0x2ad   : > { %v5319_v60 = vsub.f32 0.0, %v5223_v9  ;;  %v2736_v17 = vmax.f32 %v2544_v43, 0.0  ;;  %6773 = vlog2.f32 %v4650_v38  ;;  %v2878_v40 = vmul.f32 100.0, %v2686_v22 }
 0x2ae   : > { %v1439_v32 = vmul.f32 2.0, %v9773_v1  ;;  %v6764_v37 = vpop.eup %6763  ;;  %v4110_v52 = vmul.f32 1.442695, %v3981_v20  ;;  %v4365_v25 = vadd.f32 -1.1652529, %v3981_v20  ;;  %6775 = vlog2.f32 %v3694_v15  ;;  %v10174_v15 = vpop.f32.mrb[70].mxu1 }
 0x2af   : > { %v5622_v6 = vsel %vm5473_vm11, %v5319_v60, 0.0  ;;  %v6766_v4 = vpop.eup %6765  ;;  %v2688_v51 = vmax.f32 %v1630_v53, 0.0  ;;  %v3600_v62 = vmul.f32 100.0, %v2736_v17  ;;  %v2353_v43 = vmul.f32 2.0, %v9795_v8  ;;  %v12318_v53 = vld [vmem:[#allocation176_spill] sm:$0xff]  ;;  %v12319_v17 = vld [vmem:[#allocation42_spill] sm:$0xff] }
 0x2b0   : > { %v10165_v18 = vadd.f32 %v10111_v47, %v5622_v6  ;;  %v1535_v50 = vsub.f32 %v12315_v44, %v1439_v32  ;;  %v4773_v9 = vmul.f32 0.6931472, %v6766_v4  ;;  %6777 = vpow2.f32 %v4110_v52  ;;  %v10182_v32 = vpop.f32.mrb[70].mxu0  ;;  %v12320_v52 = vld [vmem:[#allocation183_spill] sm:$0xff] }
 0x2b1   : > { %v4461_v26 = vmax.f32 %v4365_v25, -27.631021  ;;  %v1441_v22 = vmul.f32 2.0, %v9810_v5  ;;  %v3258_v1 = vmul.f32 -0.505, %v3145_v24  ;;  %v10172_v47 = vadd.s32 %v9554_v63, %v10137_v14 }
 0x2b2   : > { %v3696_v59 = vadd.f32 1.0, %v3600_v62  ;;  %v1631_v30 = vmax.f32 %v1535_v50, 0.0  ;;  %v12317_v60 = vsub.f32 1.0, %v12301_v2  ;;  %v2974_v8 = vadd.f32 1.0, %v2878_v40 }
 0x2b3   : > { %12316 = vst [vmem:[#allocation76_spill] sm:$0xff] %v10172_v47  ;;  %v10179_v20 = vmul.f32 %v4461_v26, %v12318_v53  ;;  %v2449_v6 = vsub.f32 %v12319_v17, %v2353_v43  ;;  %v2880_v24 = vmul.f32 100.0, %v2688_v51  ;;  %v1537_v25 = vsub.f32 %v12320_v52, %v1441_v22 }
 0x2b4   : > { %v5128_v38 = vmul.f32 %v12317_v60, %v4773_v9  ;;  %v6768_v5 = vpop.eup %6767  ;;  %6779 = vlog2.f32 %v3696_v59  ;;  %v2689_v14 = vmax.f32 %v1631_v30, 0.0  ;;  %v10188_v40 = vmul.f32 0.31184378, %v6764_v37 }
 0x2b5   : > { %v6770_v4 = vpop.eup %6769  ;;  %v4267_v44 = vmul.f32 0.31184378, %v6768_v5  ;;  %v2545_v50 = vmax.f32 %v2449_v6, 0.0  ;;  %v3432_v43 = vmul.f32 1.442695, %v3258_v1  ;;  %vm5474_vm12 = vcmp.lt.s32.totalorder %v10172_v47, 300 }
 0x2b6   : > { %v5224_v2 = vadd.f32 %v5128_v38, %v10097_v42  ;;  %12321 = vst [vmem:[#allocation97_spill] sm:$0xff] %v10188_v40  ;;  %v5400_v51 = vadd.s32 88, %v9567_v55  ;;  %v6772_v26 = vpop.eup %6771  ;;  %6781 = vpow2.f32 %v10144_v54  ;;  %v2976_v42 = vadd.f32 1.0, %v2880_v24 }
 0x2b7   : > { %v4555_v59 = vsub.f32 1.0, %v4267_v44  ;;  %v2737_v30 = vmax.f32 %v2545_v50, 0.0  ;;  %v6774_v60 = vpop.eup %6773  ;;  %6783 = vlog2.f32 %v2974_v8  ;;  %v2881_v38 = vmul.f32 100.0, %v2689_v14 }
 0x2b8   : > { %v5320_v22 = vsub.f32 0.0, %v5224_v2  ;;  %v2355_v17 = vmul.f32 2.0, %v9812_v33  ;;  %v6776_v6 = vpop.eup %6775  ;;  %v4777_v1 = vmul.f32 0.6931472, %v6774_v60  ;;  %6785 = vpow2.f32 %v3432_v43 }
 0x2b9   : > { %v4651_v5 = vadd.f32 1e-12, %v4555_v59  ;;  %v3601_v52 = vmul.f32 100.0, %v2737_v30  ;;  %v3147_v54 = vmul.f32 0.6931472, %v6770_v4  ;;  %v12322_v8 = vsub.f32 1.0, %v12306_v11 }
 0x2ba   : > { %v5623_v37 = vsel %vm5473_vm11, %v5320_v22, 0.0  ;;  %v3825_v2 = vmul.f32 0.6931472, %v6776_v6  ;;  %v6778_v44 = vpop.eup %6777  ;;  %v1633_v33 = vmax.f32 %v1537_v25, 0.0  ;;  %v12323_v22 = vld [vmem:[#allocation44_spill] sm:$0xff] }
 0x2bb   : > { %v10197_v9 = vadd.f32 %v10153_v41, %v5623_v37  ;;  %v5130_v24 = vmul.f32 %v12322_v8, %v4777_v1  ;;  %6787 = vlog2.f32 %v4651_v5  ;;  %v3697_v14 = vadd.f32 1.0, %v3601_v52 }
 0x2bc   : > { %v4269_v50 = vmul.f32 0.31184378, %v6778_v44  ;;  %v3982_v62 = vmul.f32 -0.505, %v3825_v2  ;;  %6789 = vlog2.f32 %v2976_v42  ;;  %v2451_v60 = vsub.f32 %v12323_v22, %v2355_v17 }
 0x2bd   : > { %v5226_v59 = vadd.f32 %v5130_v24, %v10122_v23  ;;  %v3151_v30 = vmul.f32 0.6931472, %v6772_v26  ;;  %v2977_v41 = vadd.f32 1.0, %v2881_v38  ;;  %6791 = vlog2.f32 %v3697_v14 }
 0x2be   : > { %v6780_v43 = vpop.eup %6779  ;;  %v4557_v4 = vsub.f32 1.0, %v4269_v50  ;;  %v4112_v6 = vmul.f32 1.442695, %v3982_v62  ;;  %v4366_v37 = vadd.f32 -1.1652529, %v3982_v62  ;;  %v2547_v36 = vmax.f32 %v2451_v60, 0.0 }
 0x2bf   : > { %v5322_v11 = vsub.f32 0.0, %v5226_v59  ;;  %v3259_v1 = vmul.f32 -0.505, %v3147_v54  ;;  %v3829_v5 = vmul.f32 0.6931472, %v6780_v43  ;;  %v2691_v52 = vmax.f32 %v1633_v33, 0.0 }
 0x2c0   : > { %v4653_v25 = vadd.f32 1e-12, %v4557_v4  ;;  %6793 = vpow2.f32 %v4112_v6  ;;  %v4462_v2 = vmax.f32 %v4366_v37, -27.631021  ;;  %v2739_v42 = vmax.f32 %v2547_v36, 0.0  ;;  %v6782_v44 = vpop.eup %6781  ;;  %v12324_v62 = vld [vmem:[#allocation177_spill] sm:$0xff] }
 0x2c1   : > { %v5625_v23 = vsel %vm5474_vm12, %v5322_v11, 0.0  ;;  %v3261_v26 = vmul.f32 -0.505, %v3151_v30  ;;  %v3984_v38 = vmul.f32 -0.505, %v3829_v5  ;;  %6795 = vlog2.f32 %v2977_v41  ;;  %v6784_v17 = vpop.eup %6783  ;;  %v12326_v5 = vld [vmem:[#allocation184_spill] sm:$0xff] }
 0x2c2   : > { %v10206_v8 = vadd.f32 %v10165_v18, %v5625_v23  ;;  %6797 = vlog2.f32 %v4653_v25  ;;  %v10209_v54 = vmul.f32 %v4462_v2, %v12324_v62  ;;  %v3603_v24 = vmul.f32 100.0, %v2739_v42  ;;  %v6786_v22 = vpop.eup %6785  ;;  %v12327_v25 = vld [vmem:[#allocation45_spill] sm:$0xff]  ;;  %v10224_v2 = vpop.f32.mrb[71].mxu0 }
 0x2c3   : > { %v10212_v14 = vadd.s32 %v9554_v63, %v5400_v51  ;;  %v4116_v36 = vmul.f32 1.442695, %v3984_v38  ;;  %v4368_v33 = vadd.f32 -1.1652529, %v3984_v38  ;;  %v2883_v50 = vmul.f32 100.0, %v2691_v52  ;;  %v10220_v51 = vpop.f32.mrb[71].mxu1 }
 0x2c4   : > { %v3699_v60 = vadd.f32 1.0, %v3603_v24  ;;  %v1442_v59 = vmul.f32 2.0, %v9833_v61  ;;  %v2356_v30 = vmul.f32 2.0, %v9866_v56  ;;  %v10217_v18 = vmul.f32 2.0, %v9878_v3  ;;  %v12328_v3 = vld [vmem:[#allocation179_spill] sm:$0xff]  ;;  %v12329_v38 = vld [vmem:[#allocation186_spill] sm:$0xff] }
 0x2c5   : > { %12325 = vst [vmem:[#allocation138_spill] sm:$0xff] %v10212_v14  ;;  %v6788_v41 = vpop.eup %6787  ;;  %v3153_v43 = vmul.f32 0.6931472, %v6784_v17  ;;  %6799 = vpow2.f32 %v4116_v36  ;;  %v4464_v4 = vmax.f32 %v4368_v33, -27.631021  ;;  %v5401_v6 = vadd.s32 96, %v9567_v55 }
 0x2c6   : > { %v6790_v37 = vpop.eup %6789  ;;  %v4779_v11 = vmul.f32 0.6931472, %v6788_v41  ;;  %6801 = vlog2.f32 %v3699_v60  ;;  %v1538_v52 = vsub.f32 %v12326_v5, %v1442_v59  ;;  %v2452_v61 = vsub.f32 %v12327_v25, %v2356_v30 }
 0x2c7   : > { %v6792_v56 = vpop.eup %6791  ;;  %v10227_v42 = vmul.f32 %v4464_v4, %v12328_v3  ;;  %v2979_v23 = vadd.f32 1.0, %v2883_v50  ;;  %v1540_v17 = vsub.f32 %v12329_v38, %v10217_v18  ;;  %v2358_v24 = vmul.f32 2.0, %v9884_v35 }
 0x2c8   : > { %v3434_v36 = vmul.f32 1.442695, %v3259_v1  ;;  %v12330_v33 = vsub.f32 1.0, %v12314_v27  ;;  %v3831_v41 = vmul.f32 0.6931472, %v6792_v56  ;;  %v2548_v59 = vmax.f32 %v2452_v61, 0.0 }
 0x2c9   : > { %v10235_v5 = vmul.f32 0.31184378, %v6782_v44  ;;  %v3157_v25 = vmul.f32 0.6931472, %v6790_v37  ;;  %v2454_v4 = vsub.f32 %v12332_v21, %v2358_v24  ;;  %v3438_v13 = vmul.f32 1.442695, %v3261_v26 }
 0x2ca   : > { %v5131_v60 = vmul.f32 %v12330_v33, %v4779_v11  ;;  %v6794_v34 = vpop.eup %6793  ;;  %vm5475_vm13 = vcmp.lt.s32.totalorder %v10212_v14, 300  ;;  %v10241_v35 = vadd.s32 %v9554_v63, %v5401_v6  ;;  %v3985_v27 = vmul.f32 -0.505, %v3831_v41  ;;  %v10245_v41 = vpop.f32.mrb[72].mxu1 }
 0x2cb   : > { %12331 = vst [vmem:[#allocation13_spill] sm:$0xff] %v10235_v5  ;;  %v6796_v1 = vpop.eup %6795  ;;  %v3262_v18 = vmul.f32 -0.505, %v3153_v43  ;;  %v4270_v11 = vmul.f32 0.31184378, %v6794_v34  ;;  %6803 = vlog2.f32 %v2979_v23  ;;  %v2740_v61 = vmax.f32 %v2548_v59, 0.0 }
 0x2cc   : > { %v5227_v50 = vadd.f32 %v5131_v60, %v10159_v12  ;;  %12333 = vst [vmem:[#allocation31_spill] sm:$0xff] %v10241_v35  ;;  %v6798_v44 = vpop.eup %6797  ;;  %6805 = vpow2.f32 %v3434_v36  ;;  %v4118_v56 = vmul.f32 1.442695, %v3985_v27  ;;  %v4369_v21 = vadd.f32 -1.1652529, %v3985_v27  ;;  %v10252_v27 = vpop.f32.mrb[72].mxu0 }
 0x2cd   : > { %v4783_v38 = vmul.f32 0.6931472, %v6798_v44  ;;  %v4558_v24 = vsub.f32 1.0, %v4270_v11  ;;  %v3264_v12 = vmul.f32 -0.505, %v3157_v25  ;;  %v3604_v26 = vmul.f32 100.0, %v2740_v61 }
 0x2ce   : > { %v5323_v37 = vsub.f32 0.0, %v5227_v50  ;;  %6807 = vpow2.f32 %v4118_v56  ;;  %v4465_v6 = vmax.f32 %v4369_v21, -27.631021  ;;  %v1634_v60 = vmax.f32 %v1538_v52, 0.0 }
 0x2cf   : > { %v6800_v34 = vpop.eup %6799  ;;  %v12334_v23 = vsub.f32 1.0, %v12318_v53  ;;  %v4654_v59 = vadd.f32 1e-12, %v4558_v24  ;;  %v3159_v50 = vmul.f32 0.6931472, %v6796_v1  ;;  %v3700_v21 = vadd.f32 1.0, %v3604_v26 }
 0x2d0   : > { %v5626_v33 = vsel %vm5474_vm12, %v5323_v37, 0.0  ;;  %v6802_v25 = vpop.eup %6801  ;;  %v10254_v11 = vmul.f32 0.31184378, %v6786_v22  ;;  %v3440_v61 = vmul.f32 1.442695, %v3262_v18  ;;  %v12336_v37 = vld [vmem:[#allocation181_spill] sm:$0xff] }
 0x2d1   : > { %v10248_v43 = vadd.f32 %v10197_v9, %v5626_v33  ;;  %v5133_v36 = vmul.f32 %v12334_v23, %v4783_v38  ;;  %v4272_v44 = vmul.f32 0.31184378, %v6800_v34  ;;  %v10257_v52 = vmul.f32 %v4465_v6, %v12336_v37 }
 0x2d2   : > { %12335 = vst [vmem:[#allocation114_spill] sm:$0xff] %v10254_v11  ;;  %6809 = vlog2.f32 %v4654_v59  ;;  %v3835_v9 = vmul.f32 0.6931472, %v6802_v25  ;;  %v3444_v33 = vmul.f32 1.442695, %v3264_v12  ;;  %v2692_v38 = vmax.f32 %v1634_v60, 0.0 }
 0x2d3   : > { %v5229_v56 = vadd.f32 %v5133_v36, %v10179_v20  ;;  %v4560_v53 = vsub.f32 1.0, %v4272_v44  ;;  %v2550_v24 = vmax.f32 %v2454_v4, 0.0  ;;  %6811 = vpow2.f32 %v3438_v13 }
 0x2d4   : > { %v3265_v23 = vmul.f32 -0.505, %v3159_v50  ;;  %v3987_v30 = vmul.f32 -0.505, %v3835_v9  ;;  %6813 = vlog2.f32 %v3700_v21  ;;  %v1636_v18 = vmax.f32 %v1540_v17, 0.0  ;;  %v12338_v21 = vld [vmem:[#allocation187_spill] sm:$0xff] }
 0x2d5   : > { %v5325_v1 = vsub.f32 0.0, %v5229_v56  ;;  %v4656_v22 = vadd.f32 1e-12, %v4560_v53  ;;  %v2742_v34 = vmax.f32 %v2550_v24, 0.0  ;;  %v6804_v40 = vpop.eup %6803  ;;  %6815 = vpow2.f32 %v3440_v61 }
 0x2d6   : > { %v4122_v20 = vmul.f32 1.442695, %v3987_v30  ;;  %v4371_v36 = vadd.f32 -1.1652529, %v3987_v30  ;;  %v6806_v26 = vpop.eup %6805  ;;  %v2884_v13 = vmul.f32 100.0, %v2692_v38  ;;  %v10266_v59 = vmul.f32 2.0, %v9895_v29 }
 0x2d7   : > { %v5628_v6 = vsel %vm5475_vm13, %v5325_v1, 0.0  ;;  %6817 = vlog2.f32 %v4656_v22  ;;  %v3606_v4 = vmul.f32 100.0, %v2742_v34  ;;  %v2359_v17 = vmul.f32 2.0, %v9918_v49  ;;  %v12339_v38 = vld [vmem:[#allocation48_spill] sm:$0xff] }
 0x2d8   : > { %v10263_v12 = vadd.f32 %v10206_v8, %v5628_v6  ;;  %6819 = vpow2.f32 %v4122_v20  ;;  %v4467_v60 = vmax.f32 %v4371_v36, -27.631021  ;;  %v6808_v50 = vpop.eup %6807  ;;  %v3163_v25 = vmul.f32 0.6931472, %v6804_v40  ;;  %v12337_v8 = vld [vmem:[#allocation188_spill] sm:$0xff]  ;;  %v10283_v6 = vpop.f32.mrb[73].mxu1 }
 0x2d9   : > { %v2694_v44 = vmax.f32 %v1636_v18, 0.0  ;;  %v3702_v61 = vadd.f32 1.0, %v3606_v4  ;;  %v10270_v30 = vmul.f32 2.0, %v9927_v16  ;;  %v4273_v56 = vmul.f32 0.31184378, %v6808_v50  ;;  %v12340_v49 = vld [vmem:[#allocation16_spill] sm:$0xff] }
 0x2da   : > { %v10273_v9 = vmul.f32 %v4467_v60, %v12337_v8  ;;  %v2455_v24 = vsub.f32 %v12339_v38, %v2359_v17  ;;  %v2980_v29 = vadd.f32 1.0, %v2884_v13  ;;  %v2361_v40 = vmul.f32 2.0, %v9932_v0  ;;  %v12342_v60 = vld [vmem:[#allocation50_spill] sm:$0xff] }
 0x2db   : > { %6821 = vlog2.f32 %v3702_v61  ;;  %v10281_v18 = vmul.f32 0.31184378, %v6806_v26  ;;  %v4561_v16 = vsub.f32 1.0, %v4273_v56  ;;  %v3446_v36 = vmul.f32 1.442695, %v3265_v23  ;;  %v10291_v23 = vpop.f32.mrb[73].mxu0 }
 0x2dc   : > { %v6810_v22 = vpop.eup %6809  ;;  %6823 = vpow2.f32 %v3444_v33  ;;  %v2551_v34 = vmax.f32 %v2455_v24, 0.0  ;;  %v3267_v4 = vmul.f32 -0.505, %v3163_v25  ;;  %v2457_v17 = vsub.f32 %v12342_v60, %v2361_v40  ;;  %v12344_v61 = vld [vmem:[#allocation142_spill] sm:$0xff] }
 0x2dd   : > { %12341 = vst [vmem:[#allocation32_spill] sm:$0xff] %v10281_v18  ;;  %v4785_v20 = vmul.f32 0.6931472, %v6810_v22  ;;  %v6812_v13 = vpop.eup %6811  ;;  %v4657_v38 = vadd.f32 1e-12, %v4561_v16  ;;  %v12343_v26 = vsub.f32 1.0, %v12324_v62  ;;  %6825 = vlog2.f32 %v2980_v29 }
 0x2de   : > { %v2743_v0 = vmax.f32 %v2551_v34, 0.0  ;;  %v6814_v1 = vpop.eup %6813  ;;  %vm11860_vm14 = vcmp.lt.s32.totalorder %v10241_v35, 300  ;;  %v2886_v56 = vmul.f32 100.0, %v2694_v44  ;;  %v2553_v24 = vmax.f32 %v2457_v17, 0.0 }
 0x2df   : > { %v5134_v33 = vmul.f32 %v12343_v26, %v4785_v20  ;;  %v6816_v25 = vpop.eup %6815  ;;  %6827 = vlog2.f32 %v4657_v38  ;;  %v5402_v22 = vadd.s32 104, %v9567_v55  ;;  %v3837_v60 = vmul.f32 0.6931472, %v6814_v1 }
 0x2e0   : > { %6829 = vpow2.f32 %v3446_v36  ;;  %v3450_v62 = vmul.f32 1.442695, %v3267_v4  ;;  %v3607_v20 = vmul.f32 100.0, %v2743_v0  ;;  %v10297_v44 = vmul.f32 0.31184378, %v6812_v13 }
 0x2e1   : > { %v6818_v16 = vpop.eup %6817  ;;  %v5230_v34 = vadd.f32 %v5134_v33, %v10209_v54  ;;  %6831 = vpow2.f32 %v12344_v61  ;;  %v3988_v17 = vmul.f32 -0.505, %v3837_v60  ;;  %v2982_v40 = vadd.f32 1.0, %v2886_v56 }
 0x2e2   : > { %v6820_v26 = vpop.eup %6819  ;;  %12345 = vst [vmem:[#allocation73_spill] sm:$0xff] %v10297_v44  ;;  %v4789_v29 = vmul.f32 0.6931472, %v6818_v16  ;;  %v2745_v38 = vmax.f32 %v2553_v24, 0.0  ;;  %v12346_v18 = vsub.f32 1.0, %v12328_v3  ;;  %v3703_v54 = vadd.f32 1.0, %v3607_v20 }
 0x2e3   : > { %v5326_v50 = vsub.f32 0.0, %v5230_v34  ;;  %v4275_v53 = vmul.f32 0.31184378, %v6820_v26  ;;  %v4124_v11 = vmul.f32 1.442695, %v3988_v17  ;;  %6833 = vpow2.f32 %v3450_v62 }
 0x2e4   : > { %v5136_v1 = vmul.f32 %v12346_v18, %v4789_v29  ;;  %v4372_v5 = vadd.f32 -1.1652529, %v3988_v17  ;;  %v10304_v13 = vmul.f32 2.0, %v9938_v28  ;;  %v3609_v28 = vmul.f32 100.0, %v2745_v38  ;;  %v12351_v29 = vld [vmem:[#allocation190_spill] sm:$0xff]  ;;  %v10327_v38 = vpop.f32.mrb[74].mxu0 }
 0x2e5   : > { %v6822_v36 = vpop.eup %6821  ;;  %v5629_v4 = vsel %vm5475_vm13, %v5326_v50, 0.0  ;;  %v4563_v61 = vsub.f32 1.0, %v4275_v53  ;;  %6835 = vpow2.f32 %v4124_v11  ;;  %v12347_v50 = vld [vmem:[#allocation19_spill] sm:$0xff]  ;;  %v10314_v53 = vpop.f32.mrb[74].mxu1 }
 0x2e6   : > { %v6824_v0 = vpop.eup %6823  ;;  %v10307_v33 = vadd.f32 %v10248_v43, %v5629_v4  ;;  %v5232_v56 = vadd.f32 %v5136_v1, %v10227_v42  ;;  %v4468_v3 = vmax.f32 %v4372_v5, -27.631021  ;;  %6837 = vlog2.f32 %v2982_v40 }
 0x2e7   : > { %v4659_v24 = vadd.f32 1e-12, %v4563_v61  ;;  %v3841_v60 = vmul.f32 0.6931472, %v6822_v36  ;;  %6839 = vlog2.f32 %v3703_v54  ;;  %v6826_v62 = vpop.eup %6825  ;;  %v10316_v43 = vmul.f32 0.31184378, %v6816_v25 }
 0x2e8   : > { %v5328_v16 = vsub.f32 0.0, %v5232_v56  ;;  %v10312_v34 = vmul.f32 %v4468_v3, %v12347_v50  ;;  %v10319_v42 = vadd.s32 %v9554_v63, %v5402_v22  ;;  %v10321_v20 = vmul.f32 0.31184378, %v6824_v0 }
 0x2e9   : > { %12348 = vst [vmem:[#allocation112_spill] sm:$0xff] %v10316_v43  ;;  %6841 = vlog2.f32 %v4659_v24  ;;  %v3990_v5 = vmul.f32 -0.505, %v3841_v60  ;;  %v6828_v11 = vpop.eup %6827  ;;  %v3705_v26 = vadd.f32 1.0, %v3609_v28  ;;  %v12352_v36 = vsub.f32 %v12338_v21, %v10266_v59  ;;  %v12356_v21 = vld [vmem:[#allocation51_spill] sm:$0xff] }
 0x2ea   : > { %12349 = vst [vmem:[#allocation109_spill] sm:$0xff] %v10319_v42  ;;  %12350 = vst [vmem:[#allocation14_spill] sm:$0xff] %v10321_v20  ;;  %v5631_v40 = vsel %vm11860_vm14, %v5328_v16, 0.0  ;;  %v6830_v1 = vpop.eup %6829  ;;  %v4791_v54 = vmul.f32 0.6931472, %v6828_v11  ;;  %v2362_v3 = vmul.f32 2.0, %v9959_v58 }
 0x2eb   : > { %v10330_v25 = vadd.f32 %v10263_v12, %v5631_v40  ;;  %v4128_v22 = vmul.f32 1.442695, %v3990_v5  ;;  %v1637_v4 = vmax.f32 %v12352_v36, 0.0  ;;  %v10335_v61 = vpop.eup %6831  ;;  %v3165_v0 = vmul.f32 0.6931472, %v6826_v62  ;;  %v12362_v20 = vld [vmem:[#allocation21_spill] sm:$0xff] }
 0x2ec   : > { %12353 = vst [vmem:[#allocation113_spill] sm:$0xff] %v10335_v61  ;;  %v4374_v56 = vadd.f32 -1.1652529, %v3990_v5  ;;  %6843 = vlog2.f32 %v3705_v26  ;;  %v12354_v24 = vsub.f32 1.0, %v12336_v37  ;;  %v5403_v12 = vadd.s32 112, %v9567_v55  ;;  %v12357_v37 = vld [vmem:[#allocation53_spill] sm:$0xff] }
 0x2ed   : > { %6845 = vpow2.f32 %v4128_v22  ;;  %v2364_v16 = vmul.f32 2.0, %v9980_v7  ;;  %v10343_v11 = vmul.f32 0.31184378, %v6830_v1  ;;  %v2458_v40 = vsub.f32 %v12356_v21, %v2362_v3  ;;  %v6834_v62 = vpop.eup %6833 }
 0x2ee   : > { %v5137_v60 = vmul.f32 %v12354_v24, %v4791_v54  ;;  %v4470_v59 = vmax.f32 %v4374_v56, -27.631021  ;;  %v2695_v26 = vmax.f32 %v1637_v4, 0.0  ;;  %v3268_v36 = vmul.f32 -0.505, %v3165_v0  ;;  %v12358_v24 = vld [vmem:[#allocation84_spill] sm:$0xff] }
 0x2ef   : > { %12355 = vst [vmem:[#allocation117_spill] sm:$0xff] %v10343_v11  ;;  %v2460_v54 = vsub.f32 %v12357_v37, %v2364_v16  ;;  %v6836_v22 = vpop.eup %6835  ;;  %v12359_v7 = vsub.f32 %v12340_v49, %v10270_v30  ;;  %v2554_v56 = vmax.f32 %v2458_v40, 0.0  ;;  %vm5477_vm15 = vcmp.lt.s32.totalorder %v10319_v42, 300  ;;  %v12361_v4 = vld [vmem:[#allocation155_spill] sm:$0xff]  ;;  %v10369_v0 = vpop.f32.mrb[75].mxu0 }
 0x2f0   : > { %v5233_v58 = vadd.f32 %v5137_v60, %v10257_v52  ;;  %v10350_v18 = vmul.f32 %v4470_v59, %v12358_v24  ;;  %v6838_v28 = vpop.eup %6837  ;;  %v4276_v21 = vmul.f32 0.31184378, %v6836_v22  ;;  %v10357_v52 = vadd.s32 %v9554_v63, %v5403_v12  ;;  %v10364_v22 = vpop.f32.mrb[75].mxu1 }
 0x2f1   : > { %v1639_v1 = vmax.f32 %v12359_v7, 0.0  ;;  %v2321_v60 = vmul.f32 2.0, %v12361_v4  ;;  %v6840_v16 = vpop.eup %6839  ;;  %v5404_v59 = vadd.s32 120, %v9567_v55  ;;  %v2746_v37 = vmax.f32 %v2554_v56, 0.0 }
 0x2f2   : > { %v5329_v3 = vsub.f32 0.0, %v5233_v58  ;;  %12360 = vst [vmem:[#allocation33_spill] sm:$0xff] %v10357_v52  ;;  %v2556_v5 = vmax.f32 %v2460_v54, 0.0  ;;  %v4564_v40 = vsub.f32 1.0, %v4276_v21  ;;  %v2887_v58 = vmul.f32 100.0, %v2695_v26 }
 0x2f3   : > { %v6842_v30 = vpop.eup %6841  ;;  %v3843_v7 = vmul.f32 0.6931472, %v6840_v16  ;;  %v3452_v17 = vmul.f32 1.442695, %v3268_v36  ;;  %v2697_v61 = vmax.f32 %v1639_v1, 0.0  ;;  %v2417_v43 = vsub.f32 %v12362_v20, %v2321_v60 }
 0x2f4   : > { %v5632_v49 = vsel %vm11860_vm14, %v5329_v3, 0.0  ;;  %v4795_v4 = vmul.f32 0.6931472, %v6842_v30  ;;  %v4660_v11 = vadd.f32 1e-12, %v4564_v40  ;;  %v12364_v26 = vsub.f32 1.0, %v12337_v8 }
 0x2f5   : > { %v10367_v12 = vadd.f32 %v10307_v33, %v5632_v49  ;;  %v3169_v56 = vmul.f32 0.6931472, %v6838_v28  ;;  %v3991_v54 = vmul.f32 -0.505, %v3843_v7  ;;  %v10372_v3 = vmul.f32 0.31184378, %v6834_v62 }
 0x2f6   : > { %v6844_v44 = vpop.eup %6843  ;;  %v5139_v21 = vmul.f32 %v12364_v26, %v4795_v4  ;;  %v3610_v16 = vmul.f32 100.0, %v2746_v37  ;;  %v2748_v35 = vmax.f32 %v2556_v5, 0.0  ;;  %6847 = vlog2.f32 %v4660_v11  ;;  %v12365_v5 = vld [vmem:[#allocation136_spill] sm:$0xff] }
 0x2f7   : > { %12363 = vst [vmem:[#allocation85_spill] sm:$0xff] %v10372_v3  ;;  %v6846_v33 = vpop.eup %6845  ;;  %v2983_v30 = vadd.f32 1.0, %v2887_v58  ;;  %v4130_v36 = vmul.f32 1.442695, %v3991_v54  ;;  %v4375_v1 = vadd.f32 -1.1652529, %v3991_v54  ;;  %6849 = vpow2.f32 %v3452_v17 }
 0x2f8   : > { %v5235_v49 = vadd.f32 %v5139_v21, %v10273_v9  ;;  %v4278_v28 = vmul.f32 0.31184378, %v6846_v33  ;;  %v2889_v40 = vmul.f32 100.0, %v2697_v61  ;;  %v3270_v7 = vmul.f32 -0.505, %v3169_v56  ;;  %v10385_v21 = vpop.f32.mrb[76].mxu1 }
 0x2f9   : > { %6851 = vpow2.f32 %v4130_v36  ;;  %v4471_v20 = vmax.f32 %v4375_v1, -27.631021  ;;  %v3847_v62 = vmul.f32 0.6931472, %v6844_v44  ;;  %v3706_v8 = vadd.f32 1.0, %v3610_v16  ;;  %v12366_v16 = vld [vmem:[#allocation23_spill] sm:$0xff] }
 0x2fa   : > { %v5331_v60 = vsub.f32 0.0, %v5235_v49  ;;  %v4566_v47 = vsub.f32 1.0, %v4278_v28  ;;  %v3612_v4 = vmul.f32 100.0, %v2748_v35  ;;  %6853 = vlog2.f32 %v2983_v30  ;;  %v12367_v30 = vld [vmem:[#allocation28_spill] sm:$0xff]  ;;  %v10389_v36 = vpop.f32.mrb[76].mxu0 }
 0x2fb   : > { %v10378_v37 = vmul.f32 %v4471_v20, %v12365_v5  ;;  %v3993_v11 = vmul.f32 -0.505, %v3847_v62  ;;  %v2513_v58 = vmax.f32 %v2417_v43, 0.0  ;;  %6855 = vlog2.f32 %v3706_v8  ;;  %v12370_v20 = vld [vmem:[#allocation54_spill] sm:$0xff] }
 0x2fc   : > { %v5634_v9 = vsel %vm5477_vm15, %v5331_v60, 0.0  ;;  %v4662_v17 = vadd.f32 1e-12, %v4566_v47  ;;  %v3708_v61 = vadd.f32 1.0, %v3612_v4  ;;  %v2985_v35 = vadd.f32 1.0, %v2889_v40  ;;  %v12371_v40 = vld [vmem:[#allocation6_spill] sm:$0xff] }
 0x2fd   : > { %v10383_v56 = vadd.f32 %v10330_v25, %v5634_v9  ;;  %v4134_v44 = vmul.f32 1.442695, %v3993_v11  ;;  %v4377_v54 = vadd.f32 -1.1652529, %v3993_v11  ;;  %v2705_v26 = vmax.f32 %v2513_v58, 0.0  ;;  %v12372_v11 = vld [vmem:[#allocation64_spill] sm:$0xff] }
 0x2fe   : > { %6857 = vlog2.f32 %v4662_v17  ;;  %v2365_v33 = vmul.f32 2.0, %v12366_v16  ;;  %v2318_v43 = vmul.f32 2.0, %v12367_v30  ;;  %v12368_v1 = vsub.f32 %v12351_v29, %v10304_v13  ;;  %v12373_v17 = vld [vmem:[#allocation163_spill] sm:$0xff] }
 0x2ff   : > { %6859 = vpow2.f32 %v4134_v44  ;;  %v4473_v47 = vmax.f32 %v4377_v54, -27.631021  ;;  %v3569_v49 = vmul.f32 100.0, %v2705_v26  ;;  %v10395_v28 = vadd.s32 %v9554_v63, %v5404_v59 }
 0x300   : > { %v1640_v25 = vmax.f32 %v12368_v1, 0.0  ;;  %6861 = vlog2.f32 %v3708_v61  ;;  %v2461_v62 = vsub.f32 %v12370_v20, %v2365_v33  ;;  %v2414_v60 = vsub.f32 %v12371_v40, %v2318_v43  ;;  %v6848_v8 = vpop.eup %6847  ;;  %v12374_v33 = vld [vmem:[#allocation58_spill] sm:$0xff] }
 0x301   : > { %12369 = vst [vmem:[#allocation172_spill] sm:$0xff] %v10395_v28  ;;  %v3456_v4 = vmul.f32 1.442695, %v3270_v7  ;;  %v10400_v58 = vmul.f32 %v4473_v47, %v12372_v11  ;;  %v3665_v9 = vadd.f32 1.0, %v3569_v49  ;;  %v2367_v44 = vmul.f32 2.0, %v12373_v17  ;;  %v6850_v54 = vpop.eup %6849 }
 0x302   : > { %v4797_v13 = vmul.f32 0.6931472, %v6848_v8  ;;  %6863 = vlog2.f32 %v2985_v35  ;;  %v2557_v29 = vmax.f32 %v2461_v62, 0.0  ;;  %v2510_v26 = vmax.f32 %v2414_v60, 0.0 }
 0x303   : > { %v6852_v59 = vpop.eup %6851  ;;  %v2698_v16 = vmax.f32 %v1640_v25, 0.0  ;;  %6865 = vlog2.f32 %v3665_v9  ;;  %v2463_v30 = vsub.f32 %v12374_v33, %v2367_v44  ;;  %v12375_v7 = vsub.f32 1.0, %v12347_v50 }
 0x304   : > { %v4279_v47 = vmul.f32 0.31184378, %v6852_v59  ;;  %v2749_v1 = vmax.f32 %v2557_v29, 0.0  ;;  %v2702_v49 = vmax.f32 %v2510_v26, 0.0  ;;  %v6854_v20 = vpop.eup %6853  ;;  %6867 = vpow2.f32 %v3456_v4 }
 0x305   : > { %v5140_v43 = vmul.f32 %v12375_v7, %v4797_v13  ;;  %v10408_v40 = vadd.s32 128, %v9567_v55  ;;  %v12376_v35 = vlaneseq  ;;  %v2559_v60 = vmax.f32 %v2463_v30, 0.0  ;;  %v6856_v8 = vpop.eup %6855 }
 0x306   : > { %v10413_v25 = vmul.f32 0.31184378, %v6850_v54  ;;  %vm11859_vm0 = vcmp.lt.s32.totalorder %v10357_v52, 300  ;;  %v4567_v50 = vsub.f32 1.0, %v4279_v47  ;;  %v3613_v17 = vmul.f32 100.0, %v2749_v1  ;;  %v12378_v47 = vld [vmem:[#allocation29_spill] sm:$0xff] }
 0x307   : > { %v10411_v62 = vand.u32 127, %v12376_v35  ;;  %v5236_v9 = vadd.f32 %v5140_v43, %v10312_v34  ;;  %v10417_v44 = vmul.f32 100.0, %v2698_v16  ;;  %v3849_v13 = vmul.f32 0.6931472, %v6856_v8 }
 0x308   : > { %12377 = vst [vmem:[#allocation35_spill] sm:$0xff] %v10413_v25  ;;  %v3566_v4 = vmul.f32 100.0, %v2702_v49  ;;  %v2751_v29 = vmax.f32 %v2559_v60, 0.0  ;;  %v6858_v26 = vpop.eup %6857  ;;  %v3171_v33 = vmul.f32 0.6931472, %v6854_v20  ;;  %v3709_v35 = vadd.f32 1.0, %v3613_v17 }
 0x309   : > { %v5332_v59 = vsub.f32 0.0, %v5236_v9  ;;  %v4663_v7 = vadd.f32 1e-12, %v4567_v50  ;;  %v6860_v30 = vpop.eup %6859  ;;  %v4801_v61 = vmul.f32 0.6931472, %v6858_v26  ;;  %v2327_v1 = vmul.f32 2.0, %v12378_v47 }
 0x30a   : > { %v3994_v54 = vmul.f32 -0.505, %v3849_v13  ;;  %v3662_v25 = vadd.f32 1.0, %v3566_v4  ;;  %v3615_v3 = vmul.f32 100.0, %v2751_v29  ;;  %v6862_v34 = vpop.eup %6861  ;;  %v4281_v16 = vmul.f32 0.31184378, %v6860_v30 }
 0x30b   : > { %v5635_v43 = vsel %vm5477_vm15, %v5332_v59, 0.0  ;;  %6869 = vlog2.f32 %v4663_v7  ;;  %v12379_v20 = vsub.f32 1.0, %v12358_v24  ;;  %v3853_v13 = vmul.f32 0.6931472, %v6862_v34  ;;  %v12380_v7 = vld [vmem:[#allocation7_spill] sm:$0xff] }
 0x30c   : > { %v10423_v49 = vadd.f32 %v10367_v12, %v5635_v43  ;;  %v4136_v8 = vmul.f32 1.442695, %v3994_v54  ;;  %v4378_v9 = vadd.f32 -1.1652529, %v3994_v54  ;;  %v6864_v50 = vpop.eup %6863  ;;  %v4569_v17 = vsub.f32 1.0, %v4281_v16 }
 0x30d   : > { %v5142_v60 = vmul.f32 %v12379_v20, %v4801_v61  ;;  %6871 = vlog2.f32 %v3709_v35  ;;  %v3711_v4 = vadd.f32 1.0, %v3615_v3  ;;  %v6866_v29 = vpop.eup %6865  ;;  %v2423_v30 = vsub.f32 %v12380_v7, %v2327_v1  ;;  %v12381_v20 = vld [vmem:[#allocation118_spill] sm:$0xff]  ;;  %v10432_v35 = vpop.f32.mrb[77].mxu1  ;;  %v12383_v7 = vld [vmem:[#allocation59_spill] sm:$0xff] }
 0x30e   : > { %6873 = vpow2.f32 %v4136_v8  ;;  %v4474_v59 = vmax.f32 %v4378_v9, -27.631021  ;;  %v4665_v47 = vadd.f32 1e-12, %v4569_v17  ;;  %v3996_v12 = vmul.f32 -0.505, %v3853_v13  ;;  %v6868_v24 = vpop.eup %6867 }
 0x30f   : > { %v5238_v26 = vadd.f32 %v5142_v60, %v10350_v18  ;;  %v3767_v43 = vmul.f32 0.6931472, %v6866_v29  ;;  %6875 = vlog2.f32 %v3662_v25  ;;  %v2519_v34 = vmax.f32 %v2423_v30, 0.0  ;;  %v12382_v25 = vld [vmem:[#allocation104_spill] sm:$0xff]  ;;  %v10439_v17 = vpop.f32.mrb[77].mxu0 }
 0x310   : > { %v10430_v54 = vmul.f32 %v4474_v59, %v12381_v20  ;;  %6877 = vlog2.f32 %v3711_v4  ;;  %v10434_v3 = vmul.f32 -0.505, %v3171_v33  ;;  %v4140_v18 = vmul.f32 1.442695, %v3996_v12 }
 0x311   : > { %v5334_v61 = vsub.f32 0.0, %v5238_v26  ;;  %6879 = vlog2.f32 %v4665_v47  ;;  %v4380_v16 = vadd.f32 -1.1652529, %v3996_v12  ;;  %v3953_v60 = vmul.f32 -0.505, %v3767_v43  ;;  %v12385_v43 = vld [vmem:[#allocation94_spill] sm:$0xff] }
 0x312   : > { %v2711_v8 = vmax.f32 %v2519_v34, 0.0  ;;  %v2368_v9 = vmul.f32 2.0, %v12382_v25  ;;  %v10444_v4 = vmul.f32 0.6931472, %v6864_v50  ;;  %6881 = vpow2.f32 %v4140_v18  ;;  %v12386_v25 = vld [vmem:[#allocation5_spill] sm:$0xff] }
 0x313   : > { %v5637_v1 = vsel %vm11859_vm0, %v5334_v61, 0.0  ;;  %v4476_v33 = vmax.f32 %v4380_v16, -27.631021  ;;  %v4054_v29 = vmul.f32 1.442695, %v3953_v60  ;;  %v2324_v34 = vmul.f32 2.0, %v10088_v57 }
 0x314   : > { %v10442_v13 = vadd.f32 %v10383_v56, %v5637_v1  ;;  %v4337_v26 = vadd.f32 -1.1652529, %v3953_v60  ;;  %v3575_v59 = vmul.f32 100.0, %v2711_v8  ;;  %v2464_v30 = vsub.f32 %v12383_v7, %v2368_v9  ;;  %v12389_v57 = vld [vmem:[#allocation115_spill] sm:$0xff] }
 0x315   : > { %v6870_v47 = vpop.eup %6869  ;;  %v10447_v12 = vmul.f32 0.31184378, %v6868_v24  ;;  %v10450_v61 = vmul.f32 %v4476_v33, %v12385_v43  ;;  %v2370_v56 = vmul.f32 2.0, %v10113_v48  ;;  %6883 = vpow2.f32 %v4054_v29  ;;  %v12387_v24 = vld [vmem:[#allocation63_spill] sm:$0xff] }
 0x316   : > { %v4803_v1 = vmul.f32 0.6931472, %v6870_v47  ;;  %v4433_v50 = vmax.f32 %v4337_v26, -27.631021  ;;  %v3671_v18 = vadd.f32 1.0, %v3575_v59  ;;  %v10455_v60 = vadd.s32 256, %v10411_v62 }
 0x317   : > { %12384 = vst [vmem:[#allocation101_spill] sm:$0xff] %v10447_v12  ;;  %v6872_v16 = vpop.eup %6871  ;;  %v2560_v8 = vmax.f32 %v2464_v30, 0.0  ;;  %v2420_v9 = vsub.f32 %v12386_v25, %v2324_v34  ;;  %v2466_v7 = vsub.f32 %v12387_v24, %v2370_v56  ;;  %v12388_v33 = vsub.f32 1.0, %v12365_v5 }
 0x318   : > { %v6874_v12 = vpop.eup %6873  ;;  %v10462_v14 = vmul.f32 %v4433_v50, %v12389_v57  ;;  %v3855_v48 = vmul.f32 0.6931472, %v6872_v16  ;;  %6885 = vlog2.f32 %v3671_v18  ;;  %vm11861_vm1 = vcmp.lt.s32.totalorder %v10395_v28, 300 }
 0x319   : > { %v5143_v42 = vmul.f32 %v12388_v33, %v4803_v1  ;;  %v6876_v29 = vpop.eup %6875  ;;  %v4282_v26 = vmul.f32 0.31184378, %v6874_v12  ;;  %v2752_v62 = vmax.f32 %v2560_v8, 0.0  ;;  %v2516_v59 = vmax.f32 %v2420_v9, 0.0 }
 0x31a   : > { %v2562_v30 = vmax.f32 %v2466_v7, 0.0  ;;  %v6878_v47 = vpop.eup %6877  ;;  %v3997_v56 = vmul.f32 -0.505, %v3855_v48  ;;  %v3761_v25 = vmul.f32 0.6931472, %v6876_v29  ;;  %v10467_v5 = vadd.s32 136, %v9567_v55 }
 0x31b   : > { %v5239_v34 = vadd.f32 %v5143_v42, %v10378_v37  ;;  %v6880_v1 = vpop.eup %6879  ;;  %v4570_v50 = vsub.f32 1.0, %v4282_v26  ;;  %v3859_v24 = vmul.f32 0.6931472, %v6878_v47  ;;  %v3616_v16 = vmul.f32 100.0, %v2752_v62  ;;  %v10479_v47 = vpop.f32.mrb[78].mxu0 }
 0x31c   : > { %v2708_v18 = vmax.f32 %v2516_v59, 0.0  ;;  %v4807_v31 = vmul.f32 0.6931472, %v6880_v1  ;;  %v4142_v19 = vmul.f32 1.442695, %v3997_v56  ;;  %v2754_v12 = vmax.f32 %v2562_v30, 0.0  ;;  %v6882_v8 = vpop.eup %6881 }
 0x31d   : > { %v5335_v33 = vsub.f32 0.0, %v5239_v34  ;;  %v4666_v9 = vadd.f32 1e-12, %v4570_v50  ;;  %v10471_v7 = vadd.s32 %v9554_v63, %v10408_v40  ;;  %v4381_v42 = vadd.f32 -1.1652529, %v3997_v56  ;;  %v10477_v59 = vpop.f32.mrb[78].mxu1 }
 0x31e   : > { %v3950_v37 = vmul.f32 -0.505, %v3761_v25  ;;  %v12391_v29 = vsub.f32 1.0, %v12372_v11  ;;  %v4284_v62 = vmul.f32 0.31184378, %v6882_v8  ;;  %6887 = vpow2.f32 %v4142_v19  ;;  %12392 = vst [vmem:[#allocation173_spill] sm:$0xff] %v10477_v59 }
 0x31f   : > { %12390 = vst [vmem:[#allocation17_spill] sm:$0xff] %v10471_v7  ;;  %v5638_v48 = vsel %vm11859_vm0, %v5335_v33, 0.0  ;;  %12393 = vst [vmem:[#allocation110_spill] sm:$0xff] %v10479_v47  ;;  %6889 = vlog2.f32 %v4666_v9  ;;  %v4477_v40 = vmax.f32 %v4381_v42, -27.631021  ;;  %v6884_v56 = vpop.eup %6883  ;;  %v3712_v19 = vadd.f32 1.0, %v3616_v16 }
 0x320   : > { %v5145_v26 = vmul.f32 %v12391_v29, %v4807_v31  ;;  %v10482_v30 = vadd.f32 %v10423_v49, %v5638_v48  ;;  %v4048_v34 = vmul.f32 1.442695, %v3950_v37  ;;  %v4572_v1 = vsub.f32 1.0, %v4284_v62  ;;  %v12394_v31 = vld [vmem:[#allocation156_spill] sm:$0xff]  ;;  %v10488_v59 = vpop.f32.mrb[79].mxu1 }
 0x321   : > { %v4334_v50 = vadd.f32 -1.1652529, %v3950_v37  ;;  %v3999_v33 = vmul.f32 -0.505, %v3859_v24  ;;  %v4241_v11 = vmul.f32 0.31184378, %v6884_v56  ;;  %v10486_v8 = vmul.f32 %v4477_v40, %v12394_v31 }
 0x322   : > { %v5241_v25 = vadd.f32 %v5145_v26, %v10400_v58  ;;  %6891 = vpow2.f32 %v4048_v34  ;;  %v6886_v29 = vpop.eup %6885  ;;  %v4668_v47 = vadd.f32 1e-12, %v4572_v1  ;;  %v3572_v48 = vmul.f32 100.0, %v2708_v18  ;;  %12395 = vst [vmem:[#allocation36_spill] sm:$0xff] %v10488_v59  ;;  %v12396_v24 = vld [vmem:[#allocation116_spill] sm:$0xff]  ;;  %v12397_v1 = vld [vmem:[#allocation18_spill] sm:$0xff] }
 0x323   : > { %v4430_v49 = vmax.f32 %v4334_v50, -27.631021  ;;  %v4529_v9 = vsub.f32 1.0, %v4241_v11  ;;  %v4146_v42 = vmul.f32 1.442695, %v3999_v33  ;;  %6893 = vlog2.f32 %v3712_v19 }
 0x324   : > { %v5337_v52 = vsub.f32 0.0, %v5241_v25  ;;  %v4383_v39 = vadd.f32 -1.1652529, %v3999_v33  ;;  %6895 = vlog2.f32 %v4668_v47  ;;  %v3779_v26 = vmul.f32 0.6931472, %v6886_v29  ;;  %v10504_v33 = vpop.f32.mrb[79].mxu0 }
 0x325   : > { %v10493_v37 = vmul.f32 %v4430_v49, %v12396_v24  ;;  %v4625_v62 = vadd.f32 1e-12, %v4529_v9  ;;  %6897 = vpow2.f32 %v4146_v42  ;;  %v3668_v34 = vadd.f32 1.0, %v3572_v48  ;;  %12398 = vst [vmem:[#allocation174_spill] sm:$0xff] %v10504_v33  ;;  %v12401_v42 = vld [vmem:[#allocation9_spill] sm:$0xff] }
 0x326   : > { %v5640_v58 = vsel %vm11861_vm1, %v5337_v52, 0.0  ;;  %v4479_v18 = vmax.f32 %v4383_v39, -27.631021  ;;  %v3959_v40 = vmul.f32 -0.505, %v3779_v26  ;;  %v3618_v56 = vmul.f32 100.0, %v2754_v12 }
 0x327   : > { %v10496_v16 = vadd.f32 %v10442_v13, %v5640_v58  ;;  %v2333_v25 = vmul.f32 2.0, %v10115_v45  ;;  %6899 = vlog2.f32 %v4625_v62  ;;  %v2371_v52 = vmul.f32 2.0, %v10146_v10  ;;  %v12399_v12 = vld [vmem:[#allocation8_spill] sm:$0xff]  ;;  %v12400_v45 = vld [vmem:[#allocation65_spill] sm:$0xff] }
 0x328   : > { %v10500_v50 = vmul.f32 %v4479_v18, %v12397_v1  ;;  %v2330_v47 = vmul.f32 2.0, %v10156_v46  ;;  %v6888_v13 = vpop.eup %6887  ;;  %v4066_v11 = vmul.f32 1.442695, %v3959_v40  ;;  %v4343_v19 = vadd.f32 -1.1652529, %v3959_v40 }
 0x329   : > { %6901 = vlog2.f32 %v3668_v34  ;;  %v3714_v39 = vadd.f32 1.0, %v3618_v56  ;;  %v6890_v29 = vpop.eup %6889  ;;  %v4285_v49 = vmul.f32 0.31184378, %v6888_v13  ;;  %v2429_v48 = vsub.f32 %v12399_v12, %v2333_v25 }
 0x32a   : > { %v2467_v9 = vsub.f32 %v12400_v45, %v2371_v52  ;;  %v2426_v58 = vsub.f32 %v12401_v42, %v2330_v47  ;;  %v4809_v26 = vmul.f32 0.6931472, %v6890_v29  ;;  %6903 = vpow2.f32 %v4066_v11  ;;  %v12403_v52 = vld [vmem:[#allocation120_spill] sm:$0xff] }
 0x32b   : > { %v4439_v10 = vmax.f32 %v4343_v19, -27.631021  ;;  %v10510_v46 = vmul.f32 2.0, %v10174_v15  ;;  %v4573_v18 = vsub.f32 1.0, %v4285_v49  ;;  %6905 = vlog2.f32 %v3714_v39  ;;  %v12404_v45 = vld [vmem:[#allocation68_spill] sm:$0xff] }
 0x32c   : > { %v6892_v62 = vpop.eup %6891  ;;  %v2525_v40 = vmax.f32 %v2429_v48, 0.0  ;;  %v2563_v34 = vmax.f32 %v2467_v9, 0.0  ;;  %v12402_v56 = vsub.f32 1.0, %v12381_v20  ;;  %vm5480_vm0 = vcmp.lt.s32.totalorder %v10471_v7, 300 }
 0x32d   : > { %v4238_v25 = vmul.f32 0.31184378, %v6892_v62  ;;  %v10516_v12 = vmul.f32 %v4439_v10, %v12403_v52  ;;  %v2522_v47 = vmax.f32 %v2426_v58, 0.0  ;;  %v6894_v11 = vpop.eup %6893  ;;  %v4669_v19 = vadd.f32 1e-12, %v4573_v18 }
 0x32e   : > { %v5146_v13 = vmul.f32 %v12402_v56, %v4809_v26  ;;  %v2717_v29 = vmax.f32 %v2525_v40, 0.0  ;;  %v2755_v15 = vmax.f32 %v2563_v34, 0.0  ;;  %v2469_v49 = vsub.f32 %v12404_v45, %v10510_v46  ;;  %v6896_v39 = vpop.eup %6895 }
 0x32f   : > { %v4526_v9 = vsub.f32 1.0, %v4238_v25  ;;  %v3861_v20 = vmul.f32 0.6931472, %v6894_v11  ;;  %v2714_v42 = vmax.f32 %v2522_v47, 0.0  ;;  %v6898_v26 = vpop.eup %6897  ;;  %v4813_v56 = vmul.f32 0.6931472, %v6896_v39 }
 0x330   : > { %v5242_v48 = vadd.f32 %v5146_v13, %v10430_v54  ;;  %6907 = vlog2.f32 %v4669_v19  ;;  %v3581_v62 = vmul.f32 100.0, %v2717_v29  ;;  %v3619_v10 = vmul.f32 100.0, %v2755_v15 }
 0x331   : > { %vm5498_vm14 = vcmp.lt.s32.totalorder %v10455_v60, 300  ;;  %v4622_v58 = vadd.f32 1e-12, %v4526_v9  ;;  %v4287_v18 = vmul.f32 0.31184378, %v6898_v26  ;;  %v3578_v40 = vmul.f32 100.0, %v2714_v42  ;;  %v6900_v34 = vpop.eup %6899 }
 0x332   : > { %v5338_v33 = vsub.f32 0.0, %v5242_v48  ;;  %v12405_v46 = vsub.f32 1.0, %v12385_v43  ;;  %v4000_v59 = vmul.f32 -0.505, %v3861_v20  ;;  %v3677_v54 = vadd.f32 1.0, %v3581_v62 }
 0x333   : > { %v3715_v13 = vadd.f32 1.0, %v3619_v10  ;;  %v6902_v25 = vpop.eup %6901  ;;  %v4727_v11 = vmul.f32 0.6931472, %v6900_v34  ;;  %6909 = vlog2.f32 %v4622_v58  ;;  %v4575_v19 = vsub.f32 1.0, %v4287_v18  ;;  %v10532_v58 = vpop.f32.mrb[80].mxu1  ;;  %v12407_v34 = vld [vmem:[#allocation24_spill] sm:$0xff] }
 0x334   : > { %v5148_v45 = vmul.f32 %v12405_v46, %v4813_v56  ;;  %v5641_v47 = vsel %vm11861_vm1, %v5338_v33, 0.0  ;;  %v4148_v39 = vmul.f32 1.442695, %v4000_v59  ;;  %v4384_v48 = vadd.f32 -1.1652529, %v4000_v59  ;;  %v6904_v9 = vpop.eup %6903  ;;  %vm5504_vm1 = vmand %vm5465_vm3, %vm5498_vm14 }
 0x335   : > { %v10527_v29 = vadd.f32 %v10482_v30, %v5641_v47  ;;  %v12406_v43 = vsub.f32 1.0, %v12389_v57  ;;  %v4671_v42 = vadd.f32 1e-12, %v4575_v19  ;;  %v3773_v26 = vmul.f32 0.6931472, %v6902_v25  ;;  %v6906_v56 = vpop.eup %6905 }
 0x336   : > { %v5244_v15 = vadd.f32 %v5148_v45, %v10450_v61  ;;  %6911 = vlog2.f32 %v3677_v54  ;;  %v4247_v33 = vmul.f32 0.31184378, %v6904_v9  ;;  %v4480_v10 = vmax.f32 %v4384_v48, -27.631021  ;;  %v10540_v45 = vpop.f32.mrb[80].mxu0 }
 0x337   : > { %v5105_v20 = vmul.f32 %v12406_v43, %v4727_v11  ;;  %6913 = vpow2.f32 %v4148_v39  ;;  %v3956_v61 = vmul.f32 -0.505, %v3773_v26  ;;  %v3865_v18 = vmul.f32 0.6931472, %v6906_v56 }
 0x338   : > { %v5340_v62 = vsub.f32 0.0, %v5244_v15  ;;  %6915 = vlog2.f32 %v4671_v42  ;;  %v4535_v57 = vsub.f32 1.0, %v4247_v33  ;;  %v10538_v46 = vmul.f32 %v4480_v10, %v12407_v34 }
 0x339   : > { %v5201_v30 = vadd.f32 %v5105_v20, %v10462_v14  ;;  %6917 = vlog2.f32 %v3715_v13  ;;  %v10547_v25 = vadd.s32 %v9554_v63, %v10467_v5  ;;  %v4060_v14 = vmul.f32 1.442695, %v3956_v61 }
 0x33a   : > { %v5643_v59 = vsel %vm5480_vm0, %v5340_v62, 0.0  ;;  %v4340_v47 = vadd.f32 -1.1652529, %v3956_v61  ;;  %v6908_v11 = vpop.eup %6907  ;;  %v4631_v19 = vadd.f32 1e-12, %v4535_v57  ;;  %v3674_v39 = vadd.f32 1.0, %v3578_v40 }
 0x33b   : > { %v10543_v54 = vadd.f32 %v10496_v16, %v5643_v59  ;;  %v4002_v15 = vmul.f32 -0.505, %v3865_v18  ;;  %v2565_v48 = vmax.f32 %v2469_v49, 0.0  ;;  %v5297_v9 = vsub.f32 0.0, %v5201_v30  ;;  %v12410_v62 = vld [vmem:[#allocation121_spill] sm:$0xff] }
 0x33c   : > { %v4815_v43 = vmul.f32 0.6931472, %v6908_v11  ;;  %6919 = vpow2.f32 %v4060_v14  ;;  %v4436_v13 = vmax.f32 %v4340_v47, -27.631021  ;;  %v10554_v56 = vmul.f32 1.442695, %v10434_v3 }
 0x33d   : > { %6921 = vlog2.f32 %v4631_v19  ;;  %v4152_v16 = vmul.f32 1.442695, %v4002_v15  ;;  %v4386_v5 = vadd.f32 -1.1652529, %v4002_v15  ;;  %v2757_v42 = vmax.f32 %v2565_v48, 0.0  ;;  %v6910_v26 = vpop.eup %6909  ;;  %v12412_v19 = vld [vmem:[#allocation124_spill] sm:$0xff] }
 0x33e   : > { %v12409_v40 = vsub.f32 1.0, %v12394_v31  ;;  %v10559_v33 = vmul.f32 %v4436_v13, %v12410_v62  ;;  %6923 = vlog2.f32 %v3674_v39  ;;  %v4721_v10 = vmul.f32 0.6931472, %v6910_v26 }
 0x33f   : > { %6925 = vpow2.f32 %v4152_v16  ;;  %v4482_v30 = vmax.f32 %v4386_v5, -27.631021  ;;  %v3621_v61 = vmul.f32 100.0, %v2757_v42  ;;  %v5600_v59 = vsel %vm5504_vm1, %v5297_v9, 0.0  ;;  %vm5501_vm1 = vmand %vm5464_vm2, %vm5498_vm14 }
 0x340   : > { %v5149_v49 = vmul.f32 %v12409_v40, %v4815_v43  ;;  %v6912_v18 = vpop.eup %6911  ;;  %vm5481_vm3 = vcmp.lt.s32.totalorder %v10547_v25, 300  ;;  %v10564_v3 = vadd.s32 144, %v9567_v55  ;;  %v2339_v31 = vmul.f32 2.0, %v10182_v32 }
 0x341   : > { %v6914_v14 = vpop.eup %6913  ;;  %v12411_v47 = vsub.f32 1.0, %v12396_v24  ;;  %v10570_v15 = vmul.f32 %v4482_v30, %v12412_v19  ;;  %v3791_v39 = vmul.f32 0.6931472, %v6912_v18  ;;  %v3717_v48 = vadd.f32 1.0, %v3621_v61 }
 0x342   : > { %v5245_v57 = vadd.f32 %v5149_v49, %v10486_v8  ;;  %v6916_v43 = vpop.eup %6915  ;;  %v4288_v13 = vmul.f32 0.31184378, %v6914_v14  ;;  %v12413_v8 = vld [vmem:[#allocation10_spill] sm:$0xff]  ;;  %v2374_v16 = vmul.f32 2.0, %v10220_v51 }
 0x343   : > { %v5102_v11 = vmul.f32 %v12411_v47, %v4721_v10  ;;  %v2435_v20 = vsub.f32 %v12413_v8, %v2339_v31  ;;  %v6918_v5 = vpop.eup %6917  ;;  %v4819_v32 = vmul.f32 0.6931472, %v6916_v43  ;;  %v3965_v26 = vmul.f32 -0.505, %v3791_v39  ;;  %v10586_v31 = vpop.f32.mrb[81].mxu1 }
 0x344   : > { %v5341_v9 = vsub.f32 0.0, %v5245_v57  ;;  %6927 = vlog2.f32 %v3717_v48  ;;  %v4576_v49 = vsub.f32 1.0, %v4288_v13  ;;  %v3867_v10 = vmul.f32 0.6931472, %v6918_v5  ;;  %v12416_v48 = vld [vmem:[#allocation69_spill] sm:$0xff] }
 0x345   : > { %v5198_v42 = vadd.f32 %v5102_v11, %v10493_v37  ;;  %v2531_v30 = vmax.f32 %v2435_v20, 0.0  ;;  %v12415_v37 = vsub.f32 1.0, %v12397_v1  ;;  %v4078_v57 = vmul.f32 1.442695, %v3965_v26 }
 0x346   : > { %v5644_v24 = vsel %vm5480_vm0, %v5341_v9, 0.0  ;;  %v6920_v14 = vpop.eup %6919  ;;  %v4672_v47 = vadd.f32 1e-12, %v4576_v49  ;;  %v4349_v11 = vadd.f32 -1.1652529, %v3965_v26  ;;  %v2470_v43 = vsub.f32 %v12416_v48, %v2374_v16 }
 0x347   : > { %v10582_v61 = vadd.f32 %v10527_v29, %v5644_v24  ;;  %v5294_v51 = vsub.f32 0.0, %v5198_v42  ;;  %v5151_v18 = vmul.f32 %v12415_v37, %v4819_v32  ;;  %v4003_v39 = vmul.f32 -0.505, %v3867_v10  ;;  %v6922_v9 = vpop.eup %6921  ;;  %v10590_v29 = vpop.f32.mrb[81].mxu0 }
 0x348   : > { %v4244_v20 = vmul.f32 0.31184378, %v6920_v14  ;;  %6929 = vpow2.f32 %v4078_v57  ;;  %v6924_v5 = vpop.eup %6923  ;;  %v4739_v42 = vmul.f32 0.6931472, %v6922_v9  ;;  %v4445_v32 = vmax.f32 %v4349_v11, -27.631021 }
 0x349   : > { %v5597_v13 = vsel %vm5501_vm1, %v5294_v51, 0.0  ;;  %v5247_v8 = vadd.f32 %v5151_v18, %v10500_v50  ;;  %6931 = vlog2.f32 %v4672_v47  ;;  %v6926_v24 = vpop.eup %6925  ;;  %v4154_v49 = vmul.f32 1.442695, %v4003_v39  ;;  %v12418_v50 = vld [vmem:[#allocation125_spill] sm:$0xff]  ;;  %vm5510_vm1 = vmand %vm5467_vm5, %vm5498_vm14 }
 0x34a   : > { %v10592_v1 = vadd.f32 %v5600_v59, %v5597_v13  ;;  %v4532_v26 = vsub.f32 1.0, %v4244_v20  ;;  %v4387_v10 = vadd.f32 -1.1652529, %v4003_v39  ;;  %v12417_v16 = vsub.f32 1.0, %v12403_v52  ;;  %v12419_v13 = vld [vmem:[#allocation148_spill] sm:$0xff]  ;;  %vm10658_vm5 = vmand %vm5466_vm4, %vm5498_vm14 }
 0x34b   : > { %v5343_v40 = vsub.f32 0.0, %v5247_v8  ;;  %v4290_v37 = vmul.f32 0.31184378, %v6926_v24  ;;  %v10597_v18 = vmul.f32 %v4445_v32, %v12418_v50  ;;  %v3785_v57 = vmul.f32 0.6931472, %v6924_v5 }
 0x34c   : > { %v5111_v51 = vmul.f32 %v12417_v16, %v4739_v42  ;;  %v4628_v14 = vadd.f32 1e-12, %v4532_v26  ;;  %6933 = vpow2.f32 %v4154_v49  ;;  %v4483_v47 = vmax.f32 %v4387_v10, -27.631021  ;;  %v12421_v16 = vld [vmem:[#allocation11_spill] sm:$0xff] }
 0x34d   : > { %v5646_v59 = vsel %vm5481_vm3, %v5343_v40, 0.0  ;;  %v4578_v39 = vsub.f32 1.0, %v4290_v37  ;;  %v3962_v52 = vmul.f32 -0.505, %v3785_v57  ;;  %v2723_v20 = vmax.f32 %v2531_v30, 0.0 }
 0x34e   : > { %v10602_v11 = vadd.f32 %v10543_v54, %v5646_v59  ;;  %v10605_v48 = vadd.f32 %v5111_v51, %v10516_v12  ;;  %v6928_v9 = vpop.eup %6927  ;;  %6935 = vlog2.f32 %v4628_v14  ;;  %v10608_v8 = vmul.f32 %v4483_v47, %v12419_v13 }
 0x34f   : > { %v2566_v5 = vmax.f32 %v2470_v43, 0.0  ;;  %v10611_v42 = vadd.f32 1.0, %v10417_v44  ;;  %v4674_v32 = vadd.f32 1e-12, %v4578_v39  ;;  %v4072_v24 = vmul.f32 1.442695, %v3962_v52 }
 0x350   : > { %v2336_v54 = vmul.f32 2.0, %v10224_v2  ;;  %v4346_v40 = vadd.f32 -1.1652529, %v3962_v52  ;;  %v3871_v26 = vmul.f32 0.6931472, %v6928_v9  ;;  %v3587_v12 = vmul.f32 100.0, %v2723_v20 }
 0x351   : > { %v2758_v49 = vmax.f32 %v2566_v5, 0.0  ;;  %6937 = vlog2.f32 %v4674_v32  ;;  %v10616_v10 = vadd.s32 %v9554_v63, %v10564_v3  ;;  %v2376_v30 = vmul.f32 2.0, %v10245_v41  ;;  %v10620_v43 = vpop.f32.mrb[82].mxu1  ;;  %v10622_v44 = vpop.f32.mrb[82].mxu0  ;;  %v12422_v9 = vld [vmem:[#allocation78_spill] sm:$0xff]  ;;  %v12423_v5 = vld [vmem:[#allocation129_spill] sm:$0xff] }
 0x352   : > { %v2432_v51 = vsub.f32 %v12421_v16, %v2336_v54  ;;  %v6930_v37 = vpop.eup %6929  ;;  %6939 = vpow2.f32 %v4072_v24  ;;  %v4442_v2 = vmax.f32 %v4346_v40, -27.631021  ;;  %v4005_v57 = vmul.f32 -0.505, %v3871_v26 }
 0x353   : > { %12420 = vst [vmem:[#allocation38_spill] sm:$0xff] %v10616_v10  ;;  %v3683_v59 = vadd.f32 1.0, %v3587_v12  ;;  %v6932_v14 = vpop.eup %6931  ;;  %v4253_v47 = vmul.f32 0.31184378, %v6930_v37  ;;  %v3622_v39 = vmul.f32 100.0, %v2758_v49  ;;  %v2472_v3 = vsub.f32 %v12422_v9, %v2376_v30  ;;  %v12425_v9 = vld [vmem:[#allocation100_spill] sm:$0xff] }
 0x354   : > { %v2528_v52 = vmax.f32 %v2432_v51, 0.0  ;;  %v4821_v20 = vmul.f32 0.6931472, %v6932_v14  ;;  %v10626_v32 = vmul.f32 %v4442_v2, %v12423_v5  ;;  %v4158_v41 = vmul.f32 1.442695, %v4005_v57 }
 0x355   : > { %v4389_v54 = vadd.f32 -1.1652529, %v4005_v57  ;;  %v4541_v16 = vsub.f32 1.0, %v4253_v47  ;;  %6941 = vlog2.f32 %v3683_v59  ;;  %v3718_v7 = vadd.f32 1.0, %v3622_v39 }
 0x356   : > { %v2720_v28 = vmax.f32 %v2528_v52, 0.0  ;;  %v6934_v24 = vpop.eup %6933  ;;  %v12424_v40 = vsub.f32 1.0, %v12407_v34  ;;  %6943 = vpow2.f32 %v4158_v41  ;;  %v2568_v49 = vmax.f32 %v2472_v3, 0.0 }
 0x357   : > { %v4485_v12 = vmax.f32 %v4389_v54, -27.631021  ;;  %v4637_v51 = vadd.f32 1e-12, %v4541_v16  ;;  %v4291_v37 = vmul.f32 0.31184378, %v6934_v24  ;;  %6945 = vlog2.f32 %v3718_v7 }
 0x358   : > { %v5152_v26 = vmul.f32 %v12424_v40, %v4821_v20  ;;  %v3584_v30 = vmul.f32 100.0, %v2720_v28  ;;  %v6936_v14 = vpop.eup %6935  ;;  %v5408_v59 = vadd.s32 152, %v9567_v55  ;;  %v2760_v47 = vmax.f32 %v2568_v49, 0.0 }
 0x359   : > { %v10632_v57 = vmul.f32 %v4485_v12, %v12425_v9  ;;  %v4733_v39 = vmul.f32 0.6931472, %v6936_v14  ;;  %vm5482_vm2 = vcmp.lt.s32.totalorder %v10616_v10, 300  ;;  %6947 = vlog2.f32 %v4637_v51 }
 0x35a   : > { %v5248_v2 = vadd.f32 %v5152_v26, %v10538_v46  ;;  %v4579_v34 = vsub.f32 1.0, %v4291_v37  ;;  %v3680_v52 = vadd.f32 1.0, %v3584_v30  ;;  %v5303_v3 = vsub.f32 0.0, %v10605_v48 }
 0x35b   : > { %v3624_v7 = vmul.f32 100.0, %v2760_v47  ;;  %v2345_v28 = vmul.f32 2.0, %v10252_v27  ;;  %v6938_v41 = vpop.eup %6937  ;;  %v12426_v46 = vsub.f32 1.0, %v12410_v62  ;;  %v2377_v24 = vmul.f32 2.0, %v10283_v6 }
 0x35c   : > { %v5344_v20 = vsub.f32 0.0, %v5248_v2  ;;  %v4675_v16 = vadd.f32 1e-12, %v4579_v34  ;;  %6949 = vlog2.f32 %v3680_v52  ;;  %v6940_v40 = vpop.eup %6939  ;;  %v4825_v12 = vmul.f32 0.6931472, %v6938_v41  ;;  %v10669_v41 = vpop.f32.mrb[83].mxu1 }
 0x35d   : > { %v5108_v54 = vmul.f32 %v12426_v46, %v4733_v39  ;;  %v10648_v27 = vadd.s32 %v9554_v63, %v5408_v59  ;;  %v3720_v49 = vadd.f32 1.0, %v3624_v7  ;;  %v4250_v6 = vmul.f32 0.31184378, %v6940_v40  ;;  %v12432_v59 = vld [vmem:[#allocation34_spill] sm:$0xff] }
 0x35e   : > { %v5647_v48 = vsel %vm5481_vm3, %v5344_v20, 0.0  ;;  %6951 = vlog2.f32 %v4675_v16  ;;  %v12431_v14 = vsub.f32 1.0, %v12412_v19  ;;  %v2441_v47 = vsub.f32 %v12432_v59, %v2345_v28  ;;  %v10677_v59 = vpop.f32.mrb[83].mxu0 }
 0x35f   : > { %v10651_v62 = vadd.f32 %v10582_v61, %v5647_v48  ;;  %v5204_v51 = vadd.f32 %v5108_v54, %v10559_v33  ;;  %6953 = vlog2.f32 %v3720_v49  ;;  %v12433_v61 = vld [vmem:[#allocation82_spill] sm:$0xff]  ;;  %v6942_v34 = vpop.eup %6941  ;;  %v5606_v33 = vsel %vm5510_vm1, %v5303_v3, 0.0  ;;  %v12434_v3 = vld [vmem:[#allocation12_spill] sm:$0xff]  ;;  %vm5516_vm1 = vmand %vm5469_vm7, %vm5498_vm14 }
 0x360   : > { %v5154_v2 = vmul.f32 %v12431_v14, %v4825_v12  ;;  %v2473_v39 = vsub.f32 %v12433_v61, %v2377_v24  ;;  %v4538_v20 = vsub.f32 1.0, %v4250_v6  ;;  %v10667_v7 = vmul.f32 2.0, %v10291_v23  ;;  %v6944_v46 = vpop.eup %6943  ;;  %vm5513_vm7 = vmand %vm5468_vm6, %vm5498_vm14 }
 0x361   : > { %v5300_v52 = vsub.f32 0.0, %v5204_v51  ;;  %v3803_v16 = vmul.f32 0.6931472, %v6942_v34  ;;  %v2537_v19 = vmax.f32 %v2441_v47, 0.0  ;;  %v6946_v26 = vpop.eup %6945  ;;  %v4293_v48 = vmul.f32 0.31184378, %v6944_v46 }
 0x362   : > { %v5250_v54 = vadd.f32 %v5154_v2, %v10570_v15  ;;  %v2569_v40 = vmax.f32 %v2473_v39, 0.0  ;;  %v4634_v24 = vadd.f32 1e-12, %v4538_v20  ;;  %v2438_v12 = vsub.f32 %v12434_v3, %v10667_v7 }
 0x363   : > { %v5603_v28 = vsel %vm10658_vm5, %v5300_v52, 0.0  ;;  %v3971_v51 = vmul.f32 -0.505, %v3803_v16  ;;  %v3873_v6 = vmul.f32 0.6931472, %v6946_v26  ;;  %v6948_v37 = vpop.eup %6947  ;;  %v4581_v15 = vsub.f32 1.0, %v4293_v48  ;;  %vm5522_vm5 = vmand %vm5471_vm9, %vm5498_vm14 }
 0x364   : > { %v5696_v23 = vadd.f32 %v10592_v1, %v5603_v28  ;;  %v5346_v49 = vsub.f32 0.0, %v5250_v54  ;;  %6955 = vlog2.f32 %v4634_v24  ;;  %v2729_v14 = vmax.f32 %v2537_v19, 0.0  ;;  %vm5528_vm9 = vmand %vm5473_vm11, %vm5498_vm14 }
 0x365   : > { %v2761_v2 = vmax.f32 %v2569_v40, 0.0  ;;  %v4751_v47 = vmul.f32 0.6931472, %v6948_v37  ;;  %v4090_v39 = vmul.f32 1.442695, %v3971_v51  ;;  %v12435_v46 = vsub.f32 1.0, %v12418_v50  ;;  %vm5525_vm11 = vmand %vm5472_vm10, %vm5498_vm14 }
 0x366   : > { %v5649_v30 = vsel %vm5482_vm2, %v5346_v49, 0.0  ;;  %v10681_v61 = vadd.f32 %v5696_v23, %v5606_v33  ;;  %v6950_v34 = vpop.eup %6949  ;;  %v4677_v52 = vadd.f32 1e-12, %v4581_v15  ;;  %v4355_v20 = vadd.f32 -1.1652529, %v3971_v51  ;;  %v10689_v49 = vpop.f32.mrb[84].mxu1 }
 0x367   : > { %v10684_v1 = vadd.f32 %v10602_v11, %v5649_v30  ;;  %v4006_v7 = vmul.f32 -0.505, %v3873_v6  ;;  %v5117_v54 = vmul.f32 %v12435_v46, %v4751_v47  ;;  %6957 = vpow2.f32 %v4090_v39  ;;  %v12436_v51 = vld [vmem:[#allocation134_spill] sm:$0xff]  ;;  %v10694_v15 = vpop.f32.mrb[84].mxu0 }
 0x368   : > { %v3797_v16 = vmul.f32 0.6931472, %v6950_v34  ;;  %v3593_v19 = vmul.f32 100.0, %v2729_v14  ;;  %v6952_v40 = vpop.eup %6951  ;;  %6959 = vlog2.f32 %v4677_v52  ;;  %v4451_v26 = vmax.f32 %v4355_v20, -27.631021  ;;  %v12438_v34 = vld [vmem:[#allocation25_spill] sm:$0xff] }
 0x369   : > { %v4160_v28 = vmul.f32 1.442695, %v4006_v7  ;;  %v4390_v33 = vadd.f32 -1.1652529, %v4006_v7  ;;  %v6954_v24 = vpop.eup %6953  ;;  %v5213_v48 = vadd.f32 %v5117_v54, %v10597_v18  ;;  %v4827_v3 = vmul.f32 0.6931472, %v6952_v40 }
 0x36a   : > { %v3968_v11 = vmul.f32 -0.505, %v3797_v16  ;;  %v3689_v23 = vadd.f32 1.0, %v3593_v19  ;;  %v10692_v6 = vmul.f32 %v4451_v26, %v12436_v51  ;;  %v3877_v37 = vmul.f32 0.6931472, %v6954_v24  ;;  %v12439_v24 = vld [vmem:[#allocation71_spill] sm:$0xff] }
 0x36b   : > { %6961 = vpow2.f32 %v4160_v28  ;;  %v4486_v50 = vmax.f32 %v4390_v33, -27.631021  ;;  %v12437_v14 = vsub.f32 1.0, %v12419_v13  ;;  %v2379_v18 = vmul.f32 2.0, %v10314_v53 }
 0x36c   : > { %v4084_v47 = vmul.f32 1.442695, %v3968_v11  ;;  %v4352_v39 = vadd.f32 -1.1652529, %v3968_v11  ;;  %v4008_v20 = vmul.f32 -0.505, %v3877_v37  ;;  %6963 = vlog2.f32 %v3689_v23 }
 0x36d   : > { %v5155_v30 = vmul.f32 %v12437_v14, %v4827_v3  ;;  %v10700_v52 = vmul.f32 %v4486_v50, %v12438_v34  ;;  %v3625_v7 = vmul.f32 100.0, %v2761_v2  ;;  %v10703_v46 = vmul.f32 -0.505, %v10444_v4  ;;  %v12440_v11 = vld [vmem:[#allocation88_spill] sm:$0xff]  ;;  %v10710_v2 = vpop.f32.mrb[85].mxu1  ;;  %v10738_v14 = vpop.f32.mrb[85].mxu0 }
 0x36e   : > { %6965 = vpow2.f32 %v4084_v47  ;;  %v4448_v16 = vmax.f32 %v4352_v39, -27.631021  ;;  %v6956_v19 = vpop.eup %6955  ;;  %v4164_v13 = vmul.f32 1.442695, %v4008_v20  ;;  %v4392_v40 = vadd.f32 -1.1652529, %v4008_v20 }
 0x36f   : > { %v5251_v54 = vadd.f32 %v5155_v30, %v10608_v8  ;;  %v3721_v26 = vadd.f32 1.0, %v3625_v7  ;;  %v2534_v28 = vmax.f32 %v2438_v12, 0.0  ;;  %v4745_v53 = vmul.f32 0.6931472, %v6956_v19  ;;  %v12443_v7 = vld [vmem:[#allocation154_spill] sm:$0xff] }
 0x370   : > { %v10707_v3 = vmul.f32 %v4448_v16, %v12439_v24  ;;  %v2475_v23 = vsub.f32 %v12440_v11, %v2379_v18  ;;  %v5309_v4 = vsub.f32 0.0, %v5213_v48  ;;  %vm5483_vm4 = vcmp.lt.s32.totalorder %v10648_v27, 300 }
 0x371   : > { %v5347_v33 = vsub.f32 0.0, %v5251_v54  ;;  %6967 = vpow2.f32 %v4164_v13  ;;  %v4488_v8 = vmax.f32 %v4392_v40, -27.631021  ;;  %v2726_v50 = vmax.f32 %v2534_v28, 0.0  ;;  %v6958_v37 = vpop.eup %6957 }
 0x372   : > { %v12442_v30 = vsub.f32 1.0, %v12423_v5  ;;  %6969 = vlog2.f32 %v3721_v26  ;;  %v2571_v39 = vmax.f32 %v2475_v23, 0.0  ;;  %v6960_v48 = vpop.eup %6959  ;;  %v4259_v20 = vmul.f32 0.31184378, %v6958_v37 }
 0x373   : > { %v5650_v12 = vsel %vm5482_vm2, %v5347_v33, 0.0  ;;  %v10725_v54 = vmul.f32 %v4488_v8, %v12443_v7  ;;  %v3590_v16 = vmul.f32 100.0, %v2726_v50  ;;  %v4831_v13 = vmul.f32 0.6931472, %v6960_v48 }
 0x374   : > { %v5114_v47 = vmul.f32 %v12442_v30, %v4745_v53  ;;  %v10722_v18 = vadd.f32 %v10651_v62, %v5650_v12  ;;  %v10729_v40 = vadd.s32 160, %v9567_v55  ;;  %v2763_v28 = vmax.f32 %v2571_v39, 0.0 }
 0x375   : > { %v6962_v5 = vpop.eup %6961  ;;  %v5612_v33 = vsel %vm5516_vm1, %v5309_v4, 0.0  ;;  %v4547_v62 = vsub.f32 1.0, %v4259_v20  ;;  %v3686_v53 = vadd.f32 1.0, %v3590_v16  ;;  %v2351_v11 = vmul.f32 2.0, %v10327_v38  ;;  %v12446_v4 = vld [vmem:[#allocation40_spill] sm:$0xff]  ;;  %vm5519_vm1 = vmand %vm5470_vm8, %vm5498_vm14 }
 0x376   : > { %v5210_v19 = vadd.f32 %v5114_v47, %v10626_v32  ;;  %v12445_v8 = vsub.f32 1.0, %v12425_v9  ;;  %v4294_v50 = vmul.f32 0.31184378, %v6962_v5  ;;  %v3627_v37 = vmul.f32 100.0, %v2763_v28  ;;  %v6964_v12 = vpop.eup %6963 }
 0x377   : > { %v4643_v30 = vadd.f32 1e-12, %v4547_v62  ;;  %6971 = vlog2.f32 %v3686_v53  ;;  %v2447_v47 = vsub.f32 %v12446_v4, %v2351_v11  ;;  %v2380_v39 = vmul.f32 2.0, %v10364_v22  ;;  %v12447_v22 = vld [vmem:[#allocation89_spill] sm:$0xff] }
 0x378   : > { %v5306_v23 = vsub.f32 0.0, %v5210_v19  ;;  %v5157_v32 = vmul.f32 %v12445_v8, %v4831_v13  ;;  %v6966_v48 = vpop.eup %6965  ;;  %v4582_v38 = vsub.f32 1.0, %v4294_v50  ;;  %v3815_v19 = vmul.f32 0.6931472, %v6964_v12 }
 0x379   : > { %6973 = vlog2.f32 %v4643_v30  ;;  %v4256_v13 = vmul.f32 0.31184378, %v6966_v48  ;;  %v3723_v28 = vadd.f32 1.0, %v3627_v37  ;;  %v2543_v62 = vmax.f32 %v2447_v47, 0.0 }
 0x37a   : > { %v5609_v20 = vsel %vm5513_vm7, %v5306_v23, 0.0  ;;  %v5253_v16 = vadd.f32 %v5157_v32, %v10632_v57  ;;  %v4678_v26 = vadd.f32 1e-12, %v4582_v38  ;;  %v3977_v8 = vmul.f32 -0.505, %v3815_v19  ;;  %vm5534_vm7 = vmand %vm5475_vm13, %vm5498_vm14 }
 0x37b   : > { %v5702_v9 = vadd.f32 %v10681_v61, %v5609_v20  ;;  %v6968_v53 = vpop.eup %6967  ;;  %v4544_v10 = vsub.f32 1.0, %v4256_v13  ;;  %6975 = vlog2.f32 %v3723_v28  ;;  %v2476_v23 = vsub.f32 %v12447_v22, %v2380_v39  ;;  %v10752_v20 = vpop.f32.mrb[86].mxu1  ;;  %vm10999_vm13 = vmand %vm5477_vm15, %vm5498_vm14 }
 0x37c   : > { %v5349_v5 = vsub.f32 0.0, %v5253_v16  ;;  %v6970_v4 = vpop.eup %6969  ;;  %6977 = vlog2.f32 %v4678_v26  ;;  %v4296_v61 = vmul.f32 0.31184378, %v6968_v53  ;;  %v4102_v32 = vmul.f32 1.442695, %v3977_v8  ;;  %v10760_v22 = vpop.f32.mrb[86].mxu0 }
 0x37d   : > { %v10744_v11 = vadd.f32 %v5702_v9, %v5612_v33  ;;  %v4640_v37 = vadd.f32 1e-12, %v4544_v10  ;;  %v4361_v12 = vadd.f32 -1.1652529, %v3977_v8  ;;  %v3879_v30 = vmul.f32 0.6931472, %v6970_v4 }
 0x37e   : > { %v5652_v57 = vsel %vm5483_vm4, %v5349_v5, 0.0  ;;  %v4584_v47 = vsub.f32 1.0, %v4296_v61  ;;  %6979 = vpow2.f32 %v4102_v32  ;;  %v2735_v33 = vmax.f32 %v2543_v62, 0.0  ;;  %v12448_v10 = vld [vmem:[#allocation135_spill] sm:$0xff]  ;;  %v12449_v62 = vld [vmem:[#allocation37_spill] sm:$0xff] }
 0x37f   : > { %v10750_v50 = vadd.f32 %v10684_v1, %v5652_v57  ;;  %v2572_v48 = vmax.f32 %v2476_v23, 0.0  ;;  %6981 = vlog2.f32 %v4640_v37  ;;  %v4457_v39 = vmax.f32 %v4361_v12, -27.631021  ;;  %v12450_v37 = vld [vmem:[#allocation103_spill] sm:$0xff] }
 0x380   : > { %v4009_v16 = vmul.f32 -0.505, %v3879_v30  ;;  %v2348_v38 = vmul.f32 2.0, %v10369_v0  ;;  %v4680_v19 = vadd.f32 1e-12, %v4584_v47  ;;  %v3599_v9 = vmul.f32 100.0, %v2735_v33 }
 0x381   : > { %v2764_v13 = vmax.f32 %v2572_v48, 0.0  ;;  %v2382_v1 = vmul.f32 2.0, %v10385_v21  ;;  %v6972_v28 = vpop.eup %6971  ;;  %v10757_v5 = vmul.f32 %v4457_v39, %v12448_v10  ;;  %v10765_v48 = vadd.s32 %v9554_v63, %v10729_v40  ;;  %v12451_v39 = vld [vmem:[#allocation131_spill] sm:$0xff] }
 0x382   : > { %v4166_v26 = vmul.f32 1.442695, %v4009_v16  ;;  %v4393_v8 = vadd.f32 -1.1652529, %v4009_v16  ;;  %v2444_v53 = vsub.f32 %v12449_v62, %v2348_v38  ;;  %6983 = vlog2.f32 %v4680_v19 }
 0x383   : > { %v3809_v23 = vmul.f32 0.6931472, %v6972_v28  ;;  %v3695_v4 = vadd.f32 1.0, %v3599_v9  ;;  %v3628_v57 = vmul.f32 100.0, %v2764_v13  ;;  %v6974_v0 = vpop.eup %6973  ;;  %v2478_v21 = vsub.f32 %v12450_v37, %v2382_v1 }
 0x384   : > { %6985 = vpow2.f32 %v4166_v26  ;;  %v4489_v61 = vmax.f32 %v4393_v8, -27.631021  ;;  %v2540_v32 = vmax.f32 %v2444_v53, 0.0  ;;  %v4763_v12 = vmul.f32 0.6931472, %v6974_v0 }
 0x385   : > { %v3974_v30 = vmul.f32 -0.505, %v3809_v23  ;;  %6987 = vlog2.f32 %v3695_v4  ;;  %v3724_v47 = vadd.f32 1.0, %v3628_v57  ;;  %v6976_v33 = vpop.eup %6975  ;;  %v2574_v19 = vmax.f32 %v2478_v21, 0.0 }
 0x386   : > { %v10768_v16 = vmul.f32 %v4489_v61, %v12451_v39  ;;  %v2732_v38 = vmax.f32 %v2540_v32, 0.0  ;;  %v6978_v9 = vpop.eup %6977  ;;  %v12452_v13 = vsub.f32 1.0, %v12436_v51  ;;  %v3883_v8 = vmul.f32 0.6931472, %v6976_v33 }
 0x387   : > { %v4096_v26 = vmul.f32 1.442695, %v3974_v30  ;;  %v4358_v1 = vadd.f32 -1.1652529, %v3974_v30  ;;  %v4833_v62 = vmul.f32 0.6931472, %v6978_v9  ;;  %6989 = vlog2.f32 %v3724_v47 }
 0x388   : > { %v5123_v28 = vmul.f32 %v12452_v13, %v4763_v12  ;;  %v3596_v53 = vmul.f32 100.0, %v2732_v38  ;;  %v2766_v23 = vmax.f32 %v2574_v19, 0.0  ;;  %v6980_v4 = vpop.eup %6979  ;;  %v4011_v0 = vmul.f32 -0.505, %v3883_v8  ;;  %v12454_v30 = vld [vmem:[#allocation144_spill] sm:$0xff] }
 0x389   : > { %6991 = vpow2.f32 %v4096_v26  ;;  %v4454_v57 = vmax.f32 %v4358_v1, -27.631021  ;;  %v6982_v61 = vpop.eup %6981  ;;  %v12453_v32 = vsub.f32 1.0, %v12438_v34  ;;  %v4265_v21 = vmul.f32 0.31184378, %v6980_v4 }
 0x38a   : > { %v5219_v40 = vadd.f32 %v5123_v28, %v10692_v6  ;;  %v3692_v51 = vadd.f32 1.0, %v3596_v53  ;;  %v3630_v12 = vmul.f32 100.0, %v2766_v23  ;;  %v4757_v13 = vmul.f32 0.6931472, %v6982_v61 }
 0x38b   : > { %v5158_v37 = vmul.f32 %v12453_v32, %v4833_v62  ;;  %vm5484_vm6 = vcmp.lt.s32.totalorder %v10765_v48, 300  ;;  %v10777_v47 = vmul.f32 %v4454_v57, %v12454_v30  ;;  %v4170_v33 = vmul.f32 1.442695, %v4011_v0 }
 0x38c   : > { %v4553_v6 = vsub.f32 1.0, %v4265_v21  ;;  %v4395_v19 = vadd.f32 -1.1652529, %v4011_v0  ;;  %6993 = vlog2.f32 %v3692_v51  ;;  %v6984_v9 = vpop.eup %6983  ;;  %v12455_v28 = vsub.f32 1.0, %v12439_v24 }
 0x38d   : > { %v5254_v38 = vadd.f32 %v5158_v37, %v10700_v52  ;;  %6995 = vpow2.f32 %v4170_v33  ;;  %v10783_v26 = vadd.s32 168, %v9567_v55  ;;  %v3726_v1 = vadd.f32 1.0, %v3630_v12  ;;  %v12459_v33 = vld [vmem:[#allocation92_spill] sm:$0xff] }
 0x38e   : > { %v5120_v34 = vmul.f32 %v12455_v28, %v4757_v13  ;;  %v6986_v8 = vpop.eup %6985  ;;  %v5315_v62 = vsub.f32 0.0, %v5219_v40  ;;  %v4837_v23 = vmul.f32 0.6931472, %v6984_v9  ;;  %v4649_v4 = vadd.f32 1e-12, %v4553_v6 }
 0x38f   : > { %v5350_v53 = vsub.f32 0.0, %v5254_v38  ;;  %v6988_v57 = vpop.eup %6987  ;;  %v4297_v24 = vmul.f32 0.31184378, %v6986_v8  ;;  %v4491_v61 = vmax.f32 %v4395_v19, -27.631021  ;;  %6997 = vlog2.f32 %v3726_v1 }
 0x390   : > { %v5216_v0 = vadd.f32 %v5120_v34, %v10707_v3  ;;  %v12458_v37 = vsub.f32 1.0, %v12443_v7  ;;  %6999 = vlog2.f32 %v4649_v4  ;;  %v3827_v51 = vmul.f32 0.6931472, %v6988_v57 }
 0x391   : > { %v5653_v32 = vsel %vm5483_vm4, %v5350_v53, 0.0  ;;  %v4585_v13 = vsub.f32 1.0, %v4297_v24  ;;  %v10802_v38 = vmul.f32 %v4491_v61, %v12459_v33  ;;  %v6990_v6 = vpop.eup %6989  ;;  %v5618_v19 = vsel %vm5522_vm5, %v5315_v62, 0.0  ;;  %v12460_v62 = vld [vmem:[#allocation46_spill] sm:$0xff]  ;;  %vm5531_vm5 = vmand %vm5474_vm12, %vm5498_vm14 }
 0x392   : > { %v5160_v21 = vmul.f32 %v12458_v37, %v4837_v23  ;;  %v10799_v12 = vadd.f32 %v10722_v18, %v5653_v32  ;;  %v5312_v3 = vsub.f32 0.0, %v5216_v0  ;;  %v3983_v28 = vmul.f32 -0.505, %v3827_v51 }
 0x393   : > { %v2357_v34 = vmul.f32 2.0, %v10389_v36  ;;  %v6992_v1 = vpop.eup %6991  ;;  %v4681_v8 = vadd.f32 1e-12, %v4585_v13  ;;  %v3885_v53 = vmul.f32 0.6931472, %v6990_v6  ;;  %v2383_v23 = vmul.f32 2.0, %v10432_v35 }
 0x394   : > { %v5256_v9 = vadd.f32 %v5160_v21, %v10725_v54  ;;  %v5615_v7 = vsel %vm5519_vm1, %v5312_v3, 0.0  ;;  %v4262_v57 = vmul.f32 0.31184378, %v6992_v1  ;;  %v4114_v52 = vmul.f32 1.442695, %v3983_v28  ;;  %v12462_v1 = vld [vmem:[#allocation61_spill] sm:$0xff] }
 0x395   : > { %v5708_v18 = vadd.f32 %v10744_v11, %v5615_v7  ;;  %7001 = vlog2.f32 %v4681_v8  ;;  %v4367_v0 = vadd.f32 -1.1652529, %v3983_v28  ;;  %v4012_v24 = vmul.f32 -0.505, %v3885_v53 }
 0x396   : > { %v5352_v4 = vsub.f32 0.0, %v5256_v9  ;;  %v2453_v61 = vsub.f32 %v12460_v62, %v2357_v34  ;;  %v6994_v54 = vpop.eup %6993  ;;  %v4550_v32 = vsub.f32 1.0, %v4262_v57  ;;  %7003 = vpow2.f32 %v4114_v52  ;;  %v12461_v9 = vld [vmem:[#allocation105_spill] sm:$0xff]  ;;  %v12463_v52 = vld [vmem:[#allocation162_spill] sm:$0xff] }
 0x397   : > { %v10811_v40 = vadd.f32 %v5708_v18, %v5618_v19  ;;  %v6996_v37 = vpop.eup %6995  ;;  %v4463_v11 = vmax.f32 %v4367_v0, -27.631021  ;;  %v4172_v21 = vmul.f32 1.442695, %v4012_v24  ;;  %v4396_v51 = vadd.f32 -1.1652529, %v4012_v24 }
 0x398   : > { %v5655_v36 = vsel %vm5484_vm6, %v5352_v4, 0.0  ;;  %v4646_v3 = vadd.f32 1e-12, %v4550_v32  ;;  %v4299_v13 = vmul.f32 0.31184378, %v6996_v37  ;;  %v2479_v28 = vsub.f32 %v12461_v9, %v2383_v23 }
 0x399   : > { %v10814_v35 = vadd.f32 %v10750_v50, %v5655_v36  ;;  %v3821_v6 = vmul.f32 0.6931472, %v6994_v54  ;;  %v6998_v34 = vpop.eup %6997  ;;  %v10818_v7 = vmul.f32 %v4463_v11, %v12462_v1  ;;  %7005 = vpow2.f32 %v4172_v21 }
 0x39a   : > { %v4492_v19 = vmax.f32 %v4396_v51, -27.631021  ;;  %v2549_v8 = vmax.f32 %v2453_v61, 0.0  ;;  %v7000_v53 = vpop.eup %6999  ;;  %7007 = vlog2.f32 %v4646_v3  ;;  %v4587_v18 = vsub.f32 1.0, %v4299_v13  ;;  %v12465_v13 = vld [vmem:[#allocation173_spill] sm:$0xff] }
 0x39b   : > { %v3980_v50 = vmul.f32 -0.505, %v3821_v6  ;;  %v3889_v4 = vmul.f32 0.6931472, %v6998_v34  ;;  %v4775_v57 = vmul.f32 0.6931472, %v7000_v53  ;;  %7009 = vlog2.f32 %v10611_v42 }
 0x39c   : > { %v10821_v0 = vmul.f32 %v4492_v19, %v12463_v52  ;;  %v2741_v24 = vmax.f32 %v2549_v8, 0.0  ;;  %v2575_v62 = vmax.f32 %v2479_v28, 0.0  ;;  %v4683_v23 = vadd.f32 1e-12, %v4587_v18  ;;  %v12466_v53 = vld [vmem:[#allocation147_spill] sm:$0xff] }
 0x39d   : > { %v4108_v54 = vmul.f32 1.442695, %v3980_v50  ;;  %v4364_v36 = vadd.f32 -1.1652529, %v3980_v50  ;;  %v12464_v32 = vsub.f32 1.0, %v12448_v10  ;;  %v2354_v3 = vmul.f32 2.0, %v10439_v17 }
 0x39e   : > { %v4014_v61 = vmul.f32 -0.505, %v3889_v4  ;;  %v3605_v11 = vmul.f32 100.0, %v2741_v24  ;;  %v2767_v21 = vmax.f32 %v2575_v62, 0.0  ;;  %7011 = vlog2.f32 %v4683_v23  ;;  %v12468_v23 = vld [vmem:[#allocation43_spill] sm:$0xff] }
 0x39f   : > { %v5129_v37 = vmul.f32 %v12464_v32, %v4775_v57  ;;  %v4460_v51 = vmax.f32 %v4364_v36, -27.631021  ;;  %v2385_v6 = vmul.f32 2.0, %v12465_v13  ;;  %v7002_v9 = vpop.eup %7001  ;;  %7013 = vpow2.f32 %v4108_v54 }
 0x3a0   : > { %v4176_v42 = vmul.f32 1.442695, %v4014_v61  ;;  %v4398_v34 = vadd.f32 -1.1652529, %v4014_v61  ;;  %v7004_v19 = vpop.eup %7003  ;;  %v4839_v8 = vmul.f32 0.6931472, %v7002_v9  ;;  %v10834_v4 = vadd.s32 %v9554_v63, %v10783_v26 }
 0x3a1   : > { %v5225_v28 = vadd.f32 %v5129_v37, %v10757_v5  ;;  %v10830_v10 = vmul.f32 %v4460_v51, %v12466_v53  ;;  %v3701_v18 = vadd.f32 1.0, %v3605_v11  ;;  %v3631_v50 = vmul.f32 100.0, %v2767_v21  ;;  %v12469_v37 = vld [vmem:[#allocation77_spill] sm:$0xff]  ;;  %v12470_v21 = vld [vmem:[#allocation111_spill] sm:$0xff] }
 0x3a2   : > { %v4271_v17 = vmul.f32 0.31184378, %v7004_v19  ;;  %7015 = vpow2.f32 %v4176_v42  ;;  %v4494_v57 = vmax.f32 %v4398_v34, -27.631021  ;;  %v12467_v24 = vsub.f32 1.0, %v12451_v39 }
 0x3a3   : > { %7017 = vlog2.f32 %v3701_v18  ;;  %v3727_v62 = vadd.f32 1.0, %v3631_v50  ;;  %v2450_v54 = vsub.f32 %v12468_v23, %v2354_v3  ;;  %v7006_v36 = vpop.eup %7005  ;;  %v5411_v11 = vadd.s32 176, %v9567_v55 }
 0x3a4   : > { %v5161_v5 = vmul.f32 %v12467_v24, %v4839_v8  ;;  %v4559_v32 = vsub.f32 1.0, %v4271_v17  ;;  %v10840_v61 = vmul.f32 %v4494_v57, %v12469_v37  ;;  %v2481_v26 = vsub.f32 %v12470_v21, %v2385_v6  ;;  %v7008_v51 = vpop.eup %7007  ;;  %v12471_v57 = vld [vmem:[#allocation110_spill] sm:$0xff]  ;;  %v12474_v21 = vld [vmem:[#allocation52_spill] sm:$0xff] }
 0x3a5   : > { %v4300_v9 = vmul.f32 0.31184378, %v7006_v36  ;;  %7019 = vlog2.f32 %v3727_v62  ;;  %v2546_v39 = vmax.f32 %v2450_v54, 0.0  ;;  %v5321_v42 = vsub.f32 0.0, %v5225_v28  ;;  %v10845_v3 = vpop.eup %7009 }
 0x3a6   : > { %v5257_v13 = vadd.f32 %v5161_v5, %v10768_v16  ;;  %v4769_v34 = vmul.f32 0.6931472, %v7008_v51  ;;  %v4655_v19 = vadd.f32 1e-12, %v4559_v32  ;;  %v2577_v8 = vmax.f32 %v2481_v26, 0.0 }
 0x3a7   : > { %vm5485_vm8 = vcmp.lt.s32.totalorder %v10834_v4, 300  ;;  %v4588_v50 = vsub.f32 1.0, %v4300_v9  ;;  %v2738_v17 = vmax.f32 %v2546_v39, 0.0  ;;  %v2363_v24 = vmul.f32 2.0, %v12471_v57 }
 0x3a8   : > { %v5353_v18 = vsub.f32 0.0, %v5257_v13  ;;  %v12473_v16 = vsub.f32 1.0, %v12454_v30  ;;  %7021 = vlog2.f32 %v4655_v19  ;;  %v10856_v5 = vadd.s32 %v9554_v63, %v5411_v11  ;;  %v7012_v23 = vpop.eup %7011 }
 0x3a9   : > { %v2769_v62 = vmax.f32 %v2577_v8, 0.0  ;;  %v4684_v36 = vadd.f32 1e-12, %v4588_v50  ;;  %v3602_v32 = vmul.f32 100.0, %v2738_v17  ;;  %v2459_v26 = vsub.f32 %v12474_v21, %v2363_v24  ;;  %v7014_v51 = vpop.eup %7013 }
 0x3aa   : > { %v5126_v28 = vmul.f32 %v12473_v16, %v4769_v34  ;;  %v5656_v54 = vsel %vm5484_vm6, %v5353_v18, 0.0  ;;  %v4843_v9 = vmul.f32 0.6931472, %v7012_v23  ;;  %v5624_v34 = vsel %vm5528_vm9, %v5321_v42, 0.0  ;;  %v12477_v42 = vld [vmem:[#allocation36_spill] sm:$0xff] }
 0x3ab   : > { %v10862_v13 = vadd.f32 %v10799_v12, %v5656_v54  ;;  %v3633_v39 = vmul.f32 100.0, %v2769_v62  ;;  %7023 = vlog2.f32 %v4684_v36  ;;  %v4268_v19 = vmul.f32 0.31184378, %v7014_v51 }
 0x3ac   : > { %v5222_v30 = vadd.f32 %v5126_v28, %v10777_v47  ;;  %v3698_v8 = vadd.f32 1.0, %v3602_v32  ;;  %v7016_v18 = vpop.eup %7015  ;;  %v12476_v17 = vsub.f32 1.0, %v12459_v33  ;;  %v2555_v24 = vmax.f32 %v2459_v26, 0.0 }
 0x3ad   : > { %v3729_v12 = vadd.f32 1.0, %v3633_v39  ;;  %v7018_v6 = vpop.eup %7017  ;;  %v4556_v47 = vsub.f32 1.0, %v4268_v19  ;;  %v4302_v16 = vmul.f32 0.31184378, %v7016_v18  ;;  %v2386_v28 = vmul.f32 2.0, %v12477_v42  ;;  %v12478_v39 = vld [vmem:[#allocation119_spill] sm:$0xff] }
 0x3ae   : > { %v5318_v50 = vsub.f32 0.0, %v5222_v30  ;;  %v5163_v57 = vmul.f32 %v12476_v17, %v4843_v9  ;;  %7025 = vlog2.f32 %v3698_v8  ;;  %v3839_v54 = vmul.f32 0.6931472, %v7018_v6 }
 0x3af   : > { %7027 = vlog2.f32 %v3729_v12  ;;  %v7020_v36 = vpop.eup %7019  ;;  %v4652_v21 = vadd.f32 1e-12, %v4556_v47  ;;  %v4590_v51 = vsub.f32 1.0, %v4302_v16  ;;  %v2747_v33 = vmax.f32 %v2555_v24, 0.0 }
 0x3b0   : > { %v5621_v62 = vsel %vm5525_vm11, %v5318_v50, 0.0  ;;  %v5259_v23 = vadd.f32 %v5163_v57, %v10802_v38  ;;  %v3989_v9 = vmul.f32 -0.505, %v3839_v54  ;;  %v3891_v26 = vmul.f32 0.6931472, %v7020_v36  ;;  %v12480_v36 = vld [vmem:[#allocation174_spill] sm:$0xff] }
 0x3b1   : > { %v5714_v32 = vadd.f32 %v10811_v40, %v5621_v62  ;;  %v2482_v11 = vsub.f32 %v12478_v39, %v2386_v28  ;;  %7029 = vlog2.f32 %v4652_v21  ;;  %v4686_v8 = vadd.f32 1e-12, %v4590_v51  ;;  %v12481_v51 = vld [vmem:[#allocation93_spill] sm:$0xff] }
 0x3b2   : > { %v5355_v30 = vsub.f32 0.0, %v5259_v23  ;;  %v3611_v18 = vmul.f32 100.0, %v2747_v33  ;;  %v7022_v50 = vpop.eup %7021  ;;  %v4126_v17 = vmul.f32 1.442695, %v3989_v9  ;;  %v4373_v57 = vadd.f32 -1.1652529, %v3989_v9 }
 0x3b3   : > { %v10875_v19 = vadd.f32 %v5714_v32, %v5624_v34  ;;  %v2578_v40 = vmax.f32 %v2482_v11, 0.0  ;;  %v4787_v24 = vmul.f32 0.6931472, %v7022_v50  ;;  %7031 = vlog2.f32 %v4686_v8  ;;  %v12482_v39 = vld [vmem:[#allocation49_spill] sm:$0xff] }
 0x3b4   : > { %v5658_v38 = vsel %vm5485_vm8, %v5355_v30, 0.0  ;;  %v4015_v6 = vmul.f32 -0.505, %v3891_v26  ;;  %7033 = vpow2.f32 %v4126_v17  ;;  %v4469_v47 = vmax.f32 %v4373_v57, -27.631021 }
 0x3b5   : > { %v10880_v12 = vadd.f32 %v10814_v35, %v5658_v38  ;;  %v3707_v16 = vadd.f32 1.0, %v3611_v18  ;;  %v2770_v34 = vmax.f32 %v2578_v40, 0.0  ;;  %v7024_v42 = vpop.eup %7023  ;;  %v12479_v28 = vsub.f32 1.0, %v12462_v1  ;;  %v12484_v40 = vld [vmem:[#allocation26_spill] sm:$0xff] }
 0x3b6   : > { %v4178_v23 = vmul.f32 1.442695, %v4015_v6  ;;  %v4399_v54 = vadd.f32 -1.1652529, %v4015_v6  ;;  %v2360_v32 = vmul.f32 2.0, %v12480_v36  ;;  %v10886_v33 = vmul.f32 %v4469_v47, %v12481_v51 }
 0x3b7   : > { %v5135_v62 = vmul.f32 %v12479_v28, %v4787_v24  ;;  %v4845_v21 = vmul.f32 0.6931472, %v7024_v42  ;;  %7035 = vlog2.f32 %v3707_v16  ;;  %v3634_v35 = vmul.f32 100.0, %v2770_v34  ;;  %v12485_v34 = vld [vmem:[#allocation126_spill] sm:$0xff] }
 0x3b8   : > { %v7026_v30 = vpop.eup %7025  ;;  %7037 = vpow2.f32 %v4178_v23  ;;  %v4495_v26 = vmax.f32 %v4399_v54, -27.631021  ;;  %v2456_v11 = vsub.f32 %v12482_v39, %v2360_v32  ;;  %v12483_v1 = vsub.f32 1.0, %v12463_v52 }
 0x3b9   : > { %v5231_v9 = vadd.f32 %v5135_v62, %v10818_v7  ;;  %v7028_v8 = vpop.eup %7027  ;;  %v3833_v50 = vmul.f32 0.6931472, %v7026_v30  ;;  %v3730_v38 = vadd.f32 1.0, %v3634_v35  ;;  %v2388_v17 = vmul.f32 2.0, %v10532_v58 }
 0x3ba   : > { %v5164_v18 = vmul.f32 %v12483_v1, %v4845_v21  ;;  %v10894_v57 = vmul.f32 1.442695, %v10703_v46  ;;  %v10897_v24 = vmul.f32 %v4495_v26, %v12484_v40  ;;  %v3895_v6 = vmul.f32 0.6931472, %v7028_v8 }
 0x3bb   : > { %v2552_v7 = vmax.f32 %v2456_v11, 0.0  ;;  %v3986_v16 = vmul.f32 -0.505, %v3833_v50  ;;  %7039 = vlog2.f32 %v3730_v38  ;;  %v2484_v42 = vsub.f32 %v12485_v34, %v2388_v17  ;;  %v7030_v52 = vpop.eup %7029 }
 0x3bc   : > { %v5260_v47 = vadd.f32 %v5164_v18, %v10821_v0  ;;  %v5327_v28 = vsub.f32 0.0, %v5231_v9  ;;  %vm5486_vm10 = vcmp.lt.s32.totalorder %v10856_v5, 300  ;;  %v4017_v62 = vmul.f32 -0.505, %v3895_v6 }
 0x3bd   : > { %v10903_v58 = vadd.s32 184, %v9567_v55  ;;  %v2744_v46 = vmax.f32 %v2552_v7, 0.0  ;;  %v4781_v54 = vmul.f32 0.6931472, %v7030_v52  ;;  %v4120_v36 = vmul.f32 1.442695, %v3986_v16  ;;  %v7032_v21 = vpop.eup %7031 }
 0x3be   : > { %v5356_v23 = vsub.f32 0.0, %v5260_v47  ;;  %v2580_v32 = vmax.f32 %v2484_v42, 0.0  ;;  %7041 = vpow2.f32 %v10554_v56  ;;  %v4370_v0 = vadd.f32 -1.1652529, %v3986_v16  ;;  %v7034_v26 = vpop.eup %7033  ;;  %v12490_v42 = vld [vmem:[#allocation153_spill] sm:$0xff] }
 0x3bf   : > { %v4182_v35 = vmul.f32 1.442695, %v4017_v62  ;;  %v4401_v30 = vadd.f32 -1.1652529, %v4017_v62  ;;  %v12486_v39 = vsub.f32 1.0, %v12466_v53  ;;  %7043 = vpow2.f32 %v4120_v36 }
 0x3c0   : > { %v5659_v9 = vsel %vm5485_vm8, %v5356_v23, 0.0  ;;  %v4849_v8 = vmul.f32 0.6931472, %v7032_v21  ;;  %v4277_v18 = vmul.f32 0.31184378, %v7034_v26  ;;  %v12488_v6 = vsub.f32 1.0, %v12469_v37 }
 0x3c1   : > { %v5132_v11 = vmul.f32 %v12486_v39, %v4781_v54  ;;  %v10911_v1 = vadd.f32 %v10862_v13, %v5659_v9  ;;  %v4466_v50 = vmax.f32 %v4370_v0, -27.631021  ;;  %7045 = vpow2.f32 %v4182_v35  ;;  %v7036_v38 = vpop.eup %7035  ;;  %v12491_v37 = vld [vmem:[#allocation79_spill] sm:$0xff] }
 0x3c2   : > { %v5166_v53 = vmul.f32 %v12488_v6, %v4849_v8  ;;  %v4497_v7 = vmax.f32 %v4401_v30, -27.631021  ;;  %v3608_v47 = vmul.f32 100.0, %v2744_v46  ;;  %v7038_v16 = vpop.eup %7037  ;;  %v4565_v34 = vsub.f32 1.0, %v4277_v18 }
 0x3c3   : > { %v5228_v17 = vadd.f32 %v5132_v11, %v10830_v10  ;;  %v10925_v52 = vmul.f32 %v4466_v50, %v12490_v42  ;;  %v3851_v62 = vmul.f32 0.6931472, %v7036_v38  ;;  %v2772_v23 = vmax.f32 %v2580_v32, 0.0 }
 0x3c4   : > { %v5262_v10 = vadd.f32 %v5166_v53, %v10840_v61  ;;  %v4303_v36 = vmul.f32 0.31184378, %v7038_v16  ;;  %v10929_v21 = vmul.f32 %v4497_v7, %v12491_v37  ;;  %v5630_v46 = vsel %vm5534_vm7, %v5327_v28, 0.0 }
 0x3c5   : > { %v5324_v54 = vsub.f32 0.0, %v5228_v17  ;;  %v4661_v0 = vadd.f32 1e-12, %v4565_v34  ;;  %v3995_v35 = vmul.f32 -0.505, %v3851_v62  ;;  %v3704_v30 = vadd.f32 1.0, %v3608_v47  ;;  %v7040_v26 = vpop.eup %7039 }
 0x3c6   : > { %v5358_v39 = vsub.f32 0.0, %v5262_v10  ;;  %v4591_v11 = vsub.f32 1.0, %v4303_v36  ;;  %v3636_v8 = vmul.f32 100.0, %v2772_v23  ;;  %v3897_v56 = vmul.f32 0.6931472, %v7040_v26  ;;  %v12492_v62 = vld [vmem:[#allocation157_spill] sm:$0xff] }
 0x3c7   : > { %v5627_v9 = vsel %vm5531_vm5, %v5324_v54, 0.0  ;;  %7047 = vlog2.f32 %v4661_v0  ;;  %v4138_v32 = vmul.f32 1.442695, %v3995_v35  ;;  %v4379_v50 = vadd.f32 -1.1652529, %v3995_v35  ;;  %v12493_v35 = vld [vmem:[#allocation60_spill] sm:$0xff] }
 0x3c8   : > { %v5720_v18 = vadd.f32 %v10875_v19, %v5627_v9  ;;  %v5661_v61 = vsel %vm5486_vm10, %v5358_v39, 0.0  ;;  %v4687_v38 = vadd.f32 1e-12, %v4591_v11  ;;  %7049 = vlog2.f32 %v3704_v30  ;;  %v10934_v28 = vpop.eup %7041  ;;  %v12494_v26 = vld [vmem:[#allocation127_spill] sm:$0xff]  ;;  %v12495_v39 = vld [vmem:[#allocation56_spill] sm:$0xff] }
 0x3c9   : > { %v10937_v17 = vadd.f32 %v10880_v12, %v5661_v61  ;;  %7051 = vpow2.f32 %v4138_v32  ;;  %v4475_v53 = vmax.f32 %v4379_v50, -27.631021  ;;  %v7044_v7 = vpop.eup %7043  ;;  %v4018_v19 = vmul.f32 -0.505, %v3897_v56 }
 0x3ca   : > { %v10939_v6 = vadd.f32 %v5720_v18, %v5630_v46  ;;  %7053 = vlog2.f32 %v4687_v38  ;;  %v3732_v47 = vadd.f32 1.0, %v3636_v8  ;;  %v2369_v16 = vmul.f32 2.0, %v10540_v45  ;;  %v12496_v38 = vld [vmem:[#allocation30_spill] sm:$0xff] }
 0x3cb   : > { %v7046_v13 = vpop.eup %7045  ;;  %v4274_v34 = vmul.f32 0.31184378, %v7044_v7  ;;  %v10943_v23 = vmul.f32 %v4475_v53, %v12492_v62  ;;  %v2389_v54 = vmul.f32 2.0, %v10586_v31  ;;  %v2366_v12 = vmul.f32 2.0, %v10590_v29  ;;  %v12497_v53 = vld [vmem:[#allocation132_spill] sm:$0xff] }
 0x3cc   : > { %v4305_v10 = vmul.f32 0.31184378, %v7046_v13  ;;  %v4184_v36 = vmul.f32 1.442695, %v4018_v19  ;;  %v4402_v46 = vadd.f32 -1.1652529, %v4018_v19  ;;  %7055 = vlog2.f32 %v3732_v47 }
 0x3cd   : > { %v4562_v0 = vsub.f32 1.0, %v4274_v34  ;;  %v2465_v30 = vsub.f32 %v12493_v35, %v2369_v16  ;;  %v2485_v9 = vsub.f32 %v12494_v26, %v2389_v54  ;;  %v2462_v45 = vsub.f32 %v12495_v39, %v2366_v12 }
 0x3ce   : > { %v4593_v11 = vsub.f32 1.0, %v4305_v10  ;;  %7057 = vpow2.f32 %v4184_v36  ;;  %v4498_v8 = vmax.f32 %v4402_v46, -27.631021  ;;  %v2391_v18 = vmul.f32 2.0, %v10620_v43 }
 0x3cf   : > { %v4658_v32 = vadd.f32 1e-12, %v4562_v0  ;;  %v2561_v31 = vmax.f32 %v2465_v30, 0.0  ;;  %v2581_v50 = vmax.f32 %v2485_v9, 0.0  ;;  %v2558_v29 = vmax.f32 %v2462_v45, 0.0 }
 0x3d0   : > { %7059 = vpow2.f32 %v10894_v57  ;;  %v4689_v61 = vadd.f32 1e-12, %v4593_v11  ;;  %v10953_v56 = vmul.f32 %v4498_v8, %v12496_v38  ;;  %v2487_v7 = vsub.f32 %v12497_v53, %v2391_v18 }
 0x3d1   : > { %v7048_v19 = vpop.eup %7047  ;;  %7061 = vlog2.f32 %v4658_v32  ;;  %v2753_v47 = vmax.f32 %v2561_v31, 0.0  ;;  %v2773_v16 = vmax.f32 %v2581_v50, 0.0  ;;  %v2750_v13 = vmax.f32 %v2558_v29, 0.0 }
 0x3d2   : > { %v7050_v34 = vpop.eup %7049  ;;  %v10957_v43 = vmul.f32 0.6931472, %v10845_v3  ;;  %v4799_v54 = vmul.f32 0.6931472, %v7048_v19  ;;  %7063 = vlog2.f32 %v4689_v61  ;;  %v2583_v12 = vmax.f32 %v2487_v7, 0.0 }
 0x3d3   : > { %v7052_v10 = vpop.eup %7051  ;;  %v10961_v57 = vadd.s32 %v9554_v63, %v10903_v58  ;;  %v3845_v36 = vmul.f32 0.6931472, %v7050_v34  ;;  %v3617_v46 = vmul.f32 100.0, %v2753_v47  ;;  %v3637_v0 = vmul.f32 100.0, %v2773_v16 }
 0x3d4   : > { %v7054_v35 = vpop.eup %7053  ;;  %v12498_v30 = vsub.f32 1.0, %v12481_v51  ;;  %v4283_v9 = vmul.f32 0.31184378, %v7052_v10  ;;  %v3614_v39 = vmul.f32 100.0, %v2750_v13  ;;  %v2775_v45 = vmax.f32 %v2583_v12, 0.0 }
 0x3d5   : > { %v4851_v3 = vmul.f32 0.6931472, %v7054_v35  ;;  %v3992_v11 = vmul.f32 -0.505, %v3845_v36  ;;  %v5413_v8 = vadd.s32 192, %v9567_v55  ;;  %v3713_v18 = vadd.f32 1.0, %v3617_v46 }
 0x3d6   : > { %v5141_v26 = vmul.f32 %v12498_v30, %v4799_v54  ;;  %v7056_v32 = vpop.eup %7055  ;;  %v4571_v58 = vsub.f32 1.0, %v4283_v9  ;;  %v3733_v50 = vadd.f32 1.0, %v3637_v0  ;;  %v3639_v29 = vmul.f32 100.0, %v2775_v45  ;;  %v10971_v54 = vpop.f32.mrb[87].mxu1  ;;  %v12501_v9 = vld [vmem:[#allocation159_spill] sm:$0xff] }
 0x3d7   : > { %v12499_v61 = vsub.f32 1.0, %v12484_v40  ;;  %v4132_v51 = vmul.f32 1.442695, %v3992_v11  ;;  %v4376_v7 = vadd.f32 -1.1652529, %v3992_v11  ;;  %7065 = vlog2.f32 %v3713_v18 }
 0x3d8   : > { %v10967_v31 = vadd.f32 %v5141_v26, %v10886_v33  ;;  %v3901_v19 = vmul.f32 0.6931472, %v7056_v32  ;;  %v7058_v47 = vpop.eup %7057  ;;  %v4667_v16 = vadd.f32 1e-12, %v4571_v58  ;;  %v3710_v13 = vadd.f32 1.0, %v3614_v39 }
 0x3d9   : > { %v5167_v53 = vmul.f32 %v12499_v61, %v4851_v3  ;;  %v3735_v34 = vadd.f32 1.0, %v3639_v29  ;;  %v4306_v33 = vmul.f32 0.31184378, %v7058_v47  ;;  %7067 = vpow2.f32 %v4132_v51 }
 0x3da   : > { %v4472_v10 = vmax.f32 %v4376_v7, -27.631021  ;;  %v10974_v36 = vpop.eup %7059  ;;  %v5333_v40 = vsub.f32 0.0, %v10967_v31  ;;  %vm5487_vm12 = vcmp.lt.s32.totalorder %v10961_v57, 300  ;;  %7069 = vlog2.f32 %v4667_v16  ;;  %v12504_v7 = vld [vmem:[#allocation70_spill] sm:$0xff] }
 0x3db   : > { %v5263_v12 = vadd.f32 %v5167_v53, %v10897_v24  ;;  %12500 = vst [vmem:[#allocation74_spill] sm:$0xff] %v10974_v36  ;;  %v4020_v46 = vmul.f32 -0.505, %v3901_v19  ;;  %v2375_v0 = vmul.f32 2.0, %v10622_v44  ;;  %v7062_v35 = vpop.eup %7061  ;;  %v4594_v26 = vsub.f32 1.0, %v4306_v33  ;;  %v10982_v24 = vpop.f32.mrb[87].mxu0 }
 0x3dc   : > { %v10980_v39 = vmul.f32 %v4472_v10, %v12501_v9  ;;  %7071 = vlog2.f32 %v3733_v50  ;;  %v7064_v45 = vpop.eup %7063  ;;  %v4793_v3 = vmul.f32 0.6931472, %v7062_v35  ;;  %v12502_v29 = vsub.f32 1.0, %v12490_v42  ;;  %v11009_v33 = vpop.f32.mrb[88].mxu1  ;;  %v12513_v35 = vld [vmem:[#allocation133_spill] sm:$0xff] }
 0x3dd   : > { %v5359_v30 = vsub.f32 0.0, %v5263_v12  ;;  %v4188_v11 = vmul.f32 1.442695, %v4020_v46  ;;  %v4404_v18 = vadd.f32 -1.1652529, %v4020_v46  ;;  %7073 = vlog2.f32 %v3710_v13  ;;  %v12508_v13 = vld [vmem:[#allocation87_spill] sm:$0xff] }
 0x3de   : > { %v4855_v31 = vmul.f32 0.6931472, %v7064_v45  ;;  %v4690_v58 = vadd.f32 1e-12, %v4594_v26  ;;  %7075 = vlog2.f32 %v3735_v34  ;;  %v5138_v61 = vmul.f32 %v12502_v29, %v4793_v3  ;;  %v12514_v45 = vld [vmem:[#allocation66_spill] sm:$0xff] }
 0x3df   : > { %v5662_v32 = vsel %vm5486_vm10, %v5359_v30, 0.0  ;;  %7077 = vpow2.f32 %v4188_v11  ;;  %v4500_v50 = vmax.f32 %v4404_v18, -27.631021  ;;  %v12503_v53 = vsub.f32 1.0, %v12491_v37  ;;  %v12515_v11 = vld [vmem:[#allocation137_spill] sm:$0xff] }
 0x3e0   : > { %v10987_v44 = vadd.f32 %v10911_v1, %v5662_v32  ;;  %7079 = vlog2.f32 %v4690_v58  ;;  %v2471_v19 = vsub.f32 %v12504_v7, %v2375_v0  ;;  %v2392_v47 = vmul.f32 2.0, %v10669_v41  ;;  %v12509_v41 = vld [vmem:[#allocation31_spill] sm:$0xff]  ;;  %v11034_v1 = vpop.f32.mrb[88].mxu0 }
 0x3e1   : > { %v5169_v51 = vmul.f32 %v12503_v53, %v4855_v31  ;;  %v5234_v42 = vadd.f32 %v5138_v61, %v10925_v52  ;;  %v11005_v34 = vmul.f32 %v4500_v50, %v12508_v13  ;;  %v2372_v37 = vmul.f32 2.0, %v10677_v59  ;;  %v7066_v30 = vpop.eup %7065 }
 0x3e2   : > { %v2394_v12 = vmul.f32 2.0, %v10689_v49  ;;  %vm12510_vm1 = vcmp.lt.s32.totalorder %v12509_v41, 300  ;;  %v11021_v52 = vadd.s32 %v9554_v63, %v5413_v8  ;;  %v2567_v0 = vmax.f32 %v2471_v19, 0.0 }
 0x3e3   : > { %vm11015_vm9 = vmand %vm12510_vm1, %vm5498_vm14  ;;  %v5265_v46 = vadd.f32 %v5169_v51, %v10929_v21  ;;  %v2488_v59 = vsub.f32 %v12513_v35, %v2392_v47  ;;  %v5330_v49 = vsub.f32 0.0, %v5234_v42  ;;  %v5414_v26 = vadd.s32 200, %v9567_v55  ;;  %v7068_v32 = vpop.eup %7067 }
 0x3e4   : > { %v2468_v3 = vsub.f32 %v12514_v45, %v2372_v37  ;;  %v2490_v18 = vsub.f32 %v12515_v11, %v2394_v12  ;;  %v5636_v31 = vsel %vm10999_vm13, %v5333_v40, 0.0  ;;  %v3863_v21 = vmul.f32 0.6931472, %v7066_v30  ;;  %v7070_v8 = vpop.eup %7069  ;;  %vm11133_vm1 = vmand %vm5481_vm3, %vm5498_vm14 }
 0x3e5   : > { %v5361_v58 = vsub.f32 0.0, %v5265_v46  ;;  %v2759_v29 = vmax.f32 %v2567_v0, 0.0  ;;  %v5633_v61 = vsel %vm11015_vm9, %v5330_v49, 0.0  ;;  %v4280_v50 = vmul.f32 0.31184378, %v7068_v32  ;;  %vm11172_vm9 = vmand %vm5480_vm0, %vm5498_vm14 }
 0x3e6   : > { %v2584_v53 = vmax.f32 %v2488_v59, 0.0  ;;  %v2564_v51 = vmax.f32 %v2468_v3, 0.0  ;;  %v7072_v7 = vpop.eup %7071  ;;  %v5726_v19 = vadd.f32 %v10939_v6, %v5633_v61  ;;  %v4811_v16 = vmul.f32 0.6931472, %v7070_v8  ;;  %vm5558_vm0 = vmand %vm5483_vm4, %vm5498_vm14 }
 0x3e7   : > { %v5664_v47 = vsel %vm5487_vm12, %v5361_v58, 0.0  ;;  %v4001_v42 = vmul.f32 -0.505, %v3863_v21  ;;  %v7074_v40 = vpop.eup %7073  ;;  %v4568_v12 = vsub.f32 1.0, %v4280_v50  ;;  %v3903_v41 = vmul.f32 0.6931472, %v7072_v7 }
 0x3e8   : > { %v11037_v37 = vadd.f32 %v10937_v17, %v5664_v47  ;;  %v3623_v10 = vmul.f32 100.0, %v2759_v29  ;;  %v7076_v46 = vpop.eup %7075  ;;  %v12516_v0 = vsub.f32 1.0, %v12492_v62  ;;  %v11041_v59 = vadd.f32 %v5726_v19, %v5636_v31  ;;  %v12517_v50 = vld [vmem:[#allocation91_spill] sm:$0xff] }
 0x3e9   : > { %v4150_v6 = vmul.f32 1.442695, %v4001_v42  ;;  %v4385_v30 = vadd.f32 -1.1652529, %v4001_v42  ;;  %v7078_v49 = vpop.eup %7077  ;;  %v4664_v45 = vadd.f32 1e-12, %v4568_v12  ;;  %v11044_v32 = vadd.s32 %v9554_v63, %v5414_v26 }
 0x3ea   : > { %v5147_v35 = vmul.f32 %v12516_v0, %v4811_v16  ;;  %v4021_v3 = vmul.f32 -0.505, %v3903_v41  ;;  %v3857_v11 = vmul.f32 0.6931472, %v7074_v40  ;;  %v7080_v17 = vpop.eup %7079  ;;  %v4308_v21 = vmul.f32 0.31184378, %v7078_v49 }
 0x3eb   : > { %7081 = vpow2.f32 %v4150_v6  ;;  %v4481_v29 = vmax.f32 %v4385_v30, -27.631021  ;;  %v4857_v62 = vmul.f32 0.6931472, %v7080_v17  ;;  %v2586_v47 = vmax.f32 %v2490_v18, 0.0  ;;  %v11054_v40 = vpop.f32.mrb[89].mxu1 }
 0x3ec   : > { %v11047_v58 = vadd.f32 %v5147_v35, %v10943_v23  ;;  %7083 = vlog2.f32 %v4664_v45  ;;  %v4190_v31 = vmul.f32 1.442695, %v4021_v3  ;;  %v4405_v8 = vadd.f32 -1.1652529, %v4021_v3  ;;  %v12519_v30 = vld [vmem:[#allocation170_spill] sm:$0xff] }
 0x3ed   : > { %v4596_v61 = vsub.f32 1.0, %v4308_v21  ;;  %v11050_v7 = vmul.f32 %v4481_v29, %v12517_v50  ;;  %v3998_v19 = vmul.f32 -0.505, %v3857_v11  ;;  %v12518_v26 = vsub.f32 1.0, %v12496_v38 }
 0x3ee   : > { %7085 = vpow2.f32 %v4190_v31  ;;  %v4501_v42 = vmax.f32 %v4405_v8, -27.631021  ;;  %v3907_v23 = vmul.f32 0.6931472, %v7076_v46  ;;  %v3719_v0 = vadd.f32 1.0, %v3623_v10 }
 0x3ef   : > { %v5170_v16 = vmul.f32 %v12518_v26, %v4857_v62  ;;  %v4692_v12 = vadd.f32 1e-12, %v4596_v61  ;;  %v4144_v41 = vmul.f32 1.442695, %v3998_v19  ;;  %v2381_v35 = vmul.f32 2.0, %v10694_v15 }
 0x3f0   : > { %v11059_v49 = vmul.f32 %v4501_v42, %v12519_v30  ;;  %v4382_v45 = vadd.f32 -1.1652529, %v3998_v19  ;;  %v4023_v18 = vmul.f32 -0.505, %v3907_v23  ;;  %v2776_v38 = vmax.f32 %v2584_v53, 0.0 }
 0x3f1   : > { %v5266_v6 = vadd.f32 %v5170_v16, %v10953_v56  ;;  %7087 = vlog2.f32 %v4692_v12  ;;  %v2756_v3 = vmax.f32 %v2564_v51, 0.0  ;;  %v2778_v11 = vmax.f32 %v2586_v47, 0.0  ;;  %v12520_v56 = vld [vmem:[#allocation106_spill] sm:$0xff] }
 0x3f2   : > { %7089 = vpow2.f32 %v4144_v41  ;;  %v4478_v46 = vmax.f32 %v4382_v45, -27.631021  ;;  %v4194_v21 = vmul.f32 1.442695, %v4023_v18  ;;  %v4407_v29 = vadd.f32 -1.1652529, %v4023_v18 }
 0x3f3   : > { %v5362_v17 = vsub.f32 0.0, %v5266_v6  ;;  %7091 = vlog2.f32 %v3719_v0  ;;  %v3640_v10 = vmul.f32 100.0, %v2776_v38  ;;  %v3620_v62 = vmul.f32 100.0, %v2756_v3  ;;  %v12521_v12 = vld [vmem:[#allocation90_spill] sm:$0xff]  ;;  %v11071_v0 = vpop.f32.mrb[89].mxu0  ;;  %v12522_v6 = vld [vmem:[#allocation172_spill] sm:$0xff] }
 0x3f4   : > { %v11064_v31 = vmul.f32 %v4478_v46, %v12520_v56  ;;  %7093 = vpow2.f32 %v4194_v21  ;;  %v3642_v8 = vmul.f32 100.0, %v2778_v11  ;;  %v4503_v51 = vmax.f32 %v4407_v29, -27.631021  ;;  %v12526_v29 = vld [vmem:[#allocation139_spill] sm:$0xff] }
 0x3f5   : > { %v5665_v15 = vsel %vm5487_vm12, %v5362_v17, 0.0  ;;  %v7082_v61 = vpop.eup %7081  ;;  %v3736_v19 = vadd.f32 1.0, %v3640_v10  ;;  %v3716_v47 = vadd.f32 1.0, %v3620_v62  ;;  %v5339_v16 = vsub.f32 0.0, %v11047_v58 }
 0x3f6   : > { %v11067_v53 = vadd.f32 %v10987_v44, %v5665_v15  ;;  %v7084_v26 = vpop.eup %7083  ;;  %v4289_v42 = vmul.f32 0.31184378, %v7082_v61  ;;  %v3738_v23 = vadd.f32 1.0, %v3642_v8  ;;  %v2477_v41 = vsub.f32 %v12521_v12, %v2381_v35  ;;  %v12524_v44 = vld [vmem:[#allocation97_spill] sm:$0xff]  ;;  %v12527_v61 = vld [vmem:[#allocation83_spill] sm:$0xff] }
 0x3f7   : > { %vm12523_vm15 = vcmp.lt.s32.totalorder %v12522_v6, 300  ;;  %v4805_v45 = vmul.f32 0.6931472, %v7084_v26  ;;  %v11078_v18 = vmul.f32 %v4503_v51, %v12524_v44  ;;  %7095 = vlog2.f32 %v3736_v19 }
 0x3f8   : > { %vm5546_vm11 = vmand %vm12523_vm15, %vm5498_vm14  ;;  %v2395_v38 = vmul.f32 2.0, %v10710_v2  ;;  %v7086_v3 = vpop.eup %7085  ;;  %v4577_v58 = vsub.f32 1.0, %v4289_v42  ;;  %7097 = vlog2.f32 %v3716_v47  ;;  %v2573_v11 = vmax.f32 %v2477_v41, 0.0 }
 0x3f9   : > { %v2378_v35 = vmul.f32 2.0, %v10738_v14  ;;  %v12525_v17 = vsub.f32 1.0, %v12501_v9  ;;  %vm5488_vm7 = vcmp.lt.s32.totalorder %v11021_v52, 300  ;;  %v4309_v21 = vmul.f32 0.31184378, %v7086_v3  ;;  %v11091_v9 = vpop.f32.mrb[90].mxu1 }
 0x3fa   : > { %7099 = vlog2.f32 %v3738_v23  ;;  %v2491_v10 = vsub.f32 %v12526_v29, %v2395_v38  ;;  %v5642_v62 = vsel %vm5546_vm11, %v5339_v16, 0.0  ;;  %v4673_v15 = vadd.f32 1e-12, %v4577_v58  ;;  %v12528_v23 = vld [vmem:[#allocation33_spill] sm:$0xff]  ;;  %v11103_v29 = vpop.f32.mrb[90].mxu0  ;;  %vm5555_vm11 = vmand %vm5482_vm2, %vm5498_vm14 }
 0x3fb   : > { %v5144_v46 = vmul.f32 %v12525_v17, %v4805_v45  ;;  %v2765_v8 = vmax.f32 %v2573_v11, 0.0  ;;  %v2474_v2 = vsub.f32 %v12527_v61, %v2378_v35  ;;  %v7088_v51 = vpop.eup %7087  ;;  %v4597_v47 = vsub.f32 1.0, %v4309_v21  ;;  %vm11301_vm2 = vmand %vm5485_vm8, %vm5498_vm14 }
 0x3fc   : > { %v2587_v26 = vmax.f32 %v2491_v10, 0.0  ;;  %v11089_v14 = vmul.f32 2.0, %v10752_v20  ;;  %v7090_v42 = vpop.eup %7089  ;;  %vm12529_vm5 = vcmp.lt.s32.totalorder %v12528_v23, 300  ;;  %v4861_v12 = vmul.f32 0.6931472, %v7088_v51 }
 0x3fd   : > { %v5240_v19 = vadd.f32 %v5144_v46, %v10980_v39  ;;  %vm11097_vm13 = vmand %vm12529_vm5, %vm5498_vm14  ;;  %7101 = vlog2.f32 %v4673_v15  ;;  %v3629_v41 = vmul.f32 100.0, %v2765_v8  ;;  %v2570_v39 = vmax.f32 %v2474_v2, 0.0  ;;  %v7092_v6 = vpop.eup %7091 }
 0x3fe   : > { %v4693_v38 = vadd.f32 1e-12, %v4597_v47  ;;  %v4286_v20 = vmul.f32 0.31184378, %v7090_v42  ;;  %v2779_v3 = vmax.f32 %v2587_v26, 0.0  ;;  %v7094_v58 = vpop.eup %7093  ;;  %v12532_v11 = vsub.f32 1.0, %v12508_v13  ;;  %vm11314_vm5 = vmand %vm5484_vm6, %vm5498_vm14 }
 0x3ff   : > { %v5336_v45 = vsub.f32 0.0, %v5240_v19  ;;  %v3875_v17 = vmul.f32 0.6931472, %v7092_v6  ;;  %v3725_v46 = vadd.f32 1.0, %v3629_v41  ;;  %v2762_v21 = vmax.f32 %v2570_v39, 0.0  ;;  %vm11380_vm6 = vmand %vm5487_vm12, %vm5498_vm14 }
 0x400   : > { %v5172_v35 = vmul.f32 %v12532_v11, %v4861_v12  ;;  %7103 = vlog2.f32 %v4693_v38  ;;  %v4574_v15 = vsub.f32 1.0, %v4286_v20  ;;  %v4311_v8 = vmul.f32 0.31184378, %v7094_v58  ;;  %vm5567_vm12 = vmand %vm5486_vm10, %vm5498_vm14 }
 0x401   : > { %v5639_v10 = vsel %vm11097_vm13, %v5336_v45, 0.0  ;;  %v4007_v51 = vmul.f32 -0.505, %v3875_v17  ;;  %7105 = vlog2.f32 %v3725_v46  ;;  %v7096_v19 = vpop.eup %7095  ;;  %v3643_v26 = vmul.f32 100.0, %v2779_v3  ;;  %v12533_v17 = vld [vmem:[#allocation96_spill] sm:$0xff] }
 0x402   : > { %v5732_v61 = vadd.f32 %v11041_v59, %v5639_v10  ;;  %v5268_v2 = vadd.f32 %v5172_v35, %v11005_v34  ;;  %v4670_v13 = vadd.f32 1e-12, %v4574_v15  ;;  %v4599_v47 = vsub.f32 1.0, %v4311_v8  ;;  %v7098_v23 = vpop.eup %7097 }
 0x403   : > { %v3626_v42 = vmul.f32 100.0, %v2762_v21  ;;  %v4162_v16 = vmul.f32 1.442695, %v4007_v51  ;;  %v4391_v39 = vadd.f32 -1.1652529, %v4007_v51  ;;  %v3739_v10 = vadd.f32 1.0, %v3643_v26 }
 0x404   : > { %v5364_v12 = vsub.f32 0.0, %v5268_v2  ;;  %v11109_v41 = vadd.f32 %v5732_v61, %v5642_v62  ;;  %v7100_v6 = vpop.eup %7099  ;;  %7107 = vlog2.f32 %v4670_v13  ;;  %v4695_v45 = vadd.f32 1e-12, %v4599_v47  ;;  %v12534_v51 = vld [vmem:[#allocation80_spill] sm:$0xff] }
 0x405   : > { %v3909_v38 = vmul.f32 0.6931472, %v7096_v19  ;;  %v3869_v59 = vmul.f32 0.6931472, %v7098_v23  ;;  %7109 = vpow2.f32 %v4162_v16  ;;  %v4487_v20 = vmax.f32 %v4391_v39, -27.631021 }
 0x406   : > { %v5667_v34 = vsel %vm5488_vm7, %v5364_v12, 0.0  ;;  %v3913_v58 = vmul.f32 0.6931472, %v7100_v6  ;;  %7111 = vlog2.f32 %v4695_v45  ;;  %v3722_v15 = vadd.f32 1.0, %v3626_v42  ;;  %v11123_v45 = vpop.f32.mrb[91].mxu1 }
 0x407   : > { %v11114_v3 = vadd.f32 %v11037_v37, %v5667_v34  ;;  %v4024_v11 = vmul.f32 -0.505, %v3909_v38  ;;  %v4004_v62 = vmul.f32 -0.505, %v3869_v59  ;;  %v7102_v35 = vpop.eup %7101  ;;  %v11117_v46 = vmul.f32 %v4487_v20, %v12533_v17  ;;  %v12536_v34 = vld [vmem:[#allocation13_spill] sm:$0xff] }
 0x408   : > { %v4026_v21 = vmul.f32 -0.505, %v3913_v58  ;;  %v4823_v8 = vmul.f32 0.6931472, %v7102_v35  ;;  %v2493_v19 = vsub.f32 %v12534_v51, %v11089_v14  ;;  %7113 = vlog2.f32 %v3739_v10  ;;  %v12540_v35 = vld [vmem:[#allocation167_spill] sm:$0xff] }
 0x409   : > { %v4196_v61 = vmul.f32 1.442695, %v4024_v11  ;;  %v4408_v2 = vadd.f32 -1.1652529, %v4024_v11  ;;  %v4156_v13 = vmul.f32 1.442695, %v4004_v62 }
 0x40a   : > { %v4388_v47 = vadd.f32 -1.1652529, %v4004_v62  ;;  %v4200_v37 = vmul.f32 1.442695, %v4026_v21  ;;  %v7104_v23 = vpop.eup %7103  ;;  %v12535_v12 = vsub.f32 1.0, %v12517_v50  ;;  %v2589_v59 = vmax.f32 %v2493_v19, 0.0 }
 0x40b   : > { %7115 = vpow2.f32 %v4196_v61  ;;  %v4504_v39 = vmax.f32 %v4408_v2, -27.631021  ;;  %v4410_v6 = vadd.f32 -1.1652529, %v4026_v21  ;;  %v7106_v26 = vpop.eup %7105  ;;  %v4863_v42 = vmul.f32 0.6931472, %v7104_v23 }
 0x40c   : > { %v5153_v16 = vmul.f32 %v12535_v12, %v4823_v8  ;;  %7117 = vpow2.f32 %v4156_v13  ;;  %v4484_v38 = vmax.f32 %v4388_v47, -27.631021  ;;  %v12539_v11 = vsub.f32 1.0, %v12519_v30  ;;  %v12541_v2 = vld [vmem:[#allocation114_spill] sm:$0xff] }
 0x40d   : > { %v11127_v20 = vmul.f32 %v4504_v39, %v12536_v34  ;;  %7119 = vpow2.f32 %v4200_v37  ;;  %v4506_v58 = vmax.f32 %v4410_v6, -27.631021  ;;  %v11143_v8 = vmul.f32 -0.505, %v10957_v43 }
 0x40e   : > { %v5249_v14 = vadd.f32 %v5153_v16, %v11050_v7  ;;  %v5173_v62 = vmul.f32 %v12539_v11, %v4863_v42  ;;  %v11140_v21 = vmul.f32 %v4484_v38, %v12540_v35  ;;  %v3887_v7 = vmul.f32 0.6931472, %v7106_v26  ;;  %v7108_v10 = vpop.eup %7107  ;;  %v11155_v38 = vpop.f32.mrb[91].mxu0 }
 0x40f   : > { %7121 = vlog2.f32 %v3722_v15  ;;  %v11146_v51 = vmul.f32 %v4506_v58, %v12541_v2  ;;  %v2781_v25 = vmax.f32 %v2589_v59, 0.0  ;;  %v7110_v19 = vpop.eup %7109  ;;  %v4817_v47 = vmul.f32 0.6931472, %v7108_v10  ;;  %v11158_v11 = vpop.f32.mrb[92].mxu1 }
 0x410   : > { %v5345_v61 = vsub.f32 0.0, %v5249_v14  ;;  %v5269_v13 = vadd.f32 %v5173_v62, %v11059_v49  ;;  %v4013_v30 = vmul.f32 -0.505, %v3887_v7  ;;  %v2387_v37 = vmul.f32 2.0, %v10760_v22  ;;  %v7112_v23 = vpop.eup %7111  ;;  %v12543_v22 = vld [vmem:[#allocation123_spill] sm:$0xff] }
 0x411   : > { %vm5489_vm3 = vcmp.lt.s32.totalorder %v11044_v32, 300  ;;  %v4295_v43 = vmul.f32 0.31184378, %v7110_v19  ;;  %v3645_v12 = vmul.f32 100.0, %v2781_v25  ;;  %v12542_v39 = vsub.f32 1.0, %v12520_v56 }
 0x412   : > { %v5648_v15 = vsel %vm11133_vm1, %v5345_v61, 0.0  ;;  %v5365_v16 = vsub.f32 0.0, %v5269_v13  ;;  %v4867_v26 = vmul.f32 0.6931472, %v7112_v23  ;;  %v4174_v42 = vmul.f32 1.442695, %v4013_v30  ;;  %v7114_v50 = vpop.eup %7113  ;;  %vm5576_vm10 = vmand %vm5489_vm3, %vm5498_vm14 }
 0x413   : > { %v5150_v6 = vmul.f32 %v12542_v39, %v4817_v47  ;;  %v4583_v49 = vsub.f32 1.0, %v4295_v43  ;;  %v4397_v59 = vadd.f32 -1.1652529, %v4013_v30  ;;  %v3741_v14 = vadd.f32 1.0, %v3645_v12  ;;  %vm5573_vm1 = vmand %vm5488_vm7, %vm5498_vm14 }
 0x414   : > { %v2483_v58 = vsub.f32 %v12543_v22, %v2387_v37  ;;  %v5668_v62 = vsel %vm5488_vm7, %v5365_v16, 0.0  ;;  %v12544_v56 = vsub.f32 1.0, %v12524_v44  ;;  %7123 = vpow2.f32 %v4174_v42  ;;  %v12548_v16 = vld [vmem:[#allocation171_spill] sm:$0xff] }
 0x415   : > { %v5246_v7 = vadd.f32 %v5150_v6, %v11064_v31  ;;  %v7116_v61 = vpop.eup %7115  ;;  %v11166_v25 = vadd.f32 %v11067_v53, %v5668_v62  ;;  %v4679_v47 = vadd.f32 1e-12, %v4583_v49  ;;  %v4493_v30 = vmax.f32 %v4397_v59, -27.631021 }
 0x416   : > { %v5175_v10 = vmul.f32 %v12544_v56, %v4867_v26  ;;  %v3915_v37 = vmul.f32 0.6931472, %v7114_v50  ;;  %v7118_v31 = vpop.eup %7117  ;;  %v4312_v43 = vmul.f32 0.31184378, %v7116_v61  ;;  %7125 = vlog2.f32 %v3741_v14  ;;  %v11180_v26 = vpop.f32.mrb[92].mxu0 }
 0x417   : > { %v5342_v23 = vsub.f32 0.0, %v5246_v7  ;;  %v7120_v12 = vpop.eup %7119  ;;  %7127 = vlog2.f32 %v4679_v47  ;;  %v4292_v53 = vmul.f32 0.31184378, %v7118_v31  ;;  %v11178_v39 = vmul.f32 %v4493_v30, %v12548_v16 }
 0x418   : > { %v5271_v44 = vadd.f32 %v5175_v10, %v11078_v18  ;;  %v4027_v6 = vmul.f32 -0.505, %v3915_v37  ;;  %v4600_v22 = vsub.f32 1.0, %v4312_v43  ;;  %v4314_v50 = vmul.f32 0.31184378, %v7120_v12 }
 0x419   : > { %v7122_v42 = vpop.eup %7121  ;;  %v5645_v49 = vsel %vm11172_vm9, %v5342_v23, 0.0  ;;  %v4580_v62 = vsub.f32 1.0, %v4292_v53  ;;  %v11193_v23 = vmul.f32 0.31184378, %v10934_v28  ;;  %v2398_v43 = vmul.f32 2.0, %v10971_v54  ;;  %v12549_v53 = vld [vmem:[#allocation32_spill] sm:$0xff] }
 0x41a   : > { %v5367_v59 = vsub.f32 0.0, %v5271_v44  ;;  %v5738_v18 = vadd.f32 %v11109_v41, %v5645_v49  ;;  %v4202_v14 = vmul.f32 1.442695, %v4027_v6  ;;  %v4411_v7 = vadd.f32 -1.1652529, %v4027_v6 }
 0x41b   : > { %v4696_v10 = vadd.f32 1e-12, %v4600_v22  ;;  %v4602_v61 = vsub.f32 1.0, %v4314_v50  ;;  %v3881_v19 = vmul.f32 0.6931472, %v7122_v42  ;;  %v2579_v44 = vmax.f32 %v2483_v58, 0.0 }
 0x41c   : > { %v5670_v56 = vsel %vm5489_vm3, %v5367_v59, 0.0  ;;  %v4676_v30 = vadd.f32 1e-12, %v4580_v62  ;;  %v11190_v13 = vadd.f32 %v5738_v18, %v5648_v15  ;;  %7129 = vpow2.f32 %v4202_v14  ;;  %v12550_v22 = vld [vmem:[#allocation62_spill] sm:$0xff] }
 0x41d   : > { %v11188_v47 = vadd.f32 %v11114_v3, %v5670_v56  ;;  %7131 = vlog2.f32 %v4696_v10  ;;  %v4698_v37 = vadd.f32 1e-12, %v4602_v61  ;;  %v4507_v31 = vmax.f32 %v4411_v7, -27.631021 }
 0x41e   : > { %v4010_v41 = vmul.f32 -0.505, %v3881_v19  ;;  %7133 = vlog2.f32 %v4676_v30  ;;  %v7124_v12 = vpop.eup %7123  ;;  %v5415_v42 = vadd.s32 208, %v9567_v55  ;;  %v2771_v59 = vmax.f32 %v2579_v44, 0.0  ;;  %v12551_v19 = vld [vmem:[#allocation108_spill] sm:$0xff] }
 0x41f   : > { %7135 = vlog2.f32 %v4698_v37  ;;  %v11197_v3 = vmul.f32 %v4507_v31, %v12549_v53  ;;  %v4301_v49 = vmul.f32 0.31184378, %v7124_v12  ;;  %v2494_v50 = vsub.f32 %v12550_v22, %v2398_v43  ;;  %v12552_v37 = vld [vmem:[#allocation107_spill] sm:$0xff] }
 0x420   : > { %v4168_v6 = vmul.f32 1.442695, %v4010_v41  ;;  %v4394_v15 = vadd.f32 -1.1652529, %v4010_v41  ;;  %v7126_v18 = vpop.eup %7125  ;;  %v2384_v58 = vmul.f32 2.0, %v10982_v24  ;;  %v2400_v54 = vmul.f32 2.0, %v11009_v33 }
 0x421   : > { %v7128_v62 = vpop.eup %7127  ;;  %v4589_v14 = vsub.f32 1.0, %v4301_v49  ;;  %v3919_v7 = vmul.f32 0.6931472, %v7126_v18  ;;  %v3635_v56 = vmul.f32 100.0, %v2771_v59  ;;  %v2590_v10 = vmax.f32 %v2494_v50, 0.0  ;;  %v12553_v41 = vld [vmem:[#allocation149_spill] sm:$0xff] }
 0x422   : > { %7137 = vpow2.f32 %v4168_v6  ;;  %v4490_v28 = vmax.f32 %v4394_v15, -27.631021  ;;  %v4835_v61 = vmul.f32 0.6931472, %v7128_v62  ;;  %v2480_v31 = vsub.f32 %v12552_v37, %v2384_v58  ;;  %v11213_v50 = vpop.f32.mrb[93].mxu1  ;;  %v11216_v37 = vpop.f32.mrb[93].mxu0 }
 0x423   : > { %v2496_v44 = vsub.f32 %v12553_v41, %v2400_v54  ;;  %v4685_v43 = vadd.f32 1e-12, %v4589_v14  ;;  %v4029_v12 = vmul.f32 -0.505, %v3919_v7  ;;  %v3731_v6 = vadd.f32 1.0, %v3635_v56 }
 0x424   : > { %v11204_v30 = vmul.f32 %v4490_v28, %v12551_v19  ;;  %v2782_v15 = vmax.f32 %v2590_v10, 0.0  ;;  %v12554_v24 = vsub.f32 1.0, %v12533_v17  ;;  %v11211_v49 = vadd.s32 %v9554_v63, %v5415_v42 }
 0x425   : > { %v2576_v59 = vmax.f32 %v2480_v31, 0.0  ;;  %v2592_v22 = vmax.f32 %v2496_v44, 0.0  ;;  %7139 = vlog2.f32 %v4685_v43  ;;  %v4206_v28 = vmul.f32 1.442695, %v4029_v12 }
 0x426   : > { %v5159_v33 = vmul.f32 %v12554_v24, %v4835_v61  ;;  %v7130_v18 = vpop.eup %7129  ;;  %v4413_v58 = vadd.f32 -1.1652529, %v4029_v12  ;;  %v3646_v62 = vmul.f32 100.0, %v2782_v15  ;;  %7141 = vlog2.f32 %v3731_v6 }
 0x427   : > { %v7132_v54 = vpop.eup %7131  ;;  %v4315_v7 = vmul.f32 0.31184378, %v7130_v18  ;;  %v2768_v56 = vmax.f32 %v2576_v59, 0.0  ;;  %7143 = vpow2.f32 %v4206_v28  ;;  %v5416_v43 = vadd.s32 216, %v9567_v55 }
 0x428   : > { %v5255_v14 = vadd.f32 %v5159_v33, %v11117_v46  ;;  %v7134_v17 = vpop.eup %7133  ;;  %v4869_v10 = vmul.f32 0.6931472, %v7132_v54  ;;  %v4509_v42 = vmax.f32 %v4413_v58, -27.631021  ;;  %v3742_v61 = vadd.f32 1.0, %v3646_v62  ;;  %v12556_v33 = vld [vmem:[#allocation73_spill] sm:$0xff] }
 0x429   : > { %v7136_v31 = vpop.eup %7135  ;;  %v4829_v41 = vmul.f32 0.6931472, %v7134_v17  ;;  %v4603_v44 = vsub.f32 1.0, %v4315_v7  ;;  %v3632_v12 = vmul.f32 100.0, %v2768_v56  ;;  %v12555_v15 = vsub.f32 1.0, %v12536_v34 }
 0x42a   : > { %v4873_v46 = vmul.f32 0.6931472, %v7136_v31  ;;  %v11222_v6 = vmul.f32 %v4509_v42, %v12556_v33  ;;  %7145 = vlog2.f32 %v3742_v61  ;;  %v5351_v18 = vsub.f32 0.0, %v5255_v14  ;;  %v12560_v61 = vld [vmem:[#allocation72_spill] sm:$0xff] }
 0x42b   : > { %v5176_v24 = vmul.f32 %v12555_v15, %v4869_v10  ;;  %v12557_v28 = vsub.f32 1.0, %v12540_v35  ;;  %v4699_v62 = vadd.f32 1e-12, %v4603_v44  ;;  %v3728_v54 = vadd.f32 1.0, %v3632_v12 }
 0x42c   : > { %v7138_v59 = vpop.eup %7137  ;;  %v12558_v17 = vsub.f32 1.0, %v12541_v2  ;;  %v2784_v34 = vmax.f32 %v2592_v22, 0.0  ;;  %vm5490_vm15 = vcmp.lt.s32.totalorder %v11211_v49, 300  ;;  %v2393_v35 = vmul.f32 2.0, %v11034_v1 }
 0x42d   : > { %v5156_v58 = vmul.f32 %v12557_v28, %v4829_v41  ;;  %v5272_v7 = vadd.f32 %v5176_v24, %v11127_v20  ;;  %v4298_v36 = vmul.f32 0.31184378, %v7138_v59  ;;  %7147 = vlog2.f32 %v4699_v62  ;;  %v11250_v28 = vpop.f32.mrb[94].mxu1 }
 0x42e   : > { %v5178_v56 = vmul.f32 %v12558_v17, %v4873_v46  ;;  %7149 = vlog2.f32 %v3728_v54  ;;  %v11242_v27 = vadd.s32 %v9554_v63, %v5416_v43  ;;  %v2489_v31 = vsub.f32 %v12560_v61, %v2393_v35 }
 0x42f   : > { %v5252_v10 = vadd.f32 %v5156_v58, %v11140_v21  ;;  %v5368_v14 = vsub.f32 0.0, %v5272_v7  ;;  %v4586_v22 = vsub.f32 1.0, %v4298_v36  ;;  %v3648_v21 = vmul.f32 100.0, %v2784_v34  ;;  %v7140_v41 = vpop.eup %7139 }
 0x430   : > { %v5274_v2 = vadd.f32 %v5178_v56, %v11146_v51  ;;  %v5654_v44 = vsel %vm5558_vm0, %v5351_v18, 0.0  ;;  %v7142_v24 = vpop.eup %7141  ;;  %v4847_v51 = vmul.f32 0.6931472, %v7140_v41  ;;  %v12561_v7 = vsub.f32 1.0, %v12548_v16 }
 0x431   : > { %v5348_v42 = vsub.f32 0.0, %v5252_v10  ;;  %v5671_v1 = vsel %vm5489_vm3, %v5368_v14, 0.0  ;;  %v4682_v15 = vadd.f32 1e-12, %v4586_v22  ;;  %v3744_v59 = vadd.f32 1.0, %v3648_v21  ;;  %v7144_v43 = vpop.eup %7143  ;;  %v12562_v10 = vld [vmem:[#allocation15_spill] sm:$0xff]  ;;  %vm11518_vm3 = vmand %vm5490_vm15, %vm5498_vm14 }
 0x432   : > { %v5370_v12 = vsub.f32 0.0, %v5274_v2  ;;  %v11248_v46 = vadd.f32 %v11166_v25, %v5671_v1  ;;  %v3899_v62 = vmul.f32 0.6931472, %v7142_v24  ;;  %v5165_v25 = vmul.f32 %v12561_v7, %v4847_v51 }
 0x433   : > { %v5651_v36 = vsel %vm5555_vm11, %v5348_v42, 0.0  ;;  %7151 = vlog2.f32 %v4682_v15  ;;  %v4317_v17 = vmul.f32 0.31184378, %v7144_v43  ;;  %v11263_v35 = vmul.f32 0.31184378, %v12562_v10  ;;  %v11269_v42 = vpop.f32.mrb[94].mxu0 }
 0x434   : > { %v5744_v58 = vadd.f32 %v11190_v13, %v5651_v36  ;;  %v5673_v18 = vsel %vm5490_vm15, %v5370_v12, 0.0  ;;  %7153 = vlog2.f32 %v3744_v59  ;;  %v7146_v56 = vpop.eup %7145  ;;  %v4019_v13 = vmul.f32 -0.505, %v3899_v62  ;;  %v12563_v15 = vld [vmem:[#allocation151_spill] sm:$0xff] }
 0x435   : > { %v11256_v54 = vadd.f32 %v11188_v47, %v5673_v18  ;;  %v2585_v14 = vmax.f32 %v2489_v31, 0.0  ;;  %v11266_v20 = vadd.f32 %v5165_v25, %v11178_v39  ;;  %v4605_v2 = vsub.f32 1.0, %v4317_v17  ;;  %v11277_v18 = vpop.f32.mrb[95].mxu1 }
 0x436   : > { %v11260_v34 = vadd.f32 %v5744_v58, %v5654_v44  ;;  %v3921_v22 = vmul.f32 0.6931472, %v7146_v56  ;;  %v2401_v47 = vmul.f32 2.0, %v11054_v40  ;;  %v4186_v16 = vmul.f32 1.442695, %v4019_v13  ;;  %v11284_v56 = vpop.f32.mrb[95].mxu0 }
 0x437   : > { %v4403_v21 = vadd.f32 -1.1652529, %v4019_v13  ;;  %v11272_v61 = vadd.s32 224, %v9567_v55  ;;  %v2777_v41 = vmax.f32 %v2585_v14, 0.0  ;;  %v7148_v44 = vpop.eup %7147  ;;  %v4701_v1 = vadd.f32 1e-12, %v4605_v2 }
 0x438   : > { %v4030_v12 = vmul.f32 -0.505, %v3921_v22  ;;  %v2497_v31 = vsub.f32 %v12563_v15, %v2401_v47  ;;  %v2390_v39 = vmul.f32 2.0, %v11071_v0  ;;  %v7150_v24 = vpop.eup %7149  ;;  %v4875_v36 = vmul.f32 0.6931472, %v7148_v44  ;;  %v12565_v14 = vld [vmem:[#allocation128_spill] sm:$0xff] }
 0x439   : > { %7155 = vpow2.f32 %v4186_v16  ;;  %v4499_v51 = vmax.f32 %v4403_v21, -27.631021  ;;  %v3641_v40 = vmul.f32 100.0, %v2777_v41  ;;  %v5357_v59 = vsub.f32 0.0, %v11266_v20  ;;  %v12566_v41 = vld [vmem:[#allocation112_spill] sm:$0xff] }
 0x43a   : > { %7157 = vlog2.f32 %v4701_v1  ;;  %v4208_v43 = vmul.f32 1.442695, %v4030_v12  ;;  %v4414_v58 = vadd.f32 -1.1652529, %v4030_v12  ;;  %v12564_v62 = vsub.f32 1.0, %v12549_v53 }
 0x43b   : > { %v11282_v25 = vmul.f32 %v4499_v51, %v11263_v35  ;;  %v3893_v17 = vmul.f32 0.6931472, %v7150_v24  ;;  %v3737_v0 = vadd.f32 1.0, %v3641_v40  ;;  %v2593_v13 = vmax.f32 %v2497_v31, 0.0  ;;  %v12567_v31 = vld [vmem:[#allocation75_spill] sm:$0xff] }
 0x43c   : > { %v5179_v7 = vmul.f32 %v12564_v62, %v4875_v36  ;;  %7159 = vpow2.f32 %v4208_v43  ;;  %v4510_v10 = vmax.f32 %v4414_v58, -27.631021  ;;  %v2486_v20 = vsub.f32 %v12565_v14, %v2390_v39 }
 0x43d   : > { %v7152_v2 = vpop.eup %7151  ;;  %v4016_v47 = vmul.f32 -0.505, %v3893_v17  ;;  %7161 = vlog2.f32 %v3737_v0  ;;  %v2403_v53 = vmul.f32 2.0, %v11091_v9  ;;  %v2785_v1 = vmax.f32 %v2593_v13, 0.0 }
 0x43e   : > { %v5275_v22 = vadd.f32 %v5179_v7, %v11197_v3  ;;  %v7154_v16 = vpop.eup %7153  ;;  %v4841_v21 = vmul.f32 0.6931472, %v7152_v2  ;;  %v11290_v44 = vmul.f32 %v4510_v10, %v12566_v41  ;;  %v2582_v12 = vmax.f32 %v2486_v20, 0.0  ;;  %v12573_v20 = vld [vmem:[#allocation178_spill] sm:$0xff] }
 0x43f   : > { %v4180_v24 = vmul.f32 1.442695, %v4016_v47  ;;  %v4400_v36 = vadd.f32 -1.1652529, %v4016_v47  ;;  %v2499_v51 = vsub.f32 %v12567_v31, %v2403_v53  ;;  %v12568_v39 = vsub.f32 1.0, %v12551_v19 }
 0x440   : > { %v5371_v15 = vsub.f32 0.0, %v5275_v22  ;;  %v3925_v3 = vmul.f32 0.6931472, %v7154_v16  ;;  %v3649_v43 = vmul.f32 100.0, %v2785_v1  ;;  %v2774_v58 = vmax.f32 %v2582_v12, 0.0 }
 0x441   : > { %v5162_v40 = vmul.f32 %v12568_v39, %v4841_v21  ;;  %7163 = vpow2.f32 %v4180_v24  ;;  %v4496_v62 = vmax.f32 %v4400_v36, -27.631021  ;;  %v2595_v7 = vmax.f32 %v2499_v51, 0.0 }
 0x442   : > { %v5674_v9 = vsel %vm5490_vm15, %v5371_v15, 0.0  ;;  %vm5491_vm4 = vcmp.lt.s32.totalorder %v11242_v27, 300  ;;  %v4032_v10 = vmul.f32 -0.505, %v3925_v3  ;;  %v3745_v13 = vadd.f32 1.0, %v3649_v43 }
 0x443   : > { %v11306_v19 = vadd.f32 %v11248_v46, %v5674_v9  ;;  %v5258_v0 = vadd.f32 %v5162_v40, %v11204_v30  ;;  %v7156_v14 = vpop.eup %7155  ;;  %v11319_v2 = vmul.f32 %v4496_v62, %v12573_v20  ;;  %v12574_v46 = vld [vmem:[#allocation189_spill] sm:$0xff]  ;;  %v3638_v30 = vmul.f32 100.0, %v2774_v58  ;;  %vm5582_vm9 = vmand %vm5491_vm4, %vm5498_vm14 }
 0x444   : > { %v11322_v22 = vmul.f32 0.31184378, %v12574_v46  ;;  %v2787_v47 = vmax.f32 %v2595_v7, 0.0  ;;  %v7158_v53 = vpop.eup %7157  ;;  %v4307_v21 = vmul.f32 0.31184378, %v7156_v14  ;;  %7165 = vlog2.f32 %v3745_v13  ;;  %v12576_v14 = vld [vmem:[#allocation14_spill] sm:$0xff] }
 0x445   : > { %v5354_v16 = vsub.f32 0.0, %v5258_v0  ;;  %v4212_v1 = vmul.f32 1.442695, %v4032_v10  ;;  %v4879_v12 = vmul.f32 0.6931472, %v7158_v53  ;;  %v3734_v48 = vadd.f32 1.0, %v3638_v30 }
 0x446   : > { %v4416_v15 = vadd.f32 -1.1652529, %v4032_v10  ;;  %v3651_v24 = vmul.f32 100.0, %v2787_v47  ;;  %v7160_v36 = vpop.eup %7159  ;;  %v5660_v31 = vsel %vm11301_vm2, %v5357_v59, 0.0  ;;  %v4595_v39 = vsub.f32 1.0, %v4307_v21 }
 0x447   : > { %v5657_v51 = vsel %vm11314_vm5, %v5354_v16, 0.0  ;;  %7167 = vpow2.f32 %v4212_v1  ;;  %v7162_v40 = vpop.eup %7161  ;;  %v12575_v43 = vsub.f32 1.0, %v12556_v33  ;;  %v4318_v9 = vmul.f32 0.31184378, %v7160_v36 }
 0x448   : > { %v5750_v3 = vadd.f32 %v11260_v34, %v5657_v51  ;;  %v4512_v62 = vmax.f32 %v4416_v15, -27.631021  ;;  %v4691_v7 = vadd.f32 1e-12, %v4595_v39  ;;  %v3911_v0 = vmul.f32 0.6931472, %v7162_v40 }
 0x449   : > { %v5181_v58 = vmul.f32 %v12575_v43, %v4879_v12  ;;  %7169 = vlog2.f32 %v3734_v48  ;;  %v3747_v10 = vadd.f32 1.0, %v3651_v24  ;;  %v4606_v59 = vsub.f32 1.0, %v4318_v9  ;;  %v12577_v12 = vld [vmem:[#allocation145_spill] sm:$0xff]  ;;  %v12578_v40 = vld [vmem:[#allocation158_spill] sm:$0xff] }
 0x44a   : > { %v11332_v13 = vadd.f32 %v5750_v3, %v5660_v31  ;;  %v11335_v4 = vmul.f32 %v4512_v62, %v12576_v14  ;;  %7171 = vlog2.f32 %v4691_v7  ;;  %v5075_v34 = vsub.f32 1.0, %v11263_v35 }
 0x44b   : > { %v5277_v17 = vadd.f32 %v5181_v58, %v11222_v6  ;;  %v4025_v46 = vmul.f32 -0.505, %v3911_v0  ;;  %v2399_v33 = vmul.f32 2.0, %v11103_v29  ;;  %v7164_v30 = vpop.eup %7163  ;;  %v4702_v53 = vadd.f32 1e-12, %v4606_v59 }
 0x44c   : > { %v11341_v16 = vadd.s32 %v9554_v63, %v11272_v61  ;;  %7173 = vlog2.f32 %v3747_v10  ;;  %v4304_v6 = vmul.f32 0.31184378, %v7164_v30  ;;  %v5081_v35 = vsub.f32 1.0, %v11322_v22  ;;  %v12580_v30 = vld [vmem:[#allocation140_spill] sm:$0xff] }
 0x44d   : > { %v5373_v47 = vsub.f32 0.0, %v5277_v17  ;;  %v4198_v21 = vmul.f32 1.442695, %v4025_v46  ;;  %v4409_v1 = vadd.f32 -1.1652529, %v4025_v46  ;;  %v2495_v15 = vsub.f32 %v12577_v12, %v2399_v33  ;;  %v12579_v46 = vld [vmem:[#allocation98_spill] sm:$0xff] }
 0x44e   : > { %7175 = vlog2.f32 %v4702_v53  ;;  %v2404_v29 = vmul.f32 2.0, %v11123_v45  ;;  %v7166_v24 = vpop.eup %7165  ;;  %v4592_v61 = vsub.f32 1.0, %v4304_v6  ;;  %v2396_v43 = vmul.f32 2.0, %v11155_v38 }
 0x44f   : > { %v5676_v48 = vsel %vm5491_vm4, %v5373_v47, 0.0  ;;  %7177 = vpow2.f32 %v4198_v21  ;;  %v4505_v31 = vmax.f32 %v4409_v1, -27.631021  ;;  %v3927_v51 = vmul.f32 0.6931472, %v7166_v24  ;;  %v12581_v47 = vld [vmem:[#allocation99_spill] sm:$0xff] }
 0x450   : > { %v11349_v36 = vadd.f32 %v11256_v54, %v5676_v48  ;;  %v2591_v39 = vmax.f32 %v2495_v15, 0.0  ;;  %v2500_v3 = vsub.f32 %v12578_v40, %v2404_v29  ;;  %v4688_v9 = vadd.f32 1e-12, %v4592_v61 }
 0x451   : > { %v7168_v58 = vpop.eup %7167  ;;  %v11354_v62 = vmul.f32 %v4505_v31, %v11322_v22  ;;  %v5418_v45 = vadd.s32 232, %v9567_v55  ;;  %v2406_v7 = vmul.f32 2.0, %v11158_v11  ;;  %v4033_v0 = vmul.f32 -0.505, %v3927_v51 }
 0x452   : > { %v4320_v54 = vmul.f32 0.31184378, %v7168_v58  ;;  %v2783_v10 = vmax.f32 %v2591_v39, 0.0  ;;  %v2596_v17 = vmax.f32 %v2500_v3, 0.0  ;;  %7179 = vlog2.f32 %v4688_v9 }
 0x453   : > { %v7170_v59 = vpop.eup %7169  ;;  %v11359_v33 = vmul.f32 0.31184378, %v12579_v46  ;;  %v2492_v38 = vsub.f32 %v12580_v30, %v2396_v43  ;;  %v2502_v53 = vsub.f32 %v12581_v47, %v2406_v7  ;;  %v4214_v21 = vmul.f32 1.442695, %v4033_v0 }
 0x454   : > { %v4608_v6 = vsub.f32 1.0, %v4320_v54  ;;  %v4417_v1 = vadd.f32 -1.1652529, %v4033_v0  ;;  %v3647_v12 = vmul.f32 100.0, %v2783_v10  ;;  %v7172_v15 = vpop.eup %7171  ;;  %v3905_v48 = vmul.f32 0.6931472, %v7170_v59 }
 0x455   : > { %v2788_v11 = vmax.f32 %v2596_v17, 0.0  ;;  %v2588_v29 = vmax.f32 %v2492_v38, 0.0  ;;  %v2598_v24 = vmax.f32 %v2502_v53, 0.0  ;;  %v4859_v31 = vmul.f32 0.6931472, %v7172_v15  ;;  %v12582_v54 = vld [vmem:[#allocation117_spill] sm:$0xff] }
 0x456   : > { %v7174_v61 = vpop.eup %7173  ;;  %v4704_v51 = vadd.f32 1e-12, %v4608_v6  ;;  %7181 = vpow2.f32 %v4214_v21  ;;  %v4513_v39 = vmax.f32 %v4417_v1, -27.631021  ;;  %v4022_v40 = vmul.f32 -0.505, %v3905_v48 }
 0x457   : > { %v3931_v3 = vmul.f32 0.6931472, %v7174_v61  ;;  %v3743_v58 = vadd.f32 1.0, %v3647_v12  ;;  %v3652_v43 = vmul.f32 100.0, %v2788_v11  ;;  %v5171_v7 = vmul.f32 %v5075_v34, %v4859_v31 }
 0x458   : > { %v7176_v9 = vpop.eup %7175  ;;  %7183 = vlog2.f32 %v4704_v51  ;;  %v11364_v0 = vmul.f32 %v4513_v39, %v12582_v54  ;;  %v2780_v10 = vmax.f32 %v2588_v29, 0.0  ;;  %v4192_v46 = vmul.f32 1.442695, %v4022_v40  ;;  %v12584_v51 = vld [vmem:[#allocation185_spill] sm:$0xff] }
 0x459   : > { %v7178_v59 = vpop.eup %7177  ;;  %v4881_v17 = vmul.f32 0.6931472, %v7176_v9  ;;  %v4406_v30 = vadd.f32 -1.1652529, %v4022_v40  ;;  %7185 = vlog2.f32 %v3743_v58  ;;  %v5267_v38 = vadd.f32 %v5171_v7, %v11282_v25  ;;  %v12592_v58 = vld [vmem:[#allocation81_spill] sm:$0xff] }
 0x45a   : > { %v4313_v47 = vmul.f32 0.31184378, %v7178_v59  ;;  %v4035_v53 = vmul.f32 -0.505, %v3931_v3  ;;  %v3748_v6 = vadd.f32 1.0, %v3652_v43  ;;  %v12583_v21 = vsub.f32 1.0, %v12566_v41 }
 0x45b   : > { %7187 = vpow2.f32 %v4192_v46  ;;  %v4502_v34 = vmax.f32 %v4406_v30, -27.631021  ;;  %v3644_v12 = vmul.f32 100.0, %v2780_v10  ;;  %v11370_v29 = vadd.s32 %v9554_v63, %v5418_v45  ;;  %v12588_v30 = vld [vmem:[#allocation85_spill] sm:$0xff] }
 0x45c   : > { %v5182_v1 = vmul.f32 %v12583_v21, %v4881_v17  ;;  %v4601_v15 = vsub.f32 1.0, %v4313_v47  ;;  %v4218_v48 = vmul.f32 1.442695, %v4035_v53  ;;  %v4419_v11 = vadd.f32 -1.1652529, %v4035_v53  ;;  %v7180_v61 = vpop.eup %7179  ;;  %v12589_v21 = vld [vmem:[#allocation160_spill] sm:$0xff] }
 0x45d   : > { %v11374_v25 = vmul.f32 %v4502_v34, %v12584_v51  ;;  %7189 = vlog2.f32 %v3748_v6  ;;  %v3740_v39 = vadd.f32 1.0, %v3644_v12  ;;  %v5363_v40 = vsub.f32 0.0, %v5267_v38 }
 0x45e   : > { %v5278_v31 = vadd.f32 %v5182_v1, %v11290_v44  ;;  %v4853_v41 = vmul.f32 0.6931472, %v7180_v61  ;;  %v4697_v3 = vadd.f32 1e-12, %v4601_v15  ;;  %7191 = vpow2.f32 %v4218_v48 }
 0x45f   : > { %v4515_v43 = vmax.f32 %v4419_v11, -27.631021  ;;  %7193 = vlog2.f32 %v3740_v39  ;;  %v2790_v44 = vmax.f32 %v2598_v24, 0.0  ;;  %v12587_v7 = vsub.f32 1.0, %v12573_v20 }
 0x460   : > { %v5374_v45 = vsub.f32 0.0, %v5278_v31  ;;  %v7182_v9 = vpop.eup %7181  ;;  %vm5492_vm8 = vcmp.lt.s32.totalorder %v11341_v16, 300  ;;  %7195 = vlog2.f32 %v4697_v3  ;;  %v5087_v59 = vsub.f32 1.0, %v11359_v33 }
 0x461   : > { %v5168_v10 = vmul.f32 %v12587_v7, %v4853_v41  ;;  %v2405_v17 = vmul.f32 2.0, %v11180_v26  ;;  %v4321_v46 = vmul.f32 0.31184378, %v7182_v9  ;;  %v11392_v38 = vmul.f32 %v4515_v43, %v12588_v30  ;;  %vm5585_vm0 = vmand %vm5492_vm8, %vm5498_vm14 }
 0x462   : > { %v5677_v57 = vsel %vm5491_vm4, %v5374_v45, 0.0  ;;  %v3654_v47 = vmul.f32 100.0, %v2790_v44  ;;  %v7184_v24 = vpop.eup %7183  ;;  %v5666_v20 = vsel %vm11380_vm6, %v5363_v40, 0.0  ;;  %v2407_v48 = vmul.f32 2.0, %v11213_v50 }
 0x463   : > { %v11397_v53 = vadd.f32 %v11306_v19, %v5677_v57  ;;  %v5264_v6 = vadd.f32 %v5168_v10, %v11319_v2  ;;  %v2501_v1 = vsub.f32 %v12589_v21, %v2405_v17  ;;  %v7186_v26 = vpop.eup %7185  ;;  %v4885_v34 = vmul.f32 0.6931472, %v7184_v24  ;;  %v12590_v19 = vld [vmem:[#allocation113_spill] sm:$0xff] }
 0x464   : > { %v4609_v12 = vsub.f32 1.0, %v4321_v46  ;;  %v3750_v15 = vadd.f32 1.0, %v3654_v47  ;;  %v3923_v61 = vmul.f32 0.6931472, %v7186_v26  ;;  %v11407_v39 = vmul.f32 0.31184378, %v12590_v19 }
 0x465   : > { %v5360_v11 = vsub.f32 0.0, %v5264_v6  ;;  %v2597_v31 = vmax.f32 %v2501_v1, 0.0  ;;  %v7188_v2 = vpop.eup %7187  ;;  %v12591_v40 = vsub.f32 1.0, %v12576_v14  ;;  %v2503_v5 = vsub.f32 %v12592_v58, %v2407_v48 }
 0x466   : > { %v4705_v3 = vadd.f32 1e-12, %v4609_v12  ;;  %7197 = vlog2.f32 %v3750_v15  ;;  %v4310_v43 = vmul.f32 0.31184378, %v7188_v2  ;;  %v4031_v44 = vmul.f32 -0.505, %v3923_v61 }
 0x467   : > { %v5184_v41 = vmul.f32 %v12591_v40, %v4885_v34  ;;  %v5663_v45 = vsel %vm5567_vm12, %v5360_v11, 0.0  ;;  %v2789_v9 = vmax.f32 %v2597_v31, 0.0  ;;  %v7190_v7 = vpop.eup %7189  ;;  %v2599_v17 = vmax.f32 %v2503_v5, 0.0 }
 0x468   : > { %v5756_v50 = vadd.f32 %v11332_v13, %v5663_v45  ;;  %7199 = vlog2.f32 %v4705_v3  ;;  %v7192_v57 = vpop.eup %7191  ;;  %v4598_v46 = vsub.f32 1.0, %v4310_v43  ;;  %v4210_v47 = vmul.f32 1.442695, %v4031_v44 }
 0x469   : > { %v5280_v10 = vadd.f32 %v5184_v41, %v11335_v4  ;;  %v4415_v14 = vadd.f32 -1.1652529, %v4031_v44  ;;  %v3653_v24 = vmul.f32 100.0, %v2789_v9  ;;  %v7194_v6 = vpop.eup %7193  ;;  %v4323_v26 = vmul.f32 0.31184378, %v7192_v57 }
 0x46a   : > { %v11414_v1 = vadd.f32 %v5756_v50, %v5666_v20  ;;  %v3933_v34 = vmul.f32 0.6931472, %v7190_v7  ;;  %v7196_v12 = vpop.eup %7195  ;;  %v4694_v15 = vadd.f32 1e-12, %v4598_v46  ;;  %7201 = vpow2.f32 %v4210_v47  ;;  %v12593_v47 = vld [vmem:[#allocation35_spill] sm:$0xff] }
 0x46b   : > { %v5376_v21 = vsub.f32 0.0, %v5280_v10  ;;  %v4511_v48 = vmax.f32 %v4415_v14, -27.631021  ;;  %v3917_v13 = vmul.f32 0.6931472, %v7194_v6  ;;  %v4611_v61 = vsub.f32 1.0, %v4323_v26 }
 0x46c   : > { %v4871_v11 = vmul.f32 0.6931472, %v7196_v12  ;;  %v4036_v31 = vmul.f32 -0.505, %v3933_v34  ;;  %7203 = vlog2.f32 %v4694_v15  ;;  %v3749_v43 = vadd.f32 1.0, %v3653_v24  ;;  %v12595_v6 = vld [vmem:[#allocation20_spill] sm:$0xff] }
 0x46d   : > { %v5679_v4 = vsel %vm5492_vm8, %v5376_v21, 0.0  ;;  %v11422_v20 = vmul.f32 %v4511_v48, %v11359_v33  ;;  %v4028_v2 = vmul.f32 -0.505, %v3917_v13  ;;  %v4707_v41 = vadd.f32 1e-12, %v4611_v61 }
 0x46e   : > { %v11419_v19 = vadd.f32 %v11349_v36, %v5679_v4  ;;  %v5177_v40 = vmul.f32 %v5081_v35, %v4871_v11  ;;  %v4220_v3 = vmul.f32 1.442695, %v4036_v31  ;;  %v4420_v58 = vadd.f32 -1.1652529, %v4036_v31 }
 0x46f   : > { %v4204_v5 = vmul.f32 1.442695, %v4028_v2  ;;  %v4412_v45 = vadd.f32 -1.1652529, %v4028_v2  ;;  %v2791_v44 = vmax.f32 %v2599_v17, 0.0  ;;  %7205 = vlog2.f32 %v4707_v41 }
 0x470   : > { %v7198_v9 = vpop.eup %7197  ;;  %v5273_v7 = vadd.f32 %v5177_v40, %v11354_v62  ;;  %v4516_v36 = vmax.f32 %v4420_v58, -27.631021  ;;  %v2402_v50 = vmul.f32 2.0, %v11216_v37  ;;  %7207 = vpow2.f32 %v4220_v3  ;;  %v12594_v62 = vld [vmem:[#allocation152_spill] sm:$0xff] }
 0x471   : > { %v4508_v22 = vmax.f32 %v4412_v45, -27.631021  ;;  %v3937_v35 = vmul.f32 0.6931472, %v7198_v9  ;;  %v3655_v10 = vmul.f32 100.0, %v2791_v44  ;;  %7209 = vpow2.f32 %v4204_v5  ;;  %v12597_v40 = vld [vmem:[#allocation164_spill] sm:$0xff] }
 0x472   : > { %v7200_v57 = vpop.eup %7199  ;;  %v5369_v46 = vsub.f32 0.0, %v5273_v7  ;;  %v11433_v17 = vmul.f32 %v4516_v36, %v12593_v47  ;;  %v2498_v14 = vsub.f32 %v12594_v62, %v2402_v50  ;;  %7211 = vlog2.f32 %v3749_v43  ;;  %v12598_v45 = vld [vmem:[#allocation166_spill] sm:$0xff] }
 0x473   : > { %v4887_v24 = vmul.f32 0.6931472, %v7200_v57  ;;  %v11437_v37 = vmul.f32 %v4508_v22, %v12595_v6  ;;  %v4038_v21 = vmul.f32 -0.505, %v3937_v35  ;;  %v3751_v26 = vadd.f32 1.0, %v3655_v10 }
 0x474   : > { %v11439_v32 = vsel %vm5576_vm10, %v5369_v46, 0.0  ;;  %v2594_v34 = vmax.f32 %v2498_v14, 0.0  ;;  %v2409_v12 = vmul.f32 2.0, %v11250_v28  ;;  %v7202_v15 = vpop.eup %7201  ;;  %v12596_v48 = vsub.f32 1.0, %v12582_v54 }
 0x475   : > { %v4224_v4 = vmul.f32 1.442695, %v4038_v21  ;;  %v4422_v11 = vadd.f32 -1.1652529, %v4038_v21  ;;  %v2411_v61 = vmul.f32 2.0, %v11269_v42  ;;  %7213 = vlog2.f32 %v3751_v26  ;;  %v12599_v42 = vld [vmem:[#allocation101_spill] sm:$0xff] }
 0x476   : > { %v5185_v13 = vmul.f32 %v12596_v48, %v4887_v24  ;;  %v4319_v31 = vmul.f32 0.31184378, %v7202_v15  ;;  %v2786_v2 = vmax.f32 %v2594_v34, 0.0  ;;  %v2505_v41 = vsub.f32 %v12597_v40, %v2409_v12  ;;  %v7204_v3 = vpop.eup %7203  ;;  %v12601_v34 = vld [vmem:[#allocation165_spill] sm:$0xff] }
 0x477   : > { %7215 = vpow2.f32 %v4224_v4  ;;  %v4518_v5 = vmax.f32 %v4422_v11, -27.631021  ;;  %v2507_v28 = vsub.f32 %v12598_v45, %v2411_v61  ;;  %v4865_v43 = vmul.f32 0.6931472, %v7204_v3 }
 0x478   : > { %v5281_v58 = vadd.f32 %v5185_v13, %v11364_v0  ;;  %vm5493_vm13 = vcmp.lt.s32.totalorder %v11370_v29, 300  ;;  %v4607_v54 = vsub.f32 1.0, %v4319_v31  ;;  %v3650_v44 = vmul.f32 100.0, %v2786_v2 }
 0x479   : > { %v2601_v9 = vmax.f32 %v2505_v41, 0.0  ;;  %v11450_v36 = vmul.f32 %v4518_v5, %v12599_v42  ;;  %v2603_v50 = vmax.f32 %v2507_v28, 0.0  ;;  %v2410_v22 = vmul.f32 2.0, %v11277_v18  ;;  %v7206_v35 = vpop.eup %7205  ;;  %vm5588_vm15 = vmand %vm5493_vm13, %vm5498_vm14 }
 0x47a   : > { %v5377_v7 = vsub.f32 0.0, %v5281_v58  ;;  %v12600_v0 = vsub.f32 1.0, %v12584_v51  ;;  %v4703_v57 = vadd.f32 1e-12, %v4607_v54  ;;  %v3746_v46 = vadd.f32 1.0, %v3650_v44  ;;  %v7208_v14 = vpop.eup %7207 }
 0x47b   : > { %v2793_v62 = vmax.f32 %v2601_v9, 0.0  ;;  %v4891_v21 = vmul.f32 0.6931472, %v7206_v35  ;;  %v2795_v26 = vmax.f32 %v2603_v50, 0.0  ;;  %v2506_v12 = vsub.f32 %v12601_v34, %v2410_v22  ;;  %v7210_v15 = vpop.eup %7209 }
 0x47c   : > { %v5174_v10 = vmul.f32 %v12600_v0, %v4865_v43  ;;  %v5680_v24 = vsel %vm5492_vm8, %v5377_v7, 0.0  ;;  %7217 = vlog2.f32 %v4703_v57  ;;  %v4324_v51 = vmul.f32 0.31184378, %v7208_v14  ;;  %v7212_v13 = vpop.eup %7211 }
 0x47d   : > { %v11459_v48 = vadd.f32 %v11397_v53, %v5680_v24  ;;  %v12602_v4 = vsub.f32 1.0, %v12588_v30  ;;  %v4316_v61 = vmul.f32 0.31184378, %v7210_v15  ;;  %7219 = vlog2.f32 %v3746_v46 }
 0x47e   : > { %v5270_v18 = vadd.f32 %v5174_v10, %v11374_v25  ;;  %v3657_v31 = vmul.f32 100.0, %v2793_v62  ;;  %v4612_v40 = vsub.f32 1.0, %v4324_v51  ;;  %v3935_v53 = vmul.f32 0.6931472, %v7212_v13  ;;  %v12603_v13 = vld [vmem:[#allocation150_spill] sm:$0xff] }
 0x47f   : > { %v5187_v11 = vmul.f32 %v12602_v4, %v4891_v21  ;;  %v3659_v41 = vmul.f32 100.0, %v2795_v26  ;;  %v4604_v3 = vsub.f32 1.0, %v4316_v61  ;;  %v2602_v5 = vmax.f32 %v2506_v12, 0.0  ;;  %v7214_v45 = vpop.eup %7213  ;;  %v12604_v61 = vld [vmem:[#allocation102_spill] sm:$0xff] }
 0x480   : > { %v5366_v2 = vsub.f32 0.0, %v5270_v18  ;;  %v3753_v58 = vadd.f32 1.0, %v3657_v31  ;;  %v4708_v43 = vadd.f32 1e-12, %v4612_v40  ;;  %v4037_v52 = vmul.f32 -0.505, %v3935_v53 }
 0x481   : > { %v5283_v25 = vadd.f32 %v5187_v11, %v11392_v38  ;;  %v3755_v54 = vadd.f32 1.0, %v3659_v41  ;;  %v7216_v44 = vpop.eup %7215  ;;  %v4700_v7 = vadd.f32 1e-12, %v4604_v3  ;;  %v3939_v50 = vmul.f32 0.6931472, %v7214_v45 }
 0x482   : > { %v5669_v28 = vsel %vm5573_vm1, %v5366_v2, 0.0  ;;  %7221 = vlog2.f32 %v4708_v43  ;;  %v4326_v22 = vmul.f32 0.31184378, %v7216_v44  ;;  %v4222_v35 = vmul.f32 1.442695, %v4037_v52 }
 0x483   : > { %v5762_v30 = vadd.f32 %v11414_v1, %v5669_v28  ;;  %v5379_v9 = vsub.f32 0.0, %v5283_v25  ;;  %v4421_v0 = vadd.f32 -1.1652529, %v4037_v52  ;;  %7223 = vlog2.f32 %v4700_v7  ;;  %v12605_v25 = vld [vmem:[#allocation141_spill] sm:$0xff] }
 0x484   : > { %v4039_v57 = vmul.f32 -0.505, %v3939_v50  ;;  %v4614_v62 = vsub.f32 1.0, %v4326_v22  ;;  %7225 = vpow2.f32 %v4222_v35  ;;  %v2794_v21 = vmax.f32 %v2602_v5, 0.0  ;;  %v12606_v5 = vld [vmem:[#allocation27_spill] sm:$0xff] }
 0x485   : > { %v5682_v38 = vsel %vm5493_vm13, %v5379_v9, 0.0  ;;  %v11473_v10 = vadd.f32 %v5762_v30, %v11439_v32  ;;  %v4517_v1 = vmax.f32 %v4421_v0, -27.631021  ;;  %7227 = vlog2.f32 %v3753_v58  ;;  %v12607_v0 = vld [vmem:[#allocation74_spill] sm:$0xff] }
 0x486   : > { %v11476_v46 = vadd.f32 %v11419_v19, %v5682_v38  ;;  %v4226_v14 = vmul.f32 1.442695, %v4039_v57  ;;  %v4423_v24 = vadd.f32 -1.1652529, %v4039_v57  ;;  %v7218_v26 = vpop.eup %7217  ;;  %v4710_v34 = vadd.f32 1e-12, %v4614_v62 }
 0x487   : > { %v11479_v12 = vmul.f32 %v4517_v1, %v11407_v39  ;;  %7229 = vlog2.f32 %v3755_v54  ;;  %v2408_v32 = vmul.f32 2.0, %v11284_v56  ;;  %v7220_v15 = vpop.eup %7219  ;;  %v4883_v18 = vmul.f32 0.6931472, %v7218_v26 }
 0x488   : > { %7231 = vpow2.f32 %v4226_v14  ;;  %v4519_v19 = vmax.f32 %v4423_v24, -27.631021  ;;  %v3658_v51 = vmul.f32 100.0, %v2794_v21  ;;  %v3466_v4 = vmul.f32 1.442695, %v12603_v13 }
 0x489   : > { %7233 = vlog2.f32 %v4710_v34  ;;  %v3929_v11 = vmul.f32 0.6931472, %v7220_v15  ;;  %v2504_v31 = vsub.f32 %v12604_v61, %v2408_v32  ;;  %v5183_v2 = vmul.f32 %v5087_v59, %v4883_v18 }
 0x48a   : > { %v5419_v40 = vadd.s32 240, %v9567_v55  ;;  %v11488_v53 = vmul.f32 %v4519_v19, %v11193_v23  ;;  %v3754_v56 = vadd.f32 1.0, %v3658_v51  ;;  %v5084_v41 = vsub.f32 1.0, %v12595_v6 }
 0x48b   : > { %7235 = vpow2.f32 %v12605_v25  ;;  %v4034_v3 = vmul.f32 -0.505, %v3929_v11  ;;  %v2600_v58 = vmax.f32 %v2504_v31, 0.0  ;;  %v11493_v45 = vmul.f32 0.31184378, %v12606_v5 }
 0x48c   : > { %v3464_v28 = vmul.f32 1.442695, %v11143_v8  ;;  %v11497_v33 = vadd.f32 %v5183_v2, %v11422_v20  ;;  %7237 = vlog2.f32 %v3754_v56  ;;  %v7222_v59 = vpop.eup %7221  ;;  %v5092_v6 = vsub.f32 1.0, %v12593_v47 }
 0x48d   : > { %7239 = vpow2.f32 %v3466_v4  ;;  %v4216_v43 = vmul.f32 1.442695, %v4034_v3  ;;  %v4418_v52 = vadd.f32 -1.1652529, %v4034_v3  ;;  %v2792_v54 = vmax.f32 %v2600_v58, 0.0  ;;  %v7224_v44 = vpop.eup %7223 }
 0x48e   : > { %v5094_v30 = vsub.f32 1.0, %v12599_v42  ;;  %v4893_v9 = vmul.f32 0.6931472, %v7222_v59  ;;  %v11502_v7 = vadd.s32 %v9554_v63, %v5419_v40  ;;  %v7226_v50 = vpop.eup %7225  ;;  %v4877_v8 = vmul.f32 0.6931472, %v7224_v44 }
 0x48f   : > { %7241 = vpow2.f32 %v4216_v43  ;;  %v4514_v20 = vmax.f32 %v4418_v52, -27.631021  ;;  %v3656_v22 = vmul.f32 100.0, %v2792_v54  ;;  %v7228_v35 = vpop.eup %7227  ;;  %v11505_v38 = vmul.f32 0.31184378, %v12607_v0 }
 0x490   : > { %7243 = vpow2.f32 %v3464_v28  ;;  %v5188_v57 = vmul.f32 %v5092_v6, %v4893_v9  ;;  %v4325_v62 = vmul.f32 0.31184378, %v7226_v50  ;;  %v5180_v47 = vmul.f32 %v5084_v41, %v4877_v8 }
 0x491   : > { %v7230_v1 = vpop.eup %7229  ;;  %v11508_v42 = vmul.f32 %v4514_v20, %v11493_v45  ;;  %v3943_v14 = vmul.f32 0.6931472, %v7228_v35  ;;  %v3752_v24 = vadd.f32 1.0, %v3656_v22  ;;  %vm5494_vm7 = vcmp.lt.s32.totalorder %v11502_v7, 300 }
 0x492   : > { %v7232_v21 = vpop.eup %7231  ;;  %v5284_v26 = vadd.f32 %v5188_v57, %v11433_v17  ;;  %v4613_v34 = vsub.f32 1.0, %v4325_v62  ;;  %v3947_v32 = vmul.f32 0.6931472, %v7230_v1  ;;  %v5276_v18 = vadd.f32 %v5180_v47, %v11437_v37  ;;  %vm5591_vm2 = vmand %vm5494_vm7, %vm5498_vm14 }
 0x493   : > { %v7234_v15 = vpop.eup %7233  ;;  %v4327_v19 = vmul.f32 0.31184378, %v7232_v21  ;;  %v4041_v51 = vmul.f32 -0.505, %v3943_v14  ;;  %7245 = vlog2.f32 %v3752_v24  ;;  %v5375_v13 = vsub.f32 0.0, %v11497_v33 }
 0x494   : > { %v5380_v4 = vsub.f32 0.0, %v5284_v26  ;;  %v4897_v17 = vmul.f32 0.6931472, %v7234_v15  ;;  %v4709_v61 = vadd.f32 1e-12, %v4613_v34  ;;  %v5372_v2 = vsub.f32 0.0, %v5276_v18 }
 0x495   : > { %v7236_v31 = vpop.eup %7235  ;;  %v4615_v40 = vsub.f32 1.0, %v4327_v19  ;;  %v4230_v37 = vmul.f32 1.442695, %v4041_v51  ;;  %v4425_v56 = vadd.f32 -1.1652529, %v4041_v51  ;;  %v5678_v44 = vsel %vm5582_vm9, %v5375_v13, 0.0 }
 0x496   : > { %v7238_v41 = vpop.eup %7237  ;;  %v5683_v49 = vsel %vm5493_vm13, %v5380_v4, 0.0  ;;  %v5190_v25 = vmul.f32 %v5094_v30, %v4897_v17  ;;  %7247 = vlog2.f32 %v4709_v61  ;;  %v4043_v3 = vmul.f32 -0.505, %v3947_v32 }
 0x497   : > { %v7240_v58 = vpop.eup %7239  ;;  %v11529_v5 = vadd.f32 %v11459_v48, %v5683_v49  ;;  %v5675_v28 = vsel %vm11518_vm3, %v5372_v2, 0.0  ;;  %v4711_v33 = vadd.f32 1e-12, %v4615_v40  ;;  %7249 = vpow2.f32 %v4230_v37 }
 0x498   : > { %v5768_v59 = vadd.f32 %v11473_v10, %v5675_v28  ;;  %v5286_v27 = vadd.f32 %v5190_v25, %v11450_v36  ;;  %v4521_v43 = vmax.f32 %v4425_v56, -27.631021  ;;  %v4234_v52 = vmul.f32 1.442695, %v4043_v3 }
 0x499   : > { %v7242_v54 = vpop.eup %7241  ;;  %7251 = vlog2.f32 %v4711_v33  ;;  %v4427_v6 = vadd.f32 -1.1652529, %v4043_v3  ;;  %v3945_v30 = vmul.f32 0.6931472, %v7238_v41  ;;  %v11540_v22 = vmul.f32 0.31184378, %v7240_v58 }
 0x49a   : > { %v7244_v9 = vpop.eup %7243  ;;  %v5382_v50 = vsub.f32 0.0, %v5286_v27  ;;  %v4322_v48 = vmul.f32 0.31184378, %v7242_v54  ;;  %v11535_v8 = vadd.f32 %v5768_v59, %v5678_v44  ;;  %v11538_v20 = vmul.f32 %v4521_v43, %v11505_v38 }
 0x49b   : > { %7253 = vpow2.f32 %v4234_v52  ;;  %v4523_v10 = vmax.f32 %v4427_v6, -27.631021  ;;  %v4042_v36 = vmul.f32 -0.505, %v3945_v30  ;;  %v11550_v26 = vmul.f32 0.31184378, %v7244_v9 }
 0x49c   : > { %v5685_v35 = vsel %vm5494_vm7, %v5382_v50, 0.0  ;;  %v4610_v0 = vsub.f32 1.0, %v4322_v48  ;;  %v5093_v51 = vsub.f32 1.0, %v11407_v39  ;;  %v11556_v61 = vmul.f32 0.31184378, %v7236_v31 }
 0x49d   : > { %v7246_v57 = vpop.eup %7245  ;;  %v11545_v62 = vmul.f32 %v4523_v10, %v11540_v22  ;;  %v4232_v1 = vmul.f32 1.442695, %v4042_v36  ;;  %v4426_v47 = vadd.f32 -1.1652529, %v4042_v36  ;;  %v11548_v14 = vadd.f32 %v11476_v46, %v5685_v35 }
 0x49e   : > { %v4706_v24 = vadd.f32 1e-12, %v4610_v0  ;;  %v3941_v21 = vmul.f32 0.6931472, %v7246_v57  ;;  %v5095_v2 = vsub.f32 1.0, %v11193_v23  ;;  %v5090_v54 = vsub.f32 1.0, %v11493_v45 }
 0x49f   : > { %7255 = vpow2.f32 %v4232_v1  ;;  %v4522_v34 = vmax.f32 %v4426_v47, -27.631021  ;;  %v5420_v45 = vadd.s32 248, %v9567_v55 }
 0x4a0   : > { %v7248_v32 = vpop.eup %7247  ;;  %7257 = vlog2.f32 %v4706_v24  ;;  %v4040_v15 = vmul.f32 -0.505, %v3941_v21 }
 0x4a1   : > { %v7250_v18 = vpop.eup %7249  ;;  %v4895_v19 = vmul.f32 0.6931472, %v7248_v32  ;;  %v11554_v13 = vmul.f32 %v4522_v34, %v11550_v26  ;;  %v5454_v55 = vadd.s32 %v9554_v63, %v5420_v45 }
 0x4a2   : > { %v4329_v4 = vmul.f32 0.31184378, %v7250_v18  ;;  %v4228_v11 = vmul.f32 1.442695, %v4040_v15  ;;  %v4424_v46 = vadd.f32 -1.1652529, %v4040_v15 }
 0x4a3   : > { %v7252_v17 = vpop.eup %7251  ;;  %v5189_v40 = vmul.f32 %v5093_v51, %v4895_v19  ;;  %v5099_v15 = vsub.f32 1.0, %v11540_v22  ;;  %vm5495_vm11 = vcmp.lt.s32.totalorder %v5454_v55, 300 }
 0x4a4   : > { %v4899_v37 = vmul.f32 0.6931472, %v7252_v17  ;;  %v4617_v56 = vsub.f32 1.0, %v4329_v4  ;;  %7259 = vpow2.f32 %v4228_v11  ;;  %v4520_v41 = vmax.f32 %v4424_v46, -27.631021  ;;  %vm5594_vm4 = vmand %vm5495_vm11, %vm5498_vm14 }
 0x4a5   : > { %v7254_v49 = vpop.eup %7253  ;;  %v5285_v25 = vadd.f32 %v5189_v40, %v11479_v12 }
 0x4a6   : > { %v5191_v39 = vmul.f32 %v5095_v2, %v4899_v37  ;;  %v4713_v3 = vadd.f32 1e-12, %v4617_v56  ;;  %v4331_v58 = vmul.f32 0.31184378, %v7254_v49  ;;  %v11561_v28 = vmul.f32 %v4520_v41, %v11556_v61 }
 0x4a7   : > { %v5381_v36 = vsub.f32 0.0, %v5285_v25  ;;  %v5096_v2 = vsub.f32 1.0, %v11556_v61 }
 0x4a8   : > { %v5287_v33 = vadd.f32 %v5191_v39, %v11488_v53  ;;  %7261 = vlog2.f32 %v4713_v3  ;;  %v4619_v31 = vsub.f32 1.0, %v4331_v58 }
 0x4a9   : > { %v7256_v59 = vpop.eup %7255  ;;  %v5684_v24 = vsel %vm5588_vm15, %v5381_v36, 0.0 }
 0x4aa   : > { %v7258_v23 = vpop.eup %7257  ;;  %v5383_v27 = vsub.f32 0.0, %v5287_v33  ;;  %v4715_v43 = vadd.f32 1e-12, %v4619_v31  ;;  %v4330_v52 = vmul.f32 0.31184378, %v7256_v59 }
 0x4ab   : > { %v4889_v44 = vmul.f32 0.6931472, %v7258_v23 }
 0x4ac   : > { %v5686_v12 = vsel %vm5494_vm7, %v5383_v27, 0.0  ;;  %7263 = vlog2.f32 %v4715_v43  ;;  %v4618_v6 = vsub.f32 1.0, %v4330_v52 }
 0x4ad   : > { %v5186_v30 = vmul.f32 %v5090_v54, %v4889_v44  ;;  %v5779_v9 = vadd.f32 %v11529_v5, %v5686_v12 }
 0x4ae   : > { %v7260_v50 = vpop.eup %7259  ;;  %v4714_v53 = vadd.f32 1e-12, %v4618_v6 }
 0x4af   : > { %v5282_v48 = vadd.f32 %v5186_v30, %v11508_v42  ;;  %v4328_v10 = vmul.f32 0.31184378, %v7260_v50  ;;  %v5097_v42 = vsub.f32 1.0, %v11505_v38 }
 0x4b0   : > { %7265 = vlog2.f32 %v4714_v53 }
 0x4b1   : > { %v5378_v35 = vsub.f32 0.0, %v5282_v48  ;;  %v4616_v0 = vsub.f32 1.0, %v4328_v10 }
 0x4b2   : > { %v7262_v57 = vpop.eup %7261 }
 0x4b3   : > { %v5681_v5 = vsel %vm5585_vm0, %v5378_v35, 0.0  ;;  %v4903_v1 = vmul.f32 0.6931472, %v7262_v57  ;;  %v4712_v16 = vadd.f32 1e-12, %v4616_v0 }
 0x4b4   : > { %v5774_v47 = vadd.f32 %v11535_v8, %v5681_v5  ;;  %v5098_v8 = vsub.f32 1.0, %v11550_v26 }
 0x4b5   : > { %v5193_v21 = vmul.f32 %v5097_v42, %v4903_v1  ;;  %7267 = vlog2.f32 %v4712_v16 }
 0x4b6   : > { %v7264_v34 = vpop.eup %7263  ;;  %v5777_v32 = vadd.f32 %v5774_v47, %v5684_v24 }
 0x4b7   : > { %v5289_v29 = vadd.f32 %v5193_v21, %v11538_v20  ;;  %v4907_v18 = vmul.f32 0.6931472, %v7264_v34 }
 0x4b9   : > { %v5385_v38 = vsub.f32 0.0, %v5289_v29  ;;  %v5195_v19 = vmul.f32 %v5099_v15, %v4907_v18 }
 0x4ba   : > { %v7266_v51 = vpop.eup %7265 }
 0x4bb   : > { %v5291_v63 = vadd.f32 %v5195_v19, %v11545_v62  ;;  %v4905_v4 = vmul.f32 0.6931472, %v7266_v51  ;;  %v5688_v11 = vsel %vm5495_vm11, %v5385_v38, 0.0 }
 0x4bc   : > { %v5781_v46 = vadd.f32 %v11548_v14, %v5688_v11 }
 0x4bd   : > { %v5194_v17 = vmul.f32 %v5098_v8, %v4905_v4  ;;  %v5387_v14 = vsub.f32 0.0, %v5291_v63 }
 0x4be   : > { %5790 = vst [vmem:[%s251_s14] sm:$0xff] %v5781_v46 }
 0x4bf   : > { %v7268_v22 = vpop.eup %7267  ;;  %v5290_v20 = vadd.f32 %v5194_v17, %v11554_v13  ;;  %v5690_v25 = vsel %vm5594_vm4, %v5387_v14, 0.0 }
 0x4c0   : > { %v4901_v40 = vmul.f32 0.6931472, %v7268_v22 }
 0x4c1   : > { %v5386_v37 = vsub.f32 0.0, %v5290_v20 }
 0x4c2   : > { %v5192_v56 = vmul.f32 %v5096_v2, %v4901_v40 }
 0x4c3   : > { %v5689_v26 = vsel %vm5495_vm11, %v5386_v37, 0.0 }
 0x4c4   : > { %v5288_v62 = vadd.f32 %v5192_v56, %v11561_v28  ;;  %v5782_v41 = vadd.f32 %v5779_v9, %v5689_v26 }
 0x4c6   : > { %v5384_v13 = vsub.f32 0.0, %v5288_v62  ;;  %5791 = vst [vmem:[%s251_s14 + $0x8] sm:$0xff] %v5782_v41 }
 0x4c8   : > { %v5687_v61 = vsel %vm5591_vm2, %v5384_v13, 0.0 }
 0x4c9   : > { %v5780_v49 = vadd.f32 %v5777_v32, %v5687_v61 }
 0x4cb   : > { %v5783_v39 = vadd.f32 %v5780_v49, %v5690_v25 }
 0x4cd   : > { %5792 = vst [vmem:[%s251_s14 + $0x10] sm:$0xff] %v5783_v39 }
 0x4ce   : > { %7282 = shalt.err (!%p7279_p5)
}
 0x4cf   : > { %s7283_s7 = scalar_lea.hbm %s11605_s29, 384  ;;  %s7287_s11 = scalar_lea.hbm %s11658_s4, 768 }
 0x4d0   : > { %p7284_p6 = scmp.ne.s32.totalorder %s11605_s29, %s7283_s7  ;;  %p7288_p10 = scmp.lt.u32.totalorder %s11605_s29, %s11658_s4 }
 0x4d1   : > { %p7289_p11 = scmp.lt.u32.totalorder %s7287_s11, %s7283_s7  ;;  %p7291_p13 = scmp.lt.u32.totalorder %s7283_s7, %s11605_s29 }
 0x4d2   : > { %p7285_p7 = pnand %p7284_p6, %p7416_p4 }
 0x4d3   : > { %p7290_p12 = por %p7289_p11, %p7288_p10 }
 0x4d4   : > { %p7286_p9 = pneg %p7285_p7 }
 0x4d5   : > { %p7292_p0 = por %p7291_p13, %p7290_p12 }
 0x4d7   : > { %p7293_p1 = pnand %p7292_p0, %p7286_p9 }
 0x4d9   : > { %7296 = shalt.err (!%p7293_p1)
}
 0x4da   : > { %6253 = dma.vmem_to_hbm [thread:$0]  (%p7416_p4), %s11607_s22, 384, %s11605_s29, %s5794_s30  }
 0x4db PF: > { %p6259_p2 = scmp.ge.s32.totalorder %s7347_s20, 2  ;;  %s5820_s14 = sand.u32 1, %s7327_s15  }
 0x4dc   : > { %s5821_s21 = scalar_lea.sflag [#allocation3], %s5820_s14 }
 0x4dd   : > { %p6256_p3 = pnand %p6259_p2, %p7423_p8 }
 0x4df   : > { %7322 = dma.done.wait (!%p6256_p3), %s5821_s21, 384  }
 0x4e0   : > { %7324 = vsyncadd (!%p6256_p3), %s5821_s21, 4294966912  ;;  %s17_s20 = sadd.s32 1, %s7347_s20   ;;  %s12610_s15 = smov %s7331_s16 }
 0x4e1   : > { %p14_p5 = scmp.ge.s32.totalorder %s17_s20, 4   ;;  %s12611_s16 = smov %s7335_s17 }
 0x4e2   : > { %s12612_s17 = smov %s7429_s28  ;;  %s12613_s18 = smov %s7343_s19 }
 0x4e3   : > { %s12614_s19 = smov %s12616_s23  ;;  %16 = sbr.rel (!%p14_p5) target bundleno = 4 (0x4), region = 84 }
 0x4ea   :  { %5826 = vsyncpa [#allocation3], 1 }
 0x4eb   :  { %5828 = vsyncpa [#allocation3 + $0x1], 1 }

</bundles_post_ra>
